<compile_context>
chip_gen: v5e
topology: v5e:2x2
jax: 0.10.0
libtpu: 0.0.40
codegen_flags: <defaults>
</compile_context>

<pallas_src>
import functools

import jax
import jax.numpy as jnp
from jax.experimental import pallas as pl
from jax.experimental.pallas import tpu as pltpu


HW = 7 * 7            # pooled spatial size (7x7)
C_FE = 192            # feature_extractor output channels (stand-in)
C_MB = 1280           # mobilenet_v2 feature channels
C_CHUNK = 128         # mobilenet channel tile (keeps live vregs well under 64)
D_FLAT = C_FE * HW    # 9408 = LayerNorm([192,7,7]) / image_mlp input width
D_PAD = 9472          # 74*128: D_FLAT zero-padded to a lane multiple
TK = 4736             # 37*128: K tile of the head matmul (2 steps)
N_HIDDEN = 256        # image_mlp hidden width
NH = 128              # hidden columns handled per "parallel" head step
NUM_CLASSES = 2


# ----------------------------------------------------------------------------
# Kernel 1: backbone convs + fused 2x2 avg-pool + conv_adjust + add + LayerNorm
# ----------------------------------------------------------------------------
def _backbone_kernel(x_ref, few_ref, feb_ref, mbw_ref, mbb_ref,
                     adjw_ref, adjb_ref, g_ref, beta_ref, o_ref, *, eps):
    n_win = x_ref.shape[0]          # pooling-window corners (4 for 14x14 input)
    inv_n = 1.0 / float(n_win)

    # ---- mobilenet stand-in (3->1280) + ReLU + pool + conv_adjust (1280->192)
    # tiled over C_CHUNK channels; the (49,1280) map never exists.
    adj = jnp.zeros((HW, C_FE), jnp.float32)
    for c0 in range(0, C_MB, C_CHUNK):
        mbw_c = mbw_ref[:, c0:c0 + C_CHUNK]                          # (3, 128)
        mbb_c = jnp.broadcast_to(mbb_ref[:, c0:c0 + C_CHUNK],
                                 (HW, C_CHUNK))                      # hoisted
        mb_acc = jnp.zeros((HW, C_CHUNK), jnp.float32)
        for p in range(n_win):
            mb = jnp.dot(x_ref[p], mbw_c,
                         preferred_element_type=jnp.float32) + mbb_c
            mb_acc = mb_acc + jnp.maximum(mb, 0.0)                   # ReLU->pool
        adj = adj + jnp.dot(mb_acc * inv_n, adjw_ref[c0:c0 + C_CHUNK, :],
                            preferred_element_type=jnp.float32)      # (49,192)

    # ---- feature_extractor stand-in: 1x1 conv 3->192 + ReLU, fused 2x2 pool.
    feb = jnp.broadcast_to(feb_ref[...], (HW, C_FE))                 # hoisted
    fe_acc = jnp.zeros((HW, C_FE), jnp.float32)
    for p in range(n_win):
        fe = jnp.dot(x_ref[p], few_ref[...],
                     preferred_element_type=jnp.float32) + feb
        fe_acc = fe_acc + jnp.maximum(fe, 0.0)
    fe_pool = fe_acc * inv_n                                         # (49, 192)

    shortcut = fe_pool + adj + adjb_ref[...]                         # residual

    # ---- image_norm: LayerNorm over all 192*7*7 elements of this sample.
    # Lane-reduce per row, then a tiny (1,49)@(49,1) dot for the cross-sublane
    # sum; everything stays rank-2.
    inv_d = 1.0 / float(D_FLAT)
    ones_hw = jnp.ones((1, HW), jnp.float32)
    row_sum = jnp.sum(shortcut, axis=-1, keepdims=True)              # (49,1)
    mean = jnp.dot(ones_hw, row_sum,
                   preferred_element_type=jnp.float32) * inv_d       # (1,1)
    xc = shortcut - mean
    row_ss = jnp.sum(xc * xc, axis=-1, keepdims=True)
    var = jnp.dot(ones_hw, row_ss,
                  preferred_element_type=jnp.float32) * inv_d        # (1,1)
    inv = jax.lax.rsqrt(var + eps)
    o_ref[0] = (xc * inv) * g_ref[...] + beta_ref[...]               # (49,192)


def pallas_backbone(x_win, batch, few, feb, mbw, mbb, adjw, adjb, ln_g, ln_b,
                    *, eps=1e-5):
    total, hw, c_in = x_win.shape
    n_win = total // batch
    kernel = functools.partial(_backbone_kernel, eps=eps)
    return pl.pallas_call(
        kernel,
        out_shape=jax.ShapeDtypeStruct((batch, HW, C_FE), jnp.float32),
        grid_spec=pltpu.PrefetchScalarGridSpec(
            num_scalar_prefetch=0,
            grid=(batch,),
            in_specs=[
                pl.BlockSpec((n_win, hw, c_in), lambda b: (b, 0, 0)),  # pixels
                pl.BlockSpec((3, C_FE), lambda b: (0, 0)),
                pl.BlockSpec((1, C_FE), lambda b: (0, 0)),
                pl.BlockSpec((3, C_MB), lambda b: (0, 0)),
                pl.BlockSpec((1, C_MB), lambda b: (0, 0)),
                pl.BlockSpec((C_MB, C_FE), lambda b: (0, 0)),
                pl.BlockSpec((1, C_FE), lambda b: (0, 0)),
                pl.BlockSpec((HW, C_FE), lambda b: (0, 0)),
                pl.BlockSpec((HW, C_FE), lambda b: (0, 0)),
            ],
            out_specs=pl.BlockSpec((1, HW, C_FE), lambda b: (b, 0, 0)),
        ),
        compiler_params=pltpu.CompilerParams(
            dimension_semantics=("parallel",)),
    )(x_win, few, feb, mbw, mbb, adjw, adjb, ln_g, ln_b)


# ----------------------------------------------------------------------------
# Kernel 2: image_mlp, K-tiled over D_PAD and split over two hidden halves
# ----------------------------------------------------------------------------
def _head_matmul_kernel(x_ref, w1_ref, b1_ref, w2_ref, po_ref, acc_ref):
    k = pl.program_id(1)

    @pl.when(k == 0)
    def _():
        acc_ref[...] = jnp.zeros_like(acc_ref)

    # bf16 weight stream, bf16 x cast (tiny), f32 accumulate on the MXU.
    acc_ref[...] += jnp.dot(x_ref[...].astype(jnp.bfloat16), w1_ref[...],
                            preferred_element_type=jnp.float32)

    @pl.when(k == pl.num_programs(1) - 1)
    def _():
        hidden = jnp.maximum(acc_ref[...] + b1_ref[...], 0.0)        # (B, NH)
        po_ref[0] = jnp.dot(hidden, w2_ref[...],
                            preferred_element_type=jnp.float32)      # (B, 2)


def pallas_head_matmul(x_flat, w1, b1, w2):
    B = x_flat.shape[0]
    nh_blocks = N_HIDDEN // NH          # 2: one per TensorCore on v7x
    nk = D_PAD // TK                    # 2: double-buffered weight stream
    return pl.pallas_call(
        _head_matmul_kernel,
        out_shape=jax.ShapeDtypeStruct((nh_blocks, B, NUM_CLASSES), jnp.float32),
        grid_spec=pltpu.PrefetchScalarGridSpec(
            num_scalar_prefetch=0,
            grid=(nh_blocks, nk),
            in_specs=[
                pl.BlockSpec((B, TK), lambda h, k: (0, k)),           # x tile
                pl.BlockSpec((TK, NH), lambda h, k: (k, h)),          # w1 tile
                pl.BlockSpec((1, NH), lambda h, k: (0, h)),           # b1 half
                pl.BlockSpec((NH, NUM_CLASSES), lambda h, k: (h, 0)), # w2 half
            ],
            out_specs=pl.BlockSpec((1, B, NUM_CLASSES), lambda h, k: (h, 0, 0)),
            scratch_shapes=[pltpu.VMEM((B, NH), jnp.float32)],
        ),
        compiler_params=pltpu.CompilerParams(
            dimension_semantics=("parallel", "arbitrary")),
    )(x_flat, w1, b1, w2)


# ----------------------------------------------------------------------------
# Kernel 3: combine halves + numeric SimpleMLP + fusion blend + softmax
# ----------------------------------------------------------------------------
def _fuse_kernel(fw_ref, part_ref, b2_ref, xn_ref,
                 mw1_ref, mb1_ref, mw2_ref, mb2_ref, o_ref):
    logits_img = part_ref[0]
    for hh in range(1, part_ref.shape[0]):
        logits_img = logits_img + part_ref[hh]
    logits_img = logits_img + b2_ref[...]                             # (B, 2)

    # numeric branch: SimpleMLP(2 -> 64 -> 2)
    n1 = jnp.dot(xn_ref[...], mw1_ref[...], preferred_element_type=jnp.float32)
    n1 = jnp.maximum(n1 + mb1_ref[...], 0.0)                          # (B, 64)
    n2 = jnp.dot(n1, mw2_ref[...],
                 preferred_element_type=jnp.float32) + mb2_ref[...]   # (B, 2)

    # fused_logits = w*logits_image + (1-w)*x_numeric ; softmax(dim=-1)
    w = fw_ref[0, 0]
    fused = w * logits_img + (1.0 - w) * n2
    m = jnp.max(fused, axis=-1, keepdims=True)
    e = jnp.exp(fused - m)
    o_ref[...] = e / jnp.sum(e, axis=-1, keepdims=True)


def pallas_fuse(fusion_w, partial, b2, xn, mw1, mb1, mw2, mb2):
    B = xn.shape[0]
    nh_blocks = partial.shape[0]
    return pl.pallas_call(
        _fuse_kernel,
        out_shape=jax.ShapeDtypeStruct((B, NUM_CLASSES), jnp.float32),
        grid_spec=pltpu.PrefetchScalarGridSpec(
            num_scalar_prefetch=0,
            grid=(1,),
            in_specs=[
                pl.BlockSpec(memory_space=pltpu.MemorySpace.SMEM),    # fusion w
                pl.BlockSpec((nh_blocks, B, NUM_CLASSES), lambda i: (0, 0, 0)),
                pl.BlockSpec((1, NUM_CLASSES), lambda i: (0, 0)),
                pl.BlockSpec((B, 2), lambda i: (0, 0)),
                pl.BlockSpec((2, 64), lambda i: (0, 0)),
                pl.BlockSpec((1, 64), lambda i: (0, 0)),
                pl.BlockSpec((64, NUM_CLASSES), lambda i: (0, 0)),
                pl.BlockSpec((1, NUM_CLASSES), lambda i: (0, 0)),
            ],
            out_specs=pl.BlockSpec((B, NUM_CLASSES), lambda i: (0, 0)),
        ),
        compiler_params=pltpu.CompilerParams(
            dimension_semantics=("arbitrary",)),
    )(fusion_w, partial, b2, xn, mw1, mb1, mw2, mb2)


# ----------------------------------------------------------------------------
# Parameters (deterministic synthetic init; shapes follow the module __init__)
# ----------------------------------------------------------------------------
def init_params(key):
    ks = jax.random.split(key, 8)

    def w(k, shape, scale=0.02):
        return (scale * jax.random.normal(k, shape)).astype(jnp.float32)

    # image_norm: LayerNorm([192, 7, 7]); PyTorch layout (C,H,W) permuted once
    # to the kernel's (hw, c) layout.
    ln_g_pt = jnp.ones((C_FE, 7, 7), jnp.float32)
    ln_b_pt = jnp.zeros((C_FE, 7, 7), jnp.float32)
    ln_g = jnp.transpose(ln_g_pt.reshape(C_FE, HW), (1, 0))       # (49, 192)
    ln_b = jnp.transpose(ln_b_pt.reshape(C_FE, HW), (1, 0))

    # image_mlp first Linear: PyTorch flattens channel-major (c*49+hw); the
    # kernel flattens hw-major (hw*192+c).  Permute ONCE, zero-pad the K dim to
    # a lane multiple (Pallas does not zero-fill partial blocks) and store in
    # bf16 to halve the dominant HBM stream (accumulation stays f32).
    img_w1_pt = w(ks[3], (D_FLAT, N_HIDDEN))
    img_w1 = jnp.transpose(img_w1_pt.reshape(C_FE, HW, N_HIDDEN),
                           (1, 0, 2)).reshape(D_FLAT, N_HIDDEN)
    img_w1 = jnp.pad(img_w1, ((0, D_PAD - D_FLAT), (0, 0))).astype(jnp.bfloat16)

    return dict(
        # TODO(synk): FeatureExtractor(input_nc=3, dwt_out_nc=64, ffc_out_nc=96)
        # is not defined in the source; stand-in = 1x1 conv 3->192 (+ReLU).
        fe_w=w(ks[0], (3, C_FE)), fe_b=jnp.zeros((1, C_FE), jnp.float32),
        # TODO(synk): pretrained mobilenet_v2.features is not loadable here;
        # stand-in = 1x1 conv 3->1280 (+ReLU) producing the 1280-channel map.
        mb_w=w(ks[1], (3, C_MB)), mb_b=jnp.zeros((1, C_MB), jnp.float32),
        # conv_adjust: Conv2d(1280, 192, kernel_size=1)
        adj_w=w(ks[2], (C_MB, C_FE)), adj_b=jnp.zeros((1, C_FE), jnp.float32),
        ln_g=ln_g, ln_b=ln_b,
        img_w1=img_w1, img_b1=jnp.zeros((1, N_HIDDEN), jnp.float32),
        img_w2=w(ks[4], (N_HIDDEN, NUM_CLASSES)),
        img_b2=jnp.zeros((1, NUM_CLASSES), jnp.float32),
        # TODO(synk): SimpleMLP(input_dim=2, hidden_dim=64) body is not defined;
        # assumed Linear(2,64)->ReLU->Linear(64,2) so it fuses with [B,2] logits.
        mlp_w1=w(ks[5], (2, 64)), mlp_b1=jnp.zeros((1, 64), jnp.float32),
        mlp_w2=w(ks[6], (64, NUM_CLASSES)),
        mlp_b2=jnp.zeros((1, NUM_CLASSES), jnp.float32),
        # fusion_weight = nn.Parameter(torch.tensor(0.5))
        fusion_w=jnp.array([[0.5]], jnp.float32),
    )


# ----------------------------------------------------------------------------
# Forward pass
# ----------------------------------------------------------------------------
def forward(params, x_image, x_numeric):
    B, C, H, W = x_image.shape             # NCHW (PyTorch convention), C=3
    ph, pw = H // 7, W // 7                 # adaptive-pool window size

    # Tiny JAX glue (few KB): channels-last + split every (ph x pw) pooling
    # window into a leading "corner" axis so the pool is fused in-kernel.
    x = jnp.transpose(x_image, (0, 2, 3, 1))                      # (B,H,W,3)
    x = x.reshape(B, 7, ph, 7, pw, C)
    x = jnp.transpose(x, (0, 2, 4, 1, 3, 5)).reshape(B * ph * pw, HW, C)

    # backbone + pool + conv_adjust + residual add + image_norm, one kernel
    shortcut = pallas_backbone(
        x, B, params['fe_w'], params['fe_b'], params['mb_w'], params['mb_b'],
        params['adj_w'], params['adj_b'], params['ln_g'], params['ln_b'])
    # (B,49,192) -> (B,9408) row-major flatten (weights pre-permuted), then
    # zero-pad K to D_PAD so all head blocks are full (no garbage reads).
    x_flat = shortcut.reshape(B, D_FLAT)
    x_flat = jnp.pad(x_flat, ((0, 0), (0, D_PAD - D_FLAT)))

    # image_mlp: K-tiled, hidden-split partial logits (2, B, 2)
    partial = pallas_head_matmul(x_flat, params['img_w1'], params['img_b1'],
                                 params['img_w2'])

    xn = x_numeric[..., 0]                  # squeeze(-1) -> (B, 2)

    # combine halves + SimpleMLP + fusion blend + softmax
    probs = pallas_fuse(params['fusion_w'], partial, params['img_b2'], xn,
                        params['mlp_w1'], params['mlp_b1'],
                        params['mlp_w2'], params['mlp_b2'])
    return probs


# ----------------------------------------------------------------------------
if __name__ == "__main__":
    key = jax.random.PRNGKey(0)
    k_img, k_num, k_par = jax.random.split(key, 3)

    B = 2
    # Small image: 14x14 so both adaptive pools to (7,7) are exact 2x2 means.
    x_image = jax.random.normal(k_img, (B, 3, 14, 14), dtype=jnp.float32)
    x_numeric = jax.random.normal(k_num, (B, 2, 1), dtype=jnp.float32)

    params = init_params(k_par)

    probs = jax.jit(forward)(params, x_image, x_numeric)
    probs = jax.block_until_ready(probs)

    assert probs.shape == (B, 2), probs.shape
    assert bool(jnp.all(jnp.isfinite(probs)))
    # rows of a softmax must sum to 1
    assert bool(jnp.allclose(jnp.sum(probs, axis=-1), 1.0, atol=1e-5))
    print("KERNEL_OK")
</pallas_src>

<mosaic_0001>
module attributes {stable_mosaic.version = 11 : i64} {
  func.func @_backbone_kernel(%arg0: i32, %arg1: memref<4x49x3xf32, #tpu.memory_space<vmem>>, %arg2: memref<3x192xf32, #tpu.memory_space<vmem>>, %arg3: memref<1x192xf32, #tpu.memory_space<vmem>>, %arg4: memref<3x1280xf32, #tpu.memory_space<vmem>>, %arg5: memref<1x1280xf32, #tpu.memory_space<vmem>>, %arg6: memref<1280x192xf32, #tpu.memory_space<vmem>>, %arg7: memref<1x192xf32, #tpu.memory_space<vmem>>, %arg8: memref<49x192xf32, #tpu.memory_space<vmem>>, %arg9: memref<49x192xf32, #tpu.memory_space<vmem>>, %arg10: memref<1x49x192xf32, #tpu.memory_space<vmem>>) attributes {dimension_semantics = [#tpu.dimension_semantics<parallel>], iteration_bounds = array<i64: 2>, scalar_prefetch = 0 : i64, scratch_operands = 0 : i64, tpu.core_type = #tpu.core_type<tc>, window_params = [{transform_indices = @transform_0, window_bounds = array<i64: 4, 49, 3>}, {pipeline_mode = #tpu.pipeline_mode<synchronous>, transform_indices = @transform_1, window_bounds = array<i64: 3, 192>}, {pipeline_mode = #tpu.pipeline_mode<synchronous>, transform_indices = @transform_2, window_bounds = array<i64: 1, 192>}, {pipeline_mode = #tpu.pipeline_mode<synchronous>, transform_indices = @transform_3, window_bounds = array<i64: 3, 1280>}, {pipeline_mode = #tpu.pipeline_mode<synchronous>, transform_indices = @transform_4, window_bounds = array<i64: 1, 1280>}, {pipeline_mode = #tpu.pipeline_mode<synchronous>, transform_indices = @transform_5, window_bounds = array<i64: 1280, 192>}, {pipeline_mode = #tpu.pipeline_mode<synchronous>, transform_indices = @transform_6, window_bounds = array<i64: 1, 192>}, {pipeline_mode = #tpu.pipeline_mode<synchronous>, transform_indices = @transform_7, window_bounds = array<i64: 49, 192>}, {pipeline_mode = #tpu.pipeline_mode<synchronous>, transform_indices = @transform_8, window_bounds = array<i64: 49, 192>}, {transform_indices = @transform_9, window_bounds = array<i64: 1, 49, 192>}]} {
    %cst = arith.constant 0.000000e+00 : f32
    %0 = vector.broadcast %cst : f32 to vector<49x192xf32>
    %c0 = arith.constant 0 : index
    %c0_0 = arith.constant 0 : index
    %1 = vector.load %arg4[%c0, %c0_0] : memref<3x1280xf32, #tpu.memory_space<vmem>>, vector<3x128xf32>
    %c0_1 = arith.constant 0 : index
    %c0_2 = arith.constant 0 : index
    %2 = vector.load %arg5[%c0_1, %c0_2] : memref<1x1280xf32, #tpu.memory_space<vmem>>, vector<1x128xf32>
    %3 = vector.shape_cast %2 : vector<1x128xf32> to vector<1x128xf32>
    %4 = vector.broadcast %3 : vector<1x128xf32> to vector<49x128xf32>
    %cst_3 = arith.constant 0.000000e+00 : f32
    %5 = vector.broadcast %cst_3 : f32 to vector<49x128xf32>
    %c0_4 = arith.constant 0 : index
    %c0_5 = arith.constant 0 : index
    %c0_6 = arith.constant 0 : index
    %6 = vector.load %arg1[%c0_4, %c0_5, %c0_6] : memref<4x49x3xf32, #tpu.memory_space<vmem>>, vector<1x49x3xf32>
    %7 = vector.shape_cast %6 : vector<1x49x3xf32> to vector<49x3xf32>
    %cst_7 = arith.constant dense<0.000000e+00> : vector<49x128xf32>
    %8 = tpu.matmul %7, %1, %cst_7 {dimension_numbers = #tpu.dot_dimension_numbers<[1], [0], [0], [1], [0, 0, 1, 1], [], []>} : vector<49x3xf32>, vector<3x128xf32>, vector<49x128xf32> -> vector<49x128xf32>
    %9 = arith.addf %8, %4 : vector<49x128xf32>
    %cst_8 = arith.constant 0.000000e+00 : f32
    %10 = vector.broadcast %cst_8 : f32 to vector<49x128xf32>
    %11 = arith.maximumf %9, %10 : vector<49x128xf32>
    %12 = arith.addf %5, %11 : vector<49x128xf32>
    %c1 = arith.constant 1 : index
    %c0_9 = arith.constant 0 : index
    %c0_10 = arith.constant 0 : index
    %13 = vector.load %arg1[%c1, %c0_9, %c0_10] : memref<4x49x3xf32, #tpu.memory_space<vmem>>, vector<1x49x3xf32>
    %14 = vector.shape_cast %13 : vector<1x49x3xf32> to vector<49x3xf32>
    %cst_11 = arith.constant dense<0.000000e+00> : vector<49x128xf32>
    %15 = tpu.matmul %14, %1, %cst_11 {dimension_numbers = #tpu.dot_dimension_numbers<[1], [0], [0], [1], [0, 0, 1, 1], [], []>} : vector<49x3xf32>, vector<3x128xf32>, vector<49x128xf32> -> vector<49x128xf32>
    %16 = arith.addf %15, %4 : vector<49x128xf32>
    %cst_12 = arith.constant 0.000000e+00 : f32
    %17 = vector.broadcast %cst_12 : f32 to vector<49x128xf32>
    %18 = arith.maximumf %16, %17 : vector<49x128xf32>
    %19 = arith.addf %12, %18 : vector<49x128xf32>
    %c2 = arith.constant 2 : index
    %c0_13 = arith.constant 0 : index
    %c0_14 = arith.constant 0 : index
    %20 = vector.load %arg1[%c2, %c0_13, %c0_14] : memref<4x49x3xf32, #tpu.memory_space<vmem>>, vector<1x49x3xf32>
    %21 = vector.shape_cast %20 : vector<1x49x3xf32> to vector<49x3xf32>
    %cst_15 = arith.constant dense<0.000000e+00> : vector<49x128xf32>
    %22 = tpu.matmul %21, %1, %cst_15 {dimension_numbers = #tpu.dot_dimension_numbers<[1], [0], [0], [1], [0, 0, 1, 1], [], []>} : vector<49x3xf32>, vector<3x128xf32>, vector<49x128xf32> -> vector<49x128xf32>
    %23 = arith.addf %22, %4 : vector<49x128xf32>
    %cst_16 = arith.constant 0.000000e+00 : f32
    %24 = vector.broadcast %cst_16 : f32 to vector<49x128xf32>
    %25 = arith.maximumf %23, %24 : vector<49x128xf32>
    %26 = arith.addf %19, %25 : vector<49x128xf32>
    %c3 = arith.constant 3 : index
    %c0_17 = arith.constant 0 : index
    %c0_18 = arith.constant 0 : index
    %27 = vector.load %arg1[%c3, %c0_17, %c0_18] : memref<4x49x3xf32, #tpu.memory_space<vmem>>, vector<1x49x3xf32>
    %28 = vector.shape_cast %27 : vector<1x49x3xf32> to vector<49x3xf32>
    %cst_19 = arith.constant dense<0.000000e+00> : vector<49x128xf32>
    %29 = tpu.matmul %28, %1, %cst_19 {dimension_numbers = #tpu.dot_dimension_numbers<[1], [0], [0], [1], [0, 0, 1, 1], [], []>} : vector<49x3xf32>, vector<3x128xf32>, vector<49x128xf32> -> vector<49x128xf32>
    %30 = arith.addf %29, %4 : vector<49x128xf32>
    %cst_20 = arith.constant 0.000000e+00 : f32
    %31 = vector.broadcast %cst_20 : f32 to vector<49x128xf32>
    %32 = arith.maximumf %30, %31 : vector<49x128xf32>
    %33 = arith.addf %26, %32 : vector<49x128xf32>
    %cst_21 = arith.constant 2.500000e-01 : f32
    %34 = vector.broadcast %cst_21 : f32 to vector<49x128xf32>
    %35 = arith.mulf %33, %34 : vector<49x128xf32>
    %c0_22 = arith.constant 0 : index
    %c0_23 = arith.constant 0 : index
    %36 = vector.load %arg6[%c0_22, %c0_23] : memref<1280x192xf32, #tpu.memory_space<vmem>>, vector<128x192xf32>
    %cst_24 = arith.constant dense<0.000000e+00> : vector<49x192xf32>
    %37 = tpu.matmul %35, %36, %cst_24 {dimension_numbers = #tpu.dot_dimension_numbers<[1], [0], [0], [1], [0, 0, 1, 1], [], []>} : vector<49x128xf32>, vector<128x192xf32>, vector<49x192xf32> -> vector<49x192xf32>
    %38 = arith.addf %0, %37 : vector<49x192xf32>
    %c0_25 = arith.constant 0 : index
    %c128 = arith.constant 128 : index
    %39 = vector.load %arg4[%c0_25, %c128] : memref<3x1280xf32, #tpu.memory_space<vmem>>, vector<3x128xf32>
    %c0_26 = arith.constant 0 : index
    %c128_27 = arith.constant 128 : index
    %40 = vector.load %arg5[%c0_26, %c128_27] : memref<1x1280xf32, #tpu.memory_space<vmem>>, vector<1x128xf32>
    %41 = vector.shape_cast %40 : vector<1x128xf32> to vector<1x128xf32>
    %42 = vector.broadcast %41 : vector<1x128xf32> to vector<49x128xf32>
    %cst_28 = arith.constant 0.000000e+00 : f32
    %43 = vector.broadcast %cst_28 : f32 to vector<49x128xf32>
    %c0_29 = arith.constant 0 : index
    %c0_30 = arith.constant 0 : index
    %c0_31 = arith.constant 0 : index
    %44 = vector.load %arg1[%c0_29, %c0_30, %c0_31] : memref<4x49x3xf32, #tpu.memory_space<vmem>>, vector<1x49x3xf32>
    %45 = vector.shape_cast %44 : vector<1x49x3xf32> to vector<49x3xf32>
    %cst_32 = arith.constant dense<0.000000e+00> : vector<49x128xf32>
    %46 = tpu.matmul %45, %39, %cst_32 {dimension_numbers = #tpu.dot_dimension_numbers<[1], [0], [0], [1], [0, 0, 1, 1], [], []>} : vector<49x3xf32>, vector<3x128xf32>, vector<49x128xf32> -> vector<49x128xf32>
    %47 = arith.addf %46, %42 : vector<49x128xf32>
    %cst_33 = arith.constant 0.000000e+00 : f32
    %48 = vector.broadcast %cst_33 : f32 to vector<49x128xf32>
    %49 = arith.maximumf %47, %48 : vector<49x128xf32>
    %50 = arith.addf %43, %49 : vector<49x128xf32>
    %c1_34 = arith.constant 1 : index
    %c0_35 = arith.constant 0 : index
    %c0_36 = arith.constant 0 : index
    %51 = vector.load %arg1[%c1_34, %c0_35, %c0_36] : memref<4x49x3xf32, #tpu.memory_space<vmem>>, vector<1x49x3xf32>
    %52 = vector.shape_cast %51 : vector<1x49x3xf32> to vector<49x3xf32>
    %cst_37 = arith.constant dense<0.000000e+00> : vector<49x128xf32>
    %53 = tpu.matmul %52, %39, %cst_37 {dimension_numbers = #tpu.dot_dimension_numbers<[1], [0], [0], [1], [0, 0, 1, 1], [], []>} : vector<49x3xf32>, vector<3x128xf32>, vector<49x128xf32> -> vector<49x128xf32>
    %54 = arith.addf %53, %42 : vector<49x128xf32>
    %cst_38 = arith.constant 0.000000e+00 : f32
    %55 = vector.broadcast %cst_38 : f32 to vector<49x128xf32>
    %56 = arith.maximumf %54, %55 : vector<49x128xf32>
    %57 = arith.addf %50, %56 : vector<49x128xf32>
    %c2_39 = arith.constant 2 : index
    %c0_40 = arith.constant 0 : index
    %c0_41 = arith.constant 0 : index
    %58 = vector.load %arg1[%c2_39, %c0_40, %c0_41] : memref<4x49x3xf32, #tpu.memory_space<vmem>>, vector<1x49x3xf32>
    %59 = vector.shape_cast %58 : vector<1x49x3xf32> to vector<49x3xf32>
    %cst_42 = arith.constant dense<0.000000e+00> : vector<49x128xf32>
    %60 = tpu.matmul %59, %39, %cst_42 {dimension_numbers = #tpu.dot_dimension_numbers<[1], [0], [0], [1], [0, 0, 1, 1], [], []>} : vector<49x3xf32>, vector<3x128xf32>, vector<49x128xf32> -> vector<49x128xf32>
    %61 = arith.addf %60, %42 : vector<49x128xf32>
    %cst_43 = arith.constant 0.000000e+00 : f32
    %62 = vector.broadcast %cst_43 : f32 to vector<49x128xf32>
    %63 = arith.maximumf %61, %62 : vector<49x128xf32>
    %64 = arith.addf %57, %63 : vector<49x128xf32>
    %c3_44 = arith.constant 3 : index
    %c0_45 = arith.constant 0 : index
    %c0_46 = arith.constant 0 : index
    %65 = vector.load %arg1[%c3_44, %c0_45, %c0_46] : memref<4x49x3xf32, #tpu.memory_space<vmem>>, vector<1x49x3xf32>
    %66 = vector.shape_cast %65 : vector<1x49x3xf32> to vector<49x3xf32>
    %cst_47 = arith.constant dense<0.000000e+00> : vector<49x128xf32>
    %67 = tpu.matmul %66, %39, %cst_47 {dimension_numbers = #tpu.dot_dimension_numbers<[1], [0], [0], [1], [0, 0, 1, 1], [], []>} : vector<49x3xf32>, vector<3x128xf32>, vector<49x128xf32> -> vector<49x128xf32>
    %68 = arith.addf %67, %42 : vector<49x128xf32>
    %cst_48 = arith.constant 0.000000e+00 : f32
    %69 = vector.broadcast %cst_48 : f32 to vector<49x128xf32>
    %70 = arith.maximumf %68, %69 : vector<49x128xf32>
    %71 = arith.addf %64, %70 : vector<49x128xf32>
    %cst_49 = arith.constant 2.500000e-01 : f32
    %72 = vector.broadcast %cst_49 : f32 to vector<49x128xf32>
    %73 = arith.mulf %71, %72 : vector<49x128xf32>
    %c128_50 = arith.constant 128 : index
    %c0_51 = arith.constant 0 : index
    %74 = vector.load %arg6[%c128_50, %c0_51] : memref<1280x192xf32, #tpu.memory_space<vmem>>, vector<128x192xf32>
    %cst_52 = arith.constant dense<0.000000e+00> : vector<49x192xf32>
    %75 = tpu.matmul %73, %74, %cst_52 {dimension_numbers = #tpu.dot_dimension_numbers<[1], [0], [0], [1], [0, 0, 1, 1], [], []>} : vector<49x128xf32>, vector<128x192xf32>, vector<49x192xf32> -> vector<49x192xf32>
    %76 = arith.addf %38, %75 : vector<49x192xf32>
    %c0_53 = arith.constant 0 : index
    %c256 = arith.constant 256 : index
    %77 = vector.load %arg4[%c0_53, %c256] : memref<3x1280xf32, #tpu.memory_space<vmem>>, vector<3x128xf32>
    %c0_54 = arith.constant 0 : index
    %c256_55 = arith.constant 256 : index
    %78 = vector.load %arg5[%c0_54, %c256_55] : memref<1x1280xf32, #tpu.memory_space<vmem>>, vector<1x128xf32>
    %79 = vector.shape_cast %78 : vector<1x128xf32> to vector<1x128xf32>
    %80 = vector.broadcast %79 : vector<1x128xf32> to vector<49x128xf32>
    %cst_56 = arith.constant 0.000000e+00 : f32
    %81 = vector.broadcast %cst_56 : f32 to vector<49x128xf32>
    %c0_57 = arith.constant 0 : index
    %c0_58 = arith.constant 0 : index
    %c0_59 = arith.constant 0 : index
    %82 = vector.load %arg1[%c0_57, %c0_58, %c0_59] : memref<4x49x3xf32, #tpu.memory_space<vmem>>, vector<1x49x3xf32>
    %83 = vector.shape_cast %82 : vector<1x49x3xf32> to vector<49x3xf32>
    %cst_60 = arith.constant dense<0.000000e+00> : vector<49x128xf32>
    %84 = tpu.matmul %83, %77, %cst_60 {dimension_numbers = #tpu.dot_dimension_numbers<[1], [0], [0], [1], [0, 0, 1, 1], [], []>} : vector<49x3xf32>, vector<3x128xf32>, vector<49x128xf32> -> vector<49x128xf32>
    %85 = arith.addf %84, %80 : vector<49x128xf32>
    %cst_61 = arith.constant 0.000000e+00 : f32
    %86 = vector.broadcast %cst_61 : f32 to vector<49x128xf32>
    %87 = arith.maximumf %85, %86 : vector<49x128xf32>
    %88 = arith.addf %81, %87 : vector<49x128xf32>
    %c1_62 = arith.constant 1 : index
    %c0_63 = arith.constant 0 : index
    %c0_64 = arith.constant 0 : index
    %89 = vector.load %arg1[%c1_62, %c0_63, %c0_64] : memref<4x49x3xf32, #tpu.memory_space<vmem>>, vector<1x49x3xf32>
    %90 = vector.shape_cast %89 : vector<1x49x3xf32> to vector<49x3xf32>
    %cst_65 = arith.constant dense<0.000000e+00> : vector<49x128xf32>
    %91 = tpu.matmul %90, %77, %cst_65 {dimension_numbers = #tpu.dot_dimension_numbers<[1], [0], [0], [1], [0, 0, 1, 1], [], []>} : vector<49x3xf32>, vector<3x128xf32>, vector<49x128xf32> -> vector<49x128xf32>
    %92 = arith.addf %91, %80 : vector<49x128xf32>
    %cst_66 = arith.constant 0.000000e+00 : f32
    %93 = vector.broadcast %cst_66 : f32 to vector<49x128xf32>
    %94 = arith.maximumf %92, %93 : vector<49x128xf32>
    %95 = arith.addf %88, %94 : vector<49x128xf32>
    %c2_67 = arith.constant 2 : index
    %c0_68 = arith.constant 0 : index
    %c0_69 = arith.constant 0 : index
    %96 = vector.load %arg1[%c2_67, %c0_68, %c0_69] : memref<4x49x3xf32, #tpu.memory_space<vmem>>, vector<1x49x3xf32>
    %97 = vector.shape_cast %96 : vector<1x49x3xf32> to vector<49x3xf32>
    %cst_70 = arith.constant dense<0.000000e+00> : vector<49x128xf32>
    %98 = tpu.matmul %97, %77, %cst_70 {dimension_numbers = #tpu.dot_dimension_numbers<[1], [0], [0], [1], [0, 0, 1, 1], [], []>} : vector<49x3xf32>, vector<3x128xf32>, vector<49x128xf32> -> vector<49x128xf32>
    %99 = arith.addf %98, %80 : vector<49x128xf32>
    %cst_71 = arith.constant 0.000000e+00 : f32
    %100 = vector.broadcast %cst_71 : f32 to vector<49x128xf32>
    %101 = arith.maximumf %99, %100 : vector<49x128xf32>
    %102 = arith.addf %95, %101 : vector<49x128xf32>
    %c3_72 = arith.constant 3 : index
    %c0_73 = arith.constant 0 : index
    %c0_74 = arith.constant 0 : index
    %103 = vector.load %arg1[%c3_72, %c0_73, %c0_74] : memref<4x49x3xf32, #tpu.memory_space<vmem>>, vector<1x49x3xf32>
    %104 = vector.shape_cast %103 : vector<1x49x3xf32> to vector<49x3xf32>
    %cst_75 = arith.constant dense<0.000000e+00> : vector<49x128xf32>
    %105 = tpu.matmul %104, %77, %cst_75 {dimension_numbers = #tpu.dot_dimension_numbers<[1], [0], [0], [1], [0, 0, 1, 1], [], []>} : vector<49x3xf32>, vector<3x128xf32>, vector<49x128xf32> -> vector<49x128xf32>
    %106 = arith.addf %105, %80 : vector<49x128xf32>
    %cst_76 = arith.constant 0.000000e+00 : f32
    %107 = vector.broadcast %cst_76 : f32 to vector<49x128xf32>
    %108 = arith.maximumf %106, %107 : vector<49x128xf32>
    %109 = arith.addf %102, %108 : vector<49x128xf32>
    %cst_77 = arith.constant 2.500000e-01 : f32
    %110 = vector.broadcast %cst_77 : f32 to vector<49x128xf32>
    %111 = arith.mulf %109, %110 : vector<49x128xf32>
    %c256_78 = arith.constant 256 : index
    %c0_79 = arith.constant 0 : index
    %112 = vector.load %arg6[%c256_78, %c0_79] : memref<1280x192xf32, #tpu.memory_space<vmem>>, vector<128x192xf32>
    %cst_80 = arith.constant dense<0.000000e+00> : vector<49x192xf32>
    %113 = tpu.matmul %111, %112, %cst_80 {dimension_numbers = #tpu.dot_dimension_numbers<[1], [0], [0], [1], [0, 0, 1, 1], [], []>} : vector<49x128xf32>, vector<128x192xf32>, vector<49x192xf32> -> vector<49x192xf32>
    %114 = arith.addf %76, %113 : vector<49x192xf32>
    %c0_81 = arith.constant 0 : index
    %c384 = arith.constant 384 : index
    %115 = vector.load %arg4[%c0_81, %c384] : memref<3x1280xf32, #tpu.memory_space<vmem>>, vector<3x128xf32>
    %c0_82 = arith.constant 0 : index
    %c384_83 = arith.constant 384 : index
    %116 = vector.load %arg5[%c0_82, %c384_83] : memref<1x1280xf32, #tpu.memory_space<vmem>>, vector<1x128xf32>
    %117 = vector.shape_cast %116 : vector<1x128xf32> to vector<1x128xf32>
    %118 = vector.broadcast %117 : vector<1x128xf32> to vector<49x128xf32>
    %cst_84 = arith.constant 0.000000e+00 : f32
    %119 = vector.broadcast %cst_84 : f32 to vector<49x128xf32>
    %c0_85 = arith.constant 0 : index
    %c0_86 = arith.constant 0 : index
    %c0_87 = arith.constant 0 : index
    %120 = vector.load %arg1[%c0_85, %c0_86, %c0_87] : memref<4x49x3xf32, #tpu.memory_space<vmem>>, vector<1x49x3xf32>
    %121 = vector.shape_cast %120 : vector<1x49x3xf32> to vector<49x3xf32>
    %cst_88 = arith.constant dense<0.000000e+00> : vector<49x128xf32>
    %122 = tpu.matmul %121, %115, %cst_88 {dimension_numbers = #tpu.dot_dimension_numbers<[1], [0], [0], [1], [0, 0, 1, 1], [], []>} : vector<49x3xf32>, vector<3x128xf32>, vector<49x128xf32> -> vector<49x128xf32>
    %123 = arith.addf %122, %118 : vector<49x128xf32>
    %cst_89 = arith.constant 0.000000e+00 : f32
    %124 = vector.broadcast %cst_89 : f32 to vector<49x128xf32>
    %125 = arith.maximumf %123, %124 : vector<49x128xf32>
    %126 = arith.addf %119, %125 : vector<49x128xf32>
    %c1_90 = arith.constant 1 : index
    %c0_91 = arith.constant 0 : index
    %c0_92 = arith.constant 0 : index
    %127 = vector.load %arg1[%c1_90, %c0_91, %c0_92] : memref<4x49x3xf32, #tpu.memory_space<vmem>>, vector<1x49x3xf32>
    %128 = vector.shape_cast %127 : vector<1x49x3xf32> to vector<49x3xf32>
    %cst_93 = arith.constant dense<0.000000e+00> : vector<49x128xf32>
    %129 = tpu.matmul %128, %115, %cst_93 {dimension_numbers = #tpu.dot_dimension_numbers<[1], [0], [0], [1], [0, 0, 1, 1], [], []>} : vector<49x3xf32>, vector<3x128xf32>, vector<49x128xf32> -> vector<49x128xf32>
    %130 = arith.addf %129, %118 : vector<49x128xf32>
    %cst_94 = arith.constant 0.000000e+00 : f32
    %131 = vector.broadcast %cst_94 : f32 to vector<49x128xf32>
    %132 = arith.maximumf %130, %131 : vector<49x128xf32>
    %133 = arith.addf %126, %132 : vector<49x128xf32>
    %c2_95 = arith.constant 2 : index
    %c0_96 = arith.constant 0 : index
    %c0_97 = arith.constant 0 : index
    %134 = vector.load %arg1[%c2_95, %c0_96, %c0_97] : memref<4x49x3xf32, #tpu.memory_space<vmem>>, vector<1x49x3xf32>
    %135 = vector.shape_cast %134 : vector<1x49x3xf32> to vector<49x3xf32>
    %cst_98 = arith.constant dense<0.000000e+00> : vector<49x128xf32>
    %136 = tpu.matmul %135, %115, %cst_98 {dimension_numbers = #tpu.dot_dimension_numbers<[1], [0], [0], [1], [0, 0, 1, 1], [], []>} : vector<49x3xf32>, vector<3x128xf32>, vector<49x128xf32> -> vector<49x128xf32>
    %137 = arith.addf %136, %118 : vector<49x128xf32>
    %cst_99 = arith.constant 0.000000e+00 : f32
    %138 = vector.broadcast %cst_99 : f32 to vector<49x128xf32>
    %139 = arith.maximumf %137, %138 : vector<49x128xf32>
    %140 = arith.addf %133, %139 : vector<49x128xf32>
    %c3_100 = arith.constant 3 : index
    %c0_101 = arith.constant 0 : index
    %c0_102 = arith.constant 0 : index
    %141 = vector.load %arg1[%c3_100, %c0_101, %c0_102] : memref<4x49x3xf32, #tpu.memory_space<vmem>>, vector<1x49x3xf32>
    %142 = vector.shape_cast %141 : vector<1x49x3xf32> to vector<49x3xf32>
    %cst_103 = arith.constant dense<0.000000e+00> : vector<49x128xf32>
    %143 = tpu.matmul %142, %115, %cst_103 {dimension_numbers = #tpu.dot_dimension_numbers<[1], [0], [0], [1], [0, 0, 1, 1], [], []>} : vector<49x3xf32>, vector<3x128xf32>, vector<49x128xf32> -> vector<49x128xf32>
    %144 = arith.addf %143, %118 : vector<49x128xf32>
    %cst_104 = arith.constant 0.000000e+00 : f32
    %145 = vector.broadcast %cst_104 : f32 to vector<49x128xf32>
    %146 = arith.maximumf %144, %145 : vector<49x128xf32>
    %147 = arith.addf %140, %146 : vector<49x128xf32>
    %cst_105 = arith.constant 2.500000e-01 : f32
    %148 = vector.broadcast %cst_105 : f32 to vector<49x128xf32>
    %149 = arith.mulf %147, %148 : vector<49x128xf32>
    %c384_106 = arith.constant 384 : index
    %c0_107 = arith.constant 0 : index
    %150 = vector.load %arg6[%c384_106, %c0_107] : memref<1280x192xf32, #tpu.memory_space<vmem>>, vector<128x192xf32>
    %cst_108 = arith.constant dense<0.000000e+00> : vector<49x192xf32>
    %151 = tpu.matmul %149, %150, %cst_108 {dimension_numbers = #tpu.dot_dimension_numbers<[1], [0], [0], [1], [0, 0, 1, 1], [], []>} : vector<49x128xf32>, vector<128x192xf32>, vector<49x192xf32> -> vector<49x192xf32>
    %152 = arith.addf %114, %151 : vector<49x192xf32>
    %c0_109 = arith.constant 0 : index
    %c512 = arith.constant 512 : index
    %153 = vector.load %arg4[%c0_109, %c512] : memref<3x1280xf32, #tpu.memory_space<vmem>>, vector<3x128xf32>
    %c0_110 = arith.constant 0 : index
    %c512_111 = arith.constant 512 : index
    %154 = vector.load %arg5[%c0_110, %c512_111] : memref<1x1280xf32, #tpu.memory_space<vmem>>, vector<1x128xf32>
    %155 = vector.shape_cast %154 : vector<1x128xf32> to vector<1x128xf32>
    %156 = vector.broadcast %155 : vector<1x128xf32> to vector<49x128xf32>
    %cst_112 = arith.constant 0.000000e+00 : f32
    %157 = vector.broadcast %cst_112 : f32 to vector<49x128xf32>
    %c0_113 = arith.constant 0 : index
    %c0_114 = arith.constant 0 : index
    %c0_115 = arith.constant 0 : index
    %158 = vector.load %arg1[%c0_113, %c0_114, %c0_115] : memref<4x49x3xf32, #tpu.memory_space<vmem>>, vector<1x49x3xf32>
    %159 = vector.shape_cast %158 : vector<1x49x3xf32> to vector<49x3xf32>
    %cst_116 = arith.constant dense<0.000000e+00> : vector<49x128xf32>
    %160 = tpu.matmul %159, %153, %cst_116 {dimension_numbers = #tpu.dot_dimension_numbers<[1], [0], [0], [1], [0, 0, 1, 1], [], []>} : vector<49x3xf32>, vector<3x128xf32>, vector<49x128xf32> -> vector<49x128xf32>
    %161 = arith.addf %160, %156 : vector<49x128xf32>
    %cst_117 = arith.constant 0.000000e+00 : f32
    %162 = vector.broadcast %cst_117 : f32 to vector<49x128xf32>
    %163 = arith.maximumf %161, %162 : vector<49x128xf32>
    %164 = arith.addf %157, %163 : vector<49x128xf32>
    %c1_118 = arith.constant 1 : index
    %c0_119 = arith.constant 0 : index
    %c0_120 = arith.constant 0 : index
    %165 = vector.load %arg1[%c1_118, %c0_119, %c0_120] : memref<4x49x3xf32, #tpu.memory_space<vmem>>, vector<1x49x3xf32>
    %166 = vector.shape_cast %165 : vector<1x49x3xf32> to vector<49x3xf32>
    %cst_121 = arith.constant dense<0.000000e+00> : vector<49x128xf32>
    %167 = tpu.matmul %166, %153, %cst_121 {dimension_numbers = #tpu.dot_dimension_numbers<[1], [0], [0], [1], [0, 0, 1, 1], [], []>} : vector<49x3xf32>, vector<3x128xf32>, vector<49x128xf32> -> vector<49x128xf32>
    %168 = arith.addf %167, %156 : vector<49x128xf32>
    %cst_122 = arith.constant 0.000000e+00 : f32
    %169 = vector.broadcast %cst_122 : f32 to vector<49x128xf32>
    %170 = arith.maximumf %168, %169 : vector<49x128xf32>
    %171 = arith.addf %164, %170 : vector<49x128xf32>
    %c2_123 = arith.constant 2 : index
    %c0_124 = arith.constant 0 : index
    %c0_125 = arith.constant 0 : index
    %172 = vector.load %arg1[%c2_123, %c0_124, %c0_125] : memref<4x49x3xf32, #tpu.memory_space<vmem>>, vector<1x49x3xf32>
    %173 = vector.shape_cast %172 : vector<1x49x3xf32> to vector<49x3xf32>
    %cst_126 = arith.constant dense<0.000000e+00> : vector<49x128xf32>
    %174 = tpu.matmul %173, %153, %cst_126 {dimension_numbers = #tpu.dot_dimension_numbers<[1], [0], [0], [1], [0, 0, 1, 1], [], []>} : vector<49x3xf32>, vector<3x128xf32>, vector<49x128xf32> -> vector<49x128xf32>
    %175 = arith.addf %174, %156 : vector<49x128xf32>
    %cst_127 = arith.constant 0.000000e+00 : f32
    %176 = vector.broadcast %cst_127 : f32 to vector<49x128xf32>
    %177 = arith.maximumf %175, %176 : vector<49x128xf32>
    %178 = arith.addf %171, %177 : vector<49x128xf32>
    %c3_128 = arith.constant 3 : index
    %c0_129 = arith.constant 0 : index
    %c0_130 = arith.constant 0 : index
    %179 = vector.load %arg1[%c3_128, %c0_129, %c0_130] : memref<4x49x3xf32, #tpu.memory_space<vmem>>, vector<1x49x3xf32>
    %180 = vector.shape_cast %179 : vector<1x49x3xf32> to vector<49x3xf32>
    %cst_131 = arith.constant dense<0.000000e+00> : vector<49x128xf32>
    %181 = tpu.matmul %180, %153, %cst_131 {dimension_numbers = #tpu.dot_dimension_numbers<[1], [0], [0], [1], [0, 0, 1, 1], [], []>} : vector<49x3xf32>, vector<3x128xf32>, vector<49x128xf32> -> vector<49x128xf32>
    %182 = arith.addf %181, %156 : vector<49x128xf32>
    %cst_132 = arith.constant 0.000000e+00 : f32
    %183 = vector.broadcast %cst_132 : f32 to vector<49x128xf32>
    %184 = arith.maximumf %182, %183 : vector<49x128xf32>
    %185 = arith.addf %178, %184 : vector<49x128xf32>
    %cst_133 = arith.constant 2.500000e-01 : f32
    %186 = vector.broadcast %cst_133 : f32 to vector<49x128xf32>
    %187 = arith.mulf %185, %186 : vector<49x128xf32>
    %c512_134 = arith.constant 512 : index
    %c0_135 = arith.constant 0 : index
    %188 = vector.load %arg6[%c512_134, %c0_135] : memref<1280x192xf32, #tpu.memory_space<vmem>>, vector<128x192xf32>
    %cst_136 = arith.constant dense<0.000000e+00> : vector<49x192xf32>
    %189 = tpu.matmul %187, %188, %cst_136 {dimension_numbers = #tpu.dot_dimension_numbers<[1], [0], [0], [1], [0, 0, 1, 1], [], []>} : vector<49x128xf32>, vector<128x192xf32>, vector<49x192xf32> -> vector<49x192xf32>
    %190 = arith.addf %152, %189 : vector<49x192xf32>
    %c0_137 = arith.constant 0 : index
    %c640 = arith.constant 640 : index
    %191 = vector.load %arg4[%c0_137, %c640] : memref<3x1280xf32, #tpu.memory_space<vmem>>, vector<3x128xf32>
    %c0_138 = arith.constant 0 : index
    %c640_139 = arith.constant 640 : index
    %192 = vector.load %arg5[%c0_138, %c640_139] : memref<1x1280xf32, #tpu.memory_space<vmem>>, vector<1x128xf32>
    %193 = vector.shape_cast %192 : vector<1x128xf32> to vector<1x128xf32>
    %194 = vector.broadcast %193 : vector<1x128xf32> to vector<49x128xf32>
    %cst_140 = arith.constant 0.000000e+00 : f32
    %195 = vector.broadcast %cst_140 : f32 to vector<49x128xf32>
    %c0_141 = arith.constant 0 : index
    %c0_142 = arith.constant 0 : index
    %c0_143 = arith.constant 0 : index
    %196 = vector.load %arg1[%c0_141, %c0_142, %c0_143] : memref<4x49x3xf32, #tpu.memory_space<vmem>>, vector<1x49x3xf32>
    %197 = vector.shape_cast %196 : vector<1x49x3xf32> to vector<49x3xf32>
    %cst_144 = arith.constant dense<0.000000e+00> : vector<49x128xf32>
    %198 = tpu.matmul %197, %191, %cst_144 {dimension_numbers = #tpu.dot_dimension_numbers<[1], [0], [0], [1], [0, 0, 1, 1], [], []>} : vector<49x3xf32>, vector<3x128xf32>, vector<49x128xf32> -> vector<49x128xf32>
    %199 = arith.addf %198, %194 : vector<49x128xf32>
    %cst_145 = arith.constant 0.000000e+00 : f32
    %200 = vector.broadcast %cst_145 : f32 to vector<49x128xf32>
    %201 = arith.maximumf %199, %200 : vector<49x128xf32>
    %202 = arith.addf %195, %201 : vector<49x128xf32>
    %c1_146 = arith.constant 1 : index
    %c0_147 = arith.constant 0 : index
    %c0_148 = arith.constant 0 : index
    %203 = vector.load %arg1[%c1_146, %c0_147, %c0_148] : memref<4x49x3xf32, #tpu.memory_space<vmem>>, vector<1x49x3xf32>
    %204 = vector.shape_cast %203 : vector<1x49x3xf32> to vector<49x3xf32>
    %cst_149 = arith.constant dense<0.000000e+00> : vector<49x128xf32>
    %205 = tpu.matmul %204, %191, %cst_149 {dimension_numbers = #tpu.dot_dimension_numbers<[1], [0], [0], [1], [0, 0, 1, 1], [], []>} : vector<49x3xf32>, vector<3x128xf32>, vector<49x128xf32> -> vector<49x128xf32>
    %206 = arith.addf %205, %194 : vector<49x128xf32>
    %cst_150 = arith.constant 0.000000e+00 : f32
    %207 = vector.broadcast %cst_150 : f32 to vector<49x128xf32>
    %208 = arith.maximumf %206, %207 : vector<49x128xf32>
    %209 = arith.addf %202, %208 : vector<49x128xf32>
    %c2_151 = arith.constant 2 : index
    %c0_152 = arith.constant 0 : index
    %c0_153 = arith.constant 0 : index
    %210 = vector.load %arg1[%c2_151, %c0_152, %c0_153] : memref<4x49x3xf32, #tpu.memory_space<vmem>>, vector<1x49x3xf32>
    %211 = vector.shape_cast %210 : vector<1x49x3xf32> to vector<49x3xf32>
    %cst_154 = arith.constant dense<0.000000e+00> : vector<49x128xf32>
    %212 = tpu.matmul %211, %191, %cst_154 {dimension_numbers = #tpu.dot_dimension_numbers<[1], [0], [0], [1], [0, 0, 1, 1], [], []>} : vector<49x3xf32>, vector<3x128xf32>, vector<49x128xf32> -> vector<49x128xf32>
    %213 = arith.addf %212, %194 : vector<49x128xf32>
    %cst_155 = arith.constant 0.000000e+00 : f32
    %214 = vector.broadcast %cst_155 : f32 to vector<49x128xf32>
    %215 = arith.maximumf %213, %214 : vector<49x128xf32>
    %216 = arith.addf %209, %215 : vector<49x128xf32>
    %c3_156 = arith.constant 3 : index
    %c0_157 = arith.constant 0 : index
    %c0_158 = arith.constant 0 : index
    %217 = vector.load %arg1[%c3_156, %c0_157, %c0_158] : memref<4x49x3xf32, #tpu.memory_space<vmem>>, vector<1x49x3xf32>
    %218 = vector.shape_cast %217 : vector<1x49x3xf32> to vector<49x3xf32>
    %cst_159 = arith.constant dense<0.000000e+00> : vector<49x128xf32>
    %219 = tpu.matmul %218, %191, %cst_159 {dimension_numbers = #tpu.dot_dimension_numbers<[1], [0], [0], [1], [0, 0, 1, 1], [], []>} : vector<49x3xf32>, vector<3x128xf32>, vector<49x128xf32> -> vector<49x128xf32>
    %220 = arith.addf %219, %194 : vector<49x128xf32>
    %cst_160 = arith.constant 0.000000e+00 : f32
    %221 = vector.broadcast %cst_160 : f32 to vector<49x128xf32>
    %222 = arith.maximumf %220, %221 : vector<49x128xf32>
    %223 = arith.addf %216, %222 : vector<49x128xf32>
    %cst_161 = arith.constant 2.500000e-01 : f32
    %224 = vector.broadcast %cst_161 : f32 to vector<49x128xf32>
    %225 = arith.mulf %223, %224 : vector<49x128xf32>
    %c640_162 = arith.constant 640 : index
    %c0_163 = arith.constant 0 : index
    %226 = vector.load %arg6[%c640_162, %c0_163] : memref<1280x192xf32, #tpu.memory_space<vmem>>, vector<128x192xf32>
    %cst_164 = arith.constant dense<0.000000e+00> : vector<49x192xf32>
    %227 = tpu.matmul %225, %226, %cst_164 {dimension_numbers = #tpu.dot_dimension_numbers<[1], [0], [0], [1], [0, 0, 1, 1], [], []>} : vector<49x128xf32>, vector<128x192xf32>, vector<49x192xf32> -> vector<49x192xf32>
    %228 = arith.addf %190, %227 : vector<49x192xf32>
    %c0_165 = arith.constant 0 : index
    %c768 = arith.constant 768 : index
    %229 = vector.load %arg4[%c0_165, %c768] : memref<3x1280xf32, #tpu.memory_space<vmem>>, vector<3x128xf32>
    %c0_166 = arith.constant 0 : index
    %c768_167 = arith.constant 768 : index
    %230 = vector.load %arg5[%c0_166, %c768_167] : memref<1x1280xf32, #tpu.memory_space<vmem>>, vector<1x128xf32>
    %231 = vector.shape_cast %230 : vector<1x128xf32> to vector<1x128xf32>
    %232 = vector.broadcast %231 : vector<1x128xf32> to vector<49x128xf32>
    %cst_168 = arith.constant 0.000000e+00 : f32
    %233 = vector.broadcast %cst_168 : f32 to vector<49x128xf32>
    %c0_169 = arith.constant 0 : index
    %c0_170 = arith.constant 0 : index
    %c0_171 = arith.constant 0 : index
    %234 = vector.load %arg1[%c0_169, %c0_170, %c0_171] : memref<4x49x3xf32, #tpu.memory_space<vmem>>, vector<1x49x3xf32>
    %235 = vector.shape_cast %234 : vector<1x49x3xf32> to vector<49x3xf32>
    %cst_172 = arith.constant dense<0.000000e+00> : vector<49x128xf32>
    %236 = tpu.matmul %235, %229, %cst_172 {dimension_numbers = #tpu.dot_dimension_numbers<[1], [0], [0], [1], [0, 0, 1, 1], [], []>} : vector<49x3xf32>, vector<3x128xf32>, vector<49x128xf32> -> vector<49x128xf32>
    %237 = arith.addf %236, %232 : vector<49x128xf32>
    %cst_173 = arith.constant 0.000000e+00 : f32
    %238 = vector.broadcast %cst_173 : f32 to vector<49x128xf32>
    %239 = arith.maximumf %237, %238 : vector<49x128xf32>
    %240 = arith.addf %233, %239 : vector<49x128xf32>
    %c1_174 = arith.constant 1 : index
    %c0_175 = arith.constant 0 : index
    %c0_176 = arith.constant 0 : index
    %241 = vector.load %arg1[%c1_174, %c0_175, %c0_176] : memref<4x49x3xf32, #tpu.memory_space<vmem>>, vector<1x49x3xf32>
    %242 = vector.shape_cast %241 : vector<1x49x3xf32> to vector<49x3xf32>
    %cst_177 = arith.constant dense<0.000000e+00> : vector<49x128xf32>
    %243 = tpu.matmul %242, %229, %cst_177 {dimension_numbers = #tpu.dot_dimension_numbers<[1], [0], [0], [1], [0, 0, 1, 1], [], []>} : vector<49x3xf32>, vector<3x128xf32>, vector<49x128xf32> -> vector<49x128xf32>
    %244 = arith.addf %243, %232 : vector<49x128xf32>
    %cst_178 = arith.constant 0.000000e+00 : f32
    %245 = vector.broadcast %cst_178 : f32 to vector<49x128xf32>
    %246 = arith.maximumf %244, %245 : vector<49x128xf32>
    %247 = arith.addf %240, %246 : vector<49x128xf32>
    %c2_179 = arith.constant 2 : index
    %c0_180 = arith.constant 0 : index
    %c0_181 = arith.constant 0 : index
    %248 = vector.load %arg1[%c2_179, %c0_180, %c0_181] : memref<4x49x3xf32, #tpu.memory_space<vmem>>, vector<1x49x3xf32>
    %249 = vector.shape_cast %248 : vector<1x49x3xf32> to vector<49x3xf32>
    %cst_182 = arith.constant dense<0.000000e+00> : vector<49x128xf32>
    %250 = tpu.matmul %249, %229, %cst_182 {dimension_numbers = #tpu.dot_dimension_numbers<[1], [0], [0], [1], [0, 0, 1, 1], [], []>} : vector<49x3xf32>, vector<3x128xf32>, vector<49x128xf32> -> vector<49x128xf32>
    %251 = arith.addf %250, %232 : vector<49x128xf32>
    %cst_183 = arith.constant 0.000000e+00 : f32
    %252 = vector.broadcast %cst_183 : f32 to vector<49x128xf32>
    %253 = arith.maximumf %251, %252 : vector<49x128xf32>
    %254 = arith.addf %247, %253 : vector<49x128xf32>
    %c3_184 = arith.constant 3 : index
    %c0_185 = arith.constant 0 : index
    %c0_186 = arith.constant 0 : index
    %255 = vector.load %arg1[%c3_184, %c0_185, %c0_186] : memref<4x49x3xf32, #tpu.memory_space<vmem>>, vector<1x49x3xf32>
    %256 = vector.shape_cast %255 : vector<1x49x3xf32> to vector<49x3xf32>
    %cst_187 = arith.constant dense<0.000000e+00> : vector<49x128xf32>
    %257 = tpu.matmul %256, %229, %cst_187 {dimension_numbers = #tpu.dot_dimension_numbers<[1], [0], [0], [1], [0, 0, 1, 1], [], []>} : vector<49x3xf32>, vector<3x128xf32>, vector<49x128xf32> -> vector<49x128xf32>
    %258 = arith.addf %257, %232 : vector<49x128xf32>
    %cst_188 = arith.constant 0.000000e+00 : f32
    %259 = vector.broadcast %cst_188 : f32 to vector<49x128xf32>
    %260 = arith.maximumf %258, %259 : vector<49x128xf32>
    %261 = arith.addf %254, %260 : vector<49x128xf32>
    %cst_189 = arith.constant 2.500000e-01 : f32
    %262 = vector.broadcast %cst_189 : f32 to vector<49x128xf32>
    %263 = arith.mulf %261, %262 : vector<49x128xf32>
    %c768_190 = arith.constant 768 : index
    %c0_191 = arith.constant 0 : index
    %264 = vector.load %arg6[%c768_190, %c0_191] : memref<1280x192xf32, #tpu.memory_space<vmem>>, vector<128x192xf32>
    %cst_192 = arith.constant dense<0.000000e+00> : vector<49x192xf32>
    %265 = tpu.matmul %263, %264, %cst_192 {dimension_numbers = #tpu.dot_dimension_numbers<[1], [0], [0], [1], [0, 0, 1, 1], [], []>} : vector<49x128xf32>, vector<128x192xf32>, vector<49x192xf32> -> vector<49x192xf32>
    %266 = arith.addf %228, %265 : vector<49x192xf32>
    %c0_193 = arith.constant 0 : index
    %c896 = arith.constant 896 : index
    %267 = vector.load %arg4[%c0_193, %c896] : memref<3x1280xf32, #tpu.memory_space<vmem>>, vector<3x128xf32>
    %c0_194 = arith.constant 0 : index
    %c896_195 = arith.constant 896 : index
    %268 = vector.load %arg5[%c0_194, %c896_195] : memref<1x1280xf32, #tpu.memory_space<vmem>>, vector<1x128xf32>
    %269 = vector.shape_cast %268 : vector<1x128xf32> to vector<1x128xf32>
    %270 = vector.broadcast %269 : vector<1x128xf32> to vector<49x128xf32>
    %cst_196 = arith.constant 0.000000e+00 : f32
    %271 = vector.broadcast %cst_196 : f32 to vector<49x128xf32>
    %c0_197 = arith.constant 0 : index
    %c0_198 = arith.constant 0 : index
    %c0_199 = arith.constant 0 : index
    %272 = vector.load %arg1[%c0_197, %c0_198, %c0_199] : memref<4x49x3xf32, #tpu.memory_space<vmem>>, vector<1x49x3xf32>
    %273 = vector.shape_cast %272 : vector<1x49x3xf32> to vector<49x3xf32>
    %cst_200 = arith.constant dense<0.000000e+00> : vector<49x128xf32>
    %274 = tpu.matmul %273, %267, %cst_200 {dimension_numbers = #tpu.dot_dimension_numbers<[1], [0], [0], [1], [0, 0, 1, 1], [], []>} : vector<49x3xf32>, vector<3x128xf32>, vector<49x128xf32> -> vector<49x128xf32>
    %275 = arith.addf %274, %270 : vector<49x128xf32>
    %cst_201 = arith.constant 0.000000e+00 : f32
    %276 = vector.broadcast %cst_201 : f32 to vector<49x128xf32>
    %277 = arith.maximumf %275, %276 : vector<49x128xf32>
    %278 = arith.addf %271, %277 : vector<49x128xf32>
    %c1_202 = arith.constant 1 : index
    %c0_203 = arith.constant 0 : index
    %c0_204 = arith.constant 0 : index
    %279 = vector.load %arg1[%c1_202, %c0_203, %c0_204] : memref<4x49x3xf32, #tpu.memory_space<vmem>>, vector<1x49x3xf32>
    %280 = vector.shape_cast %279 : vector<1x49x3xf32> to vector<49x3xf32>
    %cst_205 = arith.constant dense<0.000000e+00> : vector<49x128xf32>
    %281 = tpu.matmul %280, %267, %cst_205 {dimension_numbers = #tpu.dot_dimension_numbers<[1], [0], [0], [1], [0, 0, 1, 1], [], []>} : vector<49x3xf32>, vector<3x128xf32>, vector<49x128xf32> -> vector<49x128xf32>
    %282 = arith.addf %281, %270 : vector<49x128xf32>
    %cst_206 = arith.constant 0.000000e+00 : f32
    %283 = vector.broadcast %cst_206 : f32 to vector<49x128xf32>
    %284 = arith.maximumf %282, %283 : vector<49x128xf32>
    %285 = arith.addf %278, %284 : vector<49x128xf32>
    %c2_207 = arith.constant 2 : index
    %c0_208 = arith.constant 0 : index
    %c0_209 = arith.constant 0 : index
    %286 = vector.load %arg1[%c2_207, %c0_208, %c0_209] : memref<4x49x3xf32, #tpu.memory_space<vmem>>, vector<1x49x3xf32>
    %287 = vector.shape_cast %286 : vector<1x49x3xf32> to vector<49x3xf32>
    %cst_210 = arith.constant dense<0.000000e+00> : vector<49x128xf32>
    %288 = tpu.matmul %287, %267, %cst_210 {dimension_numbers = #tpu.dot_dimension_numbers<[1], [0], [0], [1], [0, 0, 1, 1], [], []>} : vector<49x3xf32>, vector<3x128xf32>, vector<49x128xf32> -> vector<49x128xf32>
    %289 = arith.addf %288, %270 : vector<49x128xf32>
    %cst_211 = arith.constant 0.000000e+00 : f32
    %290 = vector.broadcast %cst_211 : f32 to vector<49x128xf32>
    %291 = arith.maximumf %289, %290 : vector<49x128xf32>
    %292 = arith.addf %285, %291 : vector<49x128xf32>
    %c3_212 = arith.constant 3 : index
    %c0_213 = arith.constant 0 : index
    %c0_214 = arith.constant 0 : index
    %293 = vector.load %arg1[%c3_212, %c0_213, %c0_214] : memref<4x49x3xf32, #tpu.memory_space<vmem>>, vector<1x49x3xf32>
    %294 = vector.shape_cast %293 : vector<1x49x3xf32> to vector<49x3xf32>
    %cst_215 = arith.constant dense<0.000000e+00> : vector<49x128xf32>
    %295 = tpu.matmul %294, %267, %cst_215 {dimension_numbers = #tpu.dot_dimension_numbers<[1], [0], [0], [1], [0, 0, 1, 1], [], []>} : vector<49x3xf32>, vector<3x128xf32>, vector<49x128xf32> -> vector<49x128xf32>
    %296 = arith.addf %295, %270 : vector<49x128xf32>
    %cst_216 = arith.constant 0.000000e+00 : f32
    %297 = vector.broadcast %cst_216 : f32 to vector<49x128xf32>
    %298 = arith.maximumf %296, %297 : vector<49x128xf32>
    %299 = arith.addf %292, %298 : vector<49x128xf32>
    %cst_217 = arith.constant 2.500000e-01 : f32
    %300 = vector.broadcast %cst_217 : f32 to vector<49x128xf32>
    %301 = arith.mulf %299, %300 : vector<49x128xf32>
    %c896_218 = arith.constant 896 : index
    %c0_219 = arith.constant 0 : index
    %302 = vector.load %arg6[%c896_218, %c0_219] : memref<1280x192xf32, #tpu.memory_space<vmem>>, vector<128x192xf32>
    %cst_220 = arith.constant dense<0.000000e+00> : vector<49x192xf32>
    %303 = tpu.matmul %301, %302, %cst_220 {dimension_numbers = #tpu.dot_dimension_numbers<[1], [0], [0], [1], [0, 0, 1, 1], [], []>} : vector<49x128xf32>, vector<128x192xf32>, vector<49x192xf32> -> vector<49x192xf32>
    %304 = arith.addf %266, %303 : vector<49x192xf32>
    %c0_221 = arith.constant 0 : index
    %c1024 = arith.constant 1024 : index
    %305 = vector.load %arg4[%c0_221, %c1024] : memref<3x1280xf32, #tpu.memory_space<vmem>>, vector<3x128xf32>
    %c0_222 = arith.constant 0 : index
    %c1024_223 = arith.constant 1024 : index
    %306 = vector.load %arg5[%c0_222, %c1024_223] : memref<1x1280xf32, #tpu.memory_space<vmem>>, vector<1x128xf32>
    %307 = vector.shape_cast %306 : vector<1x128xf32> to vector<1x128xf32>
    %308 = vector.broadcast %307 : vector<1x128xf32> to vector<49x128xf32>
    %cst_224 = arith.constant 0.000000e+00 : f32
    %309 = vector.broadcast %cst_224 : f32 to vector<49x128xf32>
    %c0_225 = arith.constant 0 : index
    %c0_226 = arith.constant 0 : index
    %c0_227 = arith.constant 0 : index
    %310 = vector.load %arg1[%c0_225, %c0_226, %c0_227] : memref<4x49x3xf32, #tpu.memory_space<vmem>>, vector<1x49x3xf32>
    %311 = vector.shape_cast %310 : vector<1x49x3xf32> to vector<49x3xf32>
    %cst_228 = arith.constant dense<0.000000e+00> : vector<49x128xf32>
    %312 = tpu.matmul %311, %305, %cst_228 {dimension_numbers = #tpu.dot_dimension_numbers<[1], [0], [0], [1], [0, 0, 1, 1], [], []>} : vector<49x3xf32>, vector<3x128xf32>, vector<49x128xf32> -> vector<49x128xf32>
    %313 = arith.addf %312, %308 : vector<49x128xf32>
    %cst_229 = arith.constant 0.000000e+00 : f32
    %314 = vector.broadcast %cst_229 : f32 to vector<49x128xf32>
    %315 = arith.maximumf %313, %314 : vector<49x128xf32>
    %316 = arith.addf %309, %315 : vector<49x128xf32>
    %c1_230 = arith.constant 1 : index
    %c0_231 = arith.constant 0 : index
    %c0_232 = arith.constant 0 : index
    %317 = vector.load %arg1[%c1_230, %c0_231, %c0_232] : memref<4x49x3xf32, #tpu.memory_space<vmem>>, vector<1x49x3xf32>
    %318 = vector.shape_cast %317 : vector<1x49x3xf32> to vector<49x3xf32>
    %cst_233 = arith.constant dense<0.000000e+00> : vector<49x128xf32>
    %319 = tpu.matmul %318, %305, %cst_233 {dimension_numbers = #tpu.dot_dimension_numbers<[1], [0], [0], [1], [0, 0, 1, 1], [], []>} : vector<49x3xf32>, vector<3x128xf32>, vector<49x128xf32> -> vector<49x128xf32>
    %320 = arith.addf %319, %308 : vector<49x128xf32>
    %cst_234 = arith.constant 0.000000e+00 : f32
    %321 = vector.broadcast %cst_234 : f32 to vector<49x128xf32>
    %322 = arith.maximumf %320, %321 : vector<49x128xf32>
    %323 = arith.addf %316, %322 : vector<49x128xf32>
    %c2_235 = arith.constant 2 : index
    %c0_236 = arith.constant 0 : index
    %c0_237 = arith.constant 0 : index
    %324 = vector.load %arg1[%c2_235, %c0_236, %c0_237] : memref<4x49x3xf32, #tpu.memory_space<vmem>>, vector<1x49x3xf32>
    %325 = vector.shape_cast %324 : vector<1x49x3xf32> to vector<49x3xf32>
    %cst_238 = arith.constant dense<0.000000e+00> : vector<49x128xf32>
    %326 = tpu.matmul %325, %305, %cst_238 {dimension_numbers = #tpu.dot_dimension_numbers<[1], [0], [0], [1], [0, 0, 1, 1], [], []>} : vector<49x3xf32>, vector<3x128xf32>, vector<49x128xf32> -> vector<49x128xf32>
    %327 = arith.addf %326, %308 : vector<49x128xf32>
    %cst_239 = arith.constant 0.000000e+00 : f32
    %328 = vector.broadcast %cst_239 : f32 to vector<49x128xf32>
    %329 = arith.maximumf %327, %328 : vector<49x128xf32>
    %330 = arith.addf %323, %329 : vector<49x128xf32>
    %c3_240 = arith.constant 3 : index
    %c0_241 = arith.constant 0 : index
    %c0_242 = arith.constant 0 : index
    %331 = vector.load %arg1[%c3_240, %c0_241, %c0_242] : memref<4x49x3xf32, #tpu.memory_space<vmem>>, vector<1x49x3xf32>
    %332 = vector.shape_cast %331 : vector<1x49x3xf32> to vector<49x3xf32>
    %cst_243 = arith.constant dense<0.000000e+00> : vector<49x128xf32>
    %333 = tpu.matmul %332, %305, %cst_243 {dimension_numbers = #tpu.dot_dimension_numbers<[1], [0], [0], [1], [0, 0, 1, 1], [], []>} : vector<49x3xf32>, vector<3x128xf32>, vector<49x128xf32> -> vector<49x128xf32>
    %334 = arith.addf %333, %308 : vector<49x128xf32>
    %cst_244 = arith.constant 0.000000e+00 : f32
    %335 = vector.broadcast %cst_244 : f32 to vector<49x128xf32>
    %336 = arith.maximumf %334, %335 : vector<49x128xf32>
    %337 = arith.addf %330, %336 : vector<49x128xf32>
    %cst_245 = arith.constant 2.500000e-01 : f32
    %338 = vector.broadcast %cst_245 : f32 to vector<49x128xf32>
    %339 = arith.mulf %337, %338 : vector<49x128xf32>
    %c1024_246 = arith.constant 1024 : index
    %c0_247 = arith.constant 0 : index
    %340 = vector.load %arg6[%c1024_246, %c0_247] : memref<1280x192xf32, #tpu.memory_space<vmem>>, vector<128x192xf32>
    %cst_248 = arith.constant dense<0.000000e+00> : vector<49x192xf32>
    %341 = tpu.matmul %339, %340, %cst_248 {dimension_numbers = #tpu.dot_dimension_numbers<[1], [0], [0], [1], [0, 0, 1, 1], [], []>} : vector<49x128xf32>, vector<128x192xf32>, vector<49x192xf32> -> vector<49x192xf32>
    %342 = arith.addf %304, %341 : vector<49x192xf32>
    %c0_249 = arith.constant 0 : index
    %c1152 = arith.constant 1152 : index
    %343 = vector.load %arg4[%c0_249, %c1152] : memref<3x1280xf32, #tpu.memory_space<vmem>>, vector<3x128xf32>
    %c0_250 = arith.constant 0 : index
    %c1152_251 = arith.constant 1152 : index
    %344 = vector.load %arg5[%c0_250, %c1152_251] : memref<1x1280xf32, #tpu.memory_space<vmem>>, vector<1x128xf32>
    %345 = vector.shape_cast %344 : vector<1x128xf32> to vector<1x128xf32>
    %346 = vector.broadcast %345 : vector<1x128xf32> to vector<49x128xf32>
    %cst_252 = arith.constant 0.000000e+00 : f32
    %347 = vector.broadcast %cst_252 : f32 to vector<49x128xf32>
    %c0_253 = arith.constant 0 : index
    %c0_254 = arith.constant 0 : index
    %c0_255 = arith.constant 0 : index
    %348 = vector.load %arg1[%c0_253, %c0_254, %c0_255] : memref<4x49x3xf32, #tpu.memory_space<vmem>>, vector<1x49x3xf32>
    %349 = vector.shape_cast %348 : vector<1x49x3xf32> to vector<49x3xf32>
    %cst_256 = arith.constant dense<0.000000e+00> : vector<49x128xf32>
    %350 = tpu.matmul %349, %343, %cst_256 {dimension_numbers = #tpu.dot_dimension_numbers<[1], [0], [0], [1], [0, 0, 1, 1], [], []>} : vector<49x3xf32>, vector<3x128xf32>, vector<49x128xf32> -> vector<49x128xf32>
    %351 = arith.addf %350, %346 : vector<49x128xf32>
    %cst_257 = arith.constant 0.000000e+00 : f32
    %352 = vector.broadcast %cst_257 : f32 to vector<49x128xf32>
    %353 = arith.maximumf %351, %352 : vector<49x128xf32>
    %354 = arith.addf %347, %353 : vector<49x128xf32>
    %c1_258 = arith.constant 1 : index
    %c0_259 = arith.constant 0 : index
    %c0_260 = arith.constant 0 : index
    %355 = vector.load %arg1[%c1_258, %c0_259, %c0_260] : memref<4x49x3xf32, #tpu.memory_space<vmem>>, vector<1x49x3xf32>
    %356 = vector.shape_cast %355 : vector<1x49x3xf32> to vector<49x3xf32>
    %cst_261 = arith.constant dense<0.000000e+00> : vector<49x128xf32>
    %357 = tpu.matmul %356, %343, %cst_261 {dimension_numbers = #tpu.dot_dimension_numbers<[1], [0], [0], [1], [0, 0, 1, 1], [], []>} : vector<49x3xf32>, vector<3x128xf32>, vector<49x128xf32> -> vector<49x128xf32>
    %358 = arith.addf %357, %346 : vector<49x128xf32>
    %cst_262 = arith.constant 0.000000e+00 : f32
    %359 = vector.broadcast %cst_262 : f32 to vector<49x128xf32>
    %360 = arith.maximumf %358, %359 : vector<49x128xf32>
    %361 = arith.addf %354, %360 : vector<49x128xf32>
    %c2_263 = arith.constant 2 : index
    %c0_264 = arith.constant 0 : index
    %c0_265 = arith.constant 0 : index
    %362 = vector.load %arg1[%c2_263, %c0_264, %c0_265] : memref<4x49x3xf32, #tpu.memory_space<vmem>>, vector<1x49x3xf32>
    %363 = vector.shape_cast %362 : vector<1x49x3xf32> to vector<49x3xf32>
    %cst_266 = arith.constant dense<0.000000e+00> : vector<49x128xf32>
    %364 = tpu.matmul %363, %343, %cst_266 {dimension_numbers = #tpu.dot_dimension_numbers<[1], [0], [0], [1], [0, 0, 1, 1], [], []>} : vector<49x3xf32>, vector<3x128xf32>, vector<49x128xf32> -> vector<49x128xf32>
    %365 = arith.addf %364, %346 : vector<49x128xf32>
    %cst_267 = arith.constant 0.000000e+00 : f32
    %366 = vector.broadcast %cst_267 : f32 to vector<49x128xf32>
    %367 = arith.maximumf %365, %366 : vector<49x128xf32>
    %368 = arith.addf %361, %367 : vector<49x128xf32>
    %c3_268 = arith.constant 3 : index
    %c0_269 = arith.constant 0 : index
    %c0_270 = arith.constant 0 : index
    %369 = vector.load %arg1[%c3_268, %c0_269, %c0_270] : memref<4x49x3xf32, #tpu.memory_space<vmem>>, vector<1x49x3xf32>
    %370 = vector.shape_cast %369 : vector<1x49x3xf32> to vector<49x3xf32>
    %cst_271 = arith.constant dense<0.000000e+00> : vector<49x128xf32>
    %371 = tpu.matmul %370, %343, %cst_271 {dimension_numbers = #tpu.dot_dimension_numbers<[1], [0], [0], [1], [0, 0, 1, 1], [], []>} : vector<49x3xf32>, vector<3x128xf32>, vector<49x128xf32> -> vector<49x128xf32>
    %372 = arith.addf %371, %346 : vector<49x128xf32>
    %cst_272 = arith.constant 0.000000e+00 : f32
    %373 = vector.broadcast %cst_272 : f32 to vector<49x128xf32>
    %374 = arith.maximumf %372, %373 : vector<49x128xf32>
    %375 = arith.addf %368, %374 : vector<49x128xf32>
    %cst_273 = arith.constant 2.500000e-01 : f32
    %376 = vector.broadcast %cst_273 : f32 to vector<49x128xf32>
    %377 = arith.mulf %375, %376 : vector<49x128xf32>
    %c1152_274 = arith.constant 1152 : index
    %c0_275 = arith.constant 0 : index
    %378 = vector.load %arg6[%c1152_274, %c0_275] : memref<1280x192xf32, #tpu.memory_space<vmem>>, vector<128x192xf32>
    %cst_276 = arith.constant dense<0.000000e+00> : vector<49x192xf32>
    %379 = tpu.matmul %377, %378, %cst_276 {dimension_numbers = #tpu.dot_dimension_numbers<[1], [0], [0], [1], [0, 0, 1, 1], [], []>} : vector<49x128xf32>, vector<128x192xf32>, vector<49x192xf32> -> vector<49x192xf32>
    %380 = arith.addf %342, %379 : vector<49x192xf32>
    %c0_277 = arith.constant 0 : index
    %c0_278 = arith.constant 0 : index
    %381 = vector.load %arg3[%c0_277, %c0_278] : memref<1x192xf32, #tpu.memory_space<vmem>>, vector<1x192xf32>
    %382 = vector.shape_cast %381 : vector<1x192xf32> to vector<1x192xf32>
    %383 = vector.broadcast %382 : vector<1x192xf32> to vector<49x192xf32>
    %cst_279 = arith.constant 0.000000e+00 : f32
    %384 = vector.broadcast %cst_279 : f32 to vector<49x192xf32>
    %c0_280 = arith.constant 0 : index
    %c0_281 = arith.constant 0 : index
    %c0_282 = arith.constant 0 : index
    %385 = vector.load %arg1[%c0_280, %c0_281, %c0_282] : memref<4x49x3xf32, #tpu.memory_space<vmem>>, vector<1x49x3xf32>
    %386 = vector.shape_cast %385 : vector<1x49x3xf32> to vector<49x3xf32>
    %c0_283 = arith.constant 0 : index
    %c0_284 = arith.constant 0 : index
    %387 = vector.load %arg2[%c0_283, %c0_284] : memref<3x192xf32, #tpu.memory_space<vmem>>, vector<3x192xf32>
    %cst_285 = arith.constant dense<0.000000e+00> : vector<49x192xf32>
    %388 = tpu.matmul %386, %387, %cst_285 {dimension_numbers = #tpu.dot_dimension_numbers<[1], [0], [0], [1], [0, 0, 1, 1], [], []>} : vector<49x3xf32>, vector<3x192xf32>, vector<49x192xf32> -> vector<49x192xf32>
    %389 = arith.addf %388, %383 : vector<49x192xf32>
    %cst_286 = arith.constant 0.000000e+00 : f32
    %390 = vector.broadcast %cst_286 : f32 to vector<49x192xf32>
    %391 = arith.maximumf %389, %390 : vector<49x192xf32>
    %392 = arith.addf %384, %391 : vector<49x192xf32>
    %c1_287 = arith.constant 1 : index
    %c0_288 = arith.constant 0 : index
    %c0_289 = arith.constant 0 : index
    %393 = vector.load %arg1[%c1_287, %c0_288, %c0_289] : memref<4x49x3xf32, #tpu.memory_space<vmem>>, vector<1x49x3xf32>
    %394 = vector.shape_cast %393 : vector<1x49x3xf32> to vector<49x3xf32>
    %c0_290 = arith.constant 0 : index
    %c0_291 = arith.constant 0 : index
    %395 = vector.load %arg2[%c0_290, %c0_291] : memref<3x192xf32, #tpu.memory_space<vmem>>, vector<3x192xf32>
    %cst_292 = arith.constant dense<0.000000e+00> : vector<49x192xf32>
    %396 = tpu.matmul %394, %395, %cst_292 {dimension_numbers = #tpu.dot_dimension_numbers<[1], [0], [0], [1], [0, 0, 1, 1], [], []>} : vector<49x3xf32>, vector<3x192xf32>, vector<49x192xf32> -> vector<49x192xf32>
    %397 = arith.addf %396, %383 : vector<49x192xf32>
    %cst_293 = arith.constant 0.000000e+00 : f32
    %398 = vector.broadcast %cst_293 : f32 to vector<49x192xf32>
    %399 = arith.maximumf %397, %398 : vector<49x192xf32>
    %400 = arith.addf %392, %399 : vector<49x192xf32>
    %c2_294 = arith.constant 2 : index
    %c0_295 = arith.constant 0 : index
    %c0_296 = arith.constant 0 : index
    %401 = vector.load %arg1[%c2_294, %c0_295, %c0_296] : memref<4x49x3xf32, #tpu.memory_space<vmem>>, vector<1x49x3xf32>
    %402 = vector.shape_cast %401 : vector<1x49x3xf32> to vector<49x3xf32>
    %c0_297 = arith.constant 0 : index
    %c0_298 = arith.constant 0 : index
    %403 = vector.load %arg2[%c0_297, %c0_298] : memref<3x192xf32, #tpu.memory_space<vmem>>, vector<3x192xf32>
    %cst_299 = arith.constant dense<0.000000e+00> : vector<49x192xf32>
    %404 = tpu.matmul %402, %403, %cst_299 {dimension_numbers = #tpu.dot_dimension_numbers<[1], [0], [0], [1], [0, 0, 1, 1], [], []>} : vector<49x3xf32>, vector<3x192xf32>, vector<49x192xf32> -> vector<49x192xf32>
    %405 = arith.addf %404, %383 : vector<49x192xf32>
    %cst_300 = arith.constant 0.000000e+00 : f32
    %406 = vector.broadcast %cst_300 : f32 to vector<49x192xf32>
    %407 = arith.maximumf %405, %406 : vector<49x192xf32>
    %408 = arith.addf %400, %407 : vector<49x192xf32>
    %c3_301 = arith.constant 3 : index
    %c0_302 = arith.constant 0 : index
    %c0_303 = arith.constant 0 : index
    %409 = vector.load %arg1[%c3_301, %c0_302, %c0_303] : memref<4x49x3xf32, #tpu.memory_space<vmem>>, vector<1x49x3xf32>
    %410 = vector.shape_cast %409 : vector<1x49x3xf32> to vector<49x3xf32>
    %c0_304 = arith.constant 0 : index
    %c0_305 = arith.constant 0 : index
    %411 = vector.load %arg2[%c0_304, %c0_305] : memref<3x192xf32, #tpu.memory_space<vmem>>, vector<3x192xf32>
    %cst_306 = arith.constant dense<0.000000e+00> : vector<49x192xf32>
    %412 = tpu.matmul %410, %411, %cst_306 {dimension_numbers = #tpu.dot_dimension_numbers<[1], [0], [0], [1], [0, 0, 1, 1], [], []>} : vector<49x3xf32>, vector<3x192xf32>, vector<49x192xf32> -> vector<49x192xf32>
    %413 = arith.addf %412, %383 : vector<49x192xf32>
    %cst_307 = arith.constant 0.000000e+00 : f32
    %414 = vector.broadcast %cst_307 : f32 to vector<49x192xf32>
    %415 = arith.maximumf %413, %414 : vector<49x192xf32>
    %416 = arith.addf %408, %415 : vector<49x192xf32>
    %cst_308 = arith.constant 2.500000e-01 : f32
    %417 = vector.broadcast %cst_308 : f32 to vector<49x192xf32>
    %418 = arith.mulf %416, %417 : vector<49x192xf32>
    %419 = arith.addf %418, %380 : vector<49x192xf32>
    %c0_309 = arith.constant 0 : index
    %c0_310 = arith.constant 0 : index
    %420 = vector.load %arg7[%c0_309, %c0_310] : memref<1x192xf32, #tpu.memory_space<vmem>>, vector<1x192xf32>
    %421 = vector.broadcast %420 : vector<1x192xf32> to vector<49x192xf32>
    %422 = arith.addf %419, %421 : vector<49x192xf32>
    %cst_311 = arith.constant 1.000000e+00 : f32
    %423 = vector.broadcast %cst_311 : f32 to vector<1x49xf32>
    %cst_312 = arith.constant dense<0.000000e+00> : vector<49xf32>
    %424 = vector.multi_reduction <add>, %422, %cst_312 [1] : vector<49x192xf32> to vector<49xf32>
    %425 = vector.shape_cast %424 : vector<49xf32> to vector<49x1xf32>
    %cst_313 = arith.constant dense<0.000000e+00> : vector<1x1xf32>
    %426 = tpu.matmul %423, %425, %cst_313 {dimension_numbers = #tpu.dot_dimension_numbers<[1], [0], [0], [1], [0, 0, 1, 1], [], []>} : vector<1x49xf32>, vector<49x1xf32>, vector<1x1xf32> -> vector<1x1xf32>
    %cst_314 = arith.constant 1.06292515E-4 : f32
    %427 = vector.broadcast %cst_314 : f32 to vector<1x1xf32>
    %428 = arith.mulf %426, %427 : vector<1x1xf32>
    %429 = vector.broadcast %428 : vector<1x1xf32> to vector<49x192xf32>
    %430 = arith.subf %422, %429 : vector<49x192xf32>
    %431 = arith.mulf %430, %430 : vector<49x192xf32>
    %cst_315 = arith.constant dense<0.000000e+00> : vector<49xf32>
    %432 = vector.multi_reduction <add>, %431, %cst_315 [1] : vector<49x192xf32> to vector<49xf32>
    %433 = vector.shape_cast %432 : vector<49xf32> to vector<49x1xf32>
    %cst_316 = arith.constant dense<0.000000e+00> : vector<1x1xf32>
    %434 = tpu.matmul %423, %433, %cst_316 {dimension_numbers = #tpu.dot_dimension_numbers<[1], [0], [0], [1], [0, 0, 1, 1], [], []>} : vector<1x49xf32>, vector<49x1xf32>, vector<1x1xf32> -> vector<1x1xf32>
    %cst_317 = arith.constant 1.06292515E-4 : f32
    %435 = vector.broadcast %cst_317 : f32 to vector<1x1xf32>
    %436 = arith.mulf %434, %435 : vector<1x1xf32>
    %cst_318 = arith.constant 9.99999974E-6 : f32
    %437 = vector.broadcast %cst_318 : f32 to vector<1x1xf32>
    %438 = arith.addf %436, %437 : vector<1x1xf32>
    %439 = math.rsqrt %438 : vector<1x1xf32>
    %440 = vector.broadcast %439 : vector<1x1xf32> to vector<49x192xf32>
    %441 = arith.mulf %430, %440 : vector<49x192xf32>
    %c0_319 = arith.constant 0 : index
    %c0_320 = arith.constant 0 : index
    %442 = vector.load %arg8[%c0_319, %c0_320] : memref<49x192xf32, #tpu.memory_space<vmem>>, vector<49x192xf32>
    %443 = arith.mulf %441, %442 : vector<49x192xf32>
    %c0_321 = arith.constant 0 : index
    %c0_322 = arith.constant 0 : index
    %444 = vector.load %arg9[%c0_321, %c0_322] : memref<49x192xf32, #tpu.memory_space<vmem>>, vector<49x192xf32>
    %445 = arith.addf %443, %444 : vector<49x192xf32>
    %c0_323 = arith.constant 0 : index
    %c0_324 = arith.constant 0 : index
    %c0_325 = arith.constant 0 : index
    %446 = vector.load %arg10[%c0_323, %c0_324, %c0_325] : memref<1x49x192xf32, #tpu.memory_space<vmem>>, vector<1x49x192xf32>
    %447 = vector.shape_cast %446 : vector<1x49x192xf32> to vector<49x192xf32>
    %448 = vector.shape_cast %445 : vector<49x192xf32> to vector<1x49x192xf32>
    tpu.vector_store %arg10[%c0_323, %c0_324, %c0_325], %448 {strides = array<i32>} : memref<1x49x192xf32, #tpu.memory_space<vmem>>, vector<1x49x192xf32>,
    return
  }
  func.func @transform_0(%arg0: i32) -> (i32, i32, i32) {
    %c0_i32 = arith.constant 0 : i32
    %c0_i32_0 = arith.constant 0 : i32
    %c0_i32_1 = arith.constant 0 : i32
    return %arg0, %c0_i32, %c0_i32_0 : i32, i32, i32
  }
  func.func @transform_1(%arg0: i32) -> (i32, i32) {
    %c0_i32 = arith.constant 0 : i32
    %c0_i32_0 = arith.constant 0 : i32
    %c0_i32_1 = arith.constant 0 : i32
    return %c0_i32, %c0_i32_0 : i32, i32
  }
  func.func @transform_2(%arg0: i32) -> (i32, i32) {
    %c0_i32 = arith.constant 0 : i32
    %c0_i32_0 = arith.constant 0 : i32
    %c0_i32_1 = arith.constant 0 : i32
    return %c0_i32, %c0_i32_0 : i32, i32
  }
  func.func @transform_3(%arg0: i32) -> (i32, i32) {
    %c0_i32 = arith.constant 0 : i32
    %c0_i32_0 = arith.constant 0 : i32
    %c0_i32_1 = arith.constant 0 : i32
    return %c0_i32, %c0_i32_0 : i32, i32
  }
  func.func @transform_4(%arg0: i32) -> (i32, i32) {
    %c0_i32 = arith.constant 0 : i32
    %c0_i32_0 = arith.constant 0 : i32
    %c0_i32_1 = arith.constant 0 : i32
    return %c0_i32, %c0_i32_0 : i32, i32
  }
  func.func @transform_5(%arg0: i32) -> (i32, i32) {
    %c0_i32 = arith.constant 0 : i32
    %c0_i32_0 = arith.constant 0 : i32
    %c0_i32_1 = arith.constant 0 : i32
    return %c0_i32, %c0_i32_0 : i32, i32
  }
  func.func @transform_6(%arg0: i32) -> (i32, i32) {
    %c0_i32 = arith.constant 0 : i32
    %c0_i32_0 = arith.constant 0 : i32
    %c0_i32_1 = arith.constant 0 : i32
    return %c0_i32, %c0_i32_0 : i32, i32
  }
  func.func @transform_7(%arg0: i32) -> (i32, i32) {
    %c0_i32 = arith.constant 0 : i32
    %c0_i32_0 = arith.constant 0 : i32
    %c0_i32_1 = arith.constant 0 : i32
    return %c0_i32, %c0_i32_0 : i32, i32
  }
  func.func @transform_8(%arg0: i32) -> (i32, i32) {
    %c0_i32 = arith.constant 0 : i32
    %c0_i32_0 = arith.constant 0 : i32
    %c0_i32_1 = arith.constant 0 : i32
    return %c0_i32, %c0_i32_0 : i32, i32
  }
  func.func @transform_9(%arg0: i32) -> (i32, i32, i32) {
    %c0_i32 = arith.constant 0 : i32
    %c0_i32_0 = arith.constant 0 : i32
    %c0_i32_1 = arith.constant 0 : i32
    return %arg0, %c0_i32, %c0_i32_0 : i32, i32, i32
  }
}

module attributes {stable_mosaic.version = 11 : i64} {
  func.func @_fuse_kernel(%arg0: i32, %arg1: memref<1x1xf32, #tpu.memory_space<smem>>, %arg2: memref<2x2x2xf32, #tpu.memory_space<vmem>>, %arg3: memref<1x2xf32, #tpu.memory_space<vmem>>, %arg4: memref<2x2xf32, #tpu.memory_space<vmem>>, %arg5: memref<2x64xf32, #tpu.memory_space<vmem>>, %arg6: memref<1x64xf32, #tpu.memory_space<vmem>>, %arg7: memref<64x2xf32, #tpu.memory_space<vmem>>, %arg8: memref<1x2xf32, #tpu.memory_space<vmem>>, %arg9: memref<2x2xf32, #tpu.memory_space<vmem>>) attributes {dimension_semantics = [#tpu.dimension_semantics<arbitrary>], iteration_bounds = array<i64: 1>, scalar_prefetch = 0 : i64, scratch_operands = 0 : i64, tpu.core_type = #tpu.core_type<tc>, window_params = [{transform_indices = @transform_0, window_bounds = array<i64: 1, 1>}, {pipeline_mode = #tpu.pipeline_mode<synchronous>, transform_indices = @transform_1, window_bounds = array<i64: 2, 2, 2>}, {pipeline_mode = #tpu.pipeline_mode<synchronous>, transform_indices = @transform_2, window_bounds = array<i64: 1, 2>}, {pipeline_mode = #tpu.pipeline_mode<synchronous>, transform_indices = @transform_3, window_bounds = array<i64: 2, 2>}, {pipeline_mode = #tpu.pipeline_mode<synchronous>, transform_indices = @transform_4, window_bounds = array<i64: 2, 64>}, {pipeline_mode = #tpu.pipeline_mode<synchronous>, transform_indices = @transform_5, window_bounds = array<i64: 1, 64>}, {pipeline_mode = #tpu.pipeline_mode<synchronous>, transform_indices = @transform_6, window_bounds = array<i64: 64, 2>}, {pipeline_mode = #tpu.pipeline_mode<synchronous>, transform_indices = @transform_7, window_bounds = array<i64: 1, 2>}, {pipeline_mode = #tpu.pipeline_mode<synchronous>, transform_indices = @transform_8, window_bounds = array<i64: 2, 2>}]} {
    %c0 = arith.constant 0 : index
    %c0_0 = arith.constant 0 : index
    %c0_1 = arith.constant 0 : index
    %0 = vector.load %arg2[%c0, %c0_0, %c0_1] : memref<2x2x2xf32, #tpu.memory_space<vmem>>, vector<1x2x2xf32>
    %1 = vector.shape_cast %0 : vector<1x2x2xf32> to vector<2x2xf32>
    %c1 = arith.constant 1 : index
    %c0_2 = arith.constant 0 : index
    %c0_3 = arith.constant 0 : index
    %2 = vector.load %arg2[%c1, %c0_2, %c0_3] : memref<2x2x2xf32, #tpu.memory_space<vmem>>, vector<1x2x2xf32>
    %3 = vector.shape_cast %2 : vector<1x2x2xf32> to vector<2x2xf32>
    %4 = arith.addf %1, %3 : vector<2x2xf32>
    %c0_4 = arith.constant 0 : index
    %c0_5 = arith.constant 0 : index
    %5 = vector.load %arg3[%c0_4, %c0_5] : memref<1x2xf32, #tpu.memory_space<vmem>>, vector<1x2xf32>
    %6 = vector.broadcast %5 : vector<1x2xf32> to vector<2x2xf32>
    %7 = arith.addf %4, %6 : vector<2x2xf32>
    %c0_6 = arith.constant 0 : index
    %c0_7 = arith.constant 0 : index
    %8 = vector.load %arg4[%c0_6, %c0_7] : memref<2x2xf32, #tpu.memory_space<vmem>>, vector<2x2xf32>
    %c0_8 = arith.constant 0 : index
    %c0_9 = arith.constant 0 : index
    %9 = vector.load %arg5[%c0_8, %c0_9] : memref<2x64xf32, #tpu.memory_space<vmem>>, vector<2x64xf32>
    %cst = arith.constant dense<0.000000e+00> : vector<2x64xf32>
    %10 = tpu.matmul %8, %9, %cst {dimension_numbers = #tpu.dot_dimension_numbers<[1], [0], [0], [1], [0, 0, 1, 1], [], []>} : vector<2x2xf32>, vector<2x64xf32>, vector<2x64xf32> -> vector<2x64xf32>
    %c0_10 = arith.constant 0 : index
    %c0_11 = arith.constant 0 : index
    %11 = vector.load %arg6[%c0_10, %c0_11] : memref<1x64xf32, #tpu.memory_space<vmem>>, vector<1x64xf32>
    %12 = vector.broadcast %11 : vector<1x64xf32> to vector<2x64xf32>
    %13 = arith.addf %10, %12 : vector<2x64xf32>
    %cst_12 = arith.constant 0.000000e+00 : f32
    %14 = vector.broadcast %cst_12 : f32 to vector<2x64xf32>
    %15 = arith.maximumf %13, %14 : vector<2x64xf32>
    %c0_13 = arith.constant 0 : index
    %c0_14 = arith.constant 0 : index
    %16 = vector.load %arg7[%c0_13, %c0_14] : memref<64x2xf32, #tpu.memory_space<vmem>>, vector<64x2xf32>
    %cst_15 = arith.constant dense<0.000000e+00> : vector<2x2xf32>
    %17 = tpu.matmul %15, %16, %cst_15 {dimension_numbers = #tpu.dot_dimension_numbers<[1], [0], [0], [1], [0, 0, 1, 1], [], []>} : vector<2x64xf32>, vector<64x2xf32>, vector<2x2xf32> -> vector<2x2xf32>
    %c0_16 = arith.constant 0 : index
    %c0_17 = arith.constant 0 : index
    %18 = vector.load %arg8[%c0_16, %c0_17] : memref<1x2xf32, #tpu.memory_space<vmem>>, vector<1x2xf32>
    %19 = vector.broadcast %18 : vector<1x2xf32> to vector<2x2xf32>
    %20 = arith.addf %17, %19 : vector<2x2xf32>
    %c0_18 = arith.constant 0 : index
    %c0_19 = arith.constant 0 : index
    %21 = memref.load %arg1[%c0_18, %c0_19] : memref<1x1xf32, #tpu.memory_space<smem>>
    %22 = vector.broadcast %21 : f32 to vector<2x2xf32>
    %23 = arith.mulf %22, %7 : vector<2x2xf32>
    %cst_20 = arith.constant 1.000000e+00 : f32
    %24 = arith.subf %cst_20, %21 : f32
    %25 = vector.broadcast %24 : f32 to vector<2x2xf32>
    %26 = arith.mulf %25, %20 : vector<2x2xf32>
    %27 = arith.addf %23, %26 : vector<2x2xf32>
    %cst_21 = arith.constant dense<0xFF800000> : vector<2xf32>
    %28 = vector.multi_reduction <maximumf>, %27, %cst_21 [1] : vector<2x2xf32> to vector<2xf32>
    %29 = vector.shape_cast %28 : vector<2xf32> to vector<2x1xf32>
    %30 = vector.broadcast %29 : vector<2x1xf32> to vector<2x2xf32>
    %31 = arith.subf %27, %30 : vector<2x2xf32>
    %32 = math.exp %31 : vector<2x2xf32>
    %cst_22 = arith.constant dense<0.000000e+00> : vector<2xf32>
    %33 = vector.multi_reduction <add>, %32, %cst_22 [1] : vector<2x2xf32> to vector<2xf32>
    %34 = vector.shape_cast %33 : vector<2xf32> to vector<2x1xf32>
    %35 = vector.broadcast %34 : vector<2x1xf32> to vector<2x2xf32>
    %36 = arith.divf %32, %35 : vector<2x2xf32>
    %c0_23 = arith.constant 0 : index
    %c0_24 = arith.constant 0 : index
    %37 = vector.load %arg9[%c0_23, %c0_24] : memref<2x2xf32, #tpu.memory_space<vmem>>, vector<2x2xf32>
    tpu.vector_store %arg9[%c0_23, %c0_24], %36 {strides = array<i32>} : memref<2x2xf32, #tpu.memory_space<vmem>>, vector<2x2xf32>,
    return
  }
  func.func @transform_0(%arg0: i32) -> (i32, i32) {
    %c0_i32 = arith.constant 0 : i32
    %c0_i32_0 = arith.constant 0 : i32
    %c0_i32_1 = arith.constant 0 : i32
    return %c0_i32, %c0_i32_0 : i32, i32
  }
  func.func @transform_1(%arg0: i32) -> (i32, i32, i32) {
    %c0_i32 = arith.constant 0 : i32
    %c0_i32_0 = arith.constant 0 : i32
    %c0_i32_1 = arith.constant 0 : i32
    %c0_i32_2 = arith.constant 0 : i32
    return %c0_i32, %c0_i32_0, %c0_i32_1 : i32, i32, i32
  }
  func.func @transform_2(%arg0: i32) -> (i32, i32) {
    %c0_i32 = arith.constant 0 : i32
    %c0_i32_0 = arith.constant 0 : i32
    %c0_i32_1 = arith.constant 0 : i32
    return %c0_i32, %c0_i32_0 : i32, i32
  }
  func.func @transform_3(%arg0: i32) -> (i32, i32) {
    %c0_i32 = arith.constant 0 : i32
    %c0_i32_0 = arith.constant 0 : i32
    %c0_i32_1 = arith.constant 0 : i32
    return %c0_i32, %c0_i32_0 : i32, i32
  }
  func.func @transform_4(%arg0: i32) -> (i32, i32) {
    %c0_i32 = arith.constant 0 : i32
    %c0_i32_0 = arith.constant 0 : i32
    %c0_i32_1 = arith.constant 0 : i32
    return %c0_i32, %c0_i32_0 : i32, i32
  }
  func.func @transform_5(%arg0: i32) -> (i32, i32) {
    %c0_i32 = arith.constant 0 : i32
    %c0_i32_0 = arith.constant 0 : i32
    %c0_i32_1 = arith.constant 0 : i32
    return %c0_i32, %c0_i32_0 : i32, i32
  }
  func.func @transform_6(%arg0: i32) -> (i32, i32) {
    %c0_i32 = arith.constant 0 : i32
    %c0_i32_0 = arith.constant 0 : i32
    %c0_i32_1 = arith.constant 0 : i32
    return %c0_i32, %c0_i32_0 : i32, i32
  }
  func.func @transform_7(%arg0: i32) -> (i32, i32) {
    %c0_i32 = arith.constant 0 : i32
    %c0_i32_0 = arith.constant 0 : i32
    %c0_i32_1 = arith.constant 0 : i32
    return %c0_i32, %c0_i32_0 : i32, i32
  }
  func.func @transform_8(%arg0: i32) -> (i32, i32) {
    %c0_i32 = arith.constant 0 : i32
    %c0_i32_0 = arith.constant 0 : i32
    %c0_i32_1 = arith.constant 0 : i32
    return %c0_i32, %c0_i32_0 : i32, i32
  }
}

module attributes {stable_mosaic.version = 11 : i64} {
  func.func @_head_matmul_kernel(%arg0: i32, %arg1: i32, %arg2: memref<2x4736xf32, #tpu.memory_space<vmem>>, %arg3: memref<4736x128xbf16, #tpu.memory_space<vmem>>, %arg4: memref<1x128xf32, #tpu.memory_space<vmem>>, %arg5: memref<128x2xf32, #tpu.memory_space<vmem>>, %arg6: memref<1x2x2xf32, #tpu.memory_space<vmem>>, %arg7: memref<2x128xf32, #tpu.memory_space<vmem>>) attributes {dimension_semantics = [#tpu.dimension_semantics<parallel>, #tpu.dimension_semantics<arbitrary>], iteration_bounds = array<i64: 2, 2>, scalar_prefetch = 0 : i64, scratch_operands = 1 : i64, tpu.core_type = #tpu.core_type<tc>, window_params = [{transform_indices = @transform_0, window_bounds = array<i64: 2, 4736>}, {transform_indices = @transform_1, window_bounds = array<i64: 4736, 128>}, {transform_indices = @transform_2, window_bounds = array<i64: 1, 128>}, {transform_indices = @transform_3, window_bounds = array<i64: 128, 2>}, {transform_indices = @transform_4, window_bounds = array<i64: 1, 2, 2>}]} {
    %c0_i32 = arith.constant 0 : i32
    %0 = arith.cmpi eq, %arg1, %c0_i32 : i32
    %1 = arith.extui %0 : i1 to i32
    %c0_i32_0 = arith.constant 0 : i32
    %2 = arith.cmpi ne, %1, %c0_i32_0 : i32
    scf.if %2 {
      %cst_9 = arith.constant 0.000000e+00 : f32
      %13 = vector.broadcast %cst_9 : f32 to vector<2x128xf32>
      %c0_10 = arith.constant 0 : index
      %c0_11 = arith.constant 0 : index
      %14 = vector.load %arg7[%c0_10, %c0_11] : memref<2x128xf32, #tpu.memory_space<vmem>>, vector<2x128xf32>
      tpu.vector_store %arg7[%c0_10, %c0_11], %13 {strides = array<i32>} : memref<2x128xf32, #tpu.memory_space<vmem>>, vector<2x128xf32>,
    } else {
    }
    %c0 = arith.constant 0 : index
    %c0_1 = arith.constant 0 : index
    %3 = vector.load %arg7[%c0, %c0_1] : memref<2x128xf32, #tpu.memory_space<vmem>>, vector<2x128xf32>
    %c0_2 = arith.constant 0 : index
    %c0_3 = arith.constant 0 : index
    %4 = vector.load %arg2[%c0_2, %c0_3] : memref<2x4736xf32, #tpu.memory_space<vmem>>, vector<2x4736xf32>
    %5 = arith.truncf %4 : vector<2x4736xf32> to vector<2x4736xbf16>
    %c0_4 = arith.constant 0 : index
    %c0_5 = arith.constant 0 : index
    %6 = vector.load %arg3[%c0_4, %c0_5] : memref<4736x128xbf16, #tpu.memory_space<vmem>>, vector<4736x128xbf16>
    %cst = arith.constant dense<0.000000e+00> : vector<2x128xf32>
    %7 = tpu.matmul %5, %6, %cst {dimension_numbers = #tpu.dot_dimension_numbers<[1], [0], [0], [1], [0, 0, 1, 1], [], []>} : vector<2x4736xbf16>, vector<4736x128xbf16>, vector<2x128xf32> -> vector<2x128xf32>
    %8 = arith.addf %3, %7 : vector<2x128xf32>
    %c0_6 = arith.constant 0 : index
    %c0_7 = arith.constant 0 : index
    %9 = vector.load %arg7[%c0_6, %c0_7] : memref<2x128xf32, #tpu.memory_space<vmem>>, vector<2x128xf32>
    tpu.vector_store %arg7[%c0_6, %c0_7], %8 {strides = array<i32>} : memref<2x128xf32, #tpu.memory_space<vmem>>, vector<2x128xf32>,
    %c1_i32 = arith.constant 1 : i32
    %10 = arith.cmpi eq, %arg1, %c1_i32 : i32
    %11 = arith.extui %10 : i1 to i32
    %c0_i32_8 = arith.constant 0 : i32
    %12 = arith.cmpi ne, %11, %c0_i32_8 : i32
    scf.if %12 {
      %c0_9 = arith.constant 0 : index
      %c0_10 = arith.constant 0 : index
      %13 = vector.load %arg7[%c0_9, %c0_10] : memref<2x128xf32, #tpu.memory_space<vmem>>, vector<2x128xf32>
      %c0_11 = arith.constant 0 : index
      %c0_12 = arith.constant 0 : index
      %14 = vector.load %arg4[%c0_11, %c0_12] : memref<1x128xf32, #tpu.memory_space<vmem>>, vector<1x128xf32>
      %15 = vector.broadcast %14 : vector<1x128xf32> to vector<2x128xf32>
      %16 = arith.addf %13, %15 : vector<2x128xf32>
      %cst_13 = arith.constant 0.000000e+00 : f32
      %17 = vector.broadcast %cst_13 : f32 to vector<2x128xf32>
      %18 = arith.maximumf %16, %17 : vector<2x128xf32>
      %c0_14 = arith.constant 0 : index
      %c0_15 = arith.constant 0 : index
      %19 = vector.load %arg5[%c0_14, %c0_15] : memref<128x2xf32, #tpu.memory_space<vmem>>, vector<128x2xf32>
      %cst_16 = arith.constant dense<0.000000e+00> : vector<2x2xf32>
      %20 = tpu.matmul %18, %19, %cst_16 {dimension_numbers = #tpu.dot_dimension_numbers<[1], [0], [0], [1], [0, 0, 1, 1], [], []>} : vector<2x128xf32>, vector<128x2xf32>, vector<2x2xf32> -> vector<2x2xf32>
      %c0_17 = arith.constant 0 : index
      %c0_18 = arith.constant 0 : index
      %c0_19 = arith.constant 0 : index
      %21 = vector.load %arg6[%c0_17, %c0_18, %c0_19] : memref<1x2x2xf32, #tpu.memory_space<vmem>>, vector<1x2x2xf32>
      %22 = vector.shape_cast %21 : vector<1x2x2xf32> to vector<2x2xf32>
      %23 = vector.shape_cast %20 : vector<2x2xf32> to vector<1x2x2xf32>
      tpu.vector_store %arg6[%c0_17, %c0_18, %c0_19], %23 {strides = array<i32>} : memref<1x2x2xf32, #tpu.memory_space<vmem>>, vector<1x2x2xf32>,
    } else {
    }
    return
  }
  func.func @transform_0(%arg0: i32, %arg1: i32) -> (i32, i32) {
    %c0_i32 = arith.constant 0 : i32
    %c0_i32_0 = arith.constant 0 : i32
    return %c0_i32, %arg1 : i32, i32
  }
  func.func @transform_1(%arg0: i32, %arg1: i32) -> (i32, i32) {
    %c0_i32 = arith.constant 0 : i32
    return %arg1, %arg0 : i32, i32
  }
  func.func @transform_2(%arg0: i32, %arg1: i32) -> (i32, i32) {
    %c0_i32 = arith.constant 0 : i32
    %c0_i32_0 = arith.constant 0 : i32
    return %c0_i32, %arg0 : i32, i32
  }
  func.func @transform_3(%arg0: i32, %arg1: i32) -> (i32, i32) {
    %c0_i32 = arith.constant 0 : i32
    %c0_i32_0 = arith.constant 0 : i32
    return %arg0, %c0_i32 : i32, i32
  }
  func.func @transform_4(%arg0: i32, %arg1: i32) -> (i32, i32, i32) {
    %c0_i32 = arith.constant 0 : i32
    %c0_i32_0 = arith.constant 0 : i32
    %c0_i32_1 = arith.constant 0 : i32
    return %arg0, %c0_i32, %c0_i32_0 : i32, i32, i32
  }
}

</mosaic_0001>

<bundles_post_ra>
// kernel: forward.5
= control target key start
LH: loop header
LB: loop body
LE: loop exit
PB: predicated region body
PF: predicated region fallthrough
CT: control target
= control target key end

     0   :  { %14 = vsyncpa [#allocation4], 0  ;;  %s508_s0 = inlined_call_operand.<no memory space> [shape: f32[1,1], index: 0, kind: input, shape index: {}]   ;;  %s509_s1 = inlined_call_operand.vmem [shape: f32[2,2,2], index: 1, kind: input, shape index: {}]   ;;  %s510_s2 = inlined_call_operand.hbm [shape: f32[1,2], index: 2, kind: input, shape index: {}]   ;;  %s511_s3 = inlined_call_operand.hbm [shape: f32[2,2], index: 3, kind: input, shape index: {}]   ;;  %s512_s4 = inlined_call_operand.hbm [shape: f32[2,64], index: 4, kind: input, shape index: {}]   ;;  %s513_s5 = inlined_call_operand.hbm [shape: f32[1,64], index: 5, kind: input, shape index: {}]   ;;  %s514_s6 = inlined_call_operand.vmem [shape: f32[64,2], index: 6, kind: input, shape index: {}]   ;;  %s515_s7 = inlined_call_operand.hbm [shape: f32[1,2], index: 7, kind: input, shape index: {}]   ;;  %s516_s8 = inlined_call_operand.hbm [shape: f32[2,2], index: 8, kind: output, shape index: {}]  }
   0x1   :  { %15 = vsyncpa [#allocation7], 0 }
   0x2   :  { %16 = vsyncpa [#allocation10], 0  ;;  %s38_s29 = sshll.u32 %s511_s3, 4  ;;  %s39_s29 = int_to_ptr.hbm [resolvable:$true] %s38_s29 }
   0x3   :  { %17 = vsyncpa [#allocation5], 0  ;;  %s400_s30 = smov [#allocation6]   ;;  %s60_s12 = sshll.u32 %s513_s5, 4  ;;  %s61_s12 = int_to_ptr.hbm [resolvable:$true] %s60_s12 }
   0x4   :  { %s40_s9 = sshll.u32 %s400_s30, 4  ;;  %s401_s13 = smov [#allocation9]   ;;  %s41_s9 = int_to_ptr.vmem [resolvable:$true] %s40_s9 }
   0x5   :  { %43 = dma.hbm_to_vmem [thread:$0]  %s39_s29, 32, %s41_s9, [#allocation7]  }
   0x6   :  { %s62_s14 = sshll.u32 %s401_s13, 4  ;;  %s27_s17 = sshll.u32 %s510_s2, 4  ;;  %s63_s14 = int_to_ptr.vmem [resolvable:$true] %s62_s14  ;;  %s28_s17 = int_to_ptr.hbm [resolvable:$true] %s27_s17 }
   0x7   :  { %65 = dma.hbm_to_vmem [thread:$0]  %s61_s12, 16, %s63_s14, [#allocation10]  }
   0x8   :  { %s49_s19 = sshll.u32 %s512_s4, 4  ;;  %s402_s20 = smov [#allocation3]   ;;  %s50_s19 = int_to_ptr.hbm [resolvable:$true] %s49_s19 }
   0x9   :  { %s29_s21 = sshll.u32 %s402_s20, 4  ;;  %s403_s5 = smov [#allocation8]   ;;  %s30_s21 = int_to_ptr.vmem [resolvable:$true] %s29_s21 }
   0xa   :  { %32 = dma.hbm_to_vmem [thread:$0]  %s28_s17, 16, %s30_s21, [#allocation4]  }
   0xb   :  { %s51_s22 = sshll.u32 %s403_s5, 4  ;;  %s73_s25 = sshll.u32 %s515_s7, 4  ;;  %s52_s22 = int_to_ptr.vmem [resolvable:$true] %s51_s22  ;;  %s74_s25 = int_to_ptr.hbm [resolvable:$true] %s73_s25 }
   0xc   :  { %54 = dma.hbm_to_vmem [thread:$0]  %s50_s19, 32, %s52_s22, [#allocation7]  }
   0xd   :  { %s404_s2 = smov [#allocation11]  }
   0xe   :  { %s75_s26 = sshll.u32 %s404_s2, 4  ;;  %s76_s26 = int_to_ptr.vmem [resolvable:$true] %s75_s26 }
   0xf   :  { %78 = dma.hbm_to_vmem [thread:$0]  %s74_s25, 16, %s76_s26, [#allocation10]  }
  0x10   :  { %392 = dma.done.wait [#allocation4], 16  }
  0x11   :  { %393 = vsyncadd [#allocation4], 4294967280 }
  0x12   :  { %394 = dma.done.wait [#allocation7], 64  }
  0x13   :  { %395 = vsyncadd [#allocation7], 4294967232 }
  0x14   :  { %396 = dma.done.wait [#allocation10], 32  }
  0x15   :  { %397 = vsyncadd [#allocation10], 4294967264  ;;  %vm118_vm0 = vcmask 1041408   ;;  %vm114_vm1 = vcmask 15360   ;;  %v109_v0 = vld [vmem:[#allocation8] sm:$0x3]  ;;  %v180_v20 = vstv %s508_s0 }
  0x16   :  { %v108_v1 = vld [vmem:[#allocation6] sm:$0x3]  ;;  %v150_v2 = vld [vmem:[%s514_s6 + $0x38] sm:$0xff]  ;;  %232 = vmatpush.msk.msra.mxu0 %vm118_vm0, %v109_v0  ;;  %v149_v3 = vld [vmem:[%s514_s6 + $0x30] sm:$0xff]  ;;  %vm155_vm2 = vcmask 523264   ;;  %vm186_vm3 = vcmask 9216  }
  0x17   :  { %167 = vmatpush.msra.mxu1 %v150_v2  ;;  %233 = vmatmul.msk.f32.vlgmr.msra.gmra.mxu0 %vm114_vm1, %v108_v1  ;;  %v148_v4 = vld [vmem:[%s514_s6 + $0x28] sm:$0xff]  ;;  %v147_v5 = vld [vmem:[%s514_s6 + $0x20] sm:$0xff]  ;;  %v146_v6 = vld [vmem:[%s514_s6 + $0x18] sm:$0xff]  ;;  %s219_s26 = sshll.u32 %s516_s8, 4  ;;  %s220_s26 = int_to_ptr.hbm [resolvable:$true] %s219_s26 }
  0x18   :  { %v145_v7 = vld [vmem:[%s514_s6 + $0x10] sm:$0xff]  ;;  %v144_v8 = vld [vmem:[%s514_s6 + $0x8] sm:$0xff]  ;;  %v143_v9 = vld [vmem:[%s514_s6] sm:$0xff]  ;;  %s182_s6 = ssub.f32 1.0, %s508_s0  ;;  %s405_s0 = smov [#allocation12]  }
  0x19   :  { %168 = vmatpush.msra.mxu1 %v149_v3  ;;  %v241_v10 = vld [vmem:[#allocation9] ss:$0 sm:$0xff]  ;;  %v99_v14 = vld [vmem:[%s509_s1] sm:$0x3]  ;;  %v231_v15 = vld [vmem:[%s509_s1 + $0x2] sm:$0x3] }
  0x1a   :  { %v102_v16 = vadd.f32 %v231_v15, %v99_v14  ;;  %v243_v17 = vld [vmem:[#allocation3] ss:$0 sm:$0xff]  ;;  %v242_v18 = vld [vmem:[#allocation11] ss:$0 sm:$0xff]  ;;  %v183_v22 = vstv %s182_s6  ;;  %s217_s1 = sshll.u32 %s405_s0, 4  ;;  %s218_s1 = int_to_ptr.vmem [resolvable:$true] %s217_s1 }
  0x1b   :  { %169 = vmatpush.msra.mxu1 %v148_v4 }
  0x1c   :  { %v107_v19 = vadd.f32 %v243_v17, %v102_v16 }
  0x1d   :  { %170 = vmatpush.msra.mxu1 %v147_v5 }
  0x1e   :  { %v181_v24 = vmul.f32 %v180_v20, %v107_v19 }
  0x1f   :  { %171 = vmatpush.msra.mxu1 %v146_v6 }
  0x21   :  { %172 = vmatpush.msra.mxu1 %v145_v7 }
  0x23   :  { %173 = vmatpush.msra.mxu1 %v144_v8 }
  0x25   :  { %174 = vmatpush.msra.mxu1 %v143_v9 }
  0x94   :  { %v139_v11 = vpop.f32.mrf.mxu0 }
  0x95   :  { %v140_v12 = vadd.f32 %v241_v10, %v139_v11 }
  0x97   :  { %v142_v13 = vmax.f32 %v140_v12, 0.0 }
  0x99   :  { %234 = vmatmul.msk.f32.vlgmr.msra.gmra.mxu1 %vm155_vm2, %v142_v13 }
 0x116   :  { %v176_v21 = vpop.f32.mrf.mxu1 }
 0x117   :  { %v177_v23 = vadd.f32 %v242_v18, %v176_v21 }
 0x119   :  { %v184_v25 = vmul.f32 %v183_v22, %v177_v23 }
 0x11b   :  { %v185_v26 = vadd.f32 %v184_v25, %v181_v24 }
 0x11d   :  { %v187_v27 = vsel %vm186_vm3, %v185_v26, -inf }
 0x11e   :  { %188 = vmax.xlane.f32.xlu0 %v187_v27 }
 0x191   :  { %v189_v28 = vpop.xlane.xlu0 %188 }
 0x192   :  { %v190_v29 = vsub.f32 %v185_v26, %v189_v28 }
 0x194   :  { %v191_v30 = vmul.f32 1.442695, %v190_v29 }
 0x196   :  { %244 = vpow2.f32 %v191_v30 }
 0x19c   :  { %v245_v31 = vpop.eup %244 }
 0x19d   :  { %v193_v32 = vsel %vm186_vm3, %v245_v31, 0.0 }
 0x19e   :  { %194 = vadd.xlane.f32.xlu0 %v193_v32 }
 0x211   :  { %v195_v33 = vpop.xlane.xlu0 %194 }
 0x212   :  { %246 = vrcp.f32 %v195_v33  ;;  %v207_v37 = vand.u32 2147483648, %v195_v33  ;;  %v205_v39 = vand.u32 2147483647, %v195_v33  ;;  %vm201_vm5 = vweird.f32 %v195_v33 }
 0x214   :  { %v208_v41 = vor.u32 1.1754944e-38, %v207_v37  ;;  %vm206_vm7 = vcmp.eq.f32.partialorder %v205_v39, 8.507059e+37 }
 0x218   :  { %v247_v34 = vpop.eup %246 }
 0x219   :  { %v197_v35 = vmul.f32 %v247_v34, %v195_v33  ;;  %vm202_vm4 = vweird.f32 %v247_v34 }
 0x21a   :  { %vm203_vm6 = vmor %vm201_vm5, %vm202_vm4 }
 0x21b   :  { %v198_v36 = vsub.f32 1.0, %v197_v35 }
 0x21d   :  { %v199_v38 = vmul.f32 %v247_v34, %v198_v36 }
 0x21f   :  { %v200_v40 = vadd.f32 %v247_v34, %v199_v38 }
 0x221   :  { %v204_v42 = vsel %vm203_vm6, %v247_v34, %v200_v40 }
 0x222   :  { %v209_v43 = vsel %vm206_vm7, %v208_v41, %v204_v42 }
 0x223   :  { %v210_v44 = vmul.f32 %v245_v31, %v209_v43 }
 0x225   :  { %211 = vst.msk [vmem:[#allocation12] sm:$0x3] %vm186_vm3, %v210_v44 }
 0x226   :  { %222 = dma.vmem_to_hbm [thread:$0]  %s218_s1, 32, %s220_s26, [#allocation5]  }
 0x227   :  { %398 = dma.done.wait [#allocation5], 32  }
 0x228   :  { %399 = vsyncadd [#allocation5], 4294967264 }
 0x229   :  { %227 = vsyncpa [#allocation4], 1 }
 0x22a   :  { %228 = vsyncpa [#allocation7], 1 }
 0x22b   :  { %229 = vsyncpa [#allocation10], 1 }
 0x22c   :  { %230 = vsyncpa [#allocation5], 1 }

// kernel: forward.4
= control target key start
LH: loop header
LB: loop body
LE: loop exit
PB: predicated region body
PF: predicated region fallthrough
CT: control target
= control target key end

     0   :  { %s5856_s0 = inlined_call_operand.vmem [shape: f32[2,9472], index: 0, kind: input, shape index: {}]   ;;  %s5857_s1 = inlined_call_operand.hbm [shape: bf16[9472,256], index: 1, kind: input, shape index: {}]   ;;  %s5858_s2 = inlined_call_operand.hbm [shape: f32[1,256], index: 2, kind: input, shape index: {}]   ;;  %s5859_s3 = inlined_call_operand.vmem [shape: f32[256,2], index: 3, kind: input, shape index: {}]   ;;  %s5860_s4 = inlined_call_operand.vmem [shape: f32[2,2,2], index: 4, kind: output, shape index: {}]  }
   0x1   :  { %5863 = sst [smem:[#allocation11_spill]] %s5857_s1 }
   0x2   :  { %9 = vsyncpa [#allocation4], 0 }
   0x3   :  { %11 = vsyncpa [#allocation4 + $0x1], 0 }
   0x4   :  { %12 = vsyncpa [#allocation6], 0 }
   0x5   :  { %14 = vsyncpa [#allocation6 + $0x1], 0  ;;  %s5271_s15 = smov 0   ;;  %s5273_s16 = smov 0  }
   0x6   :  { %s5275_s17 = smov 0   ;;  %s5277_s18 = smov 0  }
   0x7   :  { %s5279_s19 = smov 0   ;;  %s5281_s20 = smov 0  }
   0x8   :  { %s5283_s21 = smov 0   ;;  %s5285_s22 = smov 0  }
   0x9   :  { %s5287_s23 = smov 0   ;;  %s5289_s24 = smov 0  }
   0xa   :  { %s5291_s25 = smov 0  }
   0xb LB: > { %s29_s26 = sadd.s32 1, %s5232_s23  ;;  %p74_p1 = scmp.ne.s32.totalorder %s5220_s20, %s5216_s19  ;;  %s5240_s25 = sphi %s5291_s25, %s20_s25   ;;  %s5236_s24 = sphi %s5289_s24, %s5883_s24   ;;  %s5232_s23 = sphi %s5287_s23, %s5882_s23   ;;  %s5228_s22 = sphi %s5285_s22, %s5881_s22   ;;  %s5224_s21 = sphi %s5283_s21, %s5880_s21   ;;  %s5220_s20 = sphi %s5281_s20, %s5879_s20   ;;  %s5216_s19 = sphi %s5279_s19, %s5878_s19   ;;  %s5212_s18 = sphi %s5277_s18, %s5877_s18   ;;  %s5208_s17 = sphi %s5275_s17, %s5876_s17   ;;  %s5204_s16 = sphi %s5273_s16, %s5875_s16   ;;  %s5200_s15 = sphi %s5271_s15, %s5874_s15  }
   0xc   : > { %p5327_p0 = scmp.ge.s32.totalorder %s29_s26, 2  ;;  %p75_p2 = scmp.eq.s32.totalorder %s5240_s25, 0 }
   0xd   : > { %p4992_p4 = scmp.lt.s32.totalorder %s5240_s25, 4  ;;  %s67_s28 = sadd.s32 1, %s5220_s20 }
   0xe   : > { %s5885_s26 = smov (%p5327_p0, %s29_s26), 0  ;;  %p76_p3 = por %p75_p2, %p74_p1 }
   0xf   : > { %5865 = sst [smem:[#allocation9_spill]] %s5885_s26  ;;  %s191_s29 = sand.u32 1, %s5220_s20  }
  0x10   : > { %s4979_s30 = smul.u32 2368, %s191_s29  ;;  %p4986_p5 = pnand %p4992_p4, %p76_p3 }
  0x11   : > { %s4682_s5 = smul.u32 1184, %s5232_s23  ;;  %s5866_s1 = sld [smem:[#allocation11_spill]] }
  0x12   : > { %s195_s7 = scalar_lea.vmem [#allocation3], %s4979_s30  ;;  %s192_s14 = scalar_lea.sflag [#allocation4], %s191_s29 }
  0x13   : > { %s200_s6 = sadd.s32 %s5236_s24, %s4682_s5  ;;  %s205_s8 = sshll.u32 %s195_s7, 4  ;;  %s206_s8 = int_to_ptr.vmem [resolvable:$true] %s205_s8 }
  0x14   : > { %s3488_s9 = sshll.u32 %s200_s6, 2  ;;  %s5242_s30 = smov 128  }
  0x15   : > { %s5243_s5 = smov 64   ;;  %s5244_s7 = smov 4  }
  0x16   : > { %p3489_p6 = scmp.ge.s32.totalorder %s5240_s25, 1  ;;  %p239_p7 = scmp.lt.s32.totalorder %s5240_s25, 5 }
  0x17   : > { %s202_s12 = scalar_lea.hbm %s5866_s1, %s3488_s9  ;;  %s3483_s9 = sadd.s32 4294967295, %s5240_s25  }
  0x18   : > { %s203_s13 = sshll.u32 %s202_s12, 4  ;;  %p5352_p8 = pnand %p3489_p6, %p239_p7  ;;  %s204_s13 = int_to_ptr.hbm [resolvable:$true] %s203_s13 }
  0x19   : > { %4988 = dma.hbm_to_vmem [thread:$0]  (!%p4986_p5), %s204_s13, 37888, %s206_s8, %s192_s14, %s5242_s30, %s5243_s5, %s5244_s7  }
  0x1a   : > { %s32_s10 = sadd.s32 1, %s5236_s24  ;;  %p80_p9 = scmp.ne.s32.totalorder %s5216_s19, %s5212_s18 }
  0x1b   : > { %s5887_s10 = smov (!%p5327_p0, %s32_s10), %s5236_s24  ;;  %s62_s29 = ssub.s32 %s5232_s23, %s5885_s26 }
  0x1c   : > { %p81_p10 = scmp.eq.s32.totalorder %s3483_s9, 0  ;;  %p34_p11 = scmp.ge.s32.totalorder %s5887_s10, 2 }
  0x1d   : > { %p100_p12 = scmp.ne.s32.totalorder %s5208_s17, %s5204_s16  ;;  %p106_p1 = scmp.ne.s32.totalorder %s5204_s16, %s5200_s15 }
  0x1e   : > { %p5367_p13 = por %p81_p10, %p80_p9  ;;  %s5889_s10 = smov (%p34_p11, %s5887_s10), 0 }
  0x1f   : > { %5869 = sst [smem:[#allocation10_spill]] %s5889_s10  ;;  %s93_s18 = sadd.s32 1, %s5208_s17 }
  0x20   : > { %p5376_p3 = por %p106_p1, %p81_p10  ;;  %s63_s11 = ssub.s32 %s5236_s24, %s5889_s10 }
  0x21   : > { %p5384_p0 = por %p100_p12, %p75_p2  ;;  %s64_s13 = sor.u32 %s63_s11, %s62_s29 }
  0x22   : > { %p91_p5 = scmp.eq.s32.totalorder %s63_s11, 0  ;;  %p65_p6 = scmp.eq.s32.totalorder %s64_s13, 0 }
  0x23   : > { %s215_s15 = sand.u32 1, %s5208_s17   ;;  %s221_s9 = scalar_lea.hbm %s5858_s2, %s5236_s24 }
  0x24   : > { %s5390_s14 = scalar_select %p91_p5, %s5208_s17, %s93_s18  }
  0x25   : > { %s5395_s30 = scalar_select %p65_p6, %s5220_s20, %s67_s28  }
  0x26   : > { %s223_s1 = sshll.u32 %s221_s9, 4  ;;  %s218_s10 = scalar_lea.vmem [#allocation5], %s215_s15  ;;  %s224_s1 = int_to_ptr.hbm [resolvable:$true] %s223_s1 }
  0x27   : > { %s225_s26 = sshll.u32 %s218_s10, 4  ;;  %p4989_p2 = pnand %p4992_p4, %p5384_p0  ;;  %s226_s26 = int_to_ptr.vmem [resolvable:$true] %s225_s26 }
  0x28   : > { %s216_s29 = scalar_lea.sflag [#allocation6], %s215_s15  ;;  %243 = sbr.rel (%p5352_p8) target bundleno = 677 (0x2a5), region = 36 }
  0x29   : > { %4991 = dma.hbm_to_vmem [thread:$0]  (!%p4989_p2), %s224_s1, 16, %s226_s26, %s216_s29  }
  0x2a   : > { %s245_s28 = sand.u32 (!%p5352_p8), 1, %s5216_s19  }
  0x2b   : > { %s4980_s18 = smul.u32 (!%p5352_p8), 2368, %s245_s28  ;;  %s246_s11 = scalar_lea.sflag (!%p5352_p8), [#allocation4], %s245_s28 }
  0x2d   : > { %s5408_s13 = scalar_lea.vmem [#allocation3], %s4980_s18 }
  0x2e   : > { %5191 = dma.done.wait (%p5367_p13), %s246_s11, 37888  }
  0x2f   : > { %5193 = vsyncadd (%p5367_p13), %s246_s11, 4294929408  ;;  %s255_s10 = sand.u32 1, %s5204_s16  }
  0x30   : > { %s256_s12 = scalar_lea.sflag [#allocation6], %s255_s10  ;;  %s5415_s1 = scalar_lea.vmem [#allocation5], %s255_s10 }
  0x31   : > { %5195 = dma.done.wait (%p5376_p3), %s256_s12, 16  }
  0x32   : > { %5197 = vsyncadd (%p5376_p3), %s256_s12, 4294967280  ;;  %s297_s26 = smul.u32 37, %s5224_s21  ;;  %s3491_s6 = sshll.u32 %s5228_s22, 4 }
  0x33   : > { %p305_p4 = scmp.lt.s32.totalorder %s3491_s6, 31  ;;  %p310_p8 = scmp.lt.s32.totalorder %s5228_s22, 1 }
  0x34   : > { %p298_p7 = scmp.lt.s32.totalorder %s297_s26, 73  ;;  %p3494_p9 = scmp.ne.s32.totalorder %s5224_s21, 0 }
  0x35   : > { %s5891_s6 = smov (!%p305_p4, %s3491_s6), 31  ;;  %s5895_s22 = smov (!%p310_p8, %s5228_s22), 1 }
  0x36   : > { %s5893_s26 = smov (!%p298_p7, %s297_s26), 73  ;;  %s3492_s8 = sshll.u32 %s5891_s6, 3 }
  0x37   : > { %s3490_s15 = sshll.u32 %s5893_s26, 1  ;;  %s5427_s9 = scalar_lea.vmem %s5859_s3, %s3492_s8 }
  0x38   : > { %s5432_s28 = scalar_lea.vmem %s5856_s0, %s3490_s15  ;;  %s3493_s18 = sshll.u32 %s5895_s22, 1 }
  0x39   : > { %s5438_s12 = scalar_lea.vmem %s5860_s4, %s3493_s18  ;;  %317 = sbr.rel (%p3494_p9) target bundleno = 64 (0x40), region = 48 }
  0x3e   : > { %v5245_v0 = vmov 0.0  }
  0x3f   : > { %318 = vst [vmem:[#allocation2] sm:$0x3] %v5245_v0 }
  0x40 PF: > { %v4690_v1 = vld [vmem:[%s5408_s13 + $0x38] sm:$0xff]  ;;  %v4689_v5 = vld [vmem:[%s5408_s13 + $0x30] sm:$0xff]  ;;  %v4688_v9 = vld [vmem:[%s5408_s13 + $0x28] sm:$0xff]  ;;  %p4679_p10 = scmp.ne.s32.totalorder %s5224_s21, 1 }
  0x41   : > { %v4706_v2 = vld [vmem:[%s5408_s13 + $0xb8] sm:$0xff]  ;;  %2830 = vmatpush.bf16.msra.mxu0 %v4690_v1  ;;  %v4705_v6 = vld [vmem:[%s5408_s13 + $0xb0] sm:$0xff]  ;;  %v4704_v10 = vld [vmem:[%s5408_s13 + $0xa8] sm:$0xff] }
  0x42   : > { %v4698_v3 = vld [vmem:[%s5408_s13 + $0x78] sm:$0xff]  ;;  %2856 = vmatpush.bf16.msra.mxu2 %v4706_v2  ;;  %v4697_v7 = vld [vmem:[%s5408_s13 + $0x70] sm:$0xff]  ;;  %v4696_v11 = vld [vmem:[%s5408_s13 + $0x68] sm:$0xff] }
  0x43   : > { %v4714_v4 = vld [vmem:[%s5408_s13 + $0xf8] sm:$0xff]  ;;  %2843 = vmatpush.bf16.msra.mxu1 %v4698_v3  ;;  %v4713_v8 = vld [vmem:[%s5408_s13 + $0xf0] sm:$0xff]  ;;  %v4712_v12 = vld [vmem:[%s5408_s13 + $0xe8] sm:$0xff] }
  0x44   : > { %2869 = vmatpush.bf16.msra.mxu3 %v4714_v4  ;;  %v4687_v13 = vld [vmem:[%s5408_s13 + $0x20] sm:$0xff]  ;;  %v4686_v17 = vld [vmem:[%s5408_s13 + $0x18] sm:$0xff]  ;;  %v4685_v22 = vld [vmem:[%s5408_s13 + $0x10] sm:$0xff] }
  0x45   : > { %2831 = vmatpush.bf16.msra.mxu0 %v4689_v5  ;;  %v4703_v14 = vld [vmem:[%s5408_s13 + $0xa0] sm:$0xff]  ;;  %v4702_v18 = vld [vmem:[%s5408_s13 + $0x98] sm:$0xff]  ;;  %v4701_v23 = vld [vmem:[%s5408_s13 + $0x90] sm:$0xff] }
  0x46   : > { %2857 = vmatpush.bf16.msra.mxu2 %v4705_v6  ;;  %v4695_v15 = vld [vmem:[%s5408_s13 + $0x60] sm:$0xff]  ;;  %v4694_v19 = vld [vmem:[%s5408_s13 + $0x58] sm:$0xff]  ;;  %v4693_v24 = vld [vmem:[%s5408_s13 + $0x50] sm:$0xff] }
  0x47   : > { %2844 = vmatpush.bf16.msra.mxu1 %v4697_v7  ;;  %v4711_v16 = vld [vmem:[%s5408_s13 + $0xe0] sm:$0xff]  ;;  %v4710_v20 = vld [vmem:[%s5408_s13 + $0xd8] sm:$0xff]  ;;  %v4709_v25 = vld [vmem:[%s5408_s13 + $0xd0] sm:$0xff] }
  0x48   : > { %2870 = vmatpush.bf16.msra.mxu3 %v4713_v8  ;;  %v320_v21 = vld [vmem:[%s5432_s28] sm:$0xff]  ;;  %v321_v26 = vld [vmem:[%s5432_s28 + $0x8] sm:$0xff]  ;;  %v4684_v27 = vld [vmem:[%s5408_s13 + $0x8] sm:$0xff] }
  0x49   : > { %2832 = vmatpush.bf16.msra.mxu0 %v4688_v9  ;;  %340 = vst [vmem:[#allocation1] ss:$4 sm:$0xff] %v320_v21  ;;  %v4700_v28 = vld [vmem:[%s5408_s13 + $0x88] sm:$0xff]  ;;  %v4683_v36 = vld [vmem:[%s5408_s13] sm:$0xff]  ;;  %v4722_v38 = vld [vmem:[%s5408_s13 + $0x138] sm:$0xff] }
  0x4a   : > { %2858 = vmatpush.bf16.msra.mxu2 %v4704_v10  ;;  %342 = vst [vmem:[#allocation1 + $0x20] ss:$4 sm:$0xff] %v321_v26  ;;  %v4692_v29 = vld [vmem:[%s5408_s13 + $0x48] sm:$0xff]  ;;  %v4699_v37 = vld [vmem:[%s5408_s13 + $0x80] sm:$0xff]  ;;  %v4738_v39 = vld [vmem:[%s5408_s13 + $0x1b8] sm:$0xff] }
  0x4b   : > { %2845 = vmatpush.bf16.msra.mxu1 %v4696_v11  ;;  %v4708_v30 = vld [vmem:[%s5408_s13 + $0xc8] sm:$0xff]  ;;  %v4691_v40 = vld [vmem:[%s5408_s13 + $0x40] sm:$0xff]  ;;  %v4730_v42 = vld [vmem:[%s5408_s13 + $0x178] sm:$0xff] }
  0x4c   : > { %2871 = vmatpush.bf16.msra.mxu3 %v4712_v12  ;;  %v322_v31 = vld [vmem:[%s5432_s28 + $0x10] sm:$0xff]  ;;  %v4746_v43 = vld [vmem:[%s5408_s13 + $0x1f8] sm:$0xff]  ;;  %v4721_v46 = vld [vmem:[%s5408_s13 + $0x130] sm:$0xff] }
  0x4d   : > { %2833 = vmatpush.bf16.msra.mxu0 %v4687_v13  ;;  %v4707_v41 = vld [vmem:[%s5408_s13 + $0xc0] sm:$0xff]  ;;  %v4737_v47 = vld [vmem:[%s5408_s13 + $0x1b0] sm:$0xff]  ;;  %v4720_v57 = vld [vmem:[%s5408_s13 + $0x128] sm:$0xff] }
  0x4e   : > { %2859 = vmatpush.bf16.msra.mxu2 %v4703_v14  ;;  %v4729_v48 = vld [vmem:[%s5408_s13 + $0x170] sm:$0xff]  ;;  %v4736_v58 = vld [vmem:[%s5408_s13 + $0x1a8] sm:$0xff]  ;;  %v4719_v61 = vld [vmem:[%s5408_s13 + $0x120] sm:$0xff] }
  0x4f   : > { %2846 = vmatpush.bf16.msra.mxu1 %v4695_v15  ;;  %v4745_v49 = vld [vmem:[%s5408_s13 + $0x1f0] sm:$0xff]  ;;  %v4728_v59 = vld [vmem:[%s5408_s13 + $0x168] sm:$0xff]  ;;  %v4735_v62 = vld [vmem:[%s5408_s13 + $0x1a0] sm:$0xff] }
  0x50   : > { %2872 = vmatpush.bf16.msra.mxu3 %v4711_v16  ;;  %v345_v32 = vld.sshfl [vmem:[#allocation1 + $0x10] sm:$0xff pattern:$0x73625140]  ;;  %v343_v33 = vld.sshfl [vmem:[#allocation1] sm:$0xff pattern:$0x73625140] }
  0x51   : > { %2834 = vmatpush.bf16.msra.mxu0 %v4686_v17  ;;  %v346_v34 = vld.sshfl [vmem:[#allocation1 + $0x18] sm:$0xff pattern:$0x73625140]  ;;  %v344_v35 = vld.sshfl [vmem:[#allocation1 + $0x8] sm:$0xff pattern:$0x73625140]  ;;  %v427_v44 = vpack.c.bf16 %v345_v32, %v345_v32  ;;  %v425_v45 = vpack.c.bf16 %v343_v33, %v343_v33 }
  0x52   : > { %2860 = vmatpush.bf16.msra.mxu2 %v4702_v18  ;;  %351 = vst [vmem:[#allocation1] ss:$4 sm:$0xff] %v322_v31  ;;  %v428_v50 = vpack.c.bf16 %v346_v34, %v346_v34  ;;  %v426_v51 = vpack.c.bf16 %v344_v35, %v344_v35  ;;  %v5484_v52 = vld.sshfl [vmem:[#allocation1 + $0x30] sm:$0xff pattern:$0x73625140]  ;;  %v323_v55 = vld [vmem:[%s5432_s28 + $0x18] sm:$0xff] }
  0x53   : > { %2847 = vmatpush.bf16.msra.mxu1 %v4694_v19  ;;  %v5486_v53 = vld.sshfl [vmem:[#allocation1 + $0x20] sm:$0xff pattern:$0x73625140]  ;;  %v5488_v54 = vld.sshfl [vmem:[#allocation1 + $0x38] sm:$0xff pattern:$0x73625140]  ;;  %v431_v21 = vpack.c.bf16 %v5484_v52, %v5484_v52 }
  0x54   : > { %2873 = vmatpush.bf16.msra.mxu3 %v4710_v20  ;;  %v5491_v56 = vld.sshfl [vmem:[#allocation1 + $0x28] sm:$0xff pattern:$0x73625140]  ;;  %v4744_v60 = vld [vmem:[%s5408_s13 + $0x1e8] sm:$0xff]  ;;  %v4717_v5 = vld [vmem:[%s5408_s13 + $0x110] sm:$0xff] }
  0x55   : > { %2835 = vmatpush.bf16.msra.mxu0 %v4685_v22  ;;  %352 = vst [vmem:[#allocation1 + $0x20] ss:$4 sm:$0xff] %v323_v55  ;;  %v4727_v63 = vld [vmem:[%s5408_s13 + $0x160] sm:$0xff]  ;;  %v4718_v1 = vld [vmem:[%s5408_s13 + $0x118] sm:$0xff]  ;;  %v4733_v6 = vld [vmem:[%s5408_s13 + $0x190] sm:$0xff] }
  0x56   : > { %2861 = vmatpush.bf16.msra.mxu2 %v4701_v23  ;;  %v4743_v0 = vld [vmem:[%s5408_s13 + $0x1e0] sm:$0xff]  ;;  %v4734_v2 = vld [vmem:[%s5408_s13 + $0x198] sm:$0xff]  ;;  %v4725_v7 = vld [vmem:[%s5408_s13 + $0x150] sm:$0xff] }
  0x57   : > { %2848 = vmatpush.bf16.msra.mxu1 %v4693_v24  ;;  %v4726_v3 = vld [vmem:[%s5408_s13 + $0x158] sm:$0xff]  ;;  %v4741_v8 = vld [vmem:[%s5408_s13 + $0x1d0] sm:$0xff]  ;;  %v4716_v9 = vld [vmem:[%s5408_s13 + $0x108] sm:$0xff]  ;;  %v429_v24 = vpack.c.bf16 %v5486_v53, %v5486_v53 }
  0x58   : > { %2874 = vmatpush.bf16.msra.mxu3 %v4709_v25  ;;  %v4742_v4 = vld [vmem:[%s5408_s13 + $0x1d8] sm:$0xff]  ;;  %v4732_v10 = vld [vmem:[%s5408_s13 + $0x188] sm:$0xff]  ;;  %v4715_v13 = vld [vmem:[%s5408_s13 + $0x100] sm:$0xff] }
  0x59   : > { %2836 = vmatpush.bf16.msra.mxu0 %v4684_v27  ;;  %v4724_v11 = vld [vmem:[%s5408_s13 + $0x148] sm:$0xff]  ;;  %v4731_v14 = vld [vmem:[%s5408_s13 + $0x180] sm:$0xff]  ;;  %v4754_v15 = vld [vmem:[%s5408_s13 + $0x238] sm:$0xff] }
  0x5a   : > { %2862 = vmatpush.bf16.msra.mxu2 %v4700_v28  ;;  %v4740_v12 = vld [vmem:[%s5408_s13 + $0x1c8] sm:$0xff]  ;;  %v4770_v16 = vld [vmem:[%s5408_s13 + $0x2b8] sm:$0xff]  ;;  %v4723_v17 = vld [vmem:[%s5408_s13 + $0x140] sm:$0xff]  ;;  %v432_v28 = vpack.c.bf16 %v5488_v54, %v5488_v54 }
  0x5b   : > { %2849 = vmatpush.bf16.msra.mxu1 %v4692_v29  ;;  %v4739_v18 = vld [vmem:[%s5408_s13 + $0x1c0] sm:$0xff]  ;;  %v4762_v19 = vld [vmem:[%s5408_s13 + $0x278] sm:$0xff]  ;;  %v4753_v22 = vld [vmem:[%s5408_s13 + $0x230] sm:$0xff]  ;;  %v430_v29 = vpack.c.bf16 %v5491_v56, %v5491_v56 }
  0x5c   : > { %2875 = vmatpush.bf16.msra.mxu3 %v4708_v30  ;;  %v4778_v20 = vld [vmem:[%s5408_s13 + $0x2f8] sm:$0xff]  ;;  %v4769_v23 = vld [vmem:[%s5408_s13 + $0x2b0] sm:$0xff]  ;;  %v5529_v26 = vld.sshfl [vmem:[#allocation1 + $0x10] sm:$0xff pattern:$0x73625140] }
  0x5d   : > { %2837 = vmatpush.bf16.msra.mxu0 %v4683_v36  ;;  %v5527_v25 = vld.sshfl [vmem:[#allocation1] sm:$0xff pattern:$0x73625140]  ;;  %v5531_v27 = vld.sshfl [vmem:[#allocation1 + $0x8] sm:$0xff pattern:$0x73625140] }
  0x5e   : > { %2863 = vmatpush.bf16.msra.mxu2 %v4699_v37  ;;  %v324_v30 = vld [vmem:[%s5432_s28 + $0x20] sm:$0xff]  ;;  %v5538_v31 = vld.sshfl [vmem:[#allocation1 + $0x18] sm:$0xff pattern:$0x73625140]  ;;  %v4747_v54 = vld [vmem:[%s5408_s13 + $0x200] sm:$0xff] }
  0x5f   : > { %2850 = vmatpush.bf16.msra.mxu1 %v4691_v40  ;;  %v4761_v32 = vld [vmem:[%s5408_s13 + $0x270] sm:$0xff]  ;;  %361 = vst [vmem:[#allocation1] ss:$4 sm:$0xff] %v324_v30  ;;  %v4752_v34 = vld [vmem:[%s5408_s13 + $0x228] sm:$0xff]  ;;  %v4759_v40 = vld [vmem:[%s5408_s13 + $0x260] sm:$0xff] }
  0x60   : > { %2876 = vmatpush.bf16.msra.mxu3 %v4707_v41  ;;  %2838 = vmatmul.bf16.vlgmr.msra.gmra.mxu0 %v425_v45  ;;  %v4777_v33 = vld [vmem:[%s5408_s13 + $0x2f0] sm:$0xff]  ;;  %v4768_v35 = vld [vmem:[%s5408_s13 + $0x2a8] sm:$0xff]  ;;  %v4775_v41 = vld [vmem:[%s5408_s13 + $0x2e0] sm:$0xff] }
  0x61   : > { %2882 = vmatpush.bf16.msrb.mxu0 %v4722_v38  ;;  %2864 = vmatmul.bf16.vlgmr.msra.gmra.mxu2 %v427_v44  ;;  %v4760_v36 = vld [vmem:[%s5408_s13 + $0x268] sm:$0xff]  ;;  %v4751_v38 = vld [vmem:[%s5408_s13 + $0x220] sm:$0xff]  ;;  %v4758_v44 = vld [vmem:[%s5408_s13 + $0x258] sm:$0xff] }
  0x62   : > { %2908 = vmatpush.bf16.msrb.mxu2 %v4738_v39  ;;  %2851 = vmatmul.bf16.vlgmr.msra.gmra.mxu1 %v426_v51  ;;  %v4776_v37 = vld [vmem:[%s5408_s13 + $0x2e8] sm:$0xff]  ;;  %v4767_v39 = vld [vmem:[%s5408_s13 + $0x2a0] sm:$0xff]  ;;  %v4774_v45 = vld [vmem:[%s5408_s13 + $0x2d8] sm:$0xff] }
  0x63   : > { %2895 = vmatpush.bf16.msrb.mxu1 %v4730_v42  ;;  %2877 = vmatmul.bf16.vlgmr.msra.gmra.mxu3 %v428_v50  ;;  %v4750_v42 = vld [vmem:[%s5408_s13 + $0x218] sm:$0xff]  ;;  %v4748_v50 = vld [vmem:[%s5408_s13 + $0x208] sm:$0xff]  ;;  %v4763_v55 = vld [vmem:[%s5408_s13 + $0x280] sm:$0xff] }
  0x64   : > { %2921 = vmatpush.bf16.msrb.mxu3 %v4746_v43  ;;  %v4766_v43 = vld [vmem:[%s5408_s13 + $0x298] sm:$0xff]  ;;  %v4764_v51 = vld [vmem:[%s5408_s13 + $0x288] sm:$0xff] }
  0x65   : > { %2883 = vmatpush.bf16.msrb.mxu0 %v4721_v46  ;;  %v4749_v46 = vld [vmem:[%s5408_s13 + $0x210] sm:$0xff]  ;;  %v4756_v52 = vld [vmem:[%s5408_s13 + $0x248] sm:$0xff]  ;;  %v4786_v56 = vld [vmem:[%s5408_s13 + $0x338] sm:$0xff] }
  0x66   : > { %2909 = vmatpush.bf16.msrb.mxu2 %v4737_v47  ;;  %v4765_v47 = vld [vmem:[%s5408_s13 + $0x290] sm:$0xff]  ;;  %v4772_v53 = vld [vmem:[%s5408_s13 + $0x2c8] sm:$0xff] }
  0x67   : > { %2896 = vmatpush.bf16.msrb.mxu1 %v4729_v48  ;;  %v4757_v48 = vld [vmem:[%s5408_s13 + $0x250] sm:$0xff]  ;;  %v4804_v30 = vld [vmem:[%s5408_s13 + $0x3c8] sm:$0xff] }
  0x68   : > { %2922 = vmatpush.bf16.msrb.mxu3 %v4745_v49  ;;  %v4773_v49 = vld [vmem:[%s5408_s13 + $0x2d0] sm:$0xff] }
  0x69   : > { %2884 = vmatpush.bf16.msrb.mxu0 %v4720_v57  ;;  %v4802_v57 = vld [vmem:[%s5408_s13 + $0x3b8] sm:$0xff] }
  0x6a   : > { %2910 = vmatpush.bf16.msrb.mxu2 %v4736_v58  ;;  %v4755_v58 = vld [vmem:[%s5408_s13 + $0x240] sm:$0xff] }
  0x6b   : > { %2897 = vmatpush.bf16.msrb.mxu1 %v4728_v59  ;;  %v4771_v59 = vld [vmem:[%s5408_s13 + $0x2c0] sm:$0xff] }
  0x6c   : > { %2923 = vmatpush.bf16.msrb.mxu3 %v4744_v60  ;;  %v433_v60 = vpack.c.bf16 %v5527_v25, %v5527_v25  ;;  %v4789_v25 = vld [vmem:[%s5408_s13 + $0x350] sm:$0xff] }
  0x6d   : > { %2885 = vmatpush.bf16.msrb.mxu0 %v4719_v61  ;;  %v435_v61 = vpack.c.bf16 %v5529_v26, %v5529_v26  ;;  %v4805_v26 = vld [vmem:[%s5408_s13 + $0x3d0] sm:$0xff] }
  0x6e   : > { %2911 = vmatpush.bf16.msrb.mxu2 %v4735_v62  ;;  %v4794_v62 = vld [vmem:[%s5408_s13 + $0x378] sm:$0xff] }
  0x6f   : > { %2898 = vmatpush.bf16.msrb.mxu1 %v4727_v63  ;;  %v4810_v63 = vld [vmem:[%s5408_s13 + $0x3f8] sm:$0xff] }
  0x70   : > { %2924 = vmatpush.bf16.msrb.mxu3 %v4743_v0  ;;  %v434_v0 = vpack.c.bf16 %v5531_v27, %v5531_v27  ;;  %v4780_v27 = vld [vmem:[%s5408_s13 + $0x308] sm:$0xff] }
  0x71   : > { %2886 = vmatpush.bf16.msrb.mxu0 %v4718_v1  ;;  %v436_v1 = vpack.c.bf16 %v5538_v31, %v5538_v31  ;;  %v4779_v31 = vld [vmem:[%s5408_s13 + $0x300] sm:$0xff] }
  0x72   : > { %2912 = vmatpush.bf16.msrb.mxu2 %v4734_v2  ;;  %v4785_v2 = vld [vmem:[%s5408_s13 + $0x330] sm:$0xff] }
  0x73   : > { %2899 = vmatpush.bf16.msrb.mxu1 %v4726_v3  ;;  %v4801_v3 = vld [vmem:[%s5408_s13 + $0x3b0] sm:$0xff] }
  0x74   : > { %2925 = vmatpush.bf16.msrb.mxu3 %v4742_v4  ;;  %v5580_v4 = vld.sshfl [vmem:[#allocation1 + $0x20] sm:$0xff pattern:$0x73625140] }
  0x75   : > { %2887 = vmatpush.bf16.msrb.mxu0 %v4717_v5  ;;  %v5582_v5 = vld.sshfl [vmem:[#allocation1 + $0x30] sm:$0xff pattern:$0x73625140] }
  0x76   : > { %2913 = vmatpush.bf16.msrb.mxu2 %v4733_v6  ;;  %v5584_v6 = vld.sshfl [vmem:[#allocation1 + $0x28] sm:$0xff pattern:$0x73625140] }
  0x77   : > { %2900 = vmatpush.bf16.msrb.mxu1 %v4725_v7  ;;  %v325_v7 = vld [vmem:[%s5432_s28 + $0x28] sm:$0xff] }
  0x78   : > { %2926 = vmatpush.bf16.msrb.mxu3 %v4741_v8  ;;  %v5587_v8 = vld.sshfl [vmem:[#allocation1 + $0x38] sm:$0xff pattern:$0x73625140] }
  0x79   : > { %2888 = vmatpush.bf16.msrb.mxu0 %v4716_v9  ;;  %v4793_v9 = vld [vmem:[%s5408_s13 + $0x370] sm:$0xff]  ;;  %362 = vst [vmem:[#allocation1 + $0x20] ss:$4 sm:$0xff] %v325_v7  ;;  %v365_v7 = vld.sshfl [vmem:[#allocation1 + $0x10] sm:$0xff pattern:$0x73625140] }
  0x7a   : > { %2914 = vmatpush.bf16.msrb.mxu2 %v4732_v10  ;;  %v4809_v10 = vld [vmem:[%s5408_s13 + $0x3f0] sm:$0xff] }
  0x7b   : > { %2901 = vmatpush.bf16.msrb.mxu1 %v4724_v11  ;;  %v4784_v11 = vld [vmem:[%s5408_s13 + $0x328] sm:$0xff] }
  0x7c   : > { %2927 = vmatpush.bf16.msrb.mxu3 %v4740_v12  ;;  %v4800_v12 = vld [vmem:[%s5408_s13 + $0x3a8] sm:$0xff] }
  0x7d   : > { %2889 = vmatpush.bf16.msrb.mxu0 %v4715_v13  ;;  %v4792_v13 = vld [vmem:[%s5408_s13 + $0x368] sm:$0xff] }
  0x7e   : > { %2915 = vmatpush.bf16.msrb.mxu2 %v4731_v14  ;;  %v4808_v14 = vld [vmem:[%s5408_s13 + $0x3e8] sm:$0xff] }
  0x7f   : > { %2902 = vmatpush.bf16.msrb.mxu1 %v4723_v17  ;;  %v4791_v17 = vld [vmem:[%s5408_s13 + $0x360] sm:$0xff] }
  0x80   : > { %2928 = vmatpush.bf16.msrb.mxu3 %v4739_v18  ;;  %2890 = vmatmul.bf16.vlgmr.msrb.gmra.mxu0 %v429_v24  ;;  %v4807_v18 = vld [vmem:[%s5408_s13 + $0x3e0] sm:$0xff]  ;;  %v4797_v24 = vld [vmem:[%s5408_s13 + $0x390] sm:$0xff] }
  0x81   : > { %2934 = vmatpush.bf16.msra.mxu0 %v4754_v15  ;;  %2916 = vmatmul.bf16.vlgmr.msrb.gmra.mxu2 %v431_v21  ;;  %v4783_v15 = vld [vmem:[%s5408_s13 + $0x320] sm:$0xff]  ;;  %v4790_v21 = vld [vmem:[%s5408_s13 + $0x358] sm:$0xff] }
  0x82   : > { %2960 = vmatpush.bf16.msra.mxu2 %v4770_v16  ;;  %2903 = vmatmul.bf16.vlgmr.msrb.gmra.mxu1 %v430_v29  ;;  %v4799_v16 = vld [vmem:[%s5408_s13 + $0x3a0] sm:$0xff]  ;;  %v4788_v29 = vld [vmem:[%s5408_s13 + $0x348] sm:$0xff] }
  0x83   : > { %2947 = vmatpush.bf16.msra.mxu1 %v4762_v19  ;;  %2929 = vmatmul.bf16.vlgmr.msrb.gmra.mxu3 %v432_v28  ;;  %v4782_v19 = vld [vmem:[%s5408_s13 + $0x318] sm:$0xff]  ;;  %v4796_v28 = vld [vmem:[%s5408_s13 + $0x388] sm:$0xff] }
  0x84   : > { %2973 = vmatpush.bf16.msra.mxu3 %v4778_v20  ;;  %v4798_v20 = vld [vmem:[%s5408_s13 + $0x398] sm:$0xff] }
  0x85   : > { %2935 = vmatpush.bf16.msra.mxu0 %v4753_v22  ;;  %v4806_v22 = vld [vmem:[%s5408_s13 + $0x3d8] sm:$0xff] }
  0x86   : > { %2961 = vmatpush.bf16.msra.mxu2 %v4769_v23  ;;  %v4781_v23 = vld [vmem:[%s5408_s13 + $0x310] sm:$0xff] }
  0x87   : > { %2948 = vmatpush.bf16.msra.mxu1 %v4761_v32  ;;  %v4795_v32 = vld [vmem:[%s5408_s13 + $0x380] sm:$0xff] }
  0x88   : > { %2974 = vmatpush.bf16.msra.mxu3 %v4777_v33  ;;  %v4818_v33 = vld [vmem:[%s5408_s13 + $0x438] sm:$0xff] }
  0x89   : > { %2936 = vmatpush.bf16.msra.mxu0 %v4752_v34  ;;  %v4834_v34 = vld [vmem:[%s5408_s13 + $0x4b8] sm:$0xff] }
  0x8a   : > { %2962 = vmatpush.bf16.msra.mxu2 %v4768_v35  ;;  %v4787_v35 = vld [vmem:[%s5408_s13 + $0x340] sm:$0xff] }
  0x8b   : > { %2949 = vmatpush.bf16.msra.mxu1 %v4760_v36  ;;  %v4803_v36 = vld [vmem:[%s5408_s13 + $0x3c0] sm:$0xff] }
  0x8c   : > { %2975 = vmatpush.bf16.msra.mxu3 %v4776_v37  ;;  %v437_v37 = vpack.c.bf16 %v5580_v4, %v5580_v4  ;;  %v4827_v4 = vld [vmem:[%s5408_s13 + $0x480] sm:$0xff] }
  0x8d   : > { %2937 = vmatpush.bf16.msra.mxu0 %v4751_v38  ;;  %v439_v38 = vpack.c.bf16 %v5582_v5, %v5582_v5  ;;  %v4850_v5 = vld [vmem:[%s5408_s13 + $0x538] sm:$0xff] }
  0x8e   : > { %2963 = vmatpush.bf16.msra.mxu2 %v4767_v39  ;;  %v4826_v39 = vld [vmem:[%s5408_s13 + $0x478] sm:$0xff] }
  0x8f   : > { %2950 = vmatpush.bf16.msra.mxu1 %v4759_v40  ;;  %v4842_v40 = vld [vmem:[%s5408_s13 + $0x4f8] sm:$0xff] }
  0x90   : > { %2976 = vmatpush.bf16.msra.mxu3 %v4775_v41  ;;  %v438_v41 = vpack.c.bf16 %v5584_v6, %v5584_v6  ;;  %v363_v6 = vld.sshfl [vmem:[#allocation1] sm:$0xff pattern:$0x73625140] }
  0x91   : > { %2938 = vmatpush.bf16.msra.mxu0 %v4750_v42  ;;  %v440_v42 = vpack.c.bf16 %v5587_v8, %v5587_v8  ;;  %v4866_v8 = vld [vmem:[%s5408_s13 + $0x5b8] sm:$0xff] }
  0x92   : > { %2964 = vmatpush.bf16.msra.mxu2 %v4766_v43  ;;  %v4817_v43 = vld [vmem:[%s5408_s13 + $0x430] sm:$0xff] }
  0x93   : > { %2951 = vmatpush.bf16.msra.mxu1 %v4758_v44  ;;  %v4833_v44 = vld [vmem:[%s5408_s13 + $0x4b0] sm:$0xff] }
  0x94   : > { %2977 = vmatpush.bf16.msra.mxu3 %v4774_v45  ;;  %v4825_v45 = vld [vmem:[%s5408_s13 + $0x470] sm:$0xff] }
  0x95   : > { %2939 = vmatpush.bf16.msra.mxu0 %v4749_v46  ;;  %v4841_v46 = vld [vmem:[%s5408_s13 + $0x4f0] sm:$0xff] }
  0x96   : > { %2965 = vmatpush.bf16.msra.mxu2 %v4765_v47  ;;  %v4816_v47 = vld [vmem:[%s5408_s13 + $0x428] sm:$0xff] }
  0x97   : > { %2952 = vmatpush.bf16.msra.mxu1 %v4757_v48  ;;  %v4832_v48 = vld [vmem:[%s5408_s13 + $0x4a8] sm:$0xff] }
  0x98   : > { %2978 = vmatpush.bf16.msra.mxu3 %v4773_v49  ;;  %v4824_v49 = vld [vmem:[%s5408_s13 + $0x468] sm:$0xff] }
  0x99   : > { %2940 = vmatpush.bf16.msra.mxu0 %v4748_v50  ;;  %v4840_v50 = vld [vmem:[%s5408_s13 + $0x4e8] sm:$0xff] }
  0x9a   : > { %2966 = vmatpush.bf16.msra.mxu2 %v4764_v51  ;;  %v4815_v51 = vld [vmem:[%s5408_s13 + $0x420] sm:$0xff] }
  0x9b   : > { %2953 = vmatpush.bf16.msra.mxu1 %v4756_v52  ;;  %v4831_v52 = vld [vmem:[%s5408_s13 + $0x4a0] sm:$0xff] }
  0x9c   : > { %2979 = vmatpush.bf16.msra.mxu3 %v4772_v53  ;;  %v4823_v53 = vld [vmem:[%s5408_s13 + $0x460] sm:$0xff] }
  0x9d   : > { %2941 = vmatpush.bf16.msra.mxu0 %v4747_v54  ;;  %v4839_v54 = vld [vmem:[%s5408_s13 + $0x4e0] sm:$0xff] }
  0x9e   : > { %2967 = vmatpush.bf16.msra.mxu2 %v4763_v55  ;;  %v4814_v55 = vld [vmem:[%s5408_s13 + $0x418] sm:$0xff] }
  0x9f   : > { %2954 = vmatpush.bf16.msra.mxu1 %v4755_v58  ;;  %v4838_v58 = vld [vmem:[%s5408_s13 + $0x4d8] sm:$0xff] }
  0xa0   : > { %2980 = vmatpush.bf16.msra.mxu3 %v4771_v59  ;;  %2942 = vmatmul.bf16.vlgmr.msra.gmra.mxu0 %v433_v60  ;;  %v4813_v59 = vld [vmem:[%s5408_s13 + $0x410] sm:$0xff] }
  0xa1   : > { %2986 = vmatpush.bf16.msrb.mxu0 %v4786_v56  ;;  %2968 = vmatmul.bf16.vlgmr.msra.gmra.mxu2 %v435_v61  ;;  %v4830_v56 = vld [vmem:[%s5408_s13 + $0x498] sm:$0xff]  ;;  %v4829_v60 = vld [vmem:[%s5408_s13 + $0x490] sm:$0xff] }
  0xa2   : > { %3012 = vmatpush.bf16.msrb.mxu2 %v4802_v57  ;;  %2955 = vmatmul.bf16.vlgmr.msra.gmra.mxu1 %v434_v0  ;;  %v4822_v57 = vld [vmem:[%s5408_s13 + $0x458] sm:$0xff]  ;;  %v4821_v61 = vld [vmem:[%s5408_s13 + $0x450] sm:$0xff]  ;;  %v4828_v0 = vld [vmem:[%s5408_s13 + $0x488] sm:$0xff] }
  0xa3   : > { %2999 = vmatpush.bf16.msrb.mxu1 %v4794_v62  ;;  %2981 = vmatmul.bf16.vlgmr.msra.gmra.mxu3 %v436_v1  ;;  %v4837_v62 = vld [vmem:[%s5408_s13 + $0x4d0] sm:$0xff]  ;;  %v4820_v1 = vld [vmem:[%s5408_s13 + $0x448] sm:$0xff] }
  0xa4   : > { %3025 = vmatpush.bf16.msrb.mxu3 %v4810_v63  ;;  %v4812_v63 = vld [vmem:[%s5408_s13 + $0x408] sm:$0xff] }
  0xa5   : > { %2987 = vmatpush.bf16.msrb.mxu0 %v4785_v2  ;;  %v4836_v2 = vld [vmem:[%s5408_s13 + $0x4c8] sm:$0xff] }
  0xa6   : > { %3013 = vmatpush.bf16.msrb.mxu2 %v4801_v3  ;;  %v4811_v3 = vld [vmem:[%s5408_s13 + $0x400] sm:$0xff] }
  0xa7   : > { %3000 = vmatpush.bf16.msrb.mxu1 %v4793_v9  ;;  %v4819_v9 = vld [vmem:[%s5408_s13 + $0x440] sm:$0xff] }
  0xa8   : > { %3026 = vmatpush.bf16.msrb.mxu3 %v4809_v10  ;;  %v4835_v10 = vld [vmem:[%s5408_s13 + $0x4c0] sm:$0xff] }
  0xa9   : > { %2988 = vmatpush.bf16.msrb.mxu0 %v4784_v11  ;;  %v364_v11 = vld.sshfl [vmem:[#allocation1 + $0x8] sm:$0xff pattern:$0x73625140] }
  0xaa   : > { %3014 = vmatpush.bf16.msrb.mxu2 %v4800_v12  ;;  %v366_v12 = vld.sshfl [vmem:[#allocation1 + $0x18] sm:$0xff pattern:$0x73625140] }
  0xab   : > { %3001 = vmatpush.bf16.msrb.mxu1 %v4792_v13  ;;  %v441_v13 = vpack.c.bf16 %v363_v6, %v363_v6 }
  0xac   : > { %3027 = vmatpush.bf16.msrb.mxu3 %v4808_v14  ;;  %v443_v14 = vpack.c.bf16 %v365_v7, %v365_v7  ;;  %v4881_v7 = vld [vmem:[%s5408_s13 + $0x630] sm:$0xff] }
  0xad   : > { %2989 = vmatpush.bf16.msrb.mxu0 %v4783_v15  ;;  %v4858_v15 = vld [vmem:[%s5408_s13 + $0x578] sm:$0xff] }
  0xae   : > { %3015 = vmatpush.bf16.msrb.mxu2 %v4799_v16  ;;  %v4874_v16 = vld [vmem:[%s5408_s13 + $0x5f8] sm:$0xff] }
  0xaf   : > { %3002 = vmatpush.bf16.msrb.mxu1 %v4791_v17  ;;  %v442_v17 = vpack.c.bf16 %v364_v11, %v364_v11  ;;  %v4880_v11 = vld [vmem:[%s5408_s13 + $0x628] sm:$0xff] }
  0xb0   : > { %3028 = vmatpush.bf16.msrb.mxu3 %v4807_v18  ;;  %v444_v18 = vpack.c.bf16 %v366_v12, %v366_v12  ;;  %v4896_v12 = vld [vmem:[%s5408_s13 + $0x6a8] sm:$0xff] }
  0xb1   : > { %2990 = vmatpush.bf16.msrb.mxu0 %v4782_v19  ;;  %v4849_v19 = vld [vmem:[%s5408_s13 + $0x530] sm:$0xff] }
  0xb2   : > { %3016 = vmatpush.bf16.msrb.mxu2 %v4798_v20  ;;  %v4865_v20 = vld [vmem:[%s5408_s13 + $0x5b0] sm:$0xff] }
  0xb3   : > { %3003 = vmatpush.bf16.msrb.mxu1 %v4790_v21  ;;  %v4857_v21 = vld [vmem:[%s5408_s13 + $0x570] sm:$0xff] }
  0xb4   : > { %3029 = vmatpush.bf16.msrb.mxu3 %v4806_v22  ;;  %v4873_v22 = vld [vmem:[%s5408_s13 + $0x5f0] sm:$0xff] }
  0xb5   : > { %2991 = vmatpush.bf16.msrb.mxu0 %v4781_v23  ;;  %v4848_v23 = vld [vmem:[%s5408_s13 + $0x528] sm:$0xff] }
  0xb6   : > { %3017 = vmatpush.bf16.msrb.mxu2 %v4797_v24  ;;  %v4864_v24 = vld [vmem:[%s5408_s13 + $0x5a8] sm:$0xff] }
  0xb7   : > { %3004 = vmatpush.bf16.msrb.mxu1 %v4789_v25  ;;  %v4856_v25 = vld [vmem:[%s5408_s13 + $0x568] sm:$0xff] }
  0xb8   : > { %3030 = vmatpush.bf16.msrb.mxu3 %v4805_v26  ;;  %v4872_v26 = vld [vmem:[%s5408_s13 + $0x5e8] sm:$0xff] }
  0xb9   : > { %2992 = vmatpush.bf16.msrb.mxu0 %v4780_v27  ;;  %v4847_v27 = vld [vmem:[%s5408_s13 + $0x520] sm:$0xff] }
  0xba   : > { %3018 = vmatpush.bf16.msrb.mxu2 %v4796_v28  ;;  %v4863_v28 = vld [vmem:[%s5408_s13 + $0x5a0] sm:$0xff] }
  0xbb   : > { %3005 = vmatpush.bf16.msrb.mxu1 %v4788_v29 }
  0xbc   : > { %3031 = vmatpush.bf16.msrb.mxu3 %v4804_v30  ;;  %v4855_v30 = vld [vmem:[%s5408_s13 + $0x560] sm:$0xff] }
  0xbd   : > { %2993 = vmatpush.bf16.msrb.mxu0 %v4779_v31  ;;  %v4871_v31 = vld [vmem:[%s5408_s13 + $0x5e0] sm:$0xff] }
  0xbe   : > { %3019 = vmatpush.bf16.msrb.mxu2 %v4795_v32 }
  0xbf   : > { %3006 = vmatpush.bf16.msrb.mxu1 %v4787_v35 }
  0xc0   : > { %3032 = vmatpush.bf16.msrb.mxu3 %v4803_v36  ;;  %2994 = vmatmul.bf16.vlgmr.msrb.gmra.mxu0 %v437_v37  ;;  %v4854_v36 = vld [vmem:[%s5408_s13 + $0x558] sm:$0xff] }
  0xc1   : > { %3038 = vmatpush.bf16.msra.mxu0 %v4818_v33  ;;  %3020 = vmatmul.bf16.vlgmr.msrb.gmra.mxu2 %v439_v38  ;;  %v4846_v33 = vld [vmem:[%s5408_s13 + $0x518] sm:$0xff] }
  0xc2   : > { %3064 = vmatpush.bf16.msra.mxu2 %v4834_v34  ;;  %3007 = vmatmul.bf16.vlgmr.msrb.gmra.mxu1 %v438_v41  ;;  %v4862_v34 = vld [vmem:[%s5408_s13 + $0x598] sm:$0xff] }
  0xc3   : > { %3051 = vmatpush.bf16.msra.mxu1 %v4826_v39  ;;  %3033 = vmatmul.bf16.vlgmr.msrb.gmra.mxu3 %v440_v42  ;;  %v4870_v37 = vld [vmem:[%s5408_s13 + $0x5d8] sm:$0xff]  ;;  %v4845_v39 = vld [vmem:[%s5408_s13 + $0x510] sm:$0xff] }
  0xc4   : > { %3077 = vmatpush.bf16.msra.mxu3 %v4842_v40  ;;  %v4861_v40 = vld [vmem:[%s5408_s13 + $0x590] sm:$0xff] }
  0xc5   : > { %3039 = vmatpush.bf16.msra.mxu0 %v4817_v43 }
  0xc6   : > { %3065 = vmatpush.bf16.msra.mxu2 %v4833_v44  ;;  %v4853_v44 = vld [vmem:[%s5408_s13 + $0x550] sm:$0xff] }
  0xc7   : > { %3052 = vmatpush.bf16.msra.mxu1 %v4825_v45  ;;  %v4869_v45 = vld [vmem:[%s5408_s13 + $0x5d0] sm:$0xff] }
  0xc8   : > { %3078 = vmatpush.bf16.msra.mxu3 %v4841_v46 }
  0xc9   : > { %3040 = vmatpush.bf16.msra.mxu0 %v4816_v47  ;;  %v326_v47 = vld [vmem:[%s5432_s28 + $0x30] sm:$0xff] }
  0xca   : > { %3066 = vmatpush.bf16.msra.mxu2 %v4832_v48  ;;  %371 = vst [vmem:[#allocation1] ss:$4 sm:$0xff] %v326_v47 }
  0xcb   : > { %3053 = vmatpush.bf16.msra.mxu1 %v4824_v49  ;;  %v4844_v49 = vld [vmem:[%s5408_s13 + $0x508] sm:$0xff] }
  0xcc   : > { %3079 = vmatpush.bf16.msra.mxu3 %v4840_v50  ;;  %v4860_v50 = vld [vmem:[%s5408_s13 + $0x588] sm:$0xff] }
  0xcd   : > { %3041 = vmatpush.bf16.msra.mxu0 %v4815_v51  ;;  %v4852_v51 = vld [vmem:[%s5408_s13 + $0x548] sm:$0xff] }
  0xce   : > { %3067 = vmatpush.bf16.msra.mxu2 %v4831_v52  ;;  %v4868_v52 = vld [vmem:[%s5408_s13 + $0x5c8] sm:$0xff] }
  0xcf   : > { %3054 = vmatpush.bf16.msra.mxu1 %v4823_v53  ;;  %v4843_v53 = vld [vmem:[%s5408_s13 + $0x500] sm:$0xff] }
  0xd0   : > { %3080 = vmatpush.bf16.msra.mxu3 %v4839_v54  ;;  %v4859_v54 = vld [vmem:[%s5408_s13 + $0x580] sm:$0xff] }
  0xd1   : > { %3042 = vmatpush.bf16.msra.mxu0 %v4814_v55  ;;  %v4882_v55 = vld [vmem:[%s5408_s13 + $0x638] sm:$0xff]  ;;  %v375_v47 = vld.sshfl [vmem:[#allocation1 + $0x10] sm:$0xff pattern:$0x73625140] }
  0xd2   : > { %3068 = vmatpush.bf16.msra.mxu2 %v4830_v56 }
  0xd3   : > { %3055 = vmatpush.bf16.msra.mxu1 %v4822_v57  ;;  %v367_v57 = vld.sshfl [vmem:[#allocation1 + $0x20] sm:$0xff pattern:$0x73625140] }
  0xd4   : > { %3081 = vmatpush.bf16.msra.mxu3 %v4838_v58  ;;  %v369_v58 = vld.sshfl [vmem:[#allocation1 + $0x30] sm:$0xff pattern:$0x73625140] }
  0xd5   : > { %3043 = vmatpush.bf16.msra.mxu0 %v4813_v59  ;;  %v4898_v59 = vld [vmem:[%s5408_s13 + $0x6b8] sm:$0xff] }
  0xd6   : > { %3069 = vmatpush.bf16.msra.mxu2 %v4829_v60  ;;  %v4851_v60 = vld [vmem:[%s5408_s13 + $0x540] sm:$0xff] }
  0xd7   : > { %3056 = vmatpush.bf16.msra.mxu1 %v4821_v61  ;;  %v4867_v61 = vld [vmem:[%s5408_s13 + $0x5c0] sm:$0xff] }
  0xd8   : > { %3082 = vmatpush.bf16.msra.mxu3 %v4837_v62 }
  0xd9   : > { %3044 = vmatpush.bf16.msra.mxu0 %v4812_v63  ;;  %v368_v63 = vld.sshfl [vmem:[#allocation1 + $0x28] sm:$0xff pattern:$0x73625140] }
  0xda   : > { %3070 = vmatpush.bf16.msra.mxu2 %v4828_v0  ;;  %v370_v0 = vld.sshfl [vmem:[#allocation1 + $0x38] sm:$0xff pattern:$0x73625140] }
  0xdb   : > { %3057 = vmatpush.bf16.msra.mxu1 %v4820_v1  ;;  %v445_v1 = vpack.c.bf16 %v367_v57, %v367_v57  ;;  %v448_v6 = vpack.c.bf16 %v370_v0, %v370_v0  ;;  %v4938_v57 = vld [vmem:[%s5408_s13 + $0x7f8] sm:$0xff]  ;;  %v4912_v0 = vld [vmem:[%s5408_s13 + $0x728] sm:$0xff] }
  0xdc   : > { %3083 = vmatpush.bf16.msra.mxu3 %v4836_v2  ;;  %v447_v2 = vpack.c.bf16 %v369_v58, %v369_v58 }
  0xdd   : > { %3045 = vmatpush.bf16.msra.mxu0 %v4811_v3  ;;  %v2839_v29 = vpop.f32.mrf.mxu0  ;;  %v4890_v3 = vld [vmem:[%s5408_s13 + $0x678] sm:$0xff] }
  0xde   : > { %3071 = vmatpush.bf16.msra.mxu2 %v4827_v4  ;;  %v4906_v4 = vld [vmem:[%s5408_s13 + $0x6f8] sm:$0xff] }
  0xdf   : > { %3058 = vmatpush.bf16.msra.mxu1 %v4819_v9  ;;  %v2852_v32 = vpop.f32.mrf.mxu1  ;;  %v4889_v9 = vld [vmem:[%s5408_s13 + $0x670] sm:$0xff] }
  0xe0   : > { %3084 = vmatpush.bf16.msra.mxu3 %v4835_v10  ;;  %3046 = vmatmul.bf16.vlgmr.msra.gmra.mxu0 %v441_v13  ;;  %v2853_v35 = vadd.f32 %v2852_v32, %v2839_v29  ;;  %v4905_v10 = vld [vmem:[%s5408_s13 + $0x6f0] sm:$0xff]  ;;  %v4888_v13 = vld [vmem:[%s5408_s13 + $0x668] sm:$0xff] }
  0xe1   : > { %3090 = vmatpush.bf16.msrb.mxu0 %v4850_v5  ;;  %3072 = vmatmul.bf16.vlgmr.msra.gmra.mxu2 %v443_v14  ;;  %v446_v5 = vpack.c.bf16 %v368_v63, %v368_v63  ;;  %v4904_v14 = vld [vmem:[%s5408_s13 + $0x6e8] sm:$0xff]  ;;  %v4877_v29 = vld [vmem:[%s5408_s13 + $0x610] sm:$0xff] }
  0xe2   : > { %3116 = vmatpush.bf16.msrb.mxu2 %v4866_v8  ;;  %3059 = vmatmul.bf16.vlgmr.msra.gmra.mxu1 %v442_v17  ;;  %v4897_v8 = vld [vmem:[%s5408_s13 + $0x6b0] sm:$0xff] }
  0xe3   : > { %3103 = vmatpush.bf16.msrb.mxu1 %v4858_v15  ;;  %3085 = vmatmul.bf16.vlgmr.msra.gmra.mxu3 %v444_v18  ;;  %v4879_v15 = vld [vmem:[%s5408_s13 + $0x620] sm:$0xff]  ;;  %v4937_v63 = vld [vmem:[%s5408_s13 + $0x7f0] sm:$0xff] }
  0xe4   : > { %3129 = vmatpush.bf16.msrb.mxu3 %v4874_v16  ;;  %v2865_v38 = vpop.f32.mrf.mxu2  ;;  %v4895_v16 = vld [vmem:[%s5408_s13 + $0x6a0] sm:$0xff] }
  0xe5   : > { %3091 = vmatpush.bf16.msrb.mxu0 %v4849_v19  ;;  %v2866_v41 = vadd.f32 %v2865_v38, %v2853_v35  ;;  %v2841_v43 = vpop.f32.mrf.mxu0  ;;  %v4887_v19 = vld [vmem:[%s5408_s13 + $0x660] sm:$0xff]  ;;  %v4901_v35 = vld [vmem:[%s5408_s13 + $0x6d0] sm:$0xff]  ;;  %v4876_v38 = vld [vmem:[%s5408_s13 + $0x608] sm:$0xff] }
  0xe6   : > { %3117 = vmatpush.bf16.msrb.mxu2 %v4865_v20  ;;  %v2878_v42 = vpop.f32.mrf.mxu3  ;;  %v4903_v20 = vld [vmem:[%s5408_s13 + $0x6e0] sm:$0xff] }
  0xe7   : > { %3104 = vmatpush.bf16.msrb.mxu1 %v4857_v21  ;;  %v5679_v46 = vadd.f32 %v2878_v42, %v2866_v41  ;;  %v2854_v48 = vpop.f32.mrf.mxu1  ;;  %v4900_v41 = vld [vmem:[%s5408_s13 + $0x6c8] sm:$0xff]  ;;  %v4875_v43 = vld [vmem:[%s5408_s13 + $0x600] sm:$0xff] }
  0xe8   : > { %3130 = vmatpush.bf16.msrb.mxu3 %v4873_v22 }
  0xe9   : > { %3092 = vmatpush.bf16.msrb.mxu0 %v4848_v23  ;;  %v4878_v23 = vld [vmem:[%s5408_s13 + $0x618] sm:$0xff] }
  0xea   : > { %3118 = vmatpush.bf16.msrb.mxu2 %v4864_v24  ;;  %v4894_v24 = vld [vmem:[%s5408_s13 + $0x698] sm:$0xff] }
  0xeb   : > { %3105 = vmatpush.bf16.msrb.mxu1 %v4856_v25  ;;  %v4886_v25 = vld [vmem:[%s5408_s13 + $0x658] sm:$0xff] }
  0xec   : > { %3131 = vmatpush.bf16.msrb.mxu3 %v4872_v26  ;;  %v2867_v56 = vpop.f32.mrf.mxu2  ;;  %v4902_v26 = vld [vmem:[%s5408_s13 + $0x6d8] sm:$0xff] }
  0xed   : > { %3093 = vmatpush.bf16.msrb.mxu0 %v4847_v27  ;;  %v4922_v56 = vld [vmem:[%s5408_s13 + $0x778] sm:$0xff] }
  0xee   : > { %3119 = vmatpush.bf16.msrb.mxu2 %v4863_v28  ;;  %v2880_v62 = vpop.f32.mrf.mxu3 }
  0xef   : > { %3106 = vmatpush.bf16.msrb.mxu1 %v4855_v30  ;;  %v4893_v30 = vld [vmem:[%s5408_s13 + $0x690] sm:$0xff] }
  0xf0   : > { %3132 = vmatpush.bf16.msrb.mxu3 %v4871_v31  ;;  %v4921_v62 = vld [vmem:[%s5408_s13 + $0x770] sm:$0xff] }
  0xf1   : > { %3094 = vmatpush.bf16.msrb.mxu0 %v4846_v33 }
  0xf2   : > { %3120 = vmatpush.bf16.msrb.mxu2 %v4862_v34  ;;  %v4885_v34 = vld [vmem:[%s5408_s13 + $0x650] sm:$0xff] }
  0xf3   : > { %3107 = vmatpush.bf16.msrb.mxu1 %v4854_v36 }
  0xf4   : > { %3133 = vmatpush.bf16.msrb.mxu3 %v4870_v37  ;;  %v327_v37 = vld [vmem:[%s5432_s28 + $0x38] sm:$0xff] }
  0xf5   : > { %3095 = vmatpush.bf16.msrb.mxu0 %v4845_v39  ;;  %372 = vst [vmem:[#allocation1 + $0x20] ss:$4 sm:$0xff] %v327_v37  ;;  %v4892_v39 = vld [vmem:[%s5408_s13 + $0x688] sm:$0xff] }
  0xf6   : > { %3121 = vmatpush.bf16.msrb.mxu2 %v4861_v40  ;;  %v4884_v40 = vld [vmem:[%s5408_s13 + $0x648] sm:$0xff] }
  0xf7   : > { %3108 = vmatpush.bf16.msrb.mxu1 %v4853_v44  ;;  %v4891_v44 = vld [vmem:[%s5408_s13 + $0x680] sm:$0xff] }
  0xf8   : > { %3134 = vmatpush.bf16.msrb.mxu3 %v4869_v45  ;;  %v4914_v45 = vld [vmem:[%s5408_s13 + $0x738] sm:$0xff] }
  0xf9   : > { %3096 = vmatpush.bf16.msrb.mxu0 %v4844_v49  ;;  %v4930_v49 = vld [vmem:[%s5408_s13 + $0x7b8] sm:$0xff] }
  0xfa   : > { %3122 = vmatpush.bf16.msrb.mxu2 %v4860_v50  ;;  %v4883_v50 = vld [vmem:[%s5408_s13 + $0x640] sm:$0xff] }
  0xfb   : > { %3109 = vmatpush.bf16.msrb.mxu1 %v4852_v51  ;;  %v4899_v51 = vld [vmem:[%s5408_s13 + $0x6c0] sm:$0xff] }
  0xfc   : > { %3135 = vmatpush.bf16.msrb.mxu3 %v4868_v52  ;;  %v374_v52 = vld.sshfl [vmem:[#allocation1 + $0x8] sm:$0xff pattern:$0x73625140]  ;;  %v379_v37 = vld.sshfl [vmem:[#allocation1 + $0x30] sm:$0xff pattern:$0x73625140] }
  0xfd   : > { %3097 = vmatpush.bf16.msrb.mxu0 %v4843_v53  ;;  %v2891_v17 = vpop.f32.mrf.mxu0  ;;  %v376_v53 = vld.sshfl [vmem:[#allocation1 + $0x18] sm:$0xff pattern:$0x73625140]  ;;  %v450_v58 = vpack.c.bf16 %v374_v52, %v374_v52 }
  0xfe   : > { %3123 = vmatpush.bf16.msrb.mxu2 %v4859_v54  ;;  %v2892_v18 = vadd.f32 %v2891_v17, %v5679_v46  ;;  %v373_v46 = vld.sshfl [vmem:[#allocation1] sm:$0xff pattern:$0x73625140] }
  0xff   : > { %3110 = vmatpush.bf16.msrb.mxu1 %v4851_v60  ;;  %v2904_v21 = vpop.f32.mrf.mxu1  ;;  %v449_v54 = vpack.c.bf16 %v373_v46, %v373_v46  ;;  %v4913_v60 = vld [vmem:[%s5408_s13 + $0x730] sm:$0xff]  ;;  %v4934_v17 = vld [vmem:[%s5408_s13 + $0x7d8] sm:$0xff] }
 0x100   : > { %3136 = vmatpush.bf16.msrb.mxu3 %v4867_v61  ;;  %3098 = vmatmul.bf16.vlgmr.msrb.gmra.mxu0 %v445_v1  ;;  %v2905_v22 = vadd.f32 %v2904_v21, %v2892_v18  ;;  %v4929_v61 = vld [vmem:[%s5408_s13 + $0x7b0] sm:$0xff]  ;;  %v4928_v1 = vld [vmem:[%s5408_s13 + $0x7a8] sm:$0xff]  ;;  %v4970_v46 = vld [vmem:[%s5408_s13 + $0x8f8] sm:$0xff] }
 0x101   : > { %3142 = vmatpush.bf16.msra.mxu0 %v4882_v55  ;;  %3124 = vmatmul.bf16.vlgmr.msrb.gmra.mxu2 %v447_v2  ;;  %v451_v55 = vpack.c.bf16 %v375_v47, %v375_v47  ;;  %v4920_v2 = vld [vmem:[%s5408_s13 + $0x768] sm:$0xff]  ;;  %v4909_v21 = vld [vmem:[%s5408_s13 + $0x710] sm:$0xff] }
 0x102   : > { %3168 = vmatpush.bf16.msra.mxu2 %v4898_v59  ;;  %3111 = vmatmul.bf16.vlgmr.msrb.gmra.mxu1 %v446_v5  ;;  %v452_v59 = vpack.c.bf16 %v376_v53, %v376_v53  ;;  %v4969_v52 = vld [vmem:[%s5408_s13 + $0x8f0] sm:$0xff]  ;;  %v4944_v53 = vld [vmem:[%s5408_s13 + $0x828] sm:$0xff] }
 0x103   : > { %3155 = vmatpush.bf16.msra.mxu1 %v4890_v3  ;;  %3137 = vmatmul.bf16.vlgmr.msrb.gmra.mxu3 %v448_v6  ;;  %v4936_v3 = vld [vmem:[%s5408_s13 + $0x7e8] sm:$0xff]  ;;  %v4911_v6 = vld [vmem:[%s5408_s13 + $0x720] sm:$0xff] }
 0x104   : > { %3181 = vmatpush.bf16.msra.mxu3 %v4906_v4  ;;  %v2917_v27 = vpop.f32.mrf.mxu2 }
 0x105   : > { %3143 = vmatpush.bf16.msra.mxu0 %v4881_v7  ;;  %v2918_v28 = vadd.f32 %v2917_v27, %v2905_v22  ;;  %v2893_v32 = vpop.f32.mrf.mxu0  ;;  %v4927_v7 = vld [vmem:[%s5408_s13 + $0x7a0] sm:$0xff]  ;;  %v4925_v22 = vld [vmem:[%s5408_s13 + $0x790] sm:$0xff]  ;;  %v4908_v27 = vld [vmem:[%s5408_s13 + $0x708] sm:$0xff] }
 0x106   : > { %3169 = vmatpush.bf16.msra.mxu2 %v4897_v8  ;;  %v2930_v31 = vpop.f32.mrf.mxu3 }
 0x107   : > { %3156 = vmatpush.bf16.msra.mxu1 %v4889_v9  ;;  %v5713_v33 = vadd.f32 %v2930_v31, %v2918_v28  ;;  %v2906_v36 = vpop.f32.mrf.mxu1  ;;  %v4924_v28 = vld [vmem:[%s5408_s13 + $0x788] sm:$0xff] }
 0x108   : > { %3182 = vmatpush.bf16.msra.mxu3 %v4905_v10  ;;  %v4919_v10 = vld [vmem:[%s5408_s13 + $0x760] sm:$0xff]  ;;  %v4932_v31 = vld [vmem:[%s5408_s13 + $0x7c8] sm:$0xff]  ;;  %v377_v36 = vld.sshfl [vmem:[#allocation1 + $0x20] sm:$0xff pattern:$0x73625140] }
 0x109   : > { %3144 = vmatpush.bf16.msra.mxu0 %v4880_v11  ;;  %v4935_v11 = vld [vmem:[%s5408_s13 + $0x7e0] sm:$0xff] }
 0x10a   : > { %3170 = vmatpush.bf16.msra.mxu2 %v4896_v12  ;;  %v4910_v12 = vld [vmem:[%s5408_s13 + $0x718] sm:$0xff] }
 0x10b   : > { %3157 = vmatpush.bf16.msra.mxu1 %v4888_v13  ;;  %v4926_v13 = vld [vmem:[%s5408_s13 + $0x798] sm:$0xff] }
 0x10c   : > { %3183 = vmatpush.bf16.msra.mxu3 %v4904_v14  ;;  %v2919_v42 = vpop.f32.mrf.mxu2 }
 0x10d   : > { %3145 = vmatpush.bf16.msra.mxu0 %v4879_v15  ;;  %v380_v42 = vld.sshfl [vmem:[#allocation1 + $0x38] sm:$0xff pattern:$0x73625140] }
 0x10e   : > { %3171 = vmatpush.bf16.msra.mxu2 %v4895_v16  ;;  %v2932_v48 = vpop.f32.mrf.mxu3  ;;  %v4918_v16 = vld [vmem:[%s5408_s13 + $0x758] sm:$0xff] }
 0x10f   : > { %3158 = vmatpush.bf16.msra.mxu1 %v4887_v19  ;;  %v456_v48 = vpack.c.bf16 %v380_v42, %v380_v42  ;;  %v4974_v42 = vld [vmem:[%s5408_s13 + $0x918] sm:$0xff] }
 0x110   : > { %3184 = vmatpush.bf16.msra.mxu3 %v4903_v20 }
 0x111   : > { %3146 = vmatpush.bf16.msra.mxu0 %v4878_v23 }
 0x112   : > { %3172 = vmatpush.bf16.msra.mxu2 %v4894_v24  ;;  %v4917_v24 = vld [vmem:[%s5408_s13 + $0x750] sm:$0xff] }
 0x113   : > { %3159 = vmatpush.bf16.msra.mxu1 %v4886_v25  ;;  %v4933_v25 = vld [vmem:[%s5408_s13 + $0x7d0] sm:$0xff] }
 0x114   : > { %3185 = vmatpush.bf16.msra.mxu3 %v4902_v26  ;;  %v328_v26 = vld [vmem:[%s5432_s28 + $0x40] sm:$0xff] }
 0x115   : > { %3147 = vmatpush.bf16.msra.mxu0 %v4877_v29  ;;  %381 = vst [vmem:[#allocation1] ss:$4 sm:$0xff] %v328_v26  ;;  %v4978_v26 = vld [vmem:[%s5408_s13 + $0x938] sm:$0xff] }
 0x116   : > { %3173 = vmatpush.bf16.msra.mxu2 %v4893_v30  ;;  %v4916_v30 = vld [vmem:[%s5408_s13 + $0x748] sm:$0xff] }
 0x117   : > { %3160 = vmatpush.bf16.msra.mxu1 %v4885_v34  ;;  %v4923_v34 = vld [vmem:[%s5408_s13 + $0x780] sm:$0xff] }
 0x118   : > { %3186 = vmatpush.bf16.msra.mxu3 %v4901_v35  ;;  %v4946_v35 = vld [vmem:[%s5408_s13 + $0x838] sm:$0xff] }
 0x119   : > { %3148 = vmatpush.bf16.msra.mxu0 %v4876_v38  ;;  %v4962_v38 = vld [vmem:[%s5408_s13 + $0x8b8] sm:$0xff] }
 0x11a   : > { %3174 = vmatpush.bf16.msra.mxu2 %v4892_v39  ;;  %v4915_v39 = vld [vmem:[%s5408_s13 + $0x740] sm:$0xff] }
 0x11b   : > { %3161 = vmatpush.bf16.msra.mxu1 %v4884_v40  ;;  %v4931_v40 = vld [vmem:[%s5408_s13 + $0x7c0] sm:$0xff] }
 0x11c   : > { %3187 = vmatpush.bf16.msra.mxu3 %v4900_v41  ;;  %v378_v41 = vld.sshfl [vmem:[#allocation1 + $0x28] sm:$0xff pattern:$0x73625140] }
 0x11d   : > { %3149 = vmatpush.bf16.msra.mxu0 %v4875_v43  ;;  %v2943_v4 = vpop.f32.mrf.mxu0  ;;  %v453_v43 = vpack.c.bf16 %v377_v36, %v377_v36  ;;  %v454_v47 = vpack.c.bf16 %v378_v41, %v378_v41  ;;  %v4976_v36 = vld [vmem:[%s5408_s13 + $0x928] sm:$0xff] }
 0x11e   : > { %3175 = vmatpush.bf16.msra.mxu2 %v4891_v44  ;;  %v2944_v5 = vadd.f32 %v2943_v4, %v5713_v33  ;;  %v4907_v33 = vld [vmem:[%s5408_s13 + $0x700] sm:$0xff]  ;;  %v455_v44 = vpack.c.bf16 %v379_v37, %v379_v37 }
 0x11f   : > { %3162 = vmatpush.bf16.msra.mxu1 %v4883_v50  ;;  %v2956_v8 = vpop.f32.mrf.mxu1  ;;  %v4961_v50 = vld [vmem:[%s5408_s13 + $0x8b0] sm:$0xff] }
 0x120   : > { %3188 = vmatpush.bf16.msra.mxu3 %v4899_v51  ;;  %3150 = vmatmul.bf16.vlgmr.msra.gmra.mxu0 %v449_v54  ;;  %v2957_v9 = vadd.f32 %v2956_v8, %v2944_v5  ;;  %v4953_v51 = vld [vmem:[%s5408_s13 + $0x870] sm:$0xff]  ;;  %v4960_v54 = vld [vmem:[%s5408_s13 + $0x8a8] sm:$0xff]  ;;  %v4950_v5 = vld [vmem:[%s5408_s13 + $0x858] sm:$0xff] }
 0x121   : > { %3194 = vmatpush.bf16.msrb.mxu0 %v4914_v45  ;;  %3176 = vmatmul.bf16.vlgmr.msra.gmra.mxu2 %v451_v55  ;;  %v4954_v45 = vld [vmem:[%s5408_s13 + $0x878] sm:$0xff]  ;;  %v4952_v55 = vld [vmem:[%s5408_s13 + $0x868] sm:$0xff] }
 0x122   : > { %3220 = vmatpush.bf16.msrb.mxu2 %v4930_v49  ;;  %3163 = vmatmul.bf16.vlgmr.msra.gmra.mxu1 %v450_v58  ;;  %v4945_v49 = vld [vmem:[%s5408_s13 + $0x830] sm:$0xff] }
 0x123   : > { %3207 = vmatpush.bf16.msrb.mxu1 %v4922_v56  ;;  %3189 = vmatmul.bf16.vlgmr.msra.gmra.mxu3 %v452_v59  ;;  %v4968_v56 = vld [vmem:[%s5408_s13 + $0x8e8] sm:$0xff]  ;;  %v4943_v59 = vld [vmem:[%s5408_s13 + $0x820] sm:$0xff] }
 0x124   : > { %3233 = vmatpush.bf16.msrb.mxu3 %v4938_v57  ;;  %v2969_v14 = vpop.f32.mrf.mxu2 }
 0x125   : > { %3195 = vmatpush.bf16.msrb.mxu0 %v4913_v60  ;;  %v2970_v15 = vadd.f32 %v2969_v14, %v2957_v9  ;;  %v2945_v19 = vpop.f32.mrf.mxu0  ;;  %v4959_v60 = vld [vmem:[%s5408_s13 + $0x8a0] sm:$0xff]  ;;  %v4965_v14 = vld [vmem:[%s5408_s13 + $0x8d0] sm:$0xff] }
 0x126   : > { %3221 = vmatpush.bf16.msrb.mxu2 %v4929_v61  ;;  %v2982_v18 = vpop.f32.mrf.mxu3  ;;  %v4948_v19 = vld [vmem:[%s5408_s13 + $0x848] sm:$0xff] }
 0x127   : > { %3208 = vmatpush.bf16.msrb.mxu1 %v4921_v62  ;;  %v5747_v20 = vadd.f32 %v2982_v18, %v2970_v15  ;;  %v2958_v23 = vpop.f32.mrf.mxu1  ;;  %v329_v15 = vld [vmem:[%s5432_s28 + $0x48] sm:$0x3] }
 0x128   : > { %3234 = vmatpush.bf16.msrb.mxu3 %v4937_v63  ;;  %v4951_v63 = vld [vmem:[%s5408_s13 + $0x860] sm:$0xff]  ;;  %382 = vst [vmem:[#allocation1 + $0x20] ss:$4 sm:$0xff] %v329_v15 }
 0x129   : > { %3196 = vmatpush.bf16.msrb.mxu0 %v4912_v0  ;;  %v4967_v0 = vld [vmem:[%s5408_s13 + $0x8e0] sm:$0xff] }
 0x12a   : > { %3222 = vmatpush.bf16.msrb.mxu2 %v4928_v1  ;;  %v4942_v1 = vld [vmem:[%s5408_s13 + $0x818] sm:$0xff]  ;;  %v4955_v23 = vld [vmem:[%s5408_s13 + $0x880] sm:$0xff] }
 0x12b   : > { %3209 = vmatpush.bf16.msrb.mxu1 %v4920_v2  ;;  %v4958_v2 = vld [vmem:[%s5408_s13 + $0x898] sm:$0xff] }
 0x12c   : > { %3235 = vmatpush.bf16.msrb.mxu3 %v4936_v3  ;;  %v2971_v29 = vpop.f32.mrf.mxu2 }
 0x12d   : > { %3197 = vmatpush.bf16.msrb.mxu0 %v4911_v6  ;;  %v4966_v6 = vld [vmem:[%s5408_s13 + $0x8d8] sm:$0xff] }
 0x12e   : > { %3223 = vmatpush.bf16.msrb.mxu2 %v4927_v7  ;;  %v2984_v32 = vpop.f32.mrf.mxu3  ;;  %v384_v29 = vld.sshfl [vmem:[#allocation1 + $0x8] sm:$0xff pattern:$0x73625140] }
 0x12f   : > { %3210 = vmatpush.bf16.msrb.mxu1 %v4919_v10  ;;  %v4941_v10 = vld [vmem:[%s5408_s13 + $0x810] sm:$0xff] }
 0x130   : > { %3236 = vmatpush.bf16.msrb.mxu3 %v4935_v11  ;;  %v4957_v11 = vld [vmem:[%s5408_s13 + $0x890] sm:$0xff] }
 0x131   : > { %3198 = vmatpush.bf16.msrb.mxu0 %v4910_v12 }
 0x132   : > { %3224 = vmatpush.bf16.msrb.mxu2 %v4926_v13  ;;  %v4949_v13 = vld [vmem:[%s5408_s13 + $0x850] sm:$0xff] }
 0x133   : > { %3211 = vmatpush.bf16.msrb.mxu1 %v4918_v16  ;;  %v4940_v16 = vld [vmem:[%s5408_s13 + $0x808] sm:$0xff] }
 0x134   : > { %3237 = vmatpush.bf16.msrb.mxu3 %v4934_v17  ;;  %v4956_v17 = vld [vmem:[%s5408_s13 + $0x888] sm:$0xff] }
 0x135   : > { %3199 = vmatpush.bf16.msrb.mxu0 %v4909_v21 }
 0x136   : > { %3225 = vmatpush.bf16.msrb.mxu2 %v4925_v22  ;;  %v4939_v22 = vld [vmem:[%s5408_s13 + $0x800] sm:$0xff] }
 0x137   : > { %3212 = vmatpush.bf16.msrb.mxu1 %v4917_v24  ;;  %v383_v24 = vld.sshfl [vmem:[#allocation1] sm:$0xff pattern:$0x73625140] }
 0x138   : > { %3238 = vmatpush.bf16.msrb.mxu3 %v4933_v25  ;;  %v385_v25 = vld.sshfl [vmem:[#allocation1 + $0x10] sm:$0xff pattern:$0x73625140] }
 0x139   : > { %3200 = vmatpush.bf16.msrb.mxu0 %v4908_v27  ;;  %v4947_v27 = vld [vmem:[%s5408_s13 + $0x840] sm:$0xff]  ;;  %v459_v32 = vpack.c.bf16 %v385_v25, %v385_v25 }
 0x13a   : > { %3226 = vmatpush.bf16.msrb.mxu2 %v4924_v28  ;;  %v4963_v28 = vld [vmem:[%s5408_s13 + $0x8c0] sm:$0xff] }
 0x13b   : > { %3213 = vmatpush.bf16.msrb.mxu1 %v4916_v30  ;;  %v386_v30 = vld.sshfl [vmem:[#allocation1 + $0x18] sm:$0xff pattern:$0x73625140] }
 0x13c   : > { %3239 = vmatpush.bf16.msrb.mxu3 %v4932_v31  ;;  %v457_v31 = vpack.c.bf16 %v383_v24, %v383_v24 }
 0x13d   : > { %3201 = vmatpush.bf16.msrb.mxu0 %v4907_v33  ;;  %v2995_v57 = vpop.f32.mrf.mxu0  ;;  %v458_v33 = vpack.c.bf16 %v384_v29, %v384_v29 }
 0x13e   : > { %3227 = vmatpush.bf16.msrb.mxu2 %v4923_v34  ;;  %v2996_v58 = vadd.f32 %v2995_v57, %v5747_v20  ;;  %v4964_v20 = vld [vmem:[%s5408_s13 + $0x8c8] sm:$0xff]  ;;  %v460_v34 = vpack.c.bf16 %v386_v30, %v386_v30 }
 0x13f   : > { %3214 = vmatpush.bf16.msrb.mxu1 %v4915_v39  ;;  %v3008_v61 = vpop.f32.mrf.mxu1  ;;  %v4975_v39 = vld [vmem:[%s5408_s13 + $0x920] sm:$0xff] }
 0x140   : > { %3240 = vmatpush.bf16.msrb.mxu3 %v4931_v40  ;;  %3202 = vmatmul.bf16.vlgmr.msrb.gmra.mxu0 %v453_v43  ;;  %v3009_v62 = vadd.f32 %v3008_v61, %v2996_v58 }
 0x141   : > { %3246 = vmatpush.bf16.msra.mxu0 %v4946_v35  ;;  %3228 = vmatmul.bf16.vlgmr.msrb.gmra.mxu2 %v455_v44  ;;  %v4977_v35 = vld [vmem:[%s5408_s13 + $0x930] sm:$0xff] }
 0x142   : > { %3272 = vmatpush.bf16.msra.mxu2 %v4962_v38  ;;  %3215 = vmatmul.bf16.vlgmr.msrb.gmra.mxu1 %v454_v47 }
 0x143   : > { %3259 = vmatpush.bf16.msra.mxu1 %v4954_v45  ;;  %3241 = vmatmul.bf16.vlgmr.msrb.gmra.mxu3 %v456_v48  ;;  %v4973_v48 = vld [vmem:[%s5408_s13 + $0x910] sm:$0xff] }
 0x144   : > { %3285 = vmatpush.bf16.msra.mxu3 %v4970_v46  ;;  %v3021_v3 = vpop.f32.mrf.mxu2 }
 0x145   : > { %3247 = vmatpush.bf16.msra.mxu0 %v4945_v49  ;;  %v3022_v4 = vadd.f32 %v3021_v3, %v3009_v62  ;;  %v2997_v8 = vpop.f32.mrf.mxu0 }
 0x146   : > { %3273 = vmatpush.bf16.msra.mxu2 %v4961_v50  ;;  %v3034_v7 = vpop.f32.mrf.mxu3  ;;  %v4972_v50 = vld [vmem:[%s5408_s13 + $0x908] sm:$0xff] }
 0x147   : > { %3260 = vmatpush.bf16.msra.mxu1 %v4953_v51  ;;  %v3035_v9 = vadd.f32 %v3034_v7, %v3022_v4  ;;  %v3010_v12 = vpop.f32.mrf.mxu1 }
 0x148   : > { %3286 = vmatpush.bf16.msra.mxu3 %v4969_v52 }
 0x149   : > { %3248 = vmatpush.bf16.msra.mxu0 %v4944_v53  ;;  %v4971_v53 = vld [vmem:[%s5408_s13 + $0x900] sm:$0xff] }
 0x14a   : > { %3274 = vmatpush.bf16.msra.mxu2 %v4960_v54  ;;  %v387_v54 = vld.sshfl [vmem:[#allocation1 + $0x20] sm:$0xff pattern:$0x73625140] }
 0x14b   : > { %3261 = vmatpush.bf16.msra.mxu1 %v4952_v55  ;;  %v461_v55 = vpack.c.bf16 %v387_v54, %v387_v54 }
 0x14c   : > { %3287 = vmatpush.bf16.msra.mxu3 %v4968_v56  ;;  %v3023_v18 = vpop.f32.mrf.mxu2 }
 0x14d   : > { %3249 = vmatpush.bf16.msra.mxu0 %v4943_v59 }
 0x14e   : > { %3275 = vmatpush.bf16.msra.mxu2 %v4959_v60  ;;  %v3036_v21 = vpop.f32.mrf.mxu3 }
 0x14f   : > { %3262 = vmatpush.bf16.msra.mxu1 %v4951_v63 }
 0x150   : > { %3288 = vmatpush.bf16.msra.mxu3 %v4967_v0 }
 0x151   : > { %3250 = vmatpush.bf16.msra.mxu0 %v4942_v1 }
 0x152   : > { %3276 = vmatpush.bf16.msra.mxu2 %v4958_v2 }
 0x153   : > { %3263 = vmatpush.bf16.msra.mxu1 %v4950_v5 }
 0x154   : > { %3289 = vmatpush.bf16.msra.mxu3 %v4966_v6 }
 0x155   : > { %3251 = vmatpush.bf16.msra.mxu0 %v4941_v10 }
 0x156   : > { %3277 = vmatpush.bf16.msra.mxu2 %v4957_v11 }
 0x157   : > { %3264 = vmatpush.bf16.msra.mxu1 %v4949_v13 }
 0x158   : > { %3290 = vmatpush.bf16.msra.mxu3 %v4965_v14 }
 0x159   : > { %3252 = vmatpush.bf16.msra.mxu0 %v4940_v16 }
 0x15a   : > { %3278 = vmatpush.bf16.msra.mxu2 %v4956_v17 }
 0x15b   : > { %3265 = vmatpush.bf16.msra.mxu1 %v4948_v19 }
 0x15c   : > { %3291 = vmatpush.bf16.msra.mxu3 %v4964_v20 }
 0x15d   : > { %3253 = vmatpush.bf16.msra.mxu0 %v4939_v22  ;;  %v3047_v37 = vpop.f32.mrf.mxu0 }
 0x15e   : > { %3279 = vmatpush.bf16.msra.mxu2 %v4955_v23  ;;  %v3048_v38 = vadd.f32 %v3047_v37, %v3035_v9 }
 0x15f   : > { %3266 = vmatpush.bf16.msra.mxu1 %v4947_v27  ;;  %v3060_v40 = vpop.f32.mrf.mxu1 }
 0x160   : > { %3292 = vmatpush.bf16.msra.mxu3 %v4963_v28  ;;  %3254 = vmatmul.bf16.vlgmr.msra.gmra.mxu0 %v457_v31  ;;  %v3061_v41 = vadd.f32 %v3060_v40, %v3048_v38  ;;  %v319_v40 = vld [vmem:[#allocation2] sm:$0x3] }
 0x161   : > { %3298 = vmatpush.bf16.msrb.mxu0 %v4978_v26  ;;  %3280 = vmatmul.bf16.vlgmr.msra.gmra.mxu2 %v459_v32 }
 0x162   : > { %3267 = vmatmul.bf16.vlgmr.msra.gmra.mxu1 %v458_v33 }
 0x163   : > { %3293 = vmatmul.bf16.vlgmr.msra.gmra.mxu3 %v460_v34 }
 0x164   : > { %v3073_v43 = vpop.f32.mrf.mxu2 }
 0x165   : > { %3299 = vmatpush.bf16.msrb.mxu0 %v4977_v35  ;;  %v3074_v44 = vadd.f32 %v3073_v43, %v3061_v41  ;;  %v3049_v46 = vpop.f32.mrf.mxu0 }
 0x166   : > { %v3086_v45 = vpop.f32.mrf.mxu3 }
 0x167   : > { %v3087_v47 = vadd.f32 %v3086_v45, %v3074_v44  ;;  %v3062_v49 = vpop.f32.mrf.mxu1 }
 0x169   : > { %3300 = vmatpush.bf16.msrb.mxu0 %v4976_v36 }
 0x16c   : > { %v3075_v51 = vpop.f32.mrf.mxu2 }
 0x16d   : > { %3301 = vmatpush.bf16.msrb.mxu0 %v4975_v39 }
 0x16e   : > { %v3088_v52 = vpop.f32.mrf.mxu3 }
 0x171   : > { %3302 = vmatpush.bf16.msrb.mxu0 %v4974_v42 }
 0x175   : > { %3303 = vmatpush.bf16.msrb.mxu0 %v4973_v48 }
 0x179   : > { %3304 = vmatpush.bf16.msrb.mxu0 %v4972_v50 }
 0x17d   : > { %3305 = vmatpush.bf16.msrb.mxu0 %v4971_v53  ;;  %v3099_v56 = vpop.f32.mrf.mxu0 }
 0x17e   : > { %v3100_v57 = vadd.f32 %v3099_v56, %v3087_v47 }
 0x17f   : > { %v3112_v58 = vpop.f32.mrf.mxu1 }
 0x180   : > { %3306 = vmatmul.bf16.vlgmr.msrb.gmra.mxu0 %v461_v55  ;;  %v3113_v59 = vadd.f32 %v3112_v58, %v3100_v57 }
 0x184   : > { %v3125_v60 = vpop.f32.mrf.mxu2 }
 0x185   : > { %v3126_v61 = vadd.f32 %v3125_v60, %v3113_v59  ;;  %v3101_v63 = vpop.f32.mrf.mxu0 }
 0x186   : > { %v3138_v62 = vpop.f32.mrf.mxu3 }
 0x187   : > { %v3139_v0 = vadd.f32 %v3138_v62, %v3126_v61  ;;  %v3114_v1 = vpop.f32.mrf.mxu1 }
 0x18c   : > { %v3127_v2 = vpop.f32.mrf.mxu2 }
 0x18e   : > { %v3140_v3 = vpop.f32.mrf.mxu3 }
 0x19d   : > { %v3151_v4 = vpop.f32.mrf.mxu0 }
 0x19e   : > { %v3152_v5 = vadd.f32 %v3151_v4, %v3139_v0 }
 0x19f   : > { %v3164_v6 = vpop.f32.mrf.mxu1 }
 0x1a0   : > { %v3165_v7 = vadd.f32 %v3164_v6, %v3152_v5 }
 0x1a4   : > { %v3177_v8 = vpop.f32.mrf.mxu2 }
 0x1a5   : > { %v3178_v9 = vadd.f32 %v3177_v8, %v3165_v7  ;;  %v3153_v11 = vpop.f32.mrf.mxu0 }
 0x1a6   : > { %v3190_v10 = vpop.f32.mrf.mxu3 }
 0x1a7   : > { %v3191_v12 = vadd.f32 %v3190_v10, %v3178_v9  ;;  %v3166_v13 = vpop.f32.mrf.mxu1 }
 0x1ac   : > { %v3179_v14 = vpop.f32.mrf.mxu2 }
 0x1ae   : > { %v3192_v15 = vpop.f32.mrf.mxu3 }
 0x1bd   : > { %v3203_v16 = vpop.f32.mrf.mxu0 }
 0x1be   : > { %v3204_v27 = vadd.f32 %v3203_v16, %v3191_v12 }
 0x1bf   : > { %v3216_v17 = vpop.f32.mrf.mxu1 }
 0x1c0   : > { %v3217_v31 = vadd.f32 %v3216_v17, %v3204_v27 }
 0x1c4   : > { %v3229_v18 = vpop.f32.mrf.mxu2 }
 0x1c5   : > { %v3205_v20 = vpop.f32.mrf.mxu0  ;;  %v3230_v32 = vadd.f32 %v3229_v18, %v3217_v31 }
 0x1c6   : > { %v3242_v19 = vpop.f32.mrf.mxu3 }
 0x1c7   : > { %v3218_v21 = vpop.f32.mrf.mxu1  ;;  %v3243_v35 = vadd.f32 %v3242_v19, %v3230_v32 }
 0x1cc   : > { %v3231_v22 = vpop.f32.mrf.mxu2 }
 0x1ce   : > { %v3244_v23 = vpop.f32.mrf.mxu3 }
 0x1dd   : > { %v3255_v24 = vpop.f32.mrf.mxu0 }
 0x1de   : > { %v3256_v36 = vadd.f32 %v3255_v24, %v3243_v35 }
 0x1df   : > { %v3268_v25 = vpop.f32.mrf.mxu1 }
 0x1e0   : > { %v3269_v37 = vadd.f32 %v3268_v25, %v3256_v36 }
 0x1e4   : > { %v3281_v26 = vpop.f32.mrf.mxu2 }
 0x1e5   : > { %v3257_v29 = vpop.f32.mrf.mxu0  ;;  %v3282_v38 = vadd.f32 %v3281_v26, %v3269_v37 }
 0x1e6   : > { %v3294_v28 = vpop.f32.mrf.mxu3 }
 0x1e7   : > { %v3270_v30 = vpop.f32.mrf.mxu1  ;;  %v3295_v39 = vadd.f32 %v3294_v28, %v3282_v38 }
 0x1ec   : > { %v3283_v33 = vpop.f32.mrf.mxu2 }
 0x1ee   : > { %v3296_v34 = vpop.f32.mrf.mxu3 }
 0x1fd   : > { %v3307_v41 = vpop.f32.mrf.mxu0 }
 0x1fe   : > { %v3308_v42 = vadd.f32 %v3307_v41, %v3295_v39 }
 0x200   : > { %v3311_v43 = vadd.f32 %v3308_v42, %v319_v40 }
 0x201   : > { %3316 = sbr.rel (%p4679_p10) target bundleno = 677 (0x2a5), region = 52 }
 0x202   : > { %3312 = vst [vmem:[#allocation2] sm:$0x3] %v3311_v43 }
 0x205   : > { %v3309_v44 = vpop.f32.mrf.mxu0 }
 0x206   : > { %v3339_v45 = vld [vmem:[%s5427_s9 + $0x78] sm:$0xff]  ;;  %v3338_v46 = vld [vmem:[%s5427_s9 + $0x70] sm:$0xff]  ;;  %v3337_v47 = vld [vmem:[%s5427_s9 + $0x68] sm:$0xff]  ;;  %vm3360_vm0 = vcmask 9216  }
 0x207   : > { %3340 = vmatpush.msra.mxu0 %v3339_v45  ;;  %v3336_v48 = vld [vmem:[%s5427_s9 + $0x60] sm:$0xff]  ;;  %v3335_v49 = vld [vmem:[%s5427_s9 + $0x58] sm:$0xff]  ;;  %v3334_v50 = vld [vmem:[%s5427_s9 + $0x50] sm:$0xff] }
 0x208   : > { %v3333_v51 = vld [vmem:[%s5427_s9 + $0x48] sm:$0xff]  ;;  %v3332_v52 = vld [vmem:[%s5427_s9 + $0x40] sm:$0xff]  ;;  %v3331_v53 = vld [vmem:[%s5427_s9 + $0x38] sm:$0xff] }
 0x209   : > { %3341 = vmatpush.msra.mxu0 %v3338_v46  ;;  %v3330_v54 = vld [vmem:[%s5427_s9 + $0x30] sm:$0xff]  ;;  %v3329_v55 = vld [vmem:[%s5427_s9 + $0x28] sm:$0xff]  ;;  %v3328_v56 = vld [vmem:[%s5427_s9 + $0x20] sm:$0xff] }
 0x20a   : > { %v5085_v57 = vld [vmem:[%s5415_s1] ss:$0 sm:$0xff]  ;;  %v3317_v58 = vld [vmem:[#allocation2] sm:$0x3]  ;;  %v3327_v59 = vld [vmem:[%s5427_s9 + $0x18] sm:$0xff] }
 0x20b   : > { %3342 = vmatpush.msra.mxu0 %v3337_v47  ;;  %v3326_v60 = vld [vmem:[%s5427_s9 + $0x10] sm:$0xff]  ;;  %v3322_v61 = vadd.f32 %v5085_v57, %v3317_v58  ;;  %v3325_v62 = vld [vmem:[%s5427_s9 + $0x8] sm:$0xff]  ;;  %v3324_v63 = vld [vmem:[%s5427_s9] sm:$0xff] }
 0x20d   : > { %3343 = vmatpush.msra.mxu0 %v3336_v48  ;;  %v3323_v0 = vmax.f32 %v3322_v61, 0.0 }
 0x20f   : > { %3344 = vmatpush.msra.mxu0 %v3335_v49 }
 0x211   : > { %3345 = vmatpush.msra.mxu0 %v3334_v50 }
 0x213   : > { %3346 = vmatpush.msra.mxu0 %v3333_v51 }
 0x215   : > { %3347 = vmatpush.msra.mxu0 %v3332_v52 }
 0x217   : > { %3348 = vmatpush.msra.mxu0 %v3331_v53 }
 0x219   : > { %3349 = vmatpush.msra.mxu0 %v3330_v54 }
 0x21b   : > { %3350 = vmatpush.msra.mxu0 %v3329_v55 }
 0x21d   : > { %3351 = vmatpush.msra.mxu0 %v3328_v56 }
 0x21f   : > { %3352 = vmatpush.msra.mxu0 %v3327_v59 }
 0x221   : > { %3353 = vmatpush.msra.mxu0 %v3326_v60 }
 0x223   : > { %3354 = vmatpush.msra.mxu0 %v3325_v62 }
 0x225   : > { %3355 = vmatpush.msra.mxu0 %v3324_v63 }
 0x226   : > { %3356 = vmatmul.f32.vlgmr.msra.gmra.mxu0 %v3323_v0 }
 0x2a3   : > { %v3357_v1 = vpop.f32.mrf.mxu0 }
 0x2a4   : > { %3361 = vst.msk [vmem:[%s5438_s12] sm:$0x3] %vm3360_vm0, %v3357_v1 }
 0x2a5 PF: > { %s20_s25 = sadd.s32 1, %s5240_s25   ;;  %s5872_s13 = sld [smem:[#allocation9_spill]] }
 0x2a6   : > { %p17_p11 = scmp.ge.s32.totalorder %s20_s25, 6   ;;  %s5873_s1 = sld [smem:[#allocation10_spill]] }
 0x2a7   : > { %s5874_s15 = smov %s5204_s16  ;;  %s5875_s16 = smov %s5208_s17 }
 0x2a8   : > { %s5876_s17 = smov %s5390_s14  ;;  %s5877_s18 = smov %s5216_s19 }
 0x2a9   : > { %s5878_s19 = smov %s5220_s20  ;;  %s5879_s20 = smov %s5395_s30 }
 0x2aa   : > { %s5880_s21 = smov %s5232_s23  ;;  %s5881_s22 = smov %s5236_s24 }
 0x2ab   : > { %s5882_s23 = smov %s5872_s13  ;;  %19 = sbr.rel (!%p17_p11) target bundleno = 11 (0xb), region = 104 }
 0x2ac   : > { %s5883_s24 = smov %s5873_s1 }
 0x2b0   :  { %3381 = vsyncpa [#allocation4], 1 }
 0x2b1   :  { %3383 = vsyncpa [#allocation4 + $0x1], 1 }
 0x2b2   :  { %3384 = vsyncpa [#allocation6], 1 }
 0x2b3   :  { %3386 = vsyncpa [#allocation6 + $0x1], 1 }

// kernel: forward.3
= control target key start
LH: loop header
LB: loop body
LE: loop exit
PB: predicated region body
PF: predicated region fallthrough
CT: control target
= control target key end

     0   :  { %14 = vsyncpa [#allocation3], 0  ;;  %s8921_s0 = inlined_call_operand.vmem [shape: f32[8,49,3], index: 0, kind: input, shape index: {}]   ;;  %s8922_s1 = inlined_call_operand.hbm [shape: f32[3,192], index: 1, kind: input, shape index: {}]   ;;  %s8923_s2 = inlined_call_operand.hbm [shape: f32[1,192], index: 2, kind: input, shape index: {}]   ;;  %s8924_s3 = inlined_call_operand.hbm [shape: f32[3,1280], index: 3, kind: input, shape index: {}]   ;;  %s8925_s4 = inlined_call_operand.hbm [shape: f32[1,1280], index: 4, kind: input, shape index: {}]   ;;  %s8926_s5 = inlined_call_operand.vmem [shape: f32[1280,192], index: 5, kind: input, shape index: {}]   ;;  %s8927_s6 = inlined_call_operand.hbm [shape: f32[1,192], index: 6, kind: input, shape index: {}]   ;;  %s8928_s7 = inlined_call_operand.hbm [shape: f32[49,192], index: 7, kind: input, shape index: {}]   ;;  %s8929_s8 = inlined_call_operand.hbm [shape: f32[49,192], index: 8, kind: input, shape index: {}]   ;;  %s8930_s9 = inlined_call_operand.vmem [shape: f32[2,49,192], index: 9, kind: output, shape index: {}]  }
   0x1   :  { %15 = vsyncpa [#allocation5], 0 }
   0x2   :  { %16 = vsyncpa [#allocation8], 0 }
   0x3   :  { %17 = vsyncpa [#allocation11], 0  ;;  %s5762_s30 = smov 0  }
   0x4 LB: > { %s272_s12 = sshll.u32 %s8923_s2, 4  ;;  %s5771_s13 = sadd.s32 4294967295, %s5700_s30   ;;  %s5700_s30 = sphi %s5762_s30, %s23_s30   ;;  %s273_s12 = int_to_ptr.hbm [resolvable:$true] %s272_s12 }
   0x5   : > { %p4853_p0 = scmp.ge.s32.totalorder %s5700_s30, 1  ;;  %p248_p1 = scmp.lt.s32.totalorder %s5700_s30, 3 }
   0x6   : > { %p5340_p2 = scmp.eq.s32.totalorder %s5771_s13, 0  ;;  %s5702_s15 = smov [#allocation4]  }
   0x7   : > { %p5776_p3 = pnand %p4853_p0, %p248_p1  ;;  %s274_s16 = sshll.u32 %s5702_s15, 4  ;;  %s275_s16 = int_to_ptr.vmem [resolvable:$true] %s274_s16 }
   0x8   : > { %s296_s19 = sshll.u32 %s8925_s4, 4  ;;  %s322_s22 = sshll.u32 %s8928_s7, 4  ;;  %s297_s19 = int_to_ptr.hbm [resolvable:$true] %s296_s19  ;;  %s323_s22 = int_to_ptr.hbm [resolvable:$true] %s322_s22 }
   0x9   : > { %p5318_p4 = pneg %p5776_p3  ;;  %s5703_s24 = smov [#allocation7]  }
   0xa   : > { %s298_s25 = sshll.u32 %s5703_s24, 4  ;;  %s5704_s26 = smov [#allocation10]   ;;  %s299_s25 = int_to_ptr.vmem [resolvable:$true] %s298_s25 }
   0xb   : > { %p5790_p5 = pnand %p5340_p2, %p5318_p4  ;;  %s324_s27 = sshll.u32 %s5704_s26, 4  ;;  %s325_s27 = int_to_ptr.vmem [resolvable:$true] %s324_s27 }
   0xc   : > { %s5705_s28 = smov 256   ;;  %s5706_s29 = smov 16  }
   0xd   : > { %5324 = dma.hbm_to_vmem [thread:$0]  (!%p5790_p5), %s273_s12, 32, %s275_s16, [#allocation5]  }
   0xe   : > { %5330 = dma.hbm_to_vmem [thread:$0]  (!%p5790_p5), %s297_s19, 160, %s299_s25, [#allocation8]  }
   0xf   : > { %5336 = dma.hbm_to_vmem [thread:$0]  (!%p5790_p5), %s323_s22, 1792, %s325_s27, [#allocation11], %s5705_s28, %s5705_s28, %s5706_s29  }
  0x10   : > { %s260_s15 = sshll.u32 %s8922_s1, 4  ;;  %s5707_s17 = smov [#allocation2]   ;;  %s261_s15 = int_to_ptr.hbm [resolvable:$true] %s260_s15 }
  0x11   : > { %s262_s18 = sshll.u32 %s5707_s17, 4  ;;  %s284_s19 = sshll.u32 %s8924_s3, 4  ;;  %s263_s18 = int_to_ptr.vmem [resolvable:$true] %s262_s18  ;;  %s285_s19 = int_to_ptr.hbm [resolvable:$true] %s284_s19 }
  0x12   : > { %5321 = dma.hbm_to_vmem [thread:$0]  (!%p5790_p5), %s261_s15, 128, %s263_s18, [#allocation3]  }
  0x13   : > { %s5708_s20 = smov [#allocation6]   ;;  %s311_s25 = sshll.u32 %s8927_s6, 4  ;;  %s312_s25 = int_to_ptr.hbm [resolvable:$true] %s311_s25 }
  0x14   : > { %s286_s21 = sshll.u32 %s5708_s20, 4  ;;  %s336_s10 = sshll.u32 %s8929_s8, 4  ;;  %s287_s21 = int_to_ptr.vmem [resolvable:$true] %s286_s21  ;;  %s337_s10 = int_to_ptr.hbm [resolvable:$true] %s336_s10 }
  0x15   : > { %5327 = dma.hbm_to_vmem [thread:$0]  (!%p5790_p5), %s285_s19, 640, %s287_s21, [#allocation5]  }
  0x16   : > { %s5709_s11 = smov [#allocation9]   ;;  %s5710_s15 = smov [#allocation12]  }
  0x17   : > { %s313_s17 = sshll.u32 %s5709_s11, 4  ;;  %s338_s18 = sshll.u32 %s5710_s15, 4  ;;  %s314_s17 = int_to_ptr.vmem [resolvable:$true] %s313_s17  ;;  %s339_s18 = int_to_ptr.vmem [resolvable:$true] %s338_s18 }
  0x18   : > { %5333 = dma.hbm_to_vmem [thread:$0]  (!%p5790_p5), %s312_s25, 32, %s314_s17, [#allocation8]  }
  0x19   : > { %5339 = dma.hbm_to_vmem [thread:$0]  (!%p5790_p5), %s337_s10, 1792, %s339_s18, [#allocation11], %s5705_s28, %s5705_s28, %s5706_s29  }
  0x1a   : > { %364 = sbr.rel (%p5776_p3) target bundleno = 2780 (0xadc), region = 56 }
  0x1f   : > { %5683 = dma.done.wait (%p5340_p2), [#allocation3], 128  }
  0x20   : > { %5685 = vsyncadd (%p5340_p2), [#allocation3], 4294967168 }
  0x21   : > { %5687 = dma.done.wait (%p5340_p2), [#allocation5], 672  }
  0x22   : > { %5689 = vsyncadd (%p5340_p2), [#allocation5], 4294966624 }
  0x23   : > { %5691 = dma.done.wait (%p5340_p2), [#allocation8], 192  }
  0x24   : > { %5693 = vsyncadd (%p5340_p2), [#allocation8], 4294967104 }
  0x25   : > { %5695 = dma.done.wait (%p5340_p2), [#allocation11], 3584  }
  0x26   : > { %5697 = vsyncadd (%p5340_p2), [#allocation11], 4294963712  ;;  %s4870_s14 = sshll.u32 %s5771_s13, 2  ;;  %vm478_vm0 = vcmask 1042432   ;;  %vm456_vm1 = vcmask 23552   ;;  %v814_v30 = vld [vmem:[%s8926_s5 + $0xf0] sm:$0xff] }
  0x27   : > { %p433_p6 = scmp.lt.s32.totalorder %s4870_s14, 7  ;;  %v444_v0 = vld [vmem:[#allocation6] sm:$0x7]  ;;  %v816_v8 = vld [vmem:[#allocation6 + $0x4] sm:$0x7]  ;;  %v812_v32 = vld [vmem:[%s8926_s5 + $0xe0] sm:$0xff] }
  0x28   : > { %4903 = vmatpush.msk.msra.mxu2 %vm478_vm0, %v444_v0  ;;  %4918 = vmatpush.msk.msra.mxu3 %vm478_vm0, %v444_v0  ;;  %v815_v31 = vld [vmem:[%s8926_s5 + $0xf8] sm:$0xff]  ;;  %v813_v33 = vld [vmem:[%s8926_s5 + $0xe8] sm:$0xff]  ;;  %v810_v34 = vld [vmem:[%s8926_s5 + $0xd0] sm:$0xff]  ;;  %vm4483_vm2 = vcmask 523264   ;;  %vm4508_vm3 = vcmask 1040384   ;;  %vm4510_vm4 = vcmask 516096  }
  0x29   : > { %s9170_s14 = smov (!%p433_p6, %s4870_s14), 7  ;;  %4873 = vmatpush.msk.msra.mxu0 %vm478_vm0, %v444_v0  ;;  %4888 = vmatpush.msk.msra.mxu1 %vm478_vm0, %v444_v0  ;;  %v811_v35 = vld [vmem:[%s8926_s5 + $0xd8] sm:$0xff]  ;;  %v808_v36 = vld [vmem:[%s8926_s5 + $0xc0] sm:$0xff]  ;;  %v809_v37 = vld [vmem:[%s8926_s5 + $0xc8] sm:$0xff]  ;;  %vm4515_vm5 = vcmask 400384   ;;  %p439_p7 = scmp.lt.s32.totalorder %s5771_s13, 1 }
  0x2a   : > { %s5284_s23 = smul.u32 56, %s9170_s14  ;;  %4942 = vmatpush.msk.msrb.mxu2 %vm478_vm0, %v816_v8  ;;  %4950 = vmatpush.msk.msrb.mxu3 %vm478_vm0, %v816_v8  ;;  %v806_v38 = vld [vmem:[%s8926_s5 + $0xb0] sm:$0xff]  ;;  %v807_v39 = vld [vmem:[%s8926_s5 + $0xb8] sm:$0xff]  ;;  %v804_v40 = vld [vmem:[%s8926_s5 + $0xa0] sm:$0xff] }
  0x2b   : > { %4926 = vmatpush.msk.msrb.mxu0 %vm478_vm0, %v816_v8  ;;  %4934 = vmatpush.msk.msrb.mxu1 %vm478_vm0, %v816_v8  ;;  %v805_v41 = vld [vmem:[%s8926_s5 + $0xa8] sm:$0xff]  ;;  %v802_v42 = vld [vmem:[%s8926_s5 + $0x90] sm:$0xff]  ;;  %v803_v43 = vld [vmem:[%s8926_s5 + $0x98] sm:$0xff]  ;;  %s9172_s13 = smov (!%p439_p7, %s5771_s13), 1 }
  0x2c   : > { %s5842_s12 = scalar_lea.vmem %s8921_s0, %s5284_s23  ;;  %v800_v44 = vld [vmem:[%s8926_s5 + $0x80] sm:$0xff]  ;;  %v801_v45 = vld [vmem:[%s8926_s5 + $0x88] sm:$0xff]  ;;  %v798_v46 = vld [vmem:[%s8926_s5 + $0x70] sm:$0xff]  ;;  %s5285_s27 = smul.u32 112, %s9172_s13 }
  0x2d   : > { %v5846_v1 = vld [vmem:[%s5842_s12 + $0x70] sm:$0xff]  ;;  %v5850_v2 = vld [vmem:[%s5842_s12 + $0xa8] sm:$0xff]  ;;  %v5853_v3 = vld [vmem:[%s5842_s12] sm:$0xff] }
  0x2e   : > { %4904 = vmatmul.msk.f32.vlgmr.msra.gmra.mxu2 %vm456_vm1, %v5846_v1  ;;  %4919 = vmatmul.msk.f32.vlgmr.msra.gmra.mxu3 %vm456_vm1, %v5850_v2  ;;  %v5860_v4 = vld [vmem:[%s5842_s12 + $0x38] sm:$0xff]  ;;  %v5872_v6 = vld [vmem:[%s5842_s12 + $0xb0] sm:$0xff]  ;;  %v5875_v7 = vld [vmem:[%s5842_s12 + $0x8] sm:$0xff]  ;;  %s8890_s11 = scalar_lea.vmem %s8930_s9, %s5285_s27 }
  0x2f   : > { %4874 = vmatmul.msk.f32.vlgmr.msra.gmra.mxu0 %vm456_vm1, %v5853_v3  ;;  %4889 = vmatmul.msk.f32.vlgmr.msra.gmra.mxu1 %vm456_vm1, %v5860_v4  ;;  %v5869_v5 = vld [vmem:[%s5842_s12 + $0x78] sm:$0xff]  ;;  %v5878_v9 = vld [vmem:[%s5842_s12 + $0x40] sm:$0xff]  ;;  %v5899_v12 = vld [vmem:[%s5842_s12 + $0x10] sm:$0xff] }
  0x30   : > { %v5893_v10 = vld [vmem:[%s5842_s12 + $0x80] sm:$0xff]  ;;  %v5896_v11 = vld [vmem:[%s5842_s12 + $0xb8] sm:$0xff]  ;;  %v5902_v13 = vld [vmem:[%s5842_s12 + $0x48] sm:$0xff]  ;;  %1147 = vmatpush.msra.mxu2 %v814_v30  ;;  %1185 = vmatpush.msra.mxu3 %v815_v31 }
  0x31   : > { %v5913_v14 = vld [vmem:[%s5842_s12 + $0x88] sm:$0xff]  ;;  %v5916_v15 = vld [vmem:[%s5842_s12 + $0xc0] sm:$0xff]  ;;  %v5919_v16 = vld [vmem:[%s5842_s12 + $0x18] sm:$0xff] }
  0x32   : > { %v5922_v17 = vld [vmem:[%s5842_s12 + $0x50] sm:$0xff]  ;;  %v5936_v19 = vld [vmem:[%s5842_s12 + $0xc8] sm:$0xff]  ;;  %v5939_v20 = vld [vmem:[%s5842_s12 + $0x20] sm:$0xff]  ;;  %1148 = vmatpush.msra.mxu2 %v812_v32  ;;  %1186 = vmatpush.msra.mxu3 %v813_v33 }
  0x33   : > { %v5933_v18 = vld [vmem:[%s5842_s12 + $0x90] sm:$0xff]  ;;  %v5942_v21 = vld [vmem:[%s5842_s12 + $0x58] sm:$0xff]  ;;  %v5959_v24 = vld [vmem:[%s5842_s12 + $0x28] sm:$0xff] }
  0x34   : > { %v5953_v22 = vld [vmem:[%s5842_s12 + $0x98] sm:$0xff]  ;;  %v5956_v23 = vld [vmem:[%s5842_s12 + $0xd0] sm:$0xff]  ;;  %v5962_v25 = vld [vmem:[%s5842_s12 + $0x60] sm:$0xff]  ;;  %1149 = vmatpush.msra.mxu2 %v810_v34  ;;  %1187 = vmatpush.msra.mxu3 %v811_v35 }
  0x35   : > { %v5973_v26 = vld [vmem:[%s5842_s12 + $0xa0] sm:$0x1]  ;;  %v5976_v27 = vld [vmem:[%s5842_s12 + $0xd8] sm:$0x1]  ;;  %v5979_v28 = vld [vmem:[%s5842_s12 + $0x30] sm:$0x1] }
  0x36   : > { %4905 = vmatmul.msk.f32.gmra.mxu2 %vm456_vm1, %v5869_v5  ;;  %4920 = vmatmul.msk.f32.gmra.mxu3 %vm456_vm1, %v5872_v6  ;;  %v5982_v29 = vld [vmem:[%s5842_s12 + $0x68] sm:$0x1]  ;;  %v799_v47 = vld [vmem:[%s8926_s5 + $0x78] sm:$0xff]  ;;  %v796_v48 = vld [vmem:[%s8926_s5 + $0x60] sm:$0xff] }
  0x37   : > { %4875 = vmatmul.msk.f32.gmra.mxu0 %vm456_vm1, %v5875_v7  ;;  %4890 = vmatmul.msk.f32.gmra.mxu1 %vm456_vm1, %v5878_v9  ;;  %v797_v49 = vld [vmem:[%s8926_s5 + $0x68] sm:$0xff]  ;;  %v794_v50 = vld [vmem:[%s8926_s5 + $0x50] sm:$0xff]  ;;  %v795_v51 = vld [vmem:[%s8926_s5 + $0x58] sm:$0xff] }
  0x38   : > { %1150 = vmatpush.msra.mxu2 %v808_v36  ;;  %1188 = vmatpush.msra.mxu3 %v809_v37  ;;  %v792_v52 = vld [vmem:[%s8926_s5 + $0x40] sm:$0xff]  ;;  %v793_v53 = vld [vmem:[%s8926_s5 + $0x48] sm:$0xff]  ;;  %v790_v54 = vld [vmem:[%s8926_s5 + $0x30] sm:$0xff] }
  0x39   : > { %v791_v55 = vld [vmem:[%s8926_s5 + $0x38] sm:$0xff]  ;;  %v788_v56 = vld [vmem:[%s8926_s5 + $0x20] sm:$0xff]  ;;  %v789_v57 = vld [vmem:[%s8926_s5 + $0x28] sm:$0xff] }
  0x3a   : > { %1151 = vmatpush.msra.mxu2 %v806_v38  ;;  %1189 = vmatpush.msra.mxu3 %v807_v39  ;;  %v786_v58 = vld [vmem:[%s8926_s5 + $0x10] sm:$0xff]  ;;  %v787_v59 = vld [vmem:[%s8926_s5 + $0x18] sm:$0xff]  ;;  %v784_v60 = vld [vmem:[%s8926_s5] sm:$0xff] }
  0x3b   : > { %v785_v61 = vld [vmem:[%s8926_s5 + $0x8] sm:$0xff]  ;;  %v6144_v62 = vld [vmem:[#allocation7] ss:$0 sm:$0xff] }
  0x3c   : > { %1152 = vmatpush.msra.mxu2 %v804_v40  ;;  %1190 = vmatpush.msra.mxu3 %v805_v41  ;;  %v1069_v40 = vld [vmem:[%s8926_s5 + $0x1f0] sm:$0xff]  ;;  %v1070_v41 = vld [vmem:[%s8926_s5 + $0x1f8] sm:$0xff] }
  0x3d   : > { %1071 = vmatpush.msra.mxu0 %v1069_v40  ;;  %1109 = vmatpush.msra.mxu1 %v1070_v41  ;;  %v1057_v41 = vld [vmem:[%s8926_s5 + $0x190] sm:$0xff] }
  0x3e   : > { %4906 = vmatmul.msk.f32.gmra.mxu2 %vm456_vm1, %v5893_v10  ;;  %4921 = vmatmul.msk.f32.gmra.mxu3 %vm456_vm1, %v5896_v11 }
  0x3f   : > { %4876 = vmatmul.msk.f32.gmra.mxu0 %vm456_vm1, %v5899_v12  ;;  %4891 = vmatmul.msk.f32.gmra.mxu1 %vm456_vm1, %v5902_v13 }
  0x40   : > { %1153 = vmatpush.msra.mxu2 %v802_v42  ;;  %1191 = vmatpush.msra.mxu3 %v803_v43 }
  0x42   : > { %1154 = vmatpush.msra.mxu2 %v800_v44  ;;  %1192 = vmatpush.msra.mxu3 %v801_v45 }
  0x44   : > { %1155 = vmatpush.msra.mxu2 %v798_v46  ;;  %1193 = vmatpush.msra.mxu3 %v799_v47  ;;  %v1067_v47 = vld [vmem:[%s8926_s5 + $0x1e0] sm:$0xff] }
  0x45   : > { %1072 = vmatpush.msra.mxu0 %v1067_v47 }
  0x46   : > { %4907 = vmatmul.msk.f32.gmra.mxu2 %vm456_vm1, %v5913_v14  ;;  %4922 = vmatmul.msk.f32.gmra.mxu3 %vm456_vm1, %v5916_v15 }
  0x47   : > { %4877 = vmatmul.msk.f32.gmra.mxu0 %vm456_vm1, %v5919_v16  ;;  %4892 = vmatmul.msk.f32.gmra.mxu1 %vm456_vm1, %v5922_v17 }
  0x48   : > { %1156 = vmatpush.msra.mxu2 %v796_v48  ;;  %1194 = vmatpush.msra.mxu3 %v797_v49  ;;  %v1068_v48 = vld [vmem:[%s8926_s5 + $0x1e8] sm:$0xff] }
  0x49   : > { %1110 = vmatpush.msra.mxu1 %v1068_v48 }
  0x4a   : > { %1157 = vmatpush.msra.mxu2 %v794_v50  ;;  %1195 = vmatpush.msra.mxu3 %v795_v51 }
  0x4c   : > { %1158 = vmatpush.msra.mxu2 %v792_v52  ;;  %1196 = vmatpush.msra.mxu3 %v793_v53  ;;  %v1065_v52 = vld [vmem:[%s8926_s5 + $0x1d0] sm:$0xff]  ;;  %v1066_v53 = vld [vmem:[%s8926_s5 + $0x1d8] sm:$0xff] }
  0x4d   : > { %1073 = vmatpush.msra.mxu0 %v1065_v52  ;;  %1111 = vmatpush.msra.mxu1 %v1066_v53  ;;  %v1053_v53 = vld [vmem:[%s8926_s5 + $0x170] sm:$0xff] }
  0x4e   : > { %4908 = vmatmul.msk.f32.gmra.mxu2 %vm456_vm1, %v5933_v18  ;;  %4923 = vmatmul.msk.f32.gmra.mxu3 %vm456_vm1, %v5936_v19 }
  0x4f   : > { %4878 = vmatmul.msk.f32.gmra.mxu0 %vm456_vm1, %v5939_v20  ;;  %4893 = vmatmul.msk.f32.gmra.mxu1 %vm456_vm1, %v5942_v21 }
  0x50   : > { %1159 = vmatpush.msra.mxu2 %v790_v54  ;;  %1197 = vmatpush.msra.mxu3 %v791_v55 }
  0x52   : > { %1160 = vmatpush.msra.mxu2 %v788_v56  ;;  %1198 = vmatpush.msra.mxu3 %v789_v57 }
  0x54   : > { %1161 = vmatpush.msra.mxu2 %v786_v58  ;;  %1199 = vmatpush.msra.mxu3 %v787_v59 }
  0x56   : > { %4909 = vmatmul.msk.f32.gmra.mxu2 %vm456_vm1, %v5953_v22  ;;  %4924 = vmatmul.msk.f32.gmra.mxu3 %vm456_vm1, %v5956_v23 }
  0x57   : > { %4879 = vmatmul.msk.f32.gmra.mxu0 %vm456_vm1, %v5959_v24  ;;  %4894 = vmatmul.msk.f32.gmra.mxu1 %vm456_vm1, %v5962_v25 }
  0x58   : > { %1162 = vmatpush.msra.mxu2 %v784_v60  ;;  %1200 = vmatpush.msra.mxu3 %v785_v61  ;;  %v1063_v60 = vld [vmem:[%s8926_s5 + $0x1c0] sm:$0xff]  ;;  %v1064_v61 = vld [vmem:[%s8926_s5 + $0x1c8] sm:$0xff] }
  0x59   : > { %1074 = vmatpush.msra.mxu0 %v1063_v60  ;;  %1112 = vmatpush.msra.mxu1 %v1064_v61  ;;  %v1051_v60 = vld [vmem:[%s8926_s5 + $0x160] sm:$0xff]  ;;  %v1052_v61 = vld [vmem:[%s8926_s5 + $0x168] sm:$0xff] }
  0x5e   : > { %4910 = vmatmul.msk.f32.gmra.mxu2 %vm456_vm1, %v5973_v26  ;;  %4925 = vmatmul.msk.f32.gmra.mxu3 %vm456_vm1, %v5976_v27 }
  0x5f   : > { %4880 = vmatmul.msk.f32.gmra.mxu0 %vm456_vm1, %v5979_v28  ;;  %4895 = vmatmul.msk.f32.gmra.mxu1 %vm456_vm1, %v5982_v29 }
  0x66   : > { %4943 = vmatmul.msk.f32.vlgmr.msrb.gmra.mxu2 %vm456_vm1, %v5846_v1  ;;  %4951 = vmatmul.msk.f32.vlgmr.msrb.gmra.mxu3 %vm456_vm1, %v5850_v2 }
  0x67   : > { %4927 = vmatmul.msk.f32.vlgmr.msrb.gmra.mxu0 %vm456_vm1, %v5853_v3  ;;  %4935 = vmatmul.msk.f32.vlgmr.msrb.gmra.mxu1 %vm456_vm1, %v5860_v4 }
  0x6e   : > { %4944 = vmatmul.msk.f32.gmra.mxu2 %vm456_vm1, %v5869_v5  ;;  %4952 = vmatmul.msk.f32.gmra.mxu3 %vm456_vm1, %v5872_v6 }
  0x6f   : > { %4928 = vmatmul.msk.f32.gmra.mxu0 %vm456_vm1, %v5875_v7  ;;  %4936 = vmatmul.msk.f32.gmra.mxu1 %vm456_vm1, %v5878_v9 }
  0x76   : > { %4945 = vmatmul.msk.f32.gmra.mxu2 %vm456_vm1, %v5893_v10  ;;  %4953 = vmatmul.msk.f32.gmra.mxu3 %vm456_vm1, %v5896_v11 }
  0x77   : > { %4929 = vmatmul.msk.f32.gmra.mxu0 %vm456_vm1, %v5899_v12  ;;  %4937 = vmatmul.msk.f32.gmra.mxu1 %vm456_vm1, %v5902_v13 }
  0x7e   : > { %4946 = vmatmul.msk.f32.gmra.mxu2 %vm456_vm1, %v5913_v14  ;;  %4954 = vmatmul.msk.f32.gmra.mxu3 %vm456_vm1, %v5916_v15 }
  0x7f   : > { %4930 = vmatmul.msk.f32.gmra.mxu0 %vm456_vm1, %v5919_v16  ;;  %4938 = vmatmul.msk.f32.gmra.mxu1 %vm456_vm1, %v5922_v17 }
  0x86   : > { %4947 = vmatmul.msk.f32.gmra.mxu2 %vm456_vm1, %v5933_v18  ;;  %4955 = vmatmul.msk.f32.gmra.mxu3 %vm456_vm1, %v5936_v19 }
  0x87   : > { %4931 = vmatmul.msk.f32.gmra.mxu0 %vm456_vm1, %v5939_v20  ;;  %4939 = vmatmul.msk.f32.gmra.mxu1 %vm456_vm1, %v5942_v21 }
  0x8e   : > { %4948 = vmatmul.msk.f32.gmra.mxu2 %vm456_vm1, %v5953_v22  ;;  %4956 = vmatmul.msk.f32.gmra.mxu3 %vm456_vm1, %v5956_v23 }
  0x8f   : > { %4932 = vmatmul.msk.f32.gmra.mxu0 %vm456_vm1, %v5959_v24  ;;  %4940 = vmatmul.msk.f32.gmra.mxu1 %vm456_vm1, %v5962_v25 }
  0x96   : > { %4949 = vmatmul.msk.f32.gmra.mxu2 %vm456_vm1, %v5973_v26  ;;  %4957 = vmatmul.msk.f32.gmra.mxu3 %vm456_vm1, %v5976_v27 }
  0x97   : > { %4933 = vmatmul.msk.f32.gmra.mxu0 %vm456_vm1, %v5979_v28  ;;  %4941 = vmatmul.msk.f32.gmra.mxu1 %vm456_vm1, %v5982_v29 }
  0xac   : > { %v499_v63 = vpop.f32.mrf.mxu0  ;;  %v580_v0 = vpop.f32.mrf.mxu1 }
  0xad   : > { %v500_v8 = vadd.f32 %v6144_v62, %v499_v63  ;;  %v581_v30 = vadd.f32 %v6144_v62, %v580_v0 }
  0xaf   : > { %v520_v31 = vmax.f32 %v500_v8, 0.0  ;;  %v601_v32 = vmax.f32 %v581_v30, 0.0  ;;  %v1061_v8 = vld [vmem:[%s8926_s5 + $0x1b0] sm:$0xff]  ;;  %v1062_v30 = vld [vmem:[%s8926_s5 + $0x1b8] sm:$0xff] }
  0xb0   : > { %1075 = vmatpush.msra.mxu0 %v1061_v8  ;;  %1113 = vmatpush.msra.mxu1 %v1062_v30  ;;  %v1049_v30 = vld [vmem:[%s8926_s5 + $0x150] sm:$0xff] }
  0xb1   : > { %v661_v33 = vpop.f32.mrf.mxu2  ;;  %v742_v34 = vpop.f32.mrf.mxu3  ;;  %v608_v35 = vadd.f32 %v601_v32, %v520_v31 }
  0xb2   : > { %v662_v36 = vadd.f32 %v6144_v62, %v661_v33  ;;  %v743_v37 = vadd.f32 %v6144_v62, %v742_v34 }
  0xb4   : > { %v682_v38 = vmax.f32 %v662_v36, 0.0  ;;  %v763_v39 = vmax.f32 %v743_v37, 0.0  ;;  %v502_v42 = vpop.f32.mrf.mxu0  ;;  %v583_v43 = vpop.f32.mrf.mxu1  ;;  %v1059_v36 = vld [vmem:[%s8926_s5 + $0x1a0] sm:$0xff]  ;;  %v1060_v37 = vld [vmem:[%s8926_s5 + $0x1a8] sm:$0xff] }
  0xb5   : > { %v503_v45 = vadd.f32 %v6144_v62, %v502_v42  ;;  %v584_v46 = vadd.f32 %v6144_v62, %v583_v43  ;;  %1076 = vmatpush.msra.mxu0 %v1059_v36  ;;  %1114 = vmatpush.msra.mxu1 %v1060_v37  ;;  %v1058_v42 = vld [vmem:[%s8926_s5 + $0x198] sm:$0xff] }
  0xb6   : > { %v689_v44 = vadd.f32 %v682_v38, %v608_v35 }
  0xb7   : > { %v521_v50 = vmax.f32 %v503_v45, 0.0  ;;  %v602_v51 = vmax.f32 %v584_v46, 0.0  ;;  %1077 = vmatpush.msra.mxu0 %v1057_v41  ;;  %1115 = vmatpush.msra.mxu1 %v1058_v42  ;;  %v1045_v42 = vld [vmem:[%s8926_s5 + $0x130] sm:$0xff] }
  0xb8   : > { %v770_v49 = vadd.f32 %v763_v39, %v689_v44 }
  0xb9   : > { %v664_v54 = vpop.f32.mrf.mxu2  ;;  %v745_v55 = vpop.f32.mrf.mxu3  ;;  %v609_v57 = vadd.f32 %v602_v51, %v521_v50  ;;  %v1056_v50 = vld [vmem:[%s8926_s5 + $0x188] sm:$0xff] }
  0xba   : > { %v777_v56 = vmul.f32 0.25, %v770_v49  ;;  %v665_v58 = vadd.f32 %v6144_v62, %v664_v54  ;;  %v746_v59 = vadd.f32 %v6144_v62, %v745_v55  ;;  %v1055_v49 = vld [vmem:[%s8926_s5 + $0x180] sm:$0xff]  ;;  %1116 = vmatpush.msra.mxu1 %v1056_v50  ;;  %v1054_v54 = vld [vmem:[%s8926_s5 + $0x178] sm:$0xff]  ;;  %v1044_v50 = vld [vmem:[%s8926_s5 + $0x128] sm:$0xff] }
  0xbb   : > { %1078 = vmatpush.msra.mxu0 %v1055_v49  ;;  %v1043_v49 = vld [vmem:[%s8926_s5 + $0x120] sm:$0xff] }
  0xbc   : > { %v683_v63 = vmax.f32 %v665_v58, 0.0  ;;  %v764_v0 = vmax.f32 %v746_v59, 0.0  ;;  %1163 = vmatmul.f32.vlgmr.msra.gmra.mxu2 %v777_v56  ;;  %1201 = vmatmul.f32.vlgmr.msra.gmra.mxu3 %v777_v56  ;;  %v505_v31 = vpop.f32.mrf.mxu0  ;;  %v586_v32 = vpop.f32.mrf.mxu1 }
  0xbd   : > { %v506_v33 = vadd.f32 %v6144_v62, %v505_v31  ;;  %v587_v34 = vadd.f32 %v6144_v62, %v586_v32  ;;  %1079 = vmatpush.msra.mxu0 %v1053_v53  ;;  %1117 = vmatpush.msra.mxu1 %v1054_v54  ;;  %v1050_v31 = vld [vmem:[%s8926_s5 + $0x158] sm:$0xff]  ;;  %v1041_v54 = vld [vmem:[%s8926_s5 + $0x110] sm:$0xff] }
  0xbe   : > { %v690_v35 = vadd.f32 %v683_v63, %v609_v57 }
  0xbf   : > { %v522_v38 = vmax.f32 %v506_v33, 0.0  ;;  %v603_v39 = vmax.f32 %v587_v34, 0.0  ;;  %1080 = vmatpush.msra.mxu0 %v1051_v60  ;;  %1118 = vmatpush.msra.mxu1 %v1052_v61 }
  0xc0   : > { %v771_v40 = vadd.f32 %v764_v0, %v690_v35 }
  0xc1   : > { %v667_v43 = vpop.f32.mrf.mxu2  ;;  %v748_v44 = vpop.f32.mrf.mxu3  ;;  %v610_v45 = vadd.f32 %v603_v39, %v522_v38  ;;  %1081 = vmatpush.msra.mxu0 %v1049_v30  ;;  %1119 = vmatpush.msra.mxu1 %v1050_v31  ;;  %v1047_v38 = vld [vmem:[%s8926_s5 + $0x140] sm:$0xff]  ;;  %v1048_v39 = vld [vmem:[%s8926_s5 + $0x148] sm:$0xff] }
  0xc2   : > { %v668_v46 = vadd.f32 %v6144_v62, %v667_v43  ;;  %v749_v47 = vadd.f32 %v6144_v62, %v748_v44  ;;  %v778_v48 = vmul.f32 0.25, %v771_v40  ;;  %v1046_v43 = vld [vmem:[%s8926_s5 + $0x138] sm:$0xff] }
  0xc3   : > { %1082 = vmatpush.msra.mxu0 %v1047_v38  ;;  %1120 = vmatpush.msra.mxu1 %v1048_v39 }
  0xc4   : > { %v684_v51 = vmax.f32 %v668_v46, 0.0  ;;  %v765_v52 = vmax.f32 %v749_v47, 0.0  ;;  %1166 = vmatmul.f32.gmra.mxu2 %v778_v48  ;;  %1204 = vmatmul.f32.gmra.mxu3 %v778_v48  ;;  %v508_v55 = vpop.f32.mrf.mxu0  ;;  %v589_v56 = vpop.f32.mrf.mxu1 }
  0xc5   : > { %v509_v57 = vadd.f32 %v6144_v62, %v508_v55  ;;  %v590_v58 = vadd.f32 %v6144_v62, %v589_v56  ;;  %1083 = vmatpush.msra.mxu0 %v1045_v42  ;;  %1121 = vmatpush.msra.mxu1 %v1046_v43  ;;  %v1042_v55 = vld [vmem:[%s8926_s5 + $0x118] sm:$0xff] }
  0xc6   : > { %v691_v59 = vadd.f32 %v684_v51, %v610_v45 }
  0xc7   : > { %v523_v63 = vmax.f32 %v509_v57, 0.0  ;;  %v604_v0 = vmax.f32 %v590_v58, 0.0  ;;  %1084 = vmatpush.msra.mxu0 %v1043_v49  ;;  %1122 = vmatpush.msra.mxu1 %v1044_v50 }
  0xc8   : > { %v772_v8 = vadd.f32 %v765_v52, %v691_v59 }
  0xc9   : > { %v670_v32 = vpop.f32.mrf.mxu2  ;;  %v751_v33 = vpop.f32.mrf.mxu3  ;;  %v611_v34 = vadd.f32 %v604_v0, %v523_v63  ;;  %1085 = vmatpush.msra.mxu0 %v1041_v54  ;;  %1123 = vmatpush.msra.mxu1 %v1042_v55  ;;  %v1039_v63 = vld [vmem:[%s8926_s5 + $0x100] sm:$0xff]  ;;  %v1040_v0 = vld [vmem:[%s8926_s5 + $0x108] sm:$0xff] }
  0xca   : > { %v671_v35 = vadd.f32 %v6144_v62, %v670_v32  ;;  %v752_v36 = vadd.f32 %v6144_v62, %v751_v33  ;;  %v779_v37 = vmul.f32 0.25, %v772_v8 }
  0xcb   : > { %1086 = vmatpush.msra.mxu0 %v1039_v63  ;;  %1124 = vmatpush.msra.mxu1 %v1040_v0 }
  0xcc   : > { %v685_v40 = vmax.f32 %v671_v35, 0.0  ;;  %v766_v41 = vmax.f32 %v752_v36, 0.0  ;;  %1169 = vmatmul.f32.gmra.mxu2 %v779_v37  ;;  %1207 = vmatmul.f32.gmra.mxu3 %v779_v37  ;;  %v511_v44 = vpop.f32.mrf.mxu0  ;;  %v592_v45 = vpop.f32.mrf.mxu1 }
  0xcd   : > { %v512_v46 = vadd.f32 %v6144_v62, %v511_v44  ;;  %v593_v47 = vadd.f32 %v6144_v62, %v592_v45 }
  0xce   : > { %v692_v48 = vadd.f32 %v685_v40, %v611_v34 }
  0xcf   : > { %v524_v51 = vmax.f32 %v512_v46, 0.0  ;;  %v605_v52 = vmax.f32 %v593_v47, 0.0 }
  0xd0   : > { %v773_v53 = vadd.f32 %v766_v41, %v692_v48 }
  0xd1   : > { %v673_v56 = vpop.f32.mrf.mxu2  ;;  %v754_v57 = vpop.f32.mrf.mxu3  ;;  %v612_v58 = vadd.f32 %v605_v52, %v524_v51 }
  0xd2   : > { %v674_v59 = vadd.f32 %v6144_v62, %v673_v56  ;;  %v755_v60 = vadd.f32 %v6144_v62, %v754_v57  ;;  %v780_v61 = vmul.f32 0.25, %v773_v53 }
  0xd4   : > { %v686_v8 = vmax.f32 %v674_v59, 0.0  ;;  %v767_v30 = vmax.f32 %v755_v60, 0.0  ;;  %1172 = vmatmul.f32.gmra.mxu2 %v780_v61  ;;  %1210 = vmatmul.f32.gmra.mxu3 %v780_v61  ;;  %v514_v31 = vpop.f32.mrf.mxu0  ;;  %v595_v32 = vpop.f32.mrf.mxu1  ;;  %v6270_v61 = vld [vmem:[#allocation7 + $0x1] ss:$0 sm:$0xff] }
  0xd5   : > { %v515_v33 = vadd.f32 %v6144_v62, %v514_v31  ;;  %v596_v34 = vadd.f32 %v6144_v62, %v595_v32 }
  0xd6   : > { %v693_v35 = vadd.f32 %v686_v8, %v612_v58 }
  0xd7   : > { %v525_v36 = vmax.f32 %v515_v33, 0.0  ;;  %v606_v37 = vmax.f32 %v596_v34, 0.0 }
  0xd8   : > { %v774_v38 = vadd.f32 %v767_v30, %v693_v35 }
  0xd9   : > { %v676_v39 = vpop.f32.mrf.mxu2  ;;  %v757_v40 = vpop.f32.mrf.mxu3  ;;  %v613_v41 = vadd.f32 %v606_v37, %v525_v36 }
  0xda   : > { %v677_v42 = vadd.f32 %v6144_v62, %v676_v39  ;;  %v758_v43 = vadd.f32 %v6144_v62, %v757_v40  ;;  %v781_v44 = vmul.f32 0.25, %v774_v38 }
  0xdc   : > { %v687_v45 = vmax.f32 %v677_v42, 0.0  ;;  %v768_v46 = vmax.f32 %v758_v43, 0.0  ;;  %1175 = vmatmul.f32.gmra.mxu2 %v781_v44  ;;  %1213 = vmatmul.f32.gmra.mxu3 %v781_v44  ;;  %v517_v47 = vpop.f32.mrf.mxu0  ;;  %v598_v48 = vpop.f32.mrf.mxu1 }
  0xdd   : > { %v518_v49 = vadd.f32 %v6144_v62, %v517_v47  ;;  %v599_v50 = vadd.f32 %v6144_v62, %v598_v48 }
  0xde   : > { %v694_v51 = vadd.f32 %v687_v45, %v613_v41 }
  0xdf   : > { %v526_v52 = vmax.f32 %v518_v49, 0.0  ;;  %v607_v53 = vmax.f32 %v599_v50, 0.0 }
  0xe0   : > { %v775_v54 = vadd.f32 %v768_v46, %v694_v51 }
  0xe1   : > { %v679_v55 = vpop.f32.mrf.mxu2  ;;  %v760_v56 = vpop.f32.mrf.mxu3  ;;  %v614_v57 = vadd.f32 %v607_v53, %v526_v52 }
  0xe2   : > { %v680_v58 = vadd.f32 %v6144_v62, %v679_v55  ;;  %v761_v59 = vadd.f32 %v6144_v62, %v760_v56  ;;  %v782_v60 = vmul.f32 0.25, %v775_v54 }
  0xe4   : > { %v688_v63 = vmax.f32 %v680_v58, 0.0  ;;  %v769_v0 = vmax.f32 %v761_v59, 0.0  ;;  %1178 = vmatmul.f32.gmra.mxu2 %v782_v60  ;;  %1216 = vmatmul.f32.gmra.mxu3 %v782_v60  ;;  %v841_v8 = vpop.f32.mrf.mxu0  ;;  %v893_v30 = vpop.f32.mrf.mxu1 }
  0xe5   : > { %v842_v31 = vadd.f32 %v6270_v61, %v841_v8  ;;  %v894_v32 = vadd.f32 %v6270_v61, %v893_v30 }
  0xe6   : > { %v695_v33 = vadd.f32 %v688_v63, %v614_v57 }
  0xe7   : > { %v862_v34 = vmax.f32 %v842_v31, 0.0  ;;  %v914_v35 = vmax.f32 %v894_v32, 0.0 }
  0xe8   : > { %v776_v36 = vadd.f32 %v769_v0, %v695_v33 }
  0xe9   : > { %v945_v37 = vpop.f32.mrf.mxu2  ;;  %v997_v38 = vpop.f32.mrf.mxu3  ;;  %v921_v62 = vadd.f32 %v914_v35, %v862_v34 }
  0xea   : > { %v946_v39 = vadd.f32 %v6270_v61, %v945_v37  ;;  %v998_v40 = vadd.f32 %v6270_v61, %v997_v38  ;;  %v783_v41 = vmul.f32 0.25, %v776_v36 }
  0xec   : > { %v966_v42 = vmax.f32 %v946_v39, 0.0  ;;  %v1018_v43 = vmax.f32 %v998_v40, 0.0  ;;  %1181 = vmatmul.f32.gmra.mxu2 %v783_v41  ;;  %1219 = vmatmul.f32.gmra.mxu3 %v783_v41  ;;  %v844_v44 = vpop.f32.mrf.mxu0  ;;  %v896_v45 = vpop.f32.mrf.mxu1  ;;  %v1223_v39 = vld [vmem:[#allocation6 + $0x8] sm:$0x7] }
  0xed   : > { %v845_v47 = vadd.f32 %v6270_v61, %v844_v44  ;;  %v897_v48 = vadd.f32 %v6270_v61, %v896_v45  ;;  %4974 = vmatpush.msk.msrb.mxu2 %vm478_vm0, %v1223_v39  ;;  %4982 = vmatpush.msk.msrb.mxu3 %vm478_vm0, %v1223_v39 }
  0xee   : > { %v973_v46 = vadd.f32 %v966_v42, %v921_v62  ;;  %4958 = vmatpush.msk.msrb.mxu0 %vm478_vm0, %v1223_v39  ;;  %4966 = vmatpush.msk.msrb.mxu1 %vm478_vm0, %v1223_v39 }
  0xef   : > { %v863_v50 = vmax.f32 %v845_v47, 0.0  ;;  %v915_v51 = vmax.f32 %v897_v48, 0.0 }
  0xf0   : > { %v1025_v49 = vadd.f32 %v1018_v43, %v973_v46 }
  0xf1   : > { %v948_v52 = vpop.f32.mrf.mxu2  ;;  %v1000_v53 = vpop.f32.mrf.mxu3  ;;  %v922_v55 = vadd.f32 %v915_v51, %v863_v50 }
  0xf2   : > { %v1032_v54 = vmul.f32 0.25, %v1025_v49  ;;  %v949_v56 = vadd.f32 %v6270_v61, %v948_v52  ;;  %v1001_v57 = vadd.f32 %v6270_v61, %v1000_v53 }
  0xf4   : > { %v967_v58 = vmax.f32 %v949_v56, 0.0  ;;  %v1019_v59 = vmax.f32 %v1001_v57, 0.0  ;;  %1087 = vmatmul.f32.vlgmr.msra.gmra.mxu0 %v1032_v54  ;;  %1125 = vmatmul.f32.vlgmr.msra.gmra.mxu1 %v1032_v54  ;;  %v847_v60 = vpop.f32.mrf.mxu0  ;;  %v899_v63 = vpop.f32.mrf.mxu1 }
  0xf5   : > { %v848_v0 = vadd.f32 %v6270_v61, %v847_v60  ;;  %v900_v8 = vadd.f32 %v6270_v61, %v899_v63  ;;  %4975 = vmatmul.msk.f32.vlgmr.msrb.gmra.mxu2 %vm456_vm1, %v5846_v1  ;;  %4983 = vmatmul.msk.f32.vlgmr.msrb.gmra.mxu3 %vm456_vm1, %v5850_v2 }
  0xf6   : > { %v974_v30 = vadd.f32 %v967_v58, %v922_v55 }
  0xf7   : > { %v864_v31 = vmax.f32 %v848_v0, 0.0  ;;  %v916_v32 = vmax.f32 %v900_v8, 0.0 }
  0xf8   : > { %v1026_v33 = vadd.f32 %v1019_v59, %v974_v30 }
  0xf9   : > { %v951_v34 = vpop.f32.mrf.mxu2  ;;  %v1003_v35 = vpop.f32.mrf.mxu3  ;;  %v923_v36 = vadd.f32 %v916_v32, %v864_v31 }
  0xfa   : > { %v952_v37 = vadd.f32 %v6270_v61, %v951_v34  ;;  %v1004_v38 = vadd.f32 %v6270_v61, %v1003_v35  ;;  %v1033_v62 = vmul.f32 0.25, %v1026_v33 }
  0xfc   : > { %v968_v40 = vmax.f32 %v952_v37, 0.0  ;;  %v1020_v41 = vmax.f32 %v1004_v38, 0.0  ;;  %1090 = vmatmul.f32.gmra.mxu0 %v1033_v62  ;;  %1128 = vmatmul.f32.gmra.mxu1 %v1033_v62  ;;  %v850_v42 = vpop.f32.mrf.mxu0  ;;  %v902_v43 = vpop.f32.mrf.mxu1 }
  0xfd   : > { %v851_v44 = vadd.f32 %v6270_v61, %v850_v42  ;;  %v903_v45 = vadd.f32 %v6270_v61, %v902_v43  ;;  %4976 = vmatmul.msk.f32.gmra.mxu2 %vm456_vm1, %v5869_v5  ;;  %4984 = vmatmul.msk.f32.gmra.mxu3 %vm456_vm1, %v5872_v6 }
  0xfe   : > { %v975_v46 = vadd.f32 %v968_v40, %v923_v36 }
  0xff   : > { %v865_v47 = vmax.f32 %v851_v44, 0.0  ;;  %v917_v48 = vmax.f32 %v903_v45, 0.0 }
 0x100   : > { %v1027_v49 = vadd.f32 %v1020_v41, %v975_v46 }
 0x101   : > { %v954_v50 = vpop.f32.mrf.mxu2  ;;  %v1006_v51 = vpop.f32.mrf.mxu3  ;;  %v924_v52 = vadd.f32 %v917_v48, %v865_v47 }
 0x102   : > { %v955_v53 = vadd.f32 %v6270_v61, %v954_v50  ;;  %v1007_v54 = vadd.f32 %v6270_v61, %v1006_v51  ;;  %v1034_v55 = vmul.f32 0.25, %v1027_v49 }
 0x104   : > { %v969_v56 = vmax.f32 %v955_v53, 0.0  ;;  %v1021_v57 = vmax.f32 %v1007_v54, 0.0  ;;  %1093 = vmatmul.f32.gmra.mxu0 %v1034_v55  ;;  %1131 = vmatmul.f32.gmra.mxu1 %v1034_v55  ;;  %v853_v58 = vpop.f32.mrf.mxu0  ;;  %v905_v1 = vpop.f32.mrf.mxu1 }
 0x105   : > { %v854_v59 = vadd.f32 %v6270_v61, %v853_v58  ;;  %v906_v2 = vadd.f32 %v6270_v61, %v905_v1  ;;  %4977 = vmatmul.msk.f32.gmra.mxu2 %vm456_vm1, %v5893_v10  ;;  %4985 = vmatmul.msk.f32.gmra.mxu3 %vm456_vm1, %v5896_v11 }
 0x106   : > { %v976_v60 = vadd.f32 %v969_v56, %v924_v52 }
 0x107   : > { %v866_v63 = vmax.f32 %v854_v59, 0.0  ;;  %v918_v0 = vmax.f32 %v906_v2, 0.0 }
 0x108   : > { %v1028_v8 = vadd.f32 %v1021_v57, %v976_v60 }
 0x109   : > { %v957_v30 = vpop.f32.mrf.mxu2  ;;  %v1009_v31 = vpop.f32.mrf.mxu3  ;;  %v925_v32 = vadd.f32 %v918_v0, %v866_v63 }
 0x10a   : > { %v958_v33 = vadd.f32 %v6270_v61, %v957_v30  ;;  %v1010_v34 = vadd.f32 %v6270_v61, %v1009_v31  ;;  %v1035_v35 = vmul.f32 0.25, %v1028_v8  ;;  %v1468_v30 = vld [vmem:[%s8926_s5 + $0x2b0] sm:$0xff]  ;;  %v1469_v31 = vld [vmem:[%s8926_s5 + $0x2b8] sm:$0xff] }
 0x10c   : > { %v970_v36 = vmax.f32 %v958_v33, 0.0  ;;  %v1022_v37 = vmax.f32 %v1010_v34, 0.0  ;;  %1096 = vmatmul.f32.gmra.mxu0 %v1035_v35  ;;  %1134 = vmatmul.f32.gmra.mxu1 %v1035_v35  ;;  %v856_v38 = vpop.f32.mrf.mxu0  ;;  %v908_v5 = vpop.f32.mrf.mxu1  ;;  %v1466_v33 = vld [vmem:[%s8926_s5 + $0x2a0] sm:$0xff]  ;;  %v1467_v34 = vld [vmem:[%s8926_s5 + $0x2a8] sm:$0xff] }
 0x10d   : > { %v857_v62 = vadd.f32 %v6270_v61, %v856_v38  ;;  %v909_v6 = vadd.f32 %v6270_v61, %v908_v5  ;;  %4978 = vmatmul.msk.f32.gmra.mxu2 %vm456_vm1, %v5913_v14  ;;  %4986 = vmatmul.msk.f32.gmra.mxu3 %vm456_vm1, %v5916_v15  ;;  %v1465_v38 = vld [vmem:[%s8926_s5 + $0x298] sm:$0xff]  ;;  %v1462_v5 = vld [vmem:[%s8926_s5 + $0x280] sm:$0xff] }
 0x10e   : > { %v977_v39 = vadd.f32 %v970_v36, %v925_v32 }
 0x10f   : > { %v867_v40 = vmax.f32 %v857_v62, 0.0  ;;  %v919_v41 = vmax.f32 %v909_v6, 0.0  ;;  %v1463_v62 = vld [vmem:[%s8926_s5 + $0x288] sm:$0xff]  ;;  %v1460_v6 = vld [vmem:[%s8926_s5 + $0x270] sm:$0xff] }
 0x110   : > { %v1029_v42 = vadd.f32 %v1022_v37, %v977_v39  ;;  %v1464_v37 = vld [vmem:[%s8926_s5 + $0x290] sm:$0xff]  ;;  %v1461_v39 = vld [vmem:[%s8926_s5 + $0x278] sm:$0xff] }
 0x111   : > { %v960_v43 = vpop.f32.mrf.mxu2  ;;  %v1012_v44 = vpop.f32.mrf.mxu3  ;;  %v926_v45 = vadd.f32 %v919_v41, %v867_v40 }
 0x112   : > { %v961_v46 = vadd.f32 %v6270_v61, %v960_v43  ;;  %v1013_v47 = vadd.f32 %v6270_v61, %v1012_v44  ;;  %v1036_v48 = vmul.f32 0.25, %v1029_v42  ;;  %v1458_v42 = vld [vmem:[%s8926_s5 + $0x260] sm:$0xff]  ;;  %v1459_v43 = vld [vmem:[%s8926_s5 + $0x268] sm:$0xff] }
 0x114   : > { %v971_v49 = vmax.f32 %v961_v46, 0.0  ;;  %v1023_v50 = vmax.f32 %v1013_v47, 0.0  ;;  %1099 = vmatmul.f32.gmra.mxu0 %v1036_v48  ;;  %1137 = vmatmul.f32.gmra.mxu1 %v1036_v48  ;;  %v859_v51 = vpop.f32.mrf.mxu0  ;;  %v911_v10 = vpop.f32.mrf.mxu1  ;;  %v1456_v46 = vld [vmem:[%s8926_s5 + $0x250] sm:$0xff]  ;;  %v1457_v47 = vld [vmem:[%s8926_s5 + $0x258] sm:$0xff]  ;;  %v1454_v48 = vld [vmem:[%s8926_s5 + $0x240] sm:$0xff] }
 0x115   : > { %v860_v52 = vadd.f32 %v6270_v61, %v859_v51  ;;  %v912_v11 = vadd.f32 %v6270_v61, %v911_v10  ;;  %4979 = vmatmul.msk.f32.gmra.mxu2 %vm456_vm1, %v5933_v18  ;;  %4987 = vmatmul.msk.f32.gmra.mxu3 %vm456_vm1, %v5936_v19  ;;  %v1476_v19 = vld [vmem:[%s8926_s5 + $0x2f0] sm:$0xff]  ;;  %v1453_v51 = vld [vmem:[%s8926_s5 + $0x238] sm:$0xff] }
 0x116   : > { %v978_v53 = vadd.f32 %v971_v49, %v926_v45  ;;  %1478 = vmatpush.msra.mxu0 %v1476_v19  ;;  %v1455_v49 = vld [vmem:[%s8926_s5 + $0x248] sm:$0xff]  ;;  %v6512_v19 = vld [vmem:[#allocation7 + $0x2] ss:$0 sm:$0xff] }
 0x117   : > { %v868_v54 = vmax.f32 %v860_v52, 0.0  ;;  %v920_v55 = vmax.f32 %v912_v11, 0.0  ;;  %v1450_v52 = vld [vmem:[%s8926_s5 + $0x220] sm:$0xff]  ;;  %v1451_v11 = vld [vmem:[%s8926_s5 + $0x228] sm:$0xff] }
 0x118   : > { %v1030_v56 = vadd.f32 %v1023_v50, %v978_v53  ;;  %v1452_v50 = vld [vmem:[%s8926_s5 + $0x230] sm:$0xff] }
 0x119   : > { %v963_v57 = vpop.f32.mrf.mxu2  ;;  %v1015_v58 = vpop.f32.mrf.mxu3  ;;  %v927_v1 = vadd.f32 %v920_v55, %v868_v54 }
 0x11a   : > { %v964_v59 = vadd.f32 %v6270_v61, %v963_v57  ;;  %v1016_v2 = vadd.f32 %v6270_v61, %v1015_v58  ;;  %v1037_v60 = vmul.f32 0.25, %v1030_v56  ;;  %v1448_v56 = vld [vmem:[%s8926_s5 + $0x210] sm:$0xff]  ;;  %v1449_v57 = vld [vmem:[%s8926_s5 + $0x218] sm:$0xff]  ;;  %v1446_v58 = vld [vmem:[%s8926_s5 + $0x200] sm:$0xff] }
 0x11c   : > { %v972_v63 = vmax.f32 %v964_v59, 0.0  ;;  %v1024_v0 = vmax.f32 %v1016_v2, 0.0  ;;  %1102 = vmatmul.f32.gmra.mxu0 %v1037_v60  ;;  %1140 = vmatmul.f32.gmra.mxu1 %v1037_v60 }
 0x11d   : > { %4980 = vmatmul.msk.f32.gmra.mxu2 %vm456_vm1, %v5953_v22  ;;  %4988 = vmatmul.msk.f32.gmra.mxu3 %vm456_vm1, %v5956_v23  ;;  %v1474_v22 = vld [vmem:[%s8926_s5 + $0x2e0] sm:$0xff]  ;;  %v1475_v23 = vld [vmem:[%s8926_s5 + $0x2e8] sm:$0xff] }
 0x11e   : > { %v979_v8 = vadd.f32 %v972_v63, %v927_v1  ;;  %1479 = vmatpush.msra.mxu0 %v1474_v22  ;;  %v1447_v1 = vld [vmem:[%s8926_s5 + $0x208] sm:$0xff] }
 0x120   : > { %v1031_v14 = vadd.f32 %v1024_v0, %v979_v8 }
 0x122   : > { %v1038_v15 = vmul.f32 0.25, %v1031_v14 }
 0x124   : > { %1105 = vmatmul.f32.gmra.mxu0 %v1038_v15  ;;  %1143 = vmatmul.f32.gmra.mxu1 %v1038_v15 }
 0x125   : > { %4981 = vmatmul.msk.f32.gmra.mxu2 %vm456_vm1, %v5973_v26  ;;  %4989 = vmatmul.msk.f32.gmra.mxu3 %vm456_vm1, %v5976_v27  ;;  %v1472_v26 = vld [vmem:[%s8926_s5 + $0x2d0] sm:$0xff]  ;;  %v1473_v27 = vld [vmem:[%s8926_s5 + $0x2d8] sm:$0xff] }
 0x126   : > { %1480 = vmatpush.msra.mxu0 %v1472_v26 }
 0x12c   : > { %4959 = vmatmul.msk.f32.vlgmr.msrb.gmra.mxu0 %vm456_vm1, %v5853_v3  ;;  %4967 = vmatmul.msk.f32.vlgmr.msrb.gmra.mxu1 %vm456_vm1, %v5860_v4 }
 0x134   : > { %4960 = vmatmul.msk.f32.gmra.mxu0 %vm456_vm1, %v5875_v7  ;;  %4968 = vmatmul.msk.f32.gmra.mxu1 %vm456_vm1, %v5878_v9 }
 0x13c   : > { %4961 = vmatmul.msk.f32.gmra.mxu0 %vm456_vm1, %v5899_v12  ;;  %4969 = vmatmul.msk.f32.gmra.mxu1 %vm456_vm1, %v5902_v13 }
 0x13f   : > { %v6352_v3 = vpop.f32.mrf.mxu2  ;;  %v6358_v4 = vpop.f32.mrf.mxu3 }
 0x140   : > { %8933 = vst [vmem:[#allocation17_spill] sm:$0xff] %v6352_v3 }
 0x141   : > { %8934 = vst [vmem:[#allocation18_spill] sm:$0xff] %v6358_v4 }
 0x144   : > { %4962 = vmatmul.msk.f32.gmra.mxu0 %vm456_vm1, %v5919_v16  ;;  %4970 = vmatmul.msk.f32.gmra.mxu1 %vm456_vm1, %v5922_v17 }
 0x147   : > { %v6364_v7 = vpop.f32.mrf.mxu2  ;;  %v6366_v9 = vpop.f32.mrf.mxu3 }
 0x148   : > { %8935 = vst [vmem:[#allocation19_spill] sm:$0xff] %v6364_v7 }
 0x149   : > { %8936 = vst [vmem:[#allocation20_spill] sm:$0xff] %v6366_v9 }
 0x14c   : > { %4963 = vmatmul.msk.f32.gmra.mxu0 %vm456_vm1, %v5939_v20  ;;  %4971 = vmatmul.msk.f32.gmra.mxu1 %vm456_vm1, %v5942_v21  ;;  %v1477_v20 = vld [vmem:[%s8926_s5 + $0x2f8] sm:$0xff] }
 0x14d   : > { %1516 = vmatpush.msra.mxu1 %v1477_v20 }
 0x14f   : > { %v6368_v12 = vpop.f32.mrf.mxu2  ;;  %v6370_v13 = vpop.f32.mrf.mxu3  ;;  %1517 = vmatpush.msra.mxu1 %v1475_v23 }
 0x150   : > { %8937 = vst [vmem:[#allocation21_spill] sm:$0xff] %v6368_v12 }
 0x151   : > { %8938 = vst [vmem:[#allocation22_spill] sm:$0xff] %v6370_v13  ;;  %1518 = vmatpush.msra.mxu1 %v1473_v27 }
 0x154   : > { %4964 = vmatmul.msk.f32.gmra.mxu0 %vm456_vm1, %v5959_v24  ;;  %4972 = vmatmul.msk.f32.gmra.mxu1 %vm456_vm1, %v5962_v25 }
 0x157   : > { %v6376_v18 = vpop.f32.mrf.mxu2  ;;  %v6384_v21 = vpop.f32.mrf.mxu3 }
 0x158   : > { %8941 = vst [vmem:[#allocation25_spill] sm:$0xff] %v6376_v18 }
 0x159   : > { %8942 = vst [vmem:[#allocation26_spill] sm:$0xff] %v6384_v21 }
 0x15c   : > { %4965 = vmatmul.msk.f32.gmra.mxu0 %vm456_vm1, %v5979_v28  ;;  %4973 = vmatmul.msk.f32.gmra.mxu1 %vm456_vm1, %v5982_v29  ;;  %v1470_v28 = vld [vmem:[%s8926_s5 + $0x2c0] sm:$0xff]  ;;  %v1471_v29 = vld [vmem:[%s8926_s5 + $0x2c8] sm:$0xff] }
 0x15d   : > { %1481 = vmatpush.msra.mxu0 %v1470_v28  ;;  %1519 = vmatpush.msra.mxu1 %v1471_v29 }
 0x15f   : > { %v6408_v61 = vpop.f32.mrf.mxu2  ;;  %v6416_v32 = vpop.f32.mrf.mxu3  ;;  %1482 = vmatpush.msra.mxu0 %v1468_v30  ;;  %1520 = vmatpush.msra.mxu1 %v1469_v31 }
 0x160   : > { %8945 = vst [vmem:[#allocation29_spill] sm:$0xff] %v6408_v61 }
 0x161   : > { %8946 = vst [vmem:[#allocation30_spill] sm:$0xff] %v6416_v32  ;;  %1483 = vmatpush.msra.mxu0 %v1466_v33  ;;  %1521 = vmatpush.msra.mxu1 %v1467_v34 }
 0x163   : > { %1484 = vmatpush.msra.mxu0 %v1464_v37  ;;  %1522 = vmatpush.msra.mxu1 %v1465_v38 }
 0x165   : > { %1485 = vmatpush.msra.mxu0 %v1462_v5  ;;  %1523 = vmatpush.msra.mxu1 %v1463_v62 }
 0x167   : > { %v6446_v40 = vpop.f32.mrf.mxu2  ;;  %1486 = vmatpush.msra.mxu0 %v1460_v6  ;;  %1524 = vmatpush.msra.mxu1 %v1461_v39  ;;  %v6448_v41 = vpop.f32.mrf.mxu3 }
 0x169   : > { %1487 = vmatpush.msra.mxu0 %v1458_v42  ;;  %1525 = vmatpush.msra.mxu1 %v1459_v43 }
 0x16b   : > { %1488 = vmatpush.msra.mxu0 %v1456_v46  ;;  %1526 = vmatpush.msra.mxu1 %v1457_v47 }
 0x16d   : > { %1489 = vmatpush.msra.mxu0 %v1454_v48  ;;  %1527 = vmatpush.msra.mxu1 %v1455_v49 }
 0x16f   : > { %1490 = vmatpush.msra.mxu0 %v1452_v50  ;;  %1528 = vmatpush.msra.mxu1 %v1453_v51  ;;  %v6478_v10 = vpop.f32.mrf.mxu2  ;;  %v6490_v55 = vpop.f32.mrf.mxu3 }
 0x170   : > { %8951 = vst [vmem:[#allocation35_spill] sm:$0xff] %v6478_v10 }
 0x171   : > { %v6372_v16 = vpop.f32.mrf.mxu0  ;;  %v6374_v17 = vpop.f32.mrf.mxu1  ;;  %1491 = vmatpush.msra.mxu0 %v1450_v52  ;;  %1529 = vmatpush.msra.mxu1 %v1451_v11  ;;  %8954 = vst [vmem:[#allocation38_spill] sm:$0xff] %v6490_v55 }
 0x172   : > { %8939 = vst [vmem:[#allocation23_spill] sm:$0xff] %v6372_v16 }
 0x173   : > { %8940 = vst [vmem:[#allocation24_spill] sm:$0xff] %v6374_v17  ;;  %1492 = vmatpush.msra.mxu0 %v1448_v56  ;;  %1530 = vmatpush.msra.mxu1 %v1449_v57 }
 0x175   : > { %1493 = vmatpush.msra.mxu0 %v1446_v58  ;;  %1531 = vmatpush.msra.mxu1 %v1447_v1 }
 0x178   : > { %v1352_v59 = vpop.f32.mrf.mxu2  ;;  %v1404_v63 = vpop.f32.mrf.mxu3 }
 0x179   : > { %v6392_v24 = vpop.f32.mrf.mxu0  ;;  %v6394_v25 = vpop.f32.mrf.mxu1  ;;  %v1353_v20 = vadd.f32 %v6512_v19, %v1352_v59  ;;  %v1405_v28 = vadd.f32 %v6512_v19, %v1404_v63 }
 0x17a   : > { %8943 = vst [vmem:[#allocation27_spill] sm:$0xff] %v6392_v24 }
 0x17b   : > { %8944 = vst [vmem:[#allocation28_spill] sm:$0xff] %v6394_v25  ;;  %v1373_v31 = vmax.f32 %v1353_v20, 0.0  ;;  %v1425_v37 = vmax.f32 %v1405_v28, 0.0 }
 0x180   : > { %v1355_v14 = vpop.f32.mrf.mxu2  ;;  %v1407_v15 = vpop.f32.mrf.mxu3 }
 0x181   : > { %v6424_v35 = vpop.f32.mrf.mxu0  ;;  %v6426_v36 = vpop.f32.mrf.mxu1  ;;  %v1356_v62 = vadd.f32 %v6512_v19, %v1355_v14  ;;  %v1408_v47 = vadd.f32 %v6512_v19, %v1407_v15 }
 0x182   : > { %8947 = vst [vmem:[#allocation31_spill] sm:$0xff] %v6424_v35 }
 0x183   : > { %8948 = vst [vmem:[#allocation32_spill] sm:$0xff] %v6426_v36  ;;  %v1374_v51 = vmax.f32 %v1356_v62, 0.0  ;;  %v1426_v11 = vmax.f32 %v1408_v47, 0.0 }
 0x188   : > { %v1358_v33 = vpop.f32.mrf.mxu2  ;;  %v1410_v38 = vpop.f32.mrf.mxu3 }
 0x189   : > { %v6456_v44 = vpop.f32.mrf.mxu0  ;;  %v6458_v45 = vpop.f32.mrf.mxu1  ;;  %v1359_v58 = vadd.f32 %v6512_v19, %v1358_v33 }
 0x18a   : > { %8949 = vst [vmem:[#allocation33_spill] sm:$0xff] %v6456_v44 }
 0x18b   : > { %8950 = vst [vmem:[#allocation34_spill] sm:$0xff] %v6458_v45  ;;  %v1375_v28 = vmax.f32 %v1359_v58, 0.0 }
 0x190   : > { %v1361_v56 = vpop.f32.mrf.mxu2  ;;  %v1413_v1 = vpop.f32.mrf.mxu3 }
 0x191   : > { %v6486_v53 = vpop.f32.mrf.mxu0  ;;  %v6488_v54 = vpop.f32.mrf.mxu1 }
 0x192   : > { %8952 = vst [vmem:[#allocation36_spill] sm:$0xff] %v6486_v53 }
 0x193   : > { %8953 = vst [vmem:[#allocation37_spill] sm:$0xff] %v6488_v54 }
 0x198   : > { %v1416_v47 = vpop.f32.mrf.mxu3 }
 0x199   : > { %v6504_v2 = vpop.f32.mrf.mxu0  ;;  %v6506_v60 = vpop.f32.mrf.mxu1 }
 0x1a1   : > { %v6508_v0 = vpop.f32.mrf.mxu0  ;;  %v6510_v8 = vpop.f32.mrf.mxu1 }
 0x1a2   : > { %8955 = vst [vmem:[#allocation39_spill] sm:$0xff] %v6508_v0 }
 0x1a3   : > { %8956 = vst [vmem:[#allocation40_spill] sm:$0xff] %v6510_v8 }
 0x1a9   : > { %v1248_v22 = vpop.f32.mrf.mxu0  ;;  %v1300_v23 = vpop.f32.mrf.mxu1 }
 0x1aa   : > { %v1249_v26 = vadd.f32 %v6512_v19, %v1248_v22  ;;  %v1301_v27 = vadd.f32 %v6512_v19, %v1300_v23  ;;  %v1411_v22 = vadd.f32 %v6512_v19, %v1410_v38  ;;  %v1568_v23 = vld [vmem:[#allocation6 + $0xc] sm:$0x7]  ;;  %v1362_v38 = vadd.f32 %v6512_v19, %v1361_v56 }
 0x1ab   : > { %4990 = vmatpush.msk.msra.mxu2 %vm478_vm0, %v1568_v23  ;;  %4998 = vmatpush.msk.msra.mxu3 %vm478_vm0, %v1568_v23 }
 0x1ac   : > { %v1269_v29 = vmax.f32 %v1249_v26, 0.0  ;;  %v1321_v30 = vmax.f32 %v1301_v27, 0.0  ;;  %5006 = vmatpush.msk.msrb.mxu0 %vm478_vm0, %v1568_v23  ;;  %5014 = vmatpush.msk.msrb.mxu1 %vm478_vm0, %v1568_v23 }
 0x1ae   : > { %v1328_v34 = vadd.f32 %v1321_v30, %v1269_v29  ;;  %v6531_v30 = vld [vmem:[%s5842_s12] sm:$0xff] }
 0x1af   : > { %4991 = vmatmul.msk.f32.vlgmr.msra.gmra.mxu2 %vm456_vm1, %v6531_v30 }
 0x1b0   : > { %v1380_v5 = vadd.f32 %v1373_v31, %v1328_v34  ;;  %v6536_v31 = vld [vmem:[%s5842_s12 + $0x38] sm:$0xff]  ;;  %v1427_v34 = vmax.f32 %v1411_v22, 0.0  ;;  %v1417_v22 = vadd.f32 %v6512_v19, %v1416_v47 }
 0x1b1   : > { %v1251_v6 = vpop.f32.mrf.mxu0  ;;  %v1303_v39 = vpop.f32.mrf.mxu1  ;;  %4999 = vmatmul.msk.f32.vlgmr.msra.gmra.mxu3 %vm456_vm1, %v6536_v31 }
 0x1b2   : > { %v1432_v42 = vadd.f32 %v1425_v37, %v1380_v5  ;;  %v1252_v43 = vadd.f32 %v6512_v19, %v1251_v6  ;;  %v1304_v46 = vadd.f32 %v6512_v19, %v1303_v39  ;;  %v1364_v5 = vpop.f32.mrf.mxu2 }
 0x1b4   : > { %v1439_v48 = vmul.f32 0.25, %v1432_v42  ;;  %v1270_v49 = vmax.f32 %v1252_v43, 0.0  ;;  %v1322_v50 = vmax.f32 %v1304_v46, 0.0  ;;  %v1414_v46 = vadd.f32 %v6512_v19, %v1413_v1 }
 0x1b5   : > { %v1365_v1 = vadd.f32 %v6512_v19, %v1364_v5  ;;  %v1429_v5 = vmax.f32 %v1417_v22, 0.0 }
 0x1b6   : > { %v1329_v52 = vadd.f32 %v1322_v50, %v1270_v49  ;;  %1494 = vmatmul.f32.vlgmr.msra.gmra.mxu0 %v1439_v48  ;;  %1532 = vmatmul.f32.vlgmr.msra.gmra.mxu1 %v1439_v48  ;;  %v1376_v50 = vmax.f32 %v1362_v38, 0.0 }
 0x1b8   : > { %v1381_v57 = vadd.f32 %v1374_v51, %v1329_v52  ;;  %v6545_v52 = vld [vmem:[%s5842_s12 + $0x8] sm:$0xff] }
 0x1b9   : > { %v1254_v59 = vpop.f32.mrf.mxu0  ;;  %v1306_v63 = vpop.f32.mrf.mxu1  ;;  %4992 = vmatmul.msk.f32.gmra.mxu2 %vm456_vm1, %v6545_v52 }
 0x1ba   : > { %v1433_v14 = vadd.f32 %v1426_v11, %v1381_v57  ;;  %v1255_v15 = vadd.f32 %v6512_v19, %v1254_v59  ;;  %v1307_v20 = vadd.f32 %v6512_v19, %v1306_v63  ;;  %v6550_v11 = vld [vmem:[%s5842_s12 + $0x40] sm:$0xff]  ;;  %v1428_v57 = vmax.f32 %v1414_v46, 0.0  ;;  %v1367_v23 = vpop.f32.mrf.mxu2 }
 0x1bb   : > { %5000 = vmatmul.msk.f32.gmra.mxu3 %vm456_vm1, %v6550_v11 }
 0x1bc   : > { %v1271_v26 = vmax.f32 %v1255_v15, 0.0  ;;  %v1323_v27 = vmax.f32 %v1307_v20, 0.0  ;;  %v1440_v29 = vmul.f32 0.25, %v1433_v14 }
 0x1be   : > { %v1330_v33 = vadd.f32 %v1323_v27, %v1271_v26  ;;  %1497 = vmatmul.f32.gmra.mxu0 %v1440_v29  ;;  %1535 = vmatmul.f32.gmra.mxu1 %v1440_v29 }
 0x1c0   : > { %v1382_v37 = vadd.f32 %v1375_v28, %v1330_v33  ;;  %v1377_v28 = vmax.f32 %v1365_v1, 0.0  ;;  %v1419_v33 = vpop.f32.mrf.mxu3  ;;  %v6578_v1 = vld [vmem:[%s5842_s12 + $0x50] sm:$0xff] }
 0x1c1   : > { %v1257_v62 = vpop.f32.mrf.mxu0  ;;  %v1309_v6 = vpop.f32.mrf.mxu1 }
 0x1c2   : > { %v1434_v39 = vadd.f32 %v1427_v34, %v1382_v37  ;;  %v1258_v42 = vadd.f32 %v6512_v19, %v1257_v62  ;;  %v1310_v43 = vadd.f32 %v6512_v19, %v1309_v6  ;;  %v6559_v34 = vld [vmem:[%s5842_s12 + $0x10] sm:$0xff]  ;;  %v6564_v37 = vld [vmem:[%s5842_s12 + $0x48] sm:$0xff]  ;;  %v1368_v6 = vadd.f32 %v6512_v19, %v1367_v23 }
 0x1c3   : > { %4993 = vmatmul.msk.f32.gmra.mxu2 %vm456_vm1, %v6559_v34  ;;  %5001 = vmatmul.msk.f32.gmra.mxu3 %vm456_vm1, %v6564_v37 }
 0x1c4   : > { %v1272_v48 = vmax.f32 %v1258_v42, 0.0  ;;  %v1324_v49 = vmax.f32 %v1310_v43, 0.0  ;;  %v1441_v51 = vmul.f32 0.25, %v1434_v39 }
 0x1c6   : > { %v1331_v56 = vadd.f32 %v1324_v49, %v1272_v48  ;;  %1500 = vmatmul.f32.gmra.mxu0 %v1441_v51  ;;  %1538 = vmatmul.f32.gmra.mxu1 %v1441_v51  ;;  %v1420_v48 = vadd.f32 %v6512_v19, %v1419_v33  ;;  %v1378_v51 = vmax.f32 %v1368_v6, 0.0  ;;  %v6587_v6 = vld [vmem:[%s5842_s12 + $0x20] sm:$0xff] }
 0x1c8   : > { %v1383_v58 = vadd.f32 %v1376_v50, %v1331_v56 }
 0x1c9   : > { %v1260_v59 = vpop.f32.mrf.mxu0  ;;  %v1312_v63 = vpop.f32.mrf.mxu1 }
 0x1ca   : > { %v1435_v14 = vadd.f32 %v1428_v57, %v1383_v58  ;;  %v1261_v15 = vadd.f32 %v6512_v19, %v1260_v59  ;;  %v1313_v20 = vadd.f32 %v6512_v19, %v1312_v63  ;;  %v1370_v57 = vpop.f32.mrf.mxu2  ;;  %v6573_v58 = vld [vmem:[%s5842_s12 + $0x18] sm:$0xff]  ;;  %v1430_v63 = vmax.f32 %v1420_v48, 0.0  ;;  %v6597_v48 = vld [vmem:[%s5842_s12 + $0x28] sm:$0xff] }
 0x1cb   : > { %4994 = vmatmul.msk.f32.gmra.mxu2 %vm456_vm1, %v6573_v58  ;;  %5002 = vmatmul.msk.f32.gmra.mxu3 %vm456_vm1, %v6578_v1 }
 0x1cc   : > { %v1273_v26 = vmax.f32 %v1261_v15, 0.0  ;;  %v1325_v27 = vmax.f32 %v1313_v20, 0.0  ;;  %v1442_v29 = vmul.f32 0.25, %v1435_v14  ;;  %v1422_v14 = vpop.f32.mrf.mxu3  ;;  %v1371_v20 = vadd.f32 %v6512_v19, %v1370_v57  ;;  %v6622_v57 = vld [vmem:[%s5842_s12 + $0xa8] sm:$0xff] }
 0x1ce   : > { %v1332_v38 = vadd.f32 %v1325_v27, %v1273_v26  ;;  %1503 = vmatmul.f32.gmra.mxu0 %v1442_v29  ;;  %1541 = vmatmul.f32.gmra.mxu1 %v1442_v29  ;;  %v1423_v29 = vadd.f32 %v6512_v19, %v1422_v14  ;;  %v6637_v14 = vld [vmem:[%s5842_s12 + $0x80] sm:$0xff] }
 0x1d0   : > { %v1384_v62 = vadd.f32 %v1377_v28, %v1332_v38 }
 0x1d1   : > { %v1263_v39 = vpop.f32.mrf.mxu0  ;;  %v1315_v42 = vpop.f32.mrf.mxu1 }
 0x1d2   : > { %v1436_v43 = vadd.f32 %v1429_v5, %v1384_v62  ;;  %v1264_v46 = vadd.f32 %v6512_v19, %v1263_v39  ;;  %v1316_v47 = vadd.f32 %v6512_v19, %v1315_v42  ;;  %v1379_v5 = vmax.f32 %v1371_v20, 0.0  ;;  %v6592_v39 = vld [vmem:[%s5842_s12 + $0x58] sm:$0xff]  ;;  %v6647_v20 = vld [vmem:[%s5842_s12 + $0x88] sm:$0xff] }
 0x1d3   : > { %4995 = vmatmul.msk.f32.gmra.mxu2 %vm456_vm1, %v6587_v6  ;;  %5003 = vmatmul.msk.f32.gmra.mxu3 %vm456_vm1, %v6592_v39 }
 0x1d4   : > { %v1274_v49 = vmax.f32 %v1264_v46, 0.0  ;;  %v1326_v50 = vmax.f32 %v1316_v47, 0.0  ;;  %v1443_v56 = vmul.f32 0.25, %v1436_v43 }
 0x1d6   : > { %v1333_v59 = vadd.f32 %v1326_v50, %v1274_v49  ;;  %1506 = vmatmul.f32.gmra.mxu0 %v1443_v56  ;;  %1544 = vmatmul.f32.gmra.mxu1 %v1443_v56  ;;  %v6602_v49 = vld [vmem:[%s5842_s12 + $0x60] sm:$0xff]  ;;  %v6607_v50 = vld [vmem:[%s5842_s12 + $0x30] sm:$0x1] }
 0x1d7   : > { %v6617_v56 = vld [vmem:[%s5842_s12 + $0x70] sm:$0xff] }
 0x1d8   : > { %v1385_v15 = vadd.f32 %v1378_v51, %v1333_v59  ;;  %v6612_v51 = vld [vmem:[%s5842_s12 + $0x68] sm:$0x1]  ;;  %v6627_v59 = vld [vmem:[%s5842_s12 + $0x78] sm:$0xff] }
 0x1d9   : > { %v1266_v22 = vpop.f32.mrf.mxu0  ;;  %v1318_v23 = vpop.f32.mrf.mxu1 }
 0x1da   : > { %v1437_v26 = vadd.f32 %v1430_v63, %v1385_v15  ;;  %v1267_v27 = vadd.f32 %v6512_v19, %v1266_v22  ;;  %v1319_v28 = vadd.f32 %v6512_v19, %v1318_v23  ;;  %v1431_v19 = vmax.f32 %v1423_v29, 0.0  ;;  %v6632_v63 = vld [vmem:[%s5842_s12 + $0xb0] sm:$0xff]  ;;  %v6642_v15 = vld [vmem:[%s5842_s12 + $0xb8] sm:$0xff]  ;;  %v6652_v22 = vld [vmem:[%s5842_s12 + $0xc0] sm:$0xff] }
 0x1db   : > { %4996 = vmatmul.msk.f32.gmra.mxu2 %vm456_vm1, %v6597_v48  ;;  %5004 = vmatmul.msk.f32.gmra.mxu3 %vm456_vm1, %v6602_v49  ;;  %v6657_v23 = vld [vmem:[%s5842_s12 + $0x90] sm:$0xff]  ;;  %v6677_v29 = vld [vmem:[%s5842_s12 + $0xa0] sm:$0x1] }
 0x1dc   : > { %v1275_v33 = vmax.f32 %v1267_v27, 0.0  ;;  %v1327_v38 = vmax.f32 %v1319_v28, 0.0  ;;  %v1444_v62 = vmul.f32 0.25, %v1437_v26  ;;  %v6662_v26 = vld [vmem:[%s5842_s12 + $0xc8] sm:$0xff]  ;;  %v6667_v27 = vld [vmem:[%s5842_s12 + $0x98] sm:$0xff]  ;;  %v6672_v28 = vld [vmem:[%s5842_s12 + $0xd0] sm:$0xff] }
 0x1de   : > { %v1334_v42 = vadd.f32 %v1327_v38, %v1275_v33  ;;  %1509 = vmatmul.f32.gmra.mxu0 %v1444_v62  ;;  %1547 = vmatmul.f32.gmra.mxu1 %v1444_v62  ;;  %v6682_v33 = vld [vmem:[%s5842_s12 + $0xd8] sm:$0x1]  ;;  %v1821_v62 = vld [vmem:[%s8926_s5 + $0x3f0] sm:$0xff] }
 0x1df   : > { %1823 = vmatpush.msrb.mxu2 %v1821_v62  ;;  %v1815_v62 = vld [vmem:[%s8926_s5 + $0x3c0] sm:$0xff] }
 0x1e0   : > { %v1386_v43 = vadd.f32 %v1379_v5, %v1334_v42  ;;  %v1822_v42 = vld [vmem:[%s8926_s5 + $0x3f8] sm:$0xff] }
 0x1e1   : > { %1861 = vmatpush.msrb.mxu3 %v1822_v42  ;;  %v1816_v42 = vld [vmem:[%s8926_s5 + $0x3c8] sm:$0xff] }
 0x1e2   : > { %v1438_v46 = vadd.f32 %v1431_v19, %v1386_v43  ;;  %v1819_v19 = vld [vmem:[%s8926_s5 + $0x3e0] sm:$0xff]  ;;  %v1820_v43 = vld [vmem:[%s8926_s5 + $0x3e8] sm:$0xff] }
 0x1e3   : > { %4997 = vmatmul.msk.f32.gmra.mxu2 %vm456_vm1, %v6607_v50  ;;  %5005 = vmatmul.msk.f32.gmra.mxu3 %vm456_vm1, %v6612_v51 }
 0x1e4   : > { %v1445_v47 = vmul.f32 0.25, %v1438_v46  ;;  %1824 = vmatpush.msrb.mxu2 %v1819_v19  ;;  %1862 = vmatpush.msrb.mxu3 %v1820_v43  ;;  %v1817_v46 = vld [vmem:[%s8926_s5 + $0x3d0] sm:$0xff]  ;;  %v1814_v43 = vld [vmem:[%s8926_s5 + $0x3b8] sm:$0xff] }
 0x1e5   : > { %v1813_v19 = vld [vmem:[%s8926_s5 + $0x3b0] sm:$0xff] }
 0x1e6   : > { %1512 = vmatmul.f32.gmra.mxu0 %v1445_v47  ;;  %1550 = vmatmul.f32.gmra.mxu1 %v1445_v47  ;;  %v1818_v47 = vld [vmem:[%s8926_s5 + $0x3d8] sm:$0xff] }
 0x1e7   : > { %1825 = vmatpush.msrb.mxu2 %v1817_v46  ;;  %1863 = vmatpush.msrb.mxu3 %v1818_v47  ;;  %v1811_v46 = vld [vmem:[%s8926_s5 + $0x3a0] sm:$0xff]  ;;  %v1812_v47 = vld [vmem:[%s8926_s5 + $0x3a8] sm:$0xff] }
 0x1e9   : > { %1826 = vmatpush.msrb.mxu2 %v1815_v62  ;;  %1864 = vmatpush.msrb.mxu3 %v1816_v42  ;;  %v1809_v62 = vld [vmem:[%s8926_s5 + $0x390] sm:$0xff]  ;;  %v1810_v42 = vld [vmem:[%s8926_s5 + $0x398] sm:$0xff] }
 0x1eb   : > { %1827 = vmatpush.msrb.mxu2 %v1813_v19  ;;  %1865 = vmatpush.msrb.mxu3 %v1814_v43  ;;  %v1807_v19 = vld [vmem:[%s8926_s5 + $0x380] sm:$0xff]  ;;  %v1808_v43 = vld [vmem:[%s8926_s5 + $0x388] sm:$0xff] }
 0x1ed   : > { %1828 = vmatpush.msrb.mxu2 %v1811_v46  ;;  %1866 = vmatpush.msrb.mxu3 %v1812_v47  ;;  %v1805_v46 = vld [vmem:[%s8926_s5 + $0x370] sm:$0xff]  ;;  %v1806_v47 = vld [vmem:[%s8926_s5 + $0x378] sm:$0xff] }
 0x1ee   : > { %5007 = vmatmul.msk.f32.vlgmr.msrb.gmra.mxu0 %vm456_vm1, %v6617_v56  ;;  %5015 = vmatmul.msk.f32.vlgmr.msrb.gmra.mxu1 %vm456_vm1, %v6622_v57 }
 0x1ef   : > { %1829 = vmatpush.msrb.mxu2 %v1809_v62  ;;  %1867 = vmatpush.msrb.mxu3 %v1810_v42  ;;  %v1803_v62 = vld [vmem:[%s8926_s5 + $0x360] sm:$0xff]  ;;  %v1804_v42 = vld [vmem:[%s8926_s5 + $0x368] sm:$0xff] }
 0x1f1   : > { %1830 = vmatpush.msrb.mxu2 %v1807_v19  ;;  %1868 = vmatpush.msrb.mxu3 %v1808_v43  ;;  %v1801_v19 = vld [vmem:[%s8926_s5 + $0x350] sm:$0xff]  ;;  %v1802_v43 = vld [vmem:[%s8926_s5 + $0x358] sm:$0xff] }
 0x1f3   : > { %1831 = vmatpush.msrb.mxu2 %v1805_v46  ;;  %1869 = vmatpush.msrb.mxu3 %v1806_v47  ;;  %v1799_v46 = vld [vmem:[%s8926_s5 + $0x340] sm:$0xff]  ;;  %v1800_v47 = vld [vmem:[%s8926_s5 + $0x348] sm:$0xff] }
 0x1f5   : > { %1832 = vmatpush.msrb.mxu2 %v1803_v62  ;;  %1870 = vmatpush.msrb.mxu3 %v1804_v42  ;;  %v1797_v62 = vld [vmem:[%s8926_s5 + $0x330] sm:$0xff]  ;;  %v1798_v42 = vld [vmem:[%s8926_s5 + $0x338] sm:$0xff] }
 0x1f6   : > { %5008 = vmatmul.msk.f32.gmra.mxu0 %vm456_vm1, %v6627_v59  ;;  %5016 = vmatmul.msk.f32.gmra.mxu1 %vm456_vm1, %v6632_v63 }
 0x1f7   : > { %1833 = vmatpush.msrb.mxu2 %v1801_v19  ;;  %1871 = vmatpush.msrb.mxu3 %v1802_v43  ;;  %v1795_v19 = vld [vmem:[%s8926_s5 + $0x320] sm:$0xff]  ;;  %v1796_v43 = vld [vmem:[%s8926_s5 + $0x328] sm:$0xff] }
 0x1f9   : > { %1834 = vmatpush.msrb.mxu2 %v1799_v46  ;;  %1872 = vmatpush.msrb.mxu3 %v1800_v47  ;;  %v1793_v46 = vld [vmem:[%s8926_s5 + $0x310] sm:$0xff]  ;;  %v1794_v47 = vld [vmem:[%s8926_s5 + $0x318] sm:$0xff] }
 0x1fb   : > { %1835 = vmatpush.msrb.mxu2 %v1797_v62  ;;  %1873 = vmatpush.msrb.mxu3 %v1798_v42 }
 0x1fd   : > { %1836 = vmatpush.msrb.mxu2 %v1795_v19  ;;  %1874 = vmatpush.msrb.mxu3 %v1796_v43  ;;  %v1791_v19 = vld [vmem:[%s8926_s5 + $0x300] sm:$0xff]  ;;  %v1792_v43 = vld [vmem:[%s8926_s5 + $0x308] sm:$0xff] }
 0x1fe   : > { %5009 = vmatmul.msk.f32.gmra.mxu0 %vm456_vm1, %v6637_v14  ;;  %5017 = vmatmul.msk.f32.gmra.mxu1 %vm456_vm1, %v6642_v15 }
 0x1ff   : > { %1837 = vmatpush.msrb.mxu2 %v1793_v46  ;;  %1875 = vmatpush.msrb.mxu3 %v1794_v47  ;;  %v6806_v46 = vld [vmem:[#allocation7 + $0x3] ss:$0 sm:$0xff] }
 0x201   : > { %1838 = vmatpush.msrb.mxu2 %v1791_v19  ;;  %1876 = vmatpush.msrb.mxu3 %v1792_v43 }
 0x206   : > { %5010 = vmatmul.msk.f32.gmra.mxu0 %vm456_vm1, %v6647_v20  ;;  %5018 = vmatmul.msk.f32.gmra.mxu1 %vm456_vm1, %v6652_v22 }
 0x20e   : > { %5011 = vmatmul.msk.f32.gmra.mxu0 %vm456_vm1, %v6657_v23  ;;  %5019 = vmatmul.msk.f32.gmra.mxu1 %vm456_vm1, %v6662_v26 }
 0x216   : > { %5012 = vmatmul.msk.f32.gmra.mxu0 %vm456_vm1, %v6667_v27  ;;  %5020 = vmatmul.msk.f32.gmra.mxu1 %vm456_vm1, %v6672_v28 }
 0x21e   : > { %5013 = vmatmul.msk.f32.gmra.mxu0 %vm456_vm1, %v6677_v29  ;;  %5021 = vmatmul.msk.f32.gmra.mxu1 %vm456_vm1, %v6682_v33 }
 0x233   : > { %v6686_v38 = vpop.f32.mrf.mxu0  ;;  %v6688_v5 = vpop.f32.mrf.mxu1 }
 0x234   : > { %8957 = vst [vmem:[#allocation41_spill] sm:$0xff] %v6686_v38 }
 0x235   : > { %8958 = vst [vmem:[#allocation42_spill] sm:$0xff] %v6688_v5 }
 0x23b   : > { %v6708_v5 = vpop.f32.mrf.mxu0  ;;  %v6710_v38 = vpop.f32.mrf.mxu1 }
 0x23c   : > { %8959 = vst [vmem:[#allocation43_spill] sm:$0xff] %v6708_v5 }
 0x23d   : > { %8960 = vst [vmem:[#allocation44_spill] sm:$0xff] %v6710_v38 }
 0x243   : > { %v6736_v38 = vpop.f32.mrf.mxu0  ;;  %v6738_v5 = vpop.f32.mrf.mxu1 }
 0x244   : > { %8961 = vst [vmem:[#allocation45_spill] sm:$0xff] %v6736_v38 }
 0x245   : > { %8962 = vst [vmem:[#allocation46_spill] sm:$0xff] %v6738_v5 }
 0x24b   : > { %v6764_v5 = vpop.f32.mrf.mxu0  ;;  %v6766_v38 = vpop.f32.mrf.mxu1 }
 0x24c   : > { %8963 = vst [vmem:[#allocation47_spill] sm:$0xff] %v6764_v5  ;;  %v1645_v5 = vpop.f32.mrf.mxu3 }
 0x24d   : > { %8964 = vst [vmem:[#allocation48_spill] sm:$0xff] %v6766_v38  ;;  %v1593_v38 = vpop.f32.mrf.mxu2  ;;  %v1646_v21 = vadd.f32 %v6806_v46, %v1645_v5 }
 0x24e   : > { %v1594_v53 = vadd.f32 %v6806_v46, %v1593_v38 }
 0x24f   : > { %v1666_v18 = vmax.f32 %v1646_v21, 0.0 }
 0x250   : > { %v1614_v45 = vmax.f32 %v1594_v53, 0.0 }
 0x252   : > { %v1673_v35 = vadd.f32 %v1666_v18, %v1614_v45 }
 0x253   : > { %v6792_v62 = vpop.f32.mrf.mxu0  ;;  %v6794_v42 = vpop.f32.mrf.mxu1 }
 0x254   : > { %8965 = vst [vmem:[#allocation49_spill] sm:$0xff] %v6792_v62 }
 0x255   : > { %8966 = vst [vmem:[#allocation50_spill] sm:$0xff] %v6794_v42  ;;  %v1596_v62 = vpop.f32.mrf.mxu2  ;;  %v1648_v42 = vpop.f32.mrf.mxu3 }
 0x256   : > { %v1597_v36 = vadd.f32 %v6806_v46, %v1596_v62  ;;  %v1649_v12 = vadd.f32 %v6806_v46, %v1648_v42 }
 0x258   : > { %v1615_v38 = vmax.f32 %v1597_v36, 0.0  ;;  %v1667_v4 = vmax.f32 %v1649_v12, 0.0 }
 0x25a   : > { %v1674_v3 = vadd.f32 %v1667_v4, %v1615_v38 }
 0x25b   : > { %v6802_v32 = vpop.f32.mrf.mxu0  ;;  %v6804_v54 = vpop.f32.mrf.mxu1 }
 0x25d   : > { %v1599_v19 = vpop.f32.mrf.mxu2  ;;  %v1651_v43 = vpop.f32.mrf.mxu3 }
 0x25e   : > { %v1600_v62 = vadd.f32 %v6806_v46, %v1599_v19 }
 0x260   : > { %v1616_v12 = vmax.f32 %v1600_v62, 0.0 }
 0x263   : > { %v6808_v47 = vpop.f32.mrf.mxu0  ;;  %v6810_v61 = vpop.f32.mrf.mxu1 }
 0x264   : > { %8967 = vst [vmem:[#allocation51_spill] sm:$0xff] %v6808_v47 }
 0x265   : > { %8968 = vst [vmem:[#allocation52_spill] sm:$0xff] %v6810_v61  ;;  %v1602_v21 = vpop.f32.mrf.mxu2  ;;  %v1654_v17 = vpop.f32.mrf.mxu3 }
 0x266   : > { %v1603_v45 = vadd.f32 %v6806_v46, %v1602_v21  ;;  %v1655_v42 = vadd.f32 %v6806_v46, %v1654_v17 }
 0x268   : > { %v1669_v62 = vmax.f32 %v1655_v42, 0.0 }
 0x26b   : > { %v1697_v44 = vpop.f32.mrf.mxu0  ;;  %v1749_v13 = vpop.f32.mrf.mxu1 }
 0x26c   : > { %v1698_v9 = vadd.f32 %v6806_v46, %v1697_v44  ;;  %v1750_v25 = vadd.f32 %v6806_v46, %v1749_v13  ;;  %v1652_v13 = vadd.f32 %v6806_v46, %v1651_v43 }
 0x26d   : > { %v1605_v38 = vpop.f32.mrf.mxu2 }
 0x26e   : > { %v1718_v7 = vmax.f32 %v1698_v9, 0.0  ;;  %v1770_v24 = vmax.f32 %v1750_v25, 0.0 }
 0x270   : > { %v1725_v5 = vadd.f32 %v1718_v7, %v1673_v35 }
 0x272   : > { %v1777_v53 = vadd.f32 %v1770_v24, %v1725_v5  ;;  %v1668_v24 = vmax.f32 %v1652_v13, 0.0  ;;  %v1657_v5 = vpop.f32.mrf.mxu3  ;;  %v1913_v13 = vld [vmem:[#allocation6 + $0x10] sm:$0x7] }
 0x273   : > { %v1700_v16 = vpop.f32.mrf.mxu0  ;;  %v1752_v61 = vpop.f32.mrf.mxu1  ;;  %5038 = vmatpush.msk.msra.mxu2 %vm478_vm0, %v1913_v13  ;;  %5046 = vmatpush.msk.msra.mxu3 %vm478_vm0, %v1913_v13 }
 0x274   : > { %v1784_v47 = vmul.f32 0.25, %v1777_v53  ;;  %v1701_v18 = vadd.f32 %v6806_v46, %v1700_v16  ;;  %v1753_v44 = vadd.f32 %v6806_v46, %v1752_v61  ;;  %v1675_v19 = vadd.f32 %v1668_v24, %v1616_v12  ;;  %5022 = vmatpush.msk.msra.mxu0 %vm478_vm0, %v1913_v13  ;;  %5030 = vmatpush.msk.msra.mxu1 %vm478_vm0, %v1913_v13 }
 0x275   : > { %5023 = vmatmul.msk.f32.vlgmr.msra.gmra.mxu0 %vm456_vm1, %v6531_v30  ;;  %5031 = vmatmul.msk.f32.vlgmr.msra.gmra.mxu1 %vm456_vm1, %v6536_v31 }
 0x276   : > { %v1719_v9 = vmax.f32 %v1701_v18, 0.0  ;;  %v1771_v25 = vmax.f32 %v1753_v44, 0.0  ;;  %1839 = vmatmul.f32.vlgmr.msrb.gmra.mxu2 %v1784_v47  ;;  %1877 = vmatmul.f32.vlgmr.msrb.gmra.mxu3 %v1784_v47 }
 0x278   : > { %v1726_v7 = vadd.f32 %v1719_v9, %v1674_v3  ;;  %v1617_v3 = vmax.f32 %v1603_v45, 0.0  ;;  %v1608_v45 = vpop.f32.mrf.mxu2 }
 0x27a   : > { %v1778_v35 = vadd.f32 %v1771_v25, %v1726_v7  ;;  %v1676_v21 = vadd.f32 %v1669_v62, %v1617_v3  ;;  %v1606_v25 = vadd.f32 %v6806_v46, %v1605_v38  ;;  %v1660_v42 = vpop.f32.mrf.mxu3 }
 0x27b   : > { %v1703_v4 = vpop.f32.mrf.mxu0  ;;  %v1755_v36 = vpop.f32.mrf.mxu1 }
 0x27c   : > { %v1704_v16 = vadd.f32 %v6806_v46, %v1703_v4  ;;  %v1756_v61 = vadd.f32 %v6806_v46, %v1755_v36  ;;  %v1785_v43 = vmul.f32 0.25, %v1778_v35  ;;  %v1658_v35 = vadd.f32 %v6806_v46, %v1657_v5 }
 0x27d   : > { %5024 = vmatmul.msk.f32.gmra.mxu0 %vm456_vm1, %v6545_v52  ;;  %5032 = vmatmul.msk.f32.gmra.mxu1 %vm456_vm1, %v6550_v11 }
 0x27e   : > { %v1720_v53 = vmax.f32 %v1704_v16, 0.0  ;;  %v1772_v47 = vmax.f32 %v1756_v61, 0.0  ;;  %1842 = vmatmul.f32.gmra.mxu2 %v1785_v43  ;;  %1880 = vmatmul.f32.gmra.mxu3 %v1785_v43  ;;  %v1618_v16 = vmax.f32 %v1606_v25, 0.0  ;;  %v1670_v61 = vmax.f32 %v1658_v35, 0.0 }
 0x280   : > { %v1727_v18 = vadd.f32 %v1720_v53, %v1675_v19  ;;  %v1609_v53 = vadd.f32 %v6806_v46, %v1608_v45  ;;  %v1677_v3 = vadd.f32 %v1670_v61, %v1618_v16 }
 0x282   : > { %v1779_v44 = vadd.f32 %v1772_v47, %v1727_v18  ;;  %v1661_v47 = vadd.f32 %v6806_v46, %v1660_v42 }
 0x283   : > { %v1706_v9 = vpop.f32.mrf.mxu0  ;;  %v1758_v17 = vpop.f32.mrf.mxu1 }
 0x284   : > { %v1707_v7 = vadd.f32 %v6806_v46, %v1706_v9  ;;  %v1759_v12 = vadd.f32 %v6806_v46, %v1758_v17  ;;  %v1786_v24 = vmul.f32 0.25, %v1779_v44  ;;  %v1619_v9 = vmax.f32 %v1609_v53, 0.0 }
 0x285   : > { %v1671_v17 = vmax.f32 %v1661_v47, 0.0  ;;  %5025 = vmatmul.msk.f32.gmra.mxu0 %vm456_vm1, %v6559_v34  ;;  %5033 = vmatmul.msk.f32.gmra.mxu1 %vm456_vm1, %v6564_v37 }
 0x286   : > { %v1721_v4 = vmax.f32 %v1707_v7, 0.0  ;;  %v1773_v36 = vmax.f32 %v1759_v12, 0.0  ;;  %1845 = vmatmul.f32.gmra.mxu2 %v1786_v24  ;;  %1883 = vmatmul.f32.gmra.mxu3 %v1786_v24  ;;  %v1611_v7 = vpop.f32.mrf.mxu2  ;;  %v1663_v12 = vpop.f32.mrf.mxu3 }
 0x287   : > { %v1678_v35 = vadd.f32 %v1671_v17, %v1619_v9  ;;  %v1612_v45 = vadd.f32 %v6806_v46, %v1611_v7  ;;  %v1664_v61 = vadd.f32 %v6806_v46, %v1663_v12 }
 0x288   : > { %v1728_v19 = vadd.f32 %v1721_v4, %v1676_v21 }
 0x289   : > { %v1620_v53 = vmax.f32 %v1612_v45, 0.0  ;;  %v1672_v47 = vmax.f32 %v1664_v61, 0.0  ;;  %v2164_v45 = vld [vmem:[%s8926_s5 + $0x4e0] sm:$0xff] }
 0x28a   : > { %v1780_v43 = vadd.f32 %v1773_v36, %v1728_v19 }
 0x28b   : > { %v1709_v38 = vpop.f32.mrf.mxu0  ;;  %v1761_v5 = vpop.f32.mrf.mxu1 }
 0x28c   : > { %v1710_v62 = vadd.f32 %v6806_v46, %v1709_v38  ;;  %v1762_v18 = vadd.f32 %v6806_v46, %v1761_v5  ;;  %v1787_v44 = vmul.f32 0.25, %v1780_v43 }
 0x28d   : > { %5026 = vmatmul.msk.f32.gmra.mxu0 %vm456_vm1, %v6573_v58  ;;  %5034 = vmatmul.msk.f32.gmra.mxu1 %vm456_vm1, %v6578_v1 }
 0x28e   : > { %v1722_v13 = vmax.f32 %v1710_v62, 0.0  ;;  %v1774_v21 = vmax.f32 %v1762_v18, 0.0  ;;  %1848 = vmatmul.f32.gmra.mxu2 %v1787_v44  ;;  %1886 = vmatmul.f32.gmra.mxu3 %v1787_v44  ;;  %v1679_v44 = vadd.f32 %v1672_v47, %v1620_v53  ;;  %v2158_v53 = vld [vmem:[%s8926_s5 + $0x4b0] sm:$0xff]  ;;  %v2159_v47 = vld [vmem:[%s8926_s5 + $0x4b8] sm:$0xff] }
 0x290   : > { %v1729_v25 = vadd.f32 %v1722_v13, %v1677_v3 }
 0x292   : > { %v1781_v24 = vadd.f32 %v1774_v21, %v1729_v25 }
 0x293   : > { %v1712_v4 = vpop.f32.mrf.mxu0  ;;  %v1764_v36 = vpop.f32.mrf.mxu1 }
 0x294   : > { %v1713_v42 = vadd.f32 %v6806_v46, %v1712_v4  ;;  %v1765_v19 = vadd.f32 %v6806_v46, %v1764_v36  ;;  %v1788_v16 = vmul.f32 0.25, %v1781_v24  ;;  %v2166_v4 = vld [vmem:[%s8926_s5 + $0x4f0] sm:$0xff]  ;;  %v2167_v36 = vld [vmem:[%s8926_s5 + $0x4f8] sm:$0xff] }
 0x295   : > { %5027 = vmatmul.msk.f32.gmra.mxu0 %vm456_vm1, %v6587_v6  ;;  %5035 = vmatmul.msk.f32.gmra.mxu1 %vm456_vm1, %v6592_v39 }
 0x296   : > { %v1723_v43 = vmax.f32 %v1713_v42, 0.0  ;;  %v1775_v38 = vmax.f32 %v1765_v19, 0.0  ;;  %1851 = vmatmul.f32.gmra.mxu2 %v1788_v16  ;;  %1889 = vmatmul.f32.gmra.mxu3 %v1788_v16  ;;  %v2165_v42 = vld [vmem:[%s8926_s5 + $0x4e8] sm:$0xff]  ;;  %v2162_v19 = vld [vmem:[%s8926_s5 + $0x4d0] sm:$0xff]  ;;  %v2163_v16 = vld [vmem:[%s8926_s5 + $0x4d8] sm:$0xff] }
 0x297   : > { %2168 = vmatpush.msrb.mxu0 %v2166_v4  ;;  %2206 = vmatpush.msrb.mxu1 %v2167_v36  ;;  %v2146_v4 = vld [vmem:[%s8926_s5 + $0x450] sm:$0xff]  ;;  %v2147_v36 = vld [vmem:[%s8926_s5 + $0x458] sm:$0xff] }
 0x298   : > { %v1730_v5 = vadd.f32 %v1723_v43, %v1678_v35 }
 0x299   : > { %2169 = vmatpush.msrb.mxu0 %v2164_v45  ;;  %2207 = vmatpush.msrb.mxu1 %v2165_v42 }
 0x29a   : > { %v1782_v3 = vadd.f32 %v1775_v38, %v1730_v5  ;;  %v2160_v38 = vld [vmem:[%s8926_s5 + $0x4c0] sm:$0xff]  ;;  %v2161_v5 = vld [vmem:[%s8926_s5 + $0x4c8] sm:$0xff] }
 0x29b   : > { %v1715_v62 = vpop.f32.mrf.mxu0  ;;  %v1767_v18 = vpop.f32.mrf.mxu1  ;;  %2170 = vmatpush.msrb.mxu0 %v2162_v19  ;;  %2208 = vmatpush.msrb.mxu1 %v2163_v16  ;;  %v2144_v19 = vld [vmem:[%s8926_s5 + $0x440] sm:$0xff]  ;;  %v2145_v16 = vld [vmem:[%s8926_s5 + $0x448] sm:$0xff] }
 0x29c   : > { %v1716_v13 = vadd.f32 %v6806_v46, %v1715_v62  ;;  %v1768_v21 = vadd.f32 %v6806_v46, %v1767_v18  ;;  %v1789_v9 = vmul.f32 0.25, %v1782_v3  ;;  %v2156_v3 = vld [vmem:[%s8926_s5 + $0x4a0] sm:$0xff]  ;;  %v2157_v62 = vld [vmem:[%s8926_s5 + $0x4a8] sm:$0xff]  ;;  %v2154_v18 = vld [vmem:[%s8926_s5 + $0x490] sm:$0xff] }
 0x29d   : > { %5028 = vmatmul.msk.f32.gmra.mxu0 %vm456_vm1, %v6597_v48  ;;  %5036 = vmatmul.msk.f32.gmra.mxu1 %vm456_vm1, %v6602_v49 }
 0x29e   : > { %v1724_v17 = vmax.f32 %v1716_v13, 0.0  ;;  %v1776_v25 = vmax.f32 %v1768_v21, 0.0  ;;  %1854 = vmatmul.f32.gmra.mxu2 %v1789_v9  ;;  %1892 = vmatmul.f32.gmra.mxu3 %v1789_v9  ;;  %v2152_v9 = vld [vmem:[%s8926_s5 + $0x480] sm:$0xff] }
 0x29f   : > { %2171 = vmatpush.msrb.mxu0 %v2160_v38  ;;  %2209 = vmatpush.msrb.mxu1 %v2161_v5  ;;  %v2142_v38 = vld [vmem:[%s8926_s5 + $0x430] sm:$0xff]  ;;  %v2143_v5 = vld [vmem:[%s8926_s5 + $0x438] sm:$0xff] }
 0x2a0   : > { %v1731_v7 = vadd.f32 %v1724_v17, %v1679_v44  ;;  %v2155_v44 = vld [vmem:[%s8926_s5 + $0x498] sm:$0xff]  ;;  %v2153_v17 = vld [vmem:[%s8926_s5 + $0x488] sm:$0xff] }
 0x2a1   : > { %2172 = vmatpush.msrb.mxu0 %v2158_v53  ;;  %2210 = vmatpush.msrb.mxu1 %v2159_v47  ;;  %v2140_v53 = vld [vmem:[%s8926_s5 + $0x420] sm:$0xff]  ;;  %v2141_v47 = vld [vmem:[%s8926_s5 + $0x428] sm:$0xff] }
 0x2a2   : > { %v1783_v12 = vadd.f32 %v1776_v25, %v1731_v7  ;;  %v2150_v25 = vld [vmem:[%s8926_s5 + $0x470] sm:$0xff]  ;;  %v2151_v7 = vld [vmem:[%s8926_s5 + $0x478] sm:$0xff] }
 0x2a3   : > { %2173 = vmatpush.msrb.mxu0 %v2156_v3  ;;  %2211 = vmatpush.msrb.mxu1 %v2157_v62  ;;  %v2138_v3 = vld [vmem:[%s8926_s5 + $0x410] sm:$0xff]  ;;  %v2139_v62 = vld [vmem:[%s8926_s5 + $0x418] sm:$0xff] }
 0x2a4   : > { %v1790_v24 = vmul.f32 0.25, %v1783_v12  ;;  %v2148_v12 = vld [vmem:[%s8926_s5 + $0x460] sm:$0xff] }
 0x2a5   : > { %5029 = vmatmul.msk.f32.gmra.mxu0 %vm456_vm1, %v6607_v50  ;;  %5037 = vmatmul.msk.f32.gmra.mxu1 %vm456_vm1, %v6612_v51 }
 0x2a6   : > { %1857 = vmatmul.f32.gmra.mxu2 %v1790_v24  ;;  %1895 = vmatmul.f32.gmra.mxu3 %v1790_v24  ;;  %v2149_v24 = vld [vmem:[%s8926_s5 + $0x468] sm:$0xff] }
 0x2a7   : > { %2174 = vmatpush.msrb.mxu0 %v2154_v18  ;;  %2212 = vmatpush.msrb.mxu1 %v2155_v44 }
 0x2a9   : > { %2175 = vmatpush.msrb.mxu0 %v2152_v9  ;;  %2213 = vmatpush.msrb.mxu1 %v2153_v17 }
 0x2ab   : > { %2176 = vmatpush.msrb.mxu0 %v2150_v25  ;;  %2214 = vmatpush.msrb.mxu1 %v2151_v7  ;;  %v2136_v25 = vld [vmem:[%s8926_s5 + $0x400] sm:$0xff]  ;;  %v2137_v7 = vld [vmem:[%s8926_s5 + $0x408] sm:$0xff] }
 0x2ad   : > { %2177 = vmatpush.msrb.mxu0 %v2148_v12  ;;  %2215 = vmatpush.msrb.mxu1 %v2149_v24 }
 0x2ae   : > { %5039 = vmatmul.msk.f32.vlgmr.msra.gmra.mxu2 %vm456_vm1, %v6617_v56  ;;  %5047 = vmatmul.msk.f32.vlgmr.msra.gmra.mxu3 %vm456_vm1, %v6622_v57 }
 0x2af   : > { %2178 = vmatpush.msrb.mxu0 %v2146_v4  ;;  %2216 = vmatpush.msrb.mxu1 %v2147_v36 }
 0x2b1   : > { %2179 = vmatpush.msrb.mxu0 %v2144_v19  ;;  %2217 = vmatpush.msrb.mxu1 %v2145_v16  ;;  %v7020_v19 = vld [vmem:[#allocation7 + $0x4] ss:$0 sm:$0xff] }
 0x2b3   : > { %2180 = vmatpush.msrb.mxu0 %v2142_v38  ;;  %2218 = vmatpush.msrb.mxu1 %v2143_v5 }
 0x2b5   : > { %2181 = vmatpush.msrb.mxu0 %v2140_v53  ;;  %2219 = vmatpush.msrb.mxu1 %v2141_v47 }
 0x2b6   : > { %5040 = vmatmul.msk.f32.gmra.mxu2 %vm456_vm1, %v6627_v59  ;;  %5048 = vmatmul.msk.f32.gmra.mxu3 %vm456_vm1, %v6632_v63 }
 0x2b7   : > { %2182 = vmatpush.msrb.mxu0 %v2138_v3  ;;  %2220 = vmatpush.msrb.mxu1 %v2139_v62 }
 0x2b9   : > { %2183 = vmatpush.msrb.mxu0 %v2136_v25  ;;  %2221 = vmatpush.msrb.mxu1 %v2137_v7 }
 0x2be   : > { %5041 = vmatmul.msk.f32.gmra.mxu2 %vm456_vm1, %v6637_v14  ;;  %5049 = vmatmul.msk.f32.gmra.mxu3 %vm456_vm1, %v6642_v15 }
 0x2c6   : > { %5042 = vmatmul.msk.f32.gmra.mxu2 %vm456_vm1, %v6647_v20  ;;  %5050 = vmatmul.msk.f32.gmra.mxu3 %vm456_vm1, %v6652_v22 }
 0x2ce   : > { %5043 = vmatmul.msk.f32.gmra.mxu2 %vm456_vm1, %v6657_v23  ;;  %5051 = vmatmul.msk.f32.gmra.mxu3 %vm456_vm1, %v6662_v26 }
 0x2d6   : > { %5044 = vmatmul.msk.f32.gmra.mxu2 %vm456_vm1, %v6667_v27  ;;  %5052 = vmatmul.msk.f32.gmra.mxu3 %vm456_vm1, %v6672_v28 }
 0x2de   : > { %5045 = vmatmul.msk.f32.gmra.mxu2 %vm456_vm1, %v6677_v29  ;;  %5053 = vmatmul.msk.f32.gmra.mxu3 %vm456_vm1, %v6682_v33 }
 0x2f2   : > { %v1938_v9 = vpop.f32.mrf.mxu0  ;;  %v1990_v17 = vpop.f32.mrf.mxu1 }
 0x2f3   : > { %v1939_v5 = vadd.f32 %v7020_v19, %v1938_v9  ;;  %v1991_v53 = vadd.f32 %v7020_v19, %v1990_v17 }
 0x2f5   : > { %v1959_v47 = vmax.f32 %v1939_v5, 0.0  ;;  %v2011_v3 = vmax.f32 %v1991_v53, 0.0 }
 0x2f9   : > { %v6900_v46 = vpop.f32.mrf.mxu2  ;;  %v6902_v35 = vpop.f32.mrf.mxu3 }
 0x2fa   : > { %8969 = vst [vmem:[#allocation53_spill] sm:$0xff] %v6900_v46  ;;  %v1941_v4 = vpop.f32.mrf.mxu0  ;;  %v1993_v36 = vpop.f32.mrf.mxu1 }
 0x2fb   : > { %8970 = vst [vmem:[#allocation54_spill] sm:$0xff] %v6902_v35 }
 0x301   : > { %v6922_v61 = vpop.f32.mrf.mxu2  ;;  %v6924_v43 = vpop.f32.mrf.mxu3 }
 0x302   : > { %8971 = vst [vmem:[#allocation55_spill] sm:$0xff] %v6922_v61  ;;  %v1944_v62 = vpop.f32.mrf.mxu0  ;;  %v1996_v25 = vpop.f32.mrf.mxu1 }
 0x303   : > { %8972 = vst [vmem:[#allocation56_spill] sm:$0xff] %v6924_v43 }
 0x309   : > { %v6950_v13 = vpop.f32.mrf.mxu2  ;;  %v6952_v21 = vpop.f32.mrf.mxu3 }
 0x30a   : > { %8973 = vst [vmem:[#allocation57_spill] sm:$0xff] %v6950_v13  ;;  %v1947_v53 = vpop.f32.mrf.mxu0  ;;  %v1999_v46 = vpop.f32.mrf.mxu1 }
 0x30b   : > { %8974 = vst [vmem:[#allocation58_spill] sm:$0xff] %v6952_v21 }
 0x311   : > { %v6978_v45 = vpop.f32.mrf.mxu2  ;;  %v6980_v42 = vpop.f32.mrf.mxu3 }
 0x312   : > { %8975 = vst [vmem:[#allocation59_spill] sm:$0xff] %v6978_v45  ;;  %v2018_v45 = vadd.f32 %v2011_v3, %v1959_v47 }
 0x313   : > { %8976 = vst [vmem:[#allocation60_spill] sm:$0xff] %v6980_v42  ;;  %v1994_v42 = vadd.f32 %v7020_v19, %v1993_v36 }
 0x315   : > { %v2012_v35 = vmax.f32 %v1994_v42, 0.0 }
 0x319   : > { %v7006_v18 = vpop.f32.mrf.mxu2  ;;  %v7008_v44 = vpop.f32.mrf.mxu3 }
 0x31a   : > { %8977 = vst [vmem:[#allocation61_spill] sm:$0xff] %v7006_v18  ;;  %v1942_v18 = vadd.f32 %v7020_v19, %v1941_v4  ;;  %v1945_v4 = vadd.f32 %v7020_v19, %v1944_v62  ;;  %v1948_v62 = vadd.f32 %v7020_v19, %v1947_v53 }
 0x31b   : > { %8978 = vst [vmem:[#allocation62_spill] sm:$0xff] %v7008_v44 }
 0x31c   : > { %v1960_v9 = vmax.f32 %v1942_v18, 0.0 }
 0x321   : > { %v7016_v12 = vpop.f32.mrf.mxu2  ;;  %v7018_v24 = vpop.f32.mrf.mxu3 }
 0x329   : > { %v7022_v16 = vpop.f32.mrf.mxu2  ;;  %v7024_v38 = vpop.f32.mrf.mxu3 }
 0x32a   : > { %8979 = vst [vmem:[#allocation63_spill] sm:$0xff] %v7022_v16 }
 0x32b   : > { %8980 = vst [vmem:[#allocation64_spill] sm:$0xff] %v7024_v38  ;;  %v2019_v38 = vadd.f32 %v2012_v35, %v1960_v9  ;;  %v2258_v35 = vld [vmem:[#allocation6 + $0x14] sm:$0x7]  ;;  %v2002_v9 = vpop.f32.mrf.mxu1 }
 0x32c   : > { %5054 = vmatpush.msk.msrb.mxu2 %vm478_vm0, %v2258_v35  ;;  %5062 = vmatpush.msk.msrb.mxu3 %vm478_vm0, %v2258_v35 }
 0x32d   : > { %5070 = vmatpush.msk.msra.mxu0 %vm478_vm0, %v2258_v35  ;;  %5078 = vmatpush.msk.msra.mxu1 %vm478_vm0, %v2258_v35 }
 0x32e   : > { %5055 = vmatmul.msk.f32.vlgmr.msrb.gmra.mxu2 %vm456_vm1, %v6531_v30  ;;  %5063 = vmatmul.msk.f32.vlgmr.msrb.gmra.mxu3 %vm456_vm1, %v6536_v31  ;;  %v2003_v31 = vadd.f32 %v7020_v19, %v2002_v9 }
 0x331   : > { %v2042_v7 = vpop.f32.mrf.mxu2  ;;  %v2094_v44 = vpop.f32.mrf.mxu3 }
 0x332   : > { %v2043_v21 = vadd.f32 %v7020_v19, %v2042_v7  ;;  %v2095_v13 = vadd.f32 %v7020_v19, %v2094_v44  ;;  %v1997_v44 = vadd.f32 %v7020_v19, %v1996_v25  ;;  %v2000_v7 = vadd.f32 %v7020_v19, %v1999_v46  ;;  %v1950_v25 = vpop.f32.mrf.mxu0 }
 0x334   : > { %v2063_v43 = vmax.f32 %v2043_v21, 0.0  ;;  %v2115_v61 = vmax.f32 %v2095_v13, 0.0  ;;  %v2014_v53 = vmax.f32 %v2000_v7, 0.0  ;;  %v2015_v7 = vmax.f32 %v2003_v31, 0.0 }
 0x336   : > { %v2070_v17 = vadd.f32 %v2063_v43, %v2018_v45  ;;  %v2013_v45 = vmax.f32 %v1997_v44, 0.0  ;;  %5056 = vmatmul.msk.f32.gmra.mxu2 %vm456_vm1, %v6545_v52  ;;  %5064 = vmatmul.msk.f32.gmra.mxu3 %vm456_vm1, %v6550_v11 }
 0x338   : > { %v2122_v5 = vadd.f32 %v2115_v61, %v2070_v17  ;;  %v1961_v61 = vmax.f32 %v1945_v4, 0.0 }
 0x339   : > { %v2045_v16 = vpop.f32.mrf.mxu2  ;;  %v2097_v55 = vpop.f32.mrf.mxu3 }
 0x33a   : > { %v2129_v8 = vmul.f32 0.25, %v2122_v5  ;;  %v2046_v36 = vadd.f32 %v7020_v19, %v2045_v16  ;;  %v2098_v47 = vadd.f32 %v7020_v19, %v2097_v55  ;;  %v2020_v55 = vadd.f32 %v2013_v45, %v1961_v61  ;;  %v1953_v35 = vpop.f32.mrf.mxu0 }
 0x33b   : > { %v1962_v5 = vmax.f32 %v1948_v62, 0.0 }
 0x33c   : > { %v2064_v21 = vmax.f32 %v2046_v36, 0.0  ;;  %v2116_v13 = vmax.f32 %v2098_v47, 0.0  ;;  %2184 = vmatmul.f32.vlgmr.msrb.gmra.mxu0 %v2129_v8  ;;  %2222 = vmatmul.f32.vlgmr.msrb.gmra.mxu1 %v2129_v8 }
 0x33d   : > { %v2021_v47 = vadd.f32 %v2014_v53, %v1962_v5 }
 0x33e   : > { %v2071_v43 = vadd.f32 %v2064_v21, %v2019_v38  ;;  %5057 = vmatmul.msk.f32.gmra.mxu2 %vm456_vm1, %v6559_v34  ;;  %5065 = vmatmul.msk.f32.gmra.mxu3 %vm456_vm1, %v6564_v37 }
 0x340   : > { %v2123_v42 = vadd.f32 %v2116_v13, %v2071_v43  ;;  %v1951_v13 = vadd.f32 %v7020_v19, %v1950_v25 }
 0x341   : > { %v2048_v18 = vpop.f32.mrf.mxu2  ;;  %v2100_v3 = vpop.f32.mrf.mxu3 }
 0x342   : > { %v2049_v16 = vadd.f32 %v7020_v19, %v2048_v18  ;;  %v2101_v8 = vadd.f32 %v7020_v19, %v2100_v3  ;;  %v2130_v38 = vmul.f32 0.25, %v2123_v42  ;;  %v2005_v18 = vpop.f32.mrf.mxu1  ;;  %v1963_v62 = vmax.f32 %v1951_v13, 0.0 }
 0x343   : > { %v2006_v25 = vadd.f32 %v7020_v19, %v2005_v18 }
 0x344   : > { %v2065_v46 = vmax.f32 %v2049_v16, 0.0  ;;  %v2117_v17 = vmax.f32 %v2101_v8, 0.0  ;;  %2187 = vmatmul.f32.gmra.mxu0 %v2130_v38  ;;  %2225 = vmatmul.f32.gmra.mxu1 %v2130_v38  ;;  %v1954_v38 = vadd.f32 %v7020_v19, %v1953_v35  ;;  %v2022_v52 = vadd.f32 %v2015_v7, %v1963_v62 }
 0x346   : > { %v2072_v4 = vadd.f32 %v2065_v46, %v2020_v55  ;;  %v1964_v53 = vmax.f32 %v1954_v38, 0.0  ;;  %5058 = vmatmul.msk.f32.gmra.mxu2 %vm456_vm1, %v6573_v58  ;;  %5066 = vmatmul.msk.f32.gmra.mxu3 %vm456_vm1, %v6578_v1 }
 0x348   : > { %v2124_v36 = vadd.f32 %v2117_v17, %v2072_v4  ;;  %v2016_v4 = vmax.f32 %v2006_v25, 0.0 }
 0x349   : > { %v2051_v44 = vpop.f32.mrf.mxu2  ;;  %v2103_v21 = vpop.f32.mrf.mxu3 }
 0x34a   : > { %v2052_v43 = vadd.f32 %v7020_v19, %v2051_v44  ;;  %v2104_v30 = vadd.f32 %v7020_v19, %v2103_v21  ;;  %v2131_v61 = vmul.f32 0.25, %v2124_v36  ;;  %v2008_v44 = vpop.f32.mrf.mxu1  ;;  %v2023_v13 = vadd.f32 %v2016_v4, %v1964_v53  ;;  %v2496_v53 = vld [vmem:[%s8926_s5 + $0x578] sm:$0xff]  ;;  %v2493_v4 = vld [vmem:[%s8926_s5 + $0x560] sm:$0xff] }
 0x34c   : > { %v2066_v45 = vmax.f32 %v2052_v43, 0.0  ;;  %v2118_v42 = vmax.f32 %v2104_v30, 0.0  ;;  %2190 = vmatmul.f32.gmra.mxu0 %v2131_v61  ;;  %2228 = vmatmul.f32.gmra.mxu1 %v2131_v61 }
 0x34e   : > { %v2073_v3 = vadd.f32 %v2066_v45, %v2021_v47  ;;  %v1956_v47 = vpop.f32.mrf.mxu0  ;;  %v2009_v45 = vadd.f32 %v7020_v19, %v2008_v44  ;;  %5059 = vmatmul.msk.f32.gmra.mxu2 %vm456_vm1, %v6587_v6  ;;  %5067 = vmatmul.msk.f32.gmra.mxu3 %vm456_vm1, %v6592_v39  ;;  %v2492_v44 = vld [vmem:[%s8926_s5 + $0x558] sm:$0xff] }
 0x34f   : > { %v1957_v61 = vadd.f32 %v7020_v19, %v1956_v47  ;;  %v2491_v47 = vld [vmem:[%s8926_s5 + $0x550] sm:$0xff] }
 0x350   : > { %v2125_v55 = vadd.f32 %v2118_v42, %v2073_v3  ;;  %v2017_v62 = vmax.f32 %v2009_v45, 0.0  ;;  %v2483_v45 = vld [vmem:[%s8926_s5 + $0x510] sm:$0xff] }
 0x351   : > { %v2054_v16 = vpop.f32.mrf.mxu2  ;;  %v2106_v8 = vpop.f32.mrf.mxu3  ;;  %v1965_v3 = vmax.f32 %v1957_v61, 0.0  ;;  %v2487_v61 = vld [vmem:[%s8926_s5 + $0x530] sm:$0xff] }
 0x352   : > { %v2055_v9 = vadd.f32 %v7020_v19, %v2054_v16  ;;  %v2107_v11 = vadd.f32 %v7020_v19, %v2106_v8  ;;  %v2132_v46 = vmul.f32 0.25, %v2125_v55 }
 0x353   : > { %v2024_v8 = vadd.f32 %v2017_v62, %v1965_v3 }
 0x354   : > { %v2067_v17 = vmax.f32 %v2055_v9, 0.0  ;;  %v2119_v5 = vmax.f32 %v2107_v11, 0.0  ;;  %2193 = vmatmul.f32.gmra.mxu0 %v2132_v46  ;;  %2231 = vmatmul.f32.gmra.mxu1 %v2132_v46 }
 0x356   : > { %v2074_v36 = vadd.f32 %v2067_v17, %v2022_v52  ;;  %5060 = vmatmul.msk.f32.gmra.mxu2 %vm456_vm1, %v6597_v48  ;;  %5068 = vmatmul.msk.f32.gmra.mxu3 %vm456_vm1, %v6602_v49  ;;  %v2511_v48 = vld [vmem:[%s8926_s5 + $0x5f0] sm:$0xff]  ;;  %v2512_v49 = vld [vmem:[%s8926_s5 + $0x5f8] sm:$0xff]  ;;  %v2498_v17 = vld [vmem:[%s8926_s5 + $0x588] sm:$0xff] }
 0x357   : > { %2513 = vmatpush.msra.mxu2 %v2511_v48  ;;  %2551 = vmatpush.msra.mxu3 %v2512_v49 }
 0x358   : > { %v2126_v21 = vadd.f32 %v2119_v5, %v2074_v36  ;;  %v2495_v5 = vld [vmem:[%s8926_s5 + $0x570] sm:$0xff]  ;;  %v2494_v36 = vld [vmem:[%s8926_s5 + $0x568] sm:$0xff] }
 0x359   : > { %v2057_v43 = vpop.f32.mrf.mxu2  ;;  %v2109_v30 = vpop.f32.mrf.mxu3 }
 0x35a   : > { %v2058_v34 = vadd.f32 %v7020_v19, %v2057_v43  ;;  %v2110_v31 = vadd.f32 %v7020_v19, %v2109_v30  ;;  %v2133_v37 = vmul.f32 0.25, %v2126_v21  ;;  %v2489_v43 = vld [vmem:[%s8926_s5 + $0x540] sm:$0xff]  ;;  %v2490_v30 = vld [vmem:[%s8926_s5 + $0x548] sm:$0xff] }
 0x35c   : > { %v2068_v42 = vmax.f32 %v2058_v34, 0.0  ;;  %v2120_v35 = vmax.f32 %v2110_v31, 0.0  ;;  %2196 = vmatmul.f32.gmra.mxu0 %v2133_v37  ;;  %2234 = vmatmul.f32.gmra.mxu1 %v2133_v37  ;;  %v2488_v34 = vld [vmem:[%s8926_s5 + $0x538] sm:$0xff]  ;;  %v2485_v31 = vld [vmem:[%s8926_s5 + $0x520] sm:$0xff]  ;;  %v2486_v37 = vld [vmem:[%s8926_s5 + $0x528] sm:$0xff] }
 0x35e   : > { %v2075_v18 = vadd.f32 %v2068_v42, %v2023_v13  ;;  %5061 = vmatmul.msk.f32.gmra.mxu2 %vm456_vm1, %v6607_v50  ;;  %5069 = vmatmul.msk.f32.gmra.mxu3 %vm456_vm1, %v6612_v51  ;;  %v2509_v50 = vld [vmem:[%s8926_s5 + $0x5e0] sm:$0xff]  ;;  %v2510_v51 = vld [vmem:[%s8926_s5 + $0x5e8] sm:$0xff]  ;;  %v2484_v42 = vld [vmem:[%s8926_s5 + $0x518] sm:$0xff] }
 0x35f   : > { %2514 = vmatpush.msra.mxu2 %v2509_v50  ;;  %2552 = vmatpush.msra.mxu3 %v2510_v51 }
 0x360   : > { %v2127_v7 = vadd.f32 %v2120_v35, %v2075_v18 }
 0x361   : > { %v2060_v55 = vpop.f32.mrf.mxu2  ;;  %v2112_v16 = vpop.f32.mrf.mxu3 }
 0x362   : > { %v2061_v38 = vadd.f32 %v7020_v19, %v2060_v55  ;;  %v2113_v25 = vadd.f32 %v7020_v19, %v2112_v16  ;;  %v2134_v52 = vmul.f32 0.25, %v2127_v7  ;;  %v2497_v19 = vld [vmem:[%s8926_s5 + $0x580] sm:$0xff]  ;;  %v2482_v55 = vld [vmem:[%s8926_s5 + $0x508] sm:$0xff] }
 0x363   : > { %v2481_v7 = vld [vmem:[%s8926_s5 + $0x500] sm:$0xff] }
 0x364   : > { %v2069_v58 = vmax.f32 %v2061_v38, 0.0  ;;  %v2121_v1 = vmax.f32 %v2113_v25, 0.0  ;;  %2199 = vmatmul.f32.gmra.mxu0 %v2134_v52  ;;  %2237 = vmatmul.f32.gmra.mxu1 %v2134_v52  ;;  %v7234_v52 = vld [vmem:[#allocation7 + $0x5] ss:$0 sm:$0xff] }
 0x366   : > { %v2076_v9 = vadd.f32 %v2069_v58, %v2024_v8 }
 0x368   : > { %v2128_v11 = vadd.f32 %v2121_v1, %v2076_v9 }
 0x36a   : > { %v2135_v46 = vmul.f32 0.25, %v2128_v11 }
 0x36c   : > { %2202 = vmatmul.f32.gmra.mxu0 %v2135_v46  ;;  %2240 = vmatmul.f32.gmra.mxu1 %v2135_v46 }
 0x374   : > { %5071 = vmatmul.msk.f32.vlgmr.msra.gmra.mxu0 %vm456_vm1, %v6617_v56  ;;  %5079 = vmatmul.msk.f32.vlgmr.msra.gmra.mxu1 %vm456_vm1, %v6622_v57  ;;  %v2507_v56 = vld [vmem:[%s8926_s5 + $0x5d0] sm:$0xff]  ;;  %v2508_v57 = vld [vmem:[%s8926_s5 + $0x5d8] sm:$0xff] }
 0x375   : > { %2515 = vmatpush.msra.mxu2 %v2507_v56  ;;  %2553 = vmatpush.msra.mxu3 %v2508_v57 }
 0x37c   : > { %5072 = vmatmul.msk.f32.gmra.mxu0 %vm456_vm1, %v6627_v59  ;;  %5080 = vmatmul.msk.f32.gmra.mxu1 %vm456_vm1, %v6632_v63 }
 0x384   : > { %5073 = vmatmul.msk.f32.gmra.mxu0 %vm456_vm1, %v6637_v14  ;;  %5081 = vmatmul.msk.f32.gmra.mxu1 %vm456_vm1, %v6642_v15  ;;  %v2505_v14 = vld [vmem:[%s8926_s5 + $0x5c0] sm:$0xff]  ;;  %v2506_v15 = vld [vmem:[%s8926_s5 + $0x5c8] sm:$0xff] }
 0x385   : > { %2516 = vmatpush.msra.mxu2 %v2505_v14  ;;  %2554 = vmatpush.msra.mxu3 %v2506_v15 }
 0x38c   : > { %5074 = vmatmul.msk.f32.gmra.mxu0 %vm456_vm1, %v6647_v20  ;;  %5082 = vmatmul.msk.f32.gmra.mxu1 %vm456_vm1, %v6652_v22  ;;  %v2503_v20 = vld [vmem:[%s8926_s5 + $0x5b0] sm:$0xff]  ;;  %v2504_v22 = vld [vmem:[%s8926_s5 + $0x5b8] sm:$0xff] }
 0x38d   : > { %2517 = vmatpush.msra.mxu2 %v2503_v20  ;;  %2555 = vmatpush.msra.mxu3 %v2504_v22 }
 0x394   : > { %5075 = vmatmul.msk.f32.gmra.mxu0 %vm456_vm1, %v6657_v23  ;;  %5083 = vmatmul.msk.f32.gmra.mxu1 %vm456_vm1, %v6662_v26  ;;  %v2501_v23 = vld [vmem:[%s8926_s5 + $0x5a0] sm:$0xff]  ;;  %v2502_v26 = vld [vmem:[%s8926_s5 + $0x5a8] sm:$0xff] }
 0x395   : > { %2518 = vmatpush.msra.mxu2 %v2501_v23  ;;  %2556 = vmatpush.msra.mxu3 %v2502_v26 }
 0x39c   : > { %5076 = vmatmul.msk.f32.gmra.mxu0 %vm456_vm1, %v6667_v27  ;;  %5084 = vmatmul.msk.f32.gmra.mxu1 %vm456_vm1, %v6672_v28  ;;  %v2499_v27 = vld [vmem:[%s8926_s5 + $0x590] sm:$0xff]  ;;  %v2500_v28 = vld [vmem:[%s8926_s5 + $0x598] sm:$0xff] }
 0x39d   : > { %2519 = vmatpush.msra.mxu2 %v2499_v27  ;;  %2557 = vmatpush.msra.mxu3 %v2500_v28 }
 0x39f   : > { %2520 = vmatpush.msra.mxu2 %v2497_v19  ;;  %2558 = vmatpush.msra.mxu3 %v2498_v17 }
 0x3a1   : > { %2521 = vmatpush.msra.mxu2 %v2495_v5  ;;  %2559 = vmatpush.msra.mxu3 %v2496_v53 }
 0x3a3   : > { %2522 = vmatpush.msra.mxu2 %v2493_v4  ;;  %2560 = vmatpush.msra.mxu3 %v2494_v36 }
 0x3a4   : > { %5077 = vmatmul.msk.f32.gmra.mxu0 %vm456_vm1, %v6677_v29  ;;  %5085 = vmatmul.msk.f32.gmra.mxu1 %vm456_vm1, %v6682_v33 }
 0x3a5   : > { %2523 = vmatpush.msra.mxu2 %v2491_v47  ;;  %2561 = vmatpush.msra.mxu3 %v2492_v44 }
 0x3a7   : > { %2524 = vmatpush.msra.mxu2 %v2489_v43  ;;  %2562 = vmatpush.msra.mxu3 %v2490_v30 }
 0x3a9   : > { %2525 = vmatpush.msra.mxu2 %v2487_v61  ;;  %2563 = vmatpush.msra.mxu3 %v2488_v34 }
 0x3ab   : > { %2526 = vmatpush.msra.mxu2 %v2485_v31  ;;  %2564 = vmatpush.msra.mxu3 %v2486_v37 }
 0x3ad   : > { %2527 = vmatpush.msra.mxu2 %v2483_v45  ;;  %2565 = vmatpush.msra.mxu3 %v2484_v42 }
 0x3af   : > { %2528 = vmatpush.msra.mxu2 %v2481_v7  ;;  %2566 = vmatpush.msra.mxu3 %v2482_v55 }
 0x3b1   : > { %v2283_v3 = vpop.f32.mrf.mxu2  ;;  %v2335_v62 = vpop.f32.mrf.mxu3 }
 0x3b2   : > { %v2284_v9 = vadd.f32 %v7234_v52, %v2283_v3  ;;  %v2336_v11 = vadd.f32 %v7234_v52, %v2335_v62 }
 0x3b4   : > { %v2304_v46 = vmax.f32 %v2284_v9, 0.0  ;;  %v2356_v48 = vmax.f32 %v2336_v11, 0.0 }
 0x3b6   : > { %v2363_v15 = vadd.f32 %v2356_v48, %v2304_v46 }
 0x3b9   : > { %v7114_v6 = vpop.f32.mrf.mxu0  ;;  %v7116_v39 = vpop.f32.mrf.mxu1 }
 0x3ba   : > { %8981 = vst [vmem:[#allocation65_spill] sm:$0xff] %v7114_v6  ;;  %v2286_v38 = vpop.f32.mrf.mxu2  ;;  %v2338_v25 = vpop.f32.mrf.mxu3 }
 0x3bb   : > { %8982 = vst [vmem:[#allocation66_spill] sm:$0xff] %v7116_v39  ;;  %v2287_v57 = vadd.f32 %v7234_v52, %v2286_v38  ;;  %v2339_v14 = vadd.f32 %v7234_v52, %v2338_v25 }
 0x3bd   : > { %v2305_v27 = vmax.f32 %v2287_v57, 0.0  ;;  %v2357_v28 = vmax.f32 %v2339_v14, 0.0 }
 0x3bf   : > { %v2364_v4 = vadd.f32 %v2357_v28, %v2305_v27 }
 0x3c1   : > { %v7136_v59 = vpop.f32.mrf.mxu0  ;;  %v7138_v63 = vpop.f32.mrf.mxu1 }
 0x3c2   : > { %8983 = vst [vmem:[#allocation67_spill] sm:$0xff] %v7136_v59  ;;  %v2289_v49 = vpop.f32.mrf.mxu2  ;;  %v2341_v50 = vpop.f32.mrf.mxu3 }
 0x3c3   : > { %8984 = vst [vmem:[#allocation68_spill] sm:$0xff] %v7138_v63  ;;  %v2290_v44 = vadd.f32 %v7234_v52, %v2289_v49  ;;  %v2342_v34 = vadd.f32 %v7234_v52, %v2341_v50 }
 0x3c5   : > { %v2306_v42 = vmax.f32 %v2290_v44, 0.0  ;;  %v2358_v3 = vmax.f32 %v2342_v34, 0.0 }
 0x3c7   : > { %v2365_v9 = vadd.f32 %v2358_v3, %v2306_v42 }
 0x3c9   : > { %v7164_v29 = vpop.f32.mrf.mxu0  ;;  %v7166_v33 = vpop.f32.mrf.mxu1 }
 0x3ca   : > { %8985 = vst [vmem:[#allocation69_spill] sm:$0xff] %v7164_v29  ;;  %v2292_v5 = vpop.f32.mrf.mxu2  ;;  %v2344_v53 = vpop.f32.mrf.mxu3 }
 0x3cb   : > { %8986 = vst [vmem:[#allocation70_spill] sm:$0xff] %v7166_v33  ;;  %v2293_v38 = vadd.f32 %v7234_v52, %v2292_v5  ;;  %v2345_v25 = vadd.f32 %v7234_v52, %v2344_v53 }
 0x3cd   : > { %v2307_v57 = vmax.f32 %v2293_v38, 0.0  ;;  %v2359_v14 = vmax.f32 %v2345_v25, 0.0 }
 0x3d1   : > { %v7192_v21 = vpop.f32.mrf.mxu0  ;;  %v7194_v13 = vpop.f32.mrf.mxu1 }
 0x3d2   : > { %8987 = vst [vmem:[#allocation71_spill] sm:$0xff] %v7192_v21  ;;  %v2295_v49 = vpop.f32.mrf.mxu2  ;;  %v2347_v50 = vpop.f32.mrf.mxu3 }
 0x3d3   : > { %8988 = vst [vmem:[#allocation72_spill] sm:$0xff] %v7194_v13  ;;  %v2296_v28 = vadd.f32 %v7234_v52, %v2295_v49  ;;  %v2348_v53 = vadd.f32 %v7234_v52, %v2347_v50 }
 0x3d5   : > { %v2308_v34 = vmax.f32 %v2296_v28, 0.0 }
 0x3d9   : > { %v7220_v35 = vpop.f32.mrf.mxu0  ;;  %v7222_v18 = vpop.f32.mrf.mxu1 }
 0x3da   : > { %8989 = vst [vmem:[#allocation73_spill] sm:$0xff] %v7220_v35 }
 0x3db   : > { %8990 = vst [vmem:[#allocation74_spill] sm:$0xff] %v7222_v18 }
 0x3e1   : > { %v7230_v16 = vpop.f32.mrf.mxu0  ;;  %v7232_v8 = vpop.f32.mrf.mxu1 }
 0x3e9   : > { %v7236_v58 = vpop.f32.mrf.mxu0  ;;  %v7238_v1 = vpop.f32.mrf.mxu1 }
 0x3ea   : > { %8991 = vst [vmem:[#allocation75_spill] sm:$0xff] %v7236_v58 }
 0x3eb   : > { %8992 = vst [vmem:[#allocation76_spill] sm:$0xff] %v7238_v1 }
 0x3f1   : > { %v2387_v51 = vpop.f32.mrf.mxu0  ;;  %v2439_v56 = vpop.f32.mrf.mxu1 }
 0x3f2   : > { %v2388_v20 = vadd.f32 %v7234_v52, %v2387_v51  ;;  %v2440_v22 = vadd.f32 %v7234_v52, %v2439_v56 }
 0x3f4   : > { %v2408_v23 = vmax.f32 %v2388_v20, 0.0  ;;  %v2460_v26 = vmax.f32 %v2440_v22, 0.0  ;;  %v2603_v22 = vld [vmem:[#allocation6 + $0x18] sm:$0x7] }
 0x3f5   : > { %5102 = vmatpush.msk.msrb.mxu2 %vm478_vm0, %v2603_v22  ;;  %5110 = vmatpush.msk.msrb.mxu3 %vm478_vm0, %v2603_v22 }
 0x3f6   : > { %v2415_v19 = vadd.f32 %v2408_v23, %v2363_v15  ;;  %v2366_v23 = vadd.f32 %v2359_v14, %v2307_v57  ;;  %5086 = vmatpush.msk.msrb.mxu0 %vm478_vm0, %v2603_v22  ;;  %5094 = vmatpush.msk.msrb.mxu1 %vm478_vm0, %v2603_v22 }
 0x3f8   : > { %v2467_v17 = vadd.f32 %v2460_v26, %v2415_v19 }
 0x3f9   : > { %v2390_v36 = vpop.f32.mrf.mxu0  ;;  %v2442_v47 = vpop.f32.mrf.mxu1 }
 0x3fa   : > { %v2474_v43 = vmul.f32 0.25, %v2467_v17  ;;  %v2391_v30 = vadd.f32 %v7234_v52, %v2390_v36  ;;  %v2443_v61 = vadd.f32 %v7234_v52, %v2442_v47  ;;  %v7268_v36 = vld [vmem:[%s5842_s12 + $0x38] sm:$0xff] }
 0x3fb   : > { %5095 = vmatmul.msk.f32.vlgmr.msrb.gmra.mxu1 %vm456_vm1, %v7268_v36 }
 0x3fc   : > { %v2409_v31 = vmax.f32 %v2391_v30, 0.0  ;;  %v2461_v37 = vmax.f32 %v2443_v61, 0.0  ;;  %2529 = vmatmul.f32.vlgmr.msra.gmra.mxu2 %v2474_v43  ;;  %2567 = vmatmul.f32.vlgmr.msra.gmra.mxu3 %v2474_v43  ;;  %v2298_v43 = vpop.f32.mrf.mxu2  ;;  %v2350_v30 = vpop.f32.mrf.mxu3 }
 0x3fd   : > { %v2299_v3 = vadd.f32 %v7234_v52, %v2298_v43 }
 0x3fe   : > { %v2416_v45 = vadd.f32 %v2409_v31, %v2364_v4  ;;  %v7263_v4 = vld [vmem:[%s5842_s12] sm:$0xff]  ;;  %v2360_v31 = vmax.f32 %v2348_v53, 0.0 }
 0x3ff   : > { %5087 = vmatmul.msk.f32.vlgmr.msrb.gmra.mxu0 %vm456_vm1, %v7263_v4  ;;  %v2309_v49 = vmax.f32 %v2299_v3, 0.0 }
 0x400   : > { %v2468_v62 = vadd.f32 %v2461_v37, %v2416_v45 }
 0x401   : > { %v2393_v7 = vpop.f32.mrf.mxu0  ;;  %v2445_v55 = vpop.f32.mrf.mxu1 }
 0x402   : > { %v2394_v11 = vadd.f32 %v7234_v52, %v2393_v7  ;;  %v2446_v46 = vadd.f32 %v7234_v52, %v2445_v55  ;;  %v2475_v48 = vmul.f32 0.25, %v2468_v62  ;;  %v2351_v62 = vadd.f32 %v7234_v52, %v2350_v30 }
 0x403   : > { %v2367_v7 = vadd.f32 %v2360_v31, %v2308_v34 }
 0x404   : > { %v2410_v51 = vmax.f32 %v2394_v11, 0.0  ;;  %v2462_v56 = vmax.f32 %v2446_v46, 0.0  ;;  %2532 = vmatmul.f32.gmra.mxu2 %v2475_v48  ;;  %2570 = vmatmul.f32.gmra.mxu3 %v2475_v48  ;;  %v7282_v11 = vld [vmem:[%s5842_s12 + $0x40] sm:$0xff]  ;;  %v2361_v50 = vmax.f32 %v2351_v62, 0.0  ;;  %v2353_v57 = vpop.f32.mrf.mxu3  ;;  %v7303_v62 = vld [vmem:[%s5842_s12 + $0x18] sm:$0xff] }
 0x405   : > { %5096 = vmatmul.msk.f32.gmra.mxu1 %vm456_vm1, %v7282_v11 }
 0x406   : > { %v2417_v15 = vadd.f32 %v2410_v51, %v2365_v9  ;;  %v7277_v9 = vld [vmem:[%s5842_s12 + $0x8] sm:$0xff] }
 0x407   : > { %5088 = vmatmul.msk.f32.gmra.mxu0 %vm456_vm1, %v7277_v9 }
 0x408   : > { %v2469_v20 = vadd.f32 %v2462_v56, %v2417_v15  ;;  %v2301_v56 = vpop.f32.mrf.mxu2  ;;  %v2368_v15 = vadd.f32 %v2361_v50, %v2309_v49  ;;  %v7318_v49 = vld [vmem:[%s5842_s12 + $0x58] sm:$0xff]  ;;  %v7323_v50 = vld [vmem:[%s5842_s12 + $0x28] sm:$0xff] }
 0x409   : > { %v2396_v26 = vpop.f32.mrf.mxu0  ;;  %v2448_v27 = vpop.f32.mrf.mxu1 }
 0x40a   : > { %v2397_v19 = vadd.f32 %v7234_v52, %v2396_v26  ;;  %v2449_v17 = vadd.f32 %v7234_v52, %v2448_v27  ;;  %v2476_v5 = vmul.f32 0.25, %v2469_v20 }
 0x40c   : > { %v2411_v47 = vmax.f32 %v2397_v19, 0.0  ;;  %v2463_v44 = vmax.f32 %v2449_v17, 0.0  ;;  %2535 = vmatmul.f32.gmra.mxu2 %v2476_v5  ;;  %2573 = vmatmul.f32.gmra.mxu3 %v2476_v5  ;;  %v2354_v19 = vadd.f32 %v7234_v52, %v2353_v57  ;;  %v7291_v17 = vld [vmem:[%s5842_s12 + $0x10] sm:$0xff]  ;;  %v7296_v5 = vld [vmem:[%s5842_s12 + $0x48] sm:$0xff] }
 0x40d   : > { %5097 = vmatmul.msk.f32.gmra.mxu1 %vm456_vm1, %v7296_v5  ;;  %v7338_v57 = vld [vmem:[%s5842_s12 + $0xa8] sm:$0xff] }
 0x40e   : > { %v2418_v61 = vadd.f32 %v2411_v47, %v2366_v23  ;;  %v2302_v23 = vadd.f32 %v7234_v52, %v2301_v56  ;;  %v2362_v30 = vmax.f32 %v2354_v19, 0.0  ;;  %v7333_v56 = vld [vmem:[%s5842_s12 + $0x70] sm:$0xff] }
 0x40f   : > { %5089 = vmatmul.msk.f32.gmra.mxu0 %vm456_vm1, %v7291_v17  ;;  %v7383_v19 = vld [vmem:[%s5842_s12 + $0x90] sm:$0xff] }
 0x410   : > { %v2470_v37 = vadd.f32 %v2463_v44, %v2418_v61  ;;  %v2310_v43 = vmax.f32 %v2302_v23, 0.0  ;;  %v7363_v23 = vld [vmem:[%s5842_s12 + $0x80] sm:$0xff] }
 0x411   : > { %v2399_v45 = vpop.f32.mrf.mxu0  ;;  %v2451_v42 = vpop.f32.mrf.mxu1 }
 0x412   : > { %v2400_v55 = vadd.f32 %v7234_v52, %v2399_v45  ;;  %v2452_v38 = vadd.f32 %v7234_v52, %v2451_v42  ;;  %v2477_v25 = vmul.f32 0.25, %v2470_v37  ;;  %v2369_v37 = vadd.f32 %v2362_v30, %v2310_v43  ;;  %v7403_v43 = vld [vmem:[%s5842_s12 + $0xa0] sm:$0x1]  ;;  %v7408_v30 = vld [vmem:[%s5842_s12 + $0xd8] sm:$0x1] }
 0x414   : > { %v2412_v46 = vmax.f32 %v2400_v55, 0.0  ;;  %v2464_v48 = vmax.f32 %v2452_v38, 0.0  ;;  %2538 = vmatmul.f32.gmra.mxu2 %v2477_v25  ;;  %2576 = vmatmul.f32.gmra.mxu3 %v2477_v25 }
 0x416   : > { %v2419_v51 = vadd.f32 %v2412_v46, %v2367_v7  ;;  %v7308_v7 = vld [vmem:[%s5842_s12 + $0x50] sm:$0xff] }
 0x417   : > { %5090 = vmatmul.msk.f32.gmra.mxu0 %vm456_vm1, %v7303_v62  ;;  %5098 = vmatmul.msk.f32.gmra.mxu1 %vm456_vm1, %v7308_v7 }
 0x418   : > { %v2471_v14 = vadd.f32 %v2464_v48, %v2419_v51  ;;  %v7313_v48 = vld [vmem:[%s5842_s12 + $0x20] sm:$0xff] }
 0x419   : > { %v2402_v20 = vpop.f32.mrf.mxu0  ;;  %v2454_v22 = vpop.f32.mrf.mxu1  ;;  %v7328_v51 = vld [vmem:[%s5842_s12 + $0x60] sm:$0xff] }
 0x41a   : > { %v2403_v26 = vadd.f32 %v7234_v52, %v2402_v20  ;;  %v2455_v27 = vadd.f32 %v7234_v52, %v2454_v22  ;;  %v2478_v28 = vmul.f32 0.25, %v2471_v14  ;;  %v7343_v14 = vld [vmem:[%s5842_s12 + $0x30] sm:$0x1]  ;;  %v7353_v20 = vld [vmem:[%s5842_s12 + $0x78] sm:$0xff] }
 0x41b   : > { %v7358_v22 = vld [vmem:[%s5842_s12 + $0xb0] sm:$0xff] }
 0x41c   : > { %v2413_v53 = vmax.f32 %v2403_v26, 0.0  ;;  %v2465_v47 = vmax.f32 %v2455_v27, 0.0  ;;  %2541 = vmatmul.f32.gmra.mxu2 %v2478_v28  ;;  %2579 = vmatmul.f32.gmra.mxu3 %v2478_v28  ;;  %v7368_v26 = vld [vmem:[%s5842_s12 + $0xb8] sm:$0xff]  ;;  %v7373_v27 = vld [vmem:[%s5842_s12 + $0x88] sm:$0xff]  ;;  %v7378_v28 = vld [vmem:[%s5842_s12 + $0xc0] sm:$0xff] }
 0x41e   : > { %v2420_v44 = vadd.f32 %v2413_v53, %v2368_v15  ;;  %v7348_v15 = vld [vmem:[%s5842_s12 + $0x68] sm:$0x1] }
 0x41f   : > { %5091 = vmatmul.msk.f32.gmra.mxu0 %vm456_vm1, %v7313_v48  ;;  %5099 = vmatmul.msk.f32.gmra.mxu1 %vm456_vm1, %v7318_v49  ;;  %v7388_v53 = vld [vmem:[%s5842_s12 + $0xc8] sm:$0xff] }
 0x420   : > { %v2472_v61 = vadd.f32 %v2465_v47, %v2420_v44  ;;  %v7393_v47 = vld [vmem:[%s5842_s12 + $0x98] sm:$0xff]  ;;  %v7398_v44 = vld [vmem:[%s5842_s12 + $0xd0] sm:$0xff] }
 0x421   : > { %v2405_v34 = vpop.f32.mrf.mxu0  ;;  %v2457_v31 = vpop.f32.mrf.mxu1 }
 0x422   : > { %v2406_v45 = vadd.f32 %v7234_v52, %v2405_v34  ;;  %v2458_v42 = vadd.f32 %v7234_v52, %v2457_v31  ;;  %v2479_v3 = vmul.f32 0.25, %v2472_v61  ;;  %v2856_v31 = vld [vmem:[%s8926_s5 + $0x6f0] sm:$0xff] }
 0x423   : > { %2858 = vmatpush.msra.mxu0 %v2856_v31  ;;  %v2848_v31 = vld [vmem:[%s8926_s5 + $0x6b0] sm:$0xff] }
 0x424   : > { %v2414_v55 = vmax.f32 %v2406_v45, 0.0  ;;  %v2466_v38 = vmax.f32 %v2458_v42, 0.0  ;;  %2544 = vmatmul.f32.gmra.mxu2 %v2479_v3  ;;  %2582 = vmatmul.f32.gmra.mxu3 %v2479_v3  ;;  %v2854_v45 = vld [vmem:[%s8926_s5 + $0x6e0] sm:$0xff]  ;;  %v2855_v42 = vld [vmem:[%s8926_s5 + $0x6e8] sm:$0xff]  ;;  %v2852_v3 = vld [vmem:[%s8926_s5 + $0x6d0] sm:$0xff] }
 0x425   : > { %2859 = vmatpush.msra.mxu0 %v2854_v45  ;;  %v2846_v45 = vld [vmem:[%s8926_s5 + $0x6a0] sm:$0xff] }
 0x426   : > { %v2421_v52 = vadd.f32 %v2414_v55, %v2369_v37  ;;  %v2857_v37 = vld [vmem:[%s8926_s5 + $0x6f8] sm:$0xff] }
 0x427   : > { %5092 = vmatmul.msk.f32.gmra.mxu0 %vm456_vm1, %v7323_v50  ;;  %5100 = vmatmul.msk.f32.gmra.mxu1 %vm456_vm1, %v7328_v51  ;;  %v2853_v55 = vld [vmem:[%s8926_s5 + $0x6d8] sm:$0xff] }
 0x428   : > { %v2473_v25 = vadd.f32 %v2466_v38, %v2421_v52  ;;  %2896 = vmatpush.msra.mxu1 %v2857_v37  ;;  %2860 = vmatpush.msra.mxu0 %v2852_v3  ;;  %v2849_v37 = vld [vmem:[%s8926_s5 + $0x6b8] sm:$0xff]  ;;  %v2844_v3 = vld [vmem:[%s8926_s5 + $0x690] sm:$0xff] }
 0x42a   : > { %v2480_v46 = vmul.f32 0.25, %v2473_v25  ;;  %2897 = vmatpush.msra.mxu1 %v2855_v42  ;;  %v2850_v25 = vld [vmem:[%s8926_s5 + $0x6c0] sm:$0xff]  ;;  %v2847_v42 = vld [vmem:[%s8926_s5 + $0x6a8] sm:$0xff] }
 0x42b   : > { %2861 = vmatpush.msra.mxu0 %v2850_v25 }
 0x42c   : > { %2547 = vmatmul.f32.gmra.mxu2 %v2480_v46  ;;  %2585 = vmatmul.f32.gmra.mxu3 %v2480_v46  ;;  %v2851_v46 = vld [vmem:[%s8926_s5 + $0x6c8] sm:$0xff] }
 0x42d   : > { %2898 = vmatpush.msra.mxu1 %v2853_v55  ;;  %2862 = vmatpush.msra.mxu0 %v2848_v31  ;;  %v2845_v55 = vld [vmem:[%s8926_s5 + $0x698] sm:$0xff]  ;;  %v2842_v31 = vld [vmem:[%s8926_s5 + $0x680] sm:$0xff] }
 0x42f   : > { %5093 = vmatmul.msk.f32.gmra.mxu0 %vm456_vm1, %v7343_v14  ;;  %5101 = vmatmul.msk.f32.gmra.mxu1 %vm456_vm1, %v7348_v15 }
 0x430   : > { %2899 = vmatpush.msra.mxu1 %v2851_v46  ;;  %2863 = vmatpush.msra.mxu0 %v2846_v45  ;;  %v2840_v45 = vld [vmem:[%s8926_s5 + $0x670] sm:$0xff] }
 0x432   : > { %2900 = vmatpush.msra.mxu1 %v2849_v37  ;;  %2864 = vmatpush.msra.mxu0 %v2844_v3  ;;  %v2843_v37 = vld [vmem:[%s8926_s5 + $0x688] sm:$0xff]  ;;  %v2838_v3 = vld [vmem:[%s8926_s5 + $0x660] sm:$0xff] }
 0x434   : > { %5103 = vmatmul.msk.f32.vlgmr.msrb.gmra.mxu2 %vm456_vm1, %v7333_v56  ;;  %5111 = vmatmul.msk.f32.vlgmr.msrb.gmra.mxu3 %vm456_vm1, %v7338_v57 }
 0x435   : > { %2901 = vmatpush.msra.mxu1 %v2847_v42  ;;  %2865 = vmatpush.msra.mxu0 %v2842_v31  ;;  %v2841_v42 = vld [vmem:[%s8926_s5 + $0x678] sm:$0xff]  ;;  %v2836_v31 = vld [vmem:[%s8926_s5 + $0x650] sm:$0xff] }
 0x437   : > { %2902 = vmatpush.msra.mxu1 %v2845_v55  ;;  %v2839_v55 = vld [vmem:[%s8926_s5 + $0x668] sm:$0xff]  ;;  %2866 = vmatpush.msra.mxu0 %v2840_v45  ;;  %v2834_v45 = vld [vmem:[%s8926_s5 + $0x640] sm:$0xff] }
 0x439   : > { %2903 = vmatpush.msra.mxu1 %v2843_v37  ;;  %2867 = vmatpush.msra.mxu0 %v2838_v3  ;;  %v2837_v37 = vld [vmem:[%s8926_s5 + $0x658] sm:$0xff]  ;;  %v2832_v3 = vld [vmem:[%s8926_s5 + $0x630] sm:$0xff] }
 0x43b   : > { %2904 = vmatpush.msra.mxu1 %v2841_v42  ;;  %2868 = vmatpush.msra.mxu0 %v2836_v31  ;;  %v2835_v42 = vld [vmem:[%s8926_s5 + $0x648] sm:$0xff]  ;;  %v2830_v31 = vld [vmem:[%s8926_s5 + $0x620] sm:$0xff] }
 0x43c   : > { %5104 = vmatmul.msk.f32.gmra.mxu2 %vm456_vm1, %v7353_v20  ;;  %5112 = vmatmul.msk.f32.gmra.mxu3 %vm456_vm1, %v7358_v22 }
 0x43d   : > { %2905 = vmatpush.msra.mxu1 %v2839_v55  ;;  %2869 = vmatpush.msra.mxu0 %v2834_v45  ;;  %v2833_v55 = vld [vmem:[%s8926_s5 + $0x638] sm:$0xff]  ;;  %v2828_v45 = vld [vmem:[%s8926_s5 + $0x610] sm:$0xff] }
 0x43f   : > { %2906 = vmatpush.msra.mxu1 %v2837_v37  ;;  %2870 = vmatpush.msra.mxu0 %v2832_v3  ;;  %v2831_v37 = vld [vmem:[%s8926_s5 + $0x628] sm:$0xff] }
 0x441   : > { %2907 = vmatpush.msra.mxu1 %v2835_v42  ;;  %2871 = vmatpush.msra.mxu0 %v2830_v31  ;;  %v2829_v42 = vld [vmem:[%s8926_s5 + $0x618] sm:$0xff]  ;;  %v2826_v31 = vld [vmem:[%s8926_s5 + $0x600] sm:$0xff] }
 0x443   : > { %2908 = vmatpush.msra.mxu1 %v2833_v55  ;;  %2872 = vmatpush.msra.mxu0 %v2828_v45  ;;  %v7532_v45 = vld [vmem:[#allocation7 + $0x6] ss:$0 sm:$0xff] }
 0x444   : > { %5105 = vmatmul.msk.f32.gmra.mxu2 %vm456_vm1, %v7363_v23  ;;  %5113 = vmatmul.msk.f32.gmra.mxu3 %vm456_vm1, %v7368_v26 }
 0x445   : > { %2909 = vmatpush.msra.mxu1 %v2831_v37  ;;  %v2827_v37 = vld [vmem:[%s8926_s5 + $0x608] sm:$0xff]  ;;  %2873 = vmatpush.msra.mxu0 %v2826_v31 }
 0x447   : > { %2910 = vmatpush.msra.mxu1 %v2829_v42 }
 0x449   : > { %2911 = vmatpush.msra.mxu1 %v2827_v37 }
 0x44c   : > { %5106 = vmatmul.msk.f32.gmra.mxu2 %vm456_vm1, %v7373_v27  ;;  %5114 = vmatmul.msk.f32.gmra.mxu3 %vm456_vm1, %v7378_v28 }
 0x454   : > { %5107 = vmatmul.msk.f32.gmra.mxu2 %vm456_vm1, %v7383_v19  ;;  %5115 = vmatmul.msk.f32.gmra.mxu3 %vm456_vm1, %v7388_v53 }
 0x45c   : > { %5108 = vmatmul.msk.f32.gmra.mxu2 %vm456_vm1, %v7393_v47  ;;  %5116 = vmatmul.msk.f32.gmra.mxu3 %vm456_vm1, %v7398_v44 }
 0x464   : > { %5109 = vmatmul.msk.f32.gmra.mxu2 %vm456_vm1, %v7403_v43  ;;  %5117 = vmatmul.msk.f32.gmra.mxu3 %vm456_vm1, %v7408_v30 }
 0x47f   : > { %v7412_v61 = vpop.f32.mrf.mxu2  ;;  %v7414_v34 = vpop.f32.mrf.mxu3 }
 0x480   : > { %8993 = vst [vmem:[#allocation77_spill] sm:$0xff] %v7412_v61 }
 0x481   : > { %8994 = vst [vmem:[#allocation78_spill] sm:$0xff] %v7414_v34 }
 0x487   : > { %v7434_v38 = vpop.f32.mrf.mxu2  ;;  %v7436_v52 = vpop.f32.mrf.mxu3 }
 0x488   : > { %8995 = vst [vmem:[#allocation79_spill] sm:$0xff] %v7434_v38 }
 0x489   : > { %8996 = vst [vmem:[#allocation80_spill] sm:$0xff] %v7436_v52 }
 0x48f   : > { %v7462_v25 = vpop.f32.mrf.mxu2  ;;  %v7464_v46 = vpop.f32.mrf.mxu3 }
 0x490   : > { %8997 = vst [vmem:[#allocation81_spill] sm:$0xff] %v7462_v25 }
 0x491   : > { %8998 = vst [vmem:[#allocation82_spill] sm:$0xff] %v7464_v46 }
 0x497   : > { %v7490_v46 = vpop.f32.mrf.mxu2  ;;  %v7492_v25 = vpop.f32.mrf.mxu3 }
 0x498   : > { %8999 = vst [vmem:[#allocation83_spill] sm:$0xff] %v7490_v46  ;;  %v2680_v46 = vpop.f32.mrf.mxu1 }
 0x499   : > { %9000 = vst [vmem:[#allocation84_spill] sm:$0xff] %v7492_v25  ;;  %v2628_v25 = vpop.f32.mrf.mxu0  ;;  %v2681_v13 = vadd.f32 %v7532_v45, %v2680_v46 }
 0x49a   : > { %v2629_v35 = vadd.f32 %v7532_v45, %v2628_v25 }
 0x49b   : > { %v2701_v61 = vmax.f32 %v2681_v13, 0.0 }
 0x49c   : > { %v2649_v34 = vmax.f32 %v2629_v35, 0.0 }
 0x49e   : > { %v2708_v59 = vadd.f32 %v2701_v61, %v2649_v34 }
 0x49f   : > { %v7518_v3 = vpop.f32.mrf.mxu2  ;;  %v7520_v55 = vpop.f32.mrf.mxu3 }
 0x4a0   : > { %9001 = vst [vmem:[#allocation85_spill] sm:$0xff] %v7518_v3 }
 0x4a1   : > { %9002 = vst [vmem:[#allocation86_spill] sm:$0xff] %v7520_v55  ;;  %v2631_v3 = vpop.f32.mrf.mxu0  ;;  %v2683_v55 = vpop.f32.mrf.mxu1 }
 0x4a2   : > { %v2632_v29 = vadd.f32 %v7532_v45, %v2631_v3  ;;  %v2684_v63 = vadd.f32 %v7532_v45, %v2683_v55 }
 0x4a4   : > { %v2650_v25 = vmax.f32 %v2632_v29, 0.0  ;;  %v2702_v1 = vmax.f32 %v2684_v63, 0.0 }
 0x4a7   : > { %v7528_v52 = vpop.f32.mrf.mxu2  ;;  %v7530_v38 = vpop.f32.mrf.mxu3 }
 0x4a8   : > { %9003 = vst [vmem:[#allocation87_spill] sm:$0xff] %v7528_v52 }
 0x4a9   : > { %9004 = vst [vmem:[#allocation88_spill] sm:$0xff] %v7530_v38  ;;  %v2634_v31 = vpop.f32.mrf.mxu0  ;;  %v2686_v37 = vpop.f32.mrf.mxu1  ;;  %v2709_v38 = vadd.f32 %v2702_v1, %v2650_v25  ;;  %v2948_v1 = vld [vmem:[#allocation6 + $0x1c] sm:$0x7] }
 0x4aa   : > { %v2635_v3 = vadd.f32 %v7532_v45, %v2634_v31  ;;  %5118 = vmatpush.msk.msra.mxu2 %vm478_vm0, %v2948_v1  ;;  %5126 = vmatpush.msk.msra.mxu3 %vm478_vm0, %v2948_v1 }
 0x4ab   : > { %5134 = vmatpush.msk.msrb.mxu0 %vm478_vm0, %v2948_v1  ;;  %5142 = vmatpush.msk.msrb.mxu1 %vm478_vm0, %v2948_v1 }
 0x4ac   : > { %v2651_v63 = vmax.f32 %v2635_v3, 0.0  ;;  %5119 = vmatmul.msk.f32.vlgmr.msra.gmra.mxu2 %vm456_vm1, %v7263_v4  ;;  %5127 = vmatmul.msk.f32.vlgmr.msra.gmra.mxu3 %vm456_vm1, %v7268_v36 }
 0x4af   : > { %v7534_v42 = vpop.f32.mrf.mxu2  ;;  %v7536_v18 = vpop.f32.mrf.mxu3 }
 0x4b0   : > { %9005 = vst [vmem:[#allocation89_spill] sm:$0xff] %v7534_v42 }
 0x4b1   : > { %9006 = vst [vmem:[#allocation90_spill] sm:$0xff] %v7536_v18  ;;  %v2637_v13 = vpop.f32.mrf.mxu0  ;;  %v2689_v58 = vpop.f32.mrf.mxu1 }
 0x4b2   : > { %v2690_v31 = vadd.f32 %v7532_v45, %v2689_v58 }
 0x4b4   : > { %5120 = vmatmul.msk.f32.gmra.mxu2 %vm456_vm1, %v7277_v9  ;;  %5128 = vmatmul.msk.f32.gmra.mxu3 %vm456_vm1, %v7282_v11 }
 0x4b7   : > { %v2732_v21 = vpop.f32.mrf.mxu2  ;;  %v2784_v33 = vpop.f32.mrf.mxu3 }
 0x4b8   : > { %v2733_v39 = vadd.f32 %v7532_v45, %v2732_v21  ;;  %v2785_v6 = vadd.f32 %v7532_v45, %v2784_v33  ;;  %v2687_v33 = vadd.f32 %v7532_v45, %v2686_v37 }
 0x4b9   : > { %v2640_v37 = vpop.f32.mrf.mxu0  ;;  %v2692_v25 = vpop.f32.mrf.mxu1 }
 0x4ba   : > { %v2753_v18 = vmax.f32 %v2733_v39, 0.0  ;;  %v2805_v42 = vmax.f32 %v2785_v6, 0.0  ;;  %v2703_v29 = vmax.f32 %v2687_v33, 0.0 }
 0x4bc   : > { %v2760_v46 = vadd.f32 %v2753_v18, %v2708_v59  ;;  %5121 = vmatmul.msk.f32.gmra.mxu2 %vm456_vm1, %v7291_v17  ;;  %5129 = vmatmul.msk.f32.gmra.mxu3 %vm456_vm1, %v7296_v5 }
 0x4be   : > { %v2812_v35 = vadd.f32 %v2805_v42, %v2760_v46  ;;  %v2638_v42 = vadd.f32 %v7532_v45, %v2637_v13  ;;  %v2704_v13 = vmax.f32 %v2690_v31, 0.0 }
 0x4bf   : > { %v2735_v52 = vpop.f32.mrf.mxu2  ;;  %v2787_v10 = vpop.f32.mrf.mxu3 }
 0x4c0   : > { %v2819_v0 = vmul.f32 0.25, %v2812_v35  ;;  %v2736_v61 = vadd.f32 %v7532_v45, %v2735_v52  ;;  %v2788_v21 = vadd.f32 %v7532_v45, %v2787_v10  ;;  %v2710_v10 = vadd.f32 %v2703_v29, %v2651_v63 }
 0x4c1   : > { %v2652_v35 = vmax.f32 %v2638_v42, 0.0  ;;  %v2695_v42 = vpop.f32.mrf.mxu1 }
 0x4c2   : > { %v2754_v39 = vmax.f32 %v2736_v61, 0.0  ;;  %v2806_v6 = vmax.f32 %v2788_v21, 0.0  ;;  %2874 = vmatmul.f32.vlgmr.msra.gmra.mxu0 %v2819_v0  ;;  %2912 = vmatmul.f32.vlgmr.msra.gmra.mxu1 %v2819_v0 }
 0x4c3   : > { %v2711_v21 = vadd.f32 %v2704_v13, %v2652_v35 }
 0x4c4   : > { %v2761_v59 = vadd.f32 %v2754_v39, %v2709_v38  ;;  %5122 = vmatmul.msk.f32.gmra.mxu2 %vm456_vm1, %v7303_v62  ;;  %5130 = vmatmul.msk.f32.gmra.mxu3 %vm456_vm1, %v7308_v7 }
 0x4c6   : > { %v2813_v18 = vadd.f32 %v2806_v6, %v2761_v59  ;;  %v2641_v6 = vadd.f32 %v7532_v45, %v2640_v37 }
 0x4c7   : > { %v2738_v34 = vpop.f32.mrf.mxu2  ;;  %v2790_v55 = vpop.f32.mrf.mxu3 }
 0x4c8   : > { %v2739_v52 = vadd.f32 %v7532_v45, %v2738_v34  ;;  %v2791_v0 = vadd.f32 %v7532_v45, %v2790_v55  ;;  %v2820_v38 = vmul.f32 0.25, %v2813_v18  ;;  %v2693_v18 = vadd.f32 %v7532_v45, %v2692_v25  ;;  %v2643_v55 = vpop.f32.mrf.mxu0 }
 0x4c9   : > { %v2644_v25 = vadd.f32 %v7532_v45, %v2643_v55 }
 0x4ca   : > { %v2755_v58 = vmax.f32 %v2739_v52, 0.0  ;;  %v2807_v46 = vmax.f32 %v2791_v0, 0.0  ;;  %2877 = vmatmul.f32.gmra.mxu0 %v2820_v38  ;;  %2915 = vmatmul.f32.gmra.mxu1 %v2820_v38  ;;  %v2705_v52 = vmax.f32 %v2693_v18, 0.0 }
 0x4cc   : > { %v2762_v3 = vadd.f32 %v2755_v58, %v2710_v10  ;;  %v2653_v10 = vmax.f32 %v2641_v6, 0.0  ;;  %v2696_v58 = vadd.f32 %v7532_v45, %v2695_v42  ;;  %5123 = vmatmul.msk.f32.gmra.mxu2 %vm456_vm1, %v7313_v48  ;;  %5131 = vmatmul.msk.f32.gmra.mxu3 %vm456_vm1, %v7318_v49 }
 0x4ce   : > { %v2814_v61 = vadd.f32 %v2807_v46, %v2762_v3  ;;  %v2712_v46 = vadd.f32 %v2705_v52, %v2653_v10 }
 0x4cf   : > { %v2741_v33 = vpop.f32.mrf.mxu2  ;;  %v2793_v39 = vpop.f32.mrf.mxu3 }
 0x4d0   : > { %v2742_v59 = vadd.f32 %v7532_v45, %v2741_v33  ;;  %v2794_v63 = vadd.f32 %v7532_v45, %v2793_v39  ;;  %v2821_v29 = vmul.f32 0.25, %v2814_v61  ;;  %v2654_v33 = vmax.f32 %v2644_v25, 0.0 }
 0x4d1   : > { %v2706_v39 = vmax.f32 %v2696_v58, 0.0 }
 0x4d2   : > { %v2756_v1 = vmax.f32 %v2742_v59, 0.0  ;;  %v2808_v34 = vmax.f32 %v2794_v63, 0.0  ;;  %2880 = vmatmul.f32.gmra.mxu0 %v2821_v29  ;;  %2918 = vmatmul.f32.gmra.mxu1 %v2821_v29  ;;  %v2646_v59 = vpop.f32.mrf.mxu0  ;;  %v2698_v63 = vpop.f32.mrf.mxu1 }
 0x4d3   : > { %v2713_v18 = vadd.f32 %v2706_v39, %v2654_v33  ;;  %v2647_v55 = vadd.f32 %v7532_v45, %v2646_v59  ;;  %v2699_v52 = vadd.f32 %v7532_v45, %v2698_v63 }
 0x4d4   : > { %v2763_v31 = vadd.f32 %v2756_v1, %v2711_v21  ;;  %5124 = vmatmul.msk.f32.gmra.mxu2 %vm456_vm1, %v7323_v50  ;;  %5132 = vmatmul.msk.f32.gmra.mxu3 %vm456_vm1, %v7328_v51 }
 0x4d5   : > { %v2655_v25 = vmax.f32 %v2647_v55, 0.0  ;;  %v2707_v58 = vmax.f32 %v2699_v52, 0.0  ;;  %v3199_v55 = vld [vmem:[%s8926_s5 + $0x7e0] sm:$0xff] }
 0x4d6   : > { %v2815_v0 = vadd.f32 %v2808_v34, %v2763_v31 }
 0x4d7   : > { %v2744_v38 = vpop.f32.mrf.mxu2  ;;  %v2796_v37 = vpop.f32.mrf.mxu3 }
 0x4d8   : > { %v2745_v35 = vadd.f32 %v7532_v45, %v2744_v38  ;;  %v2797_v13 = vadd.f32 %v7532_v45, %v2796_v37  ;;  %v2822_v3 = vmul.f32 0.25, %v2815_v0 }
 0x4da   : > { %v2757_v61 = vmax.f32 %v2745_v35, 0.0  ;;  %v2809_v21 = vmax.f32 %v2797_v13, 0.0  ;;  %2883 = vmatmul.f32.gmra.mxu0 %v2822_v3  ;;  %2921 = vmatmul.f32.gmra.mxu1 %v2822_v3  ;;  %v2714_v3 = vadd.f32 %v2707_v58, %v2655_v25  ;;  %v3193_v25 = vld [vmem:[%s8926_s5 + $0x7b0] sm:$0xff]  ;;  %v3194_v58 = vld [vmem:[%s8926_s5 + $0x7b8] sm:$0xff] }
 0x4dc   : > { %v2764_v6 = vadd.f32 %v2757_v61, %v2712_v46  ;;  %5125 = vmatmul.msk.f32.gmra.mxu2 %vm456_vm1, %v7343_v14  ;;  %5133 = vmatmul.msk.f32.gmra.mxu3 %vm456_vm1, %v7348_v15 }
 0x4de   : > { %v2816_v29 = vadd.f32 %v2809_v21, %v2764_v6 }
 0x4df   : > { %v2747_v1 = vpop.f32.mrf.mxu2  ;;  %v2799_v34 = vpop.f32.mrf.mxu3 }
 0x4e0   : > { %v2748_v42 = vadd.f32 %v7532_v45, %v2747_v1  ;;  %v2800_v31 = vadd.f32 %v7532_v45, %v2799_v34  ;;  %v2823_v10 = vmul.f32 0.25, %v2816_v29  ;;  %v3201_v1 = vld [vmem:[%s8926_s5 + $0x7f0] sm:$0xff]  ;;  %v3202_v34 = vld [vmem:[%s8926_s5 + $0x7f8] sm:$0xff] }
 0x4e1   : > { %3203 = vmatpush.msrb.mxu2 %v3201_v1  ;;  %3241 = vmatpush.msrb.mxu3 %v3202_v34  ;;  %v3181_v1 = vld [vmem:[%s8926_s5 + $0x750] sm:$0xff]  ;;  %v3182_v34 = vld [vmem:[%s8926_s5 + $0x758] sm:$0xff] }
 0x4e2   : > { %v2758_v0 = vmax.f32 %v2748_v42, 0.0  ;;  %v2810_v38 = vmax.f32 %v2800_v31, 0.0  ;;  %2886 = vmatmul.f32.gmra.mxu0 %v2823_v10  ;;  %2924 = vmatmul.f32.gmra.mxu1 %v2823_v10  ;;  %v3200_v42 = vld [vmem:[%s8926_s5 + $0x7e8] sm:$0xff]  ;;  %v3197_v31 = vld [vmem:[%s8926_s5 + $0x7d0] sm:$0xff]  ;;  %v3198_v10 = vld [vmem:[%s8926_s5 + $0x7d8] sm:$0xff] }
 0x4e3   : > { %3204 = vmatpush.msrb.mxu2 %v3199_v55  ;;  %3242 = vmatpush.msrb.mxu3 %v3200_v42 }
 0x4e4   : > { %v2765_v37 = vadd.f32 %v2758_v0, %v2713_v18 }
 0x4e5   : > { %3205 = vmatpush.msrb.mxu2 %v3197_v31  ;;  %3243 = vmatpush.msrb.mxu3 %v3198_v10  ;;  %v3179_v31 = vld [vmem:[%s8926_s5 + $0x740] sm:$0xff]  ;;  %v3180_v10 = vld [vmem:[%s8926_s5 + $0x748] sm:$0xff] }
 0x4e6   : > { %v2817_v46 = vadd.f32 %v2810_v38, %v2765_v37  ;;  %v3195_v38 = vld [vmem:[%s8926_s5 + $0x7c0] sm:$0xff]  ;;  %v3196_v37 = vld [vmem:[%s8926_s5 + $0x7c8] sm:$0xff] }
 0x4e7   : > { %v2750_v35 = vpop.f32.mrf.mxu2  ;;  %v2802_v13 = vpop.f32.mrf.mxu3  ;;  %3206 = vmatpush.msrb.mxu2 %v3195_v38  ;;  %3244 = vmatpush.msrb.mxu3 %v3196_v37  ;;  %v3177_v38 = vld [vmem:[%s8926_s5 + $0x730] sm:$0xff]  ;;  %v3178_v37 = vld [vmem:[%s8926_s5 + $0x738] sm:$0xff] }
 0x4e8   : > { %v2751_v61 = vadd.f32 %v7532_v45, %v2750_v35  ;;  %v2803_v21 = vadd.f32 %v7532_v45, %v2802_v13  ;;  %v2824_v33 = vmul.f32 0.25, %v2817_v46  ;;  %v3191_v46 = vld [vmem:[%s8926_s5 + $0x7a0] sm:$0xff]  ;;  %v3192_v35 = vld [vmem:[%s8926_s5 + $0x7a8] sm:$0xff]  ;;  %v3189_v13 = vld [vmem:[%s8926_s5 + $0x790] sm:$0xff] }
 0x4e9   : > { %3207 = vmatpush.msrb.mxu2 %v3193_v25  ;;  %3245 = vmatpush.msrb.mxu3 %v3194_v58  ;;  %v3175_v25 = vld [vmem:[%s8926_s5 + $0x720] sm:$0xff]  ;;  %v3176_v58 = vld [vmem:[%s8926_s5 + $0x728] sm:$0xff] }
 0x4ea   : > { %v2759_v39 = vmax.f32 %v2751_v61, 0.0  ;;  %v2811_v6 = vmax.f32 %v2803_v21, 0.0  ;;  %2889 = vmatmul.f32.gmra.mxu0 %v2824_v33  ;;  %2927 = vmatmul.f32.gmra.mxu1 %v2824_v33  ;;  %v3187_v33 = vld [vmem:[%s8926_s5 + $0x780] sm:$0xff] }
 0x4eb   : > { %3208 = vmatpush.msrb.mxu2 %v3191_v46  ;;  %3246 = vmatpush.msrb.mxu3 %v3192_v35  ;;  %v3173_v46 = vld [vmem:[%s8926_s5 + $0x710] sm:$0xff]  ;;  %v3174_v35 = vld [vmem:[%s8926_s5 + $0x718] sm:$0xff] }
 0x4ec   : > { %v2766_v59 = vadd.f32 %v2759_v39, %v2714_v3  ;;  %v3190_v3 = vld [vmem:[%s8926_s5 + $0x798] sm:$0xff]  ;;  %v3188_v39 = vld [vmem:[%s8926_s5 + $0x788] sm:$0xff] }
 0x4ed   : > { %3209 = vmatpush.msrb.mxu2 %v3189_v13  ;;  %3247 = vmatpush.msrb.mxu3 %v3190_v3 }
 0x4ee   : > { %v2818_v63 = vadd.f32 %v2811_v6, %v2766_v59  ;;  %v3185_v6 = vld [vmem:[%s8926_s5 + $0x770] sm:$0xff]  ;;  %v3186_v59 = vld [vmem:[%s8926_s5 + $0x778] sm:$0xff] }
 0x4ef   : > { %3210 = vmatpush.msrb.mxu2 %v3187_v33  ;;  %3248 = vmatpush.msrb.mxu3 %v3188_v39 }
 0x4f0   : > { %v2825_v29 = vmul.f32 0.25, %v2818_v63  ;;  %v3183_v63 = vld [vmem:[%s8926_s5 + $0x760] sm:$0xff] }
 0x4f1   : > { %3211 = vmatpush.msrb.mxu2 %v3185_v6  ;;  %3249 = vmatpush.msrb.mxu3 %v3186_v59  ;;  %v3171_v6 = vld [vmem:[%s8926_s5 + $0x700] sm:$0xff]  ;;  %v3172_v59 = vld [vmem:[%s8926_s5 + $0x708] sm:$0xff] }
 0x4f2   : > { %2892 = vmatmul.f32.gmra.mxu0 %v2825_v29  ;;  %2930 = vmatmul.f32.gmra.mxu1 %v2825_v29  ;;  %v3184_v29 = vld [vmem:[%s8926_s5 + $0x768] sm:$0xff] }
 0x4f3   : > { %3212 = vmatpush.msrb.mxu2 %v3183_v63  ;;  %3250 = vmatpush.msrb.mxu3 %v3184_v29 }
 0x4f5   : > { %3213 = vmatpush.msrb.mxu2 %v3181_v1  ;;  %3251 = vmatpush.msrb.mxu3 %v3182_v34 }
 0x4f7   : > { %3214 = vmatpush.msrb.mxu2 %v3179_v31  ;;  %3252 = vmatpush.msrb.mxu3 %v3180_v10  ;;  %v7746_v31 = vld [vmem:[#allocation7 + $0x7] ss:$0 sm:$0xff] }
 0x4f9   : > { %3215 = vmatpush.msrb.mxu2 %v3177_v38  ;;  %3253 = vmatpush.msrb.mxu3 %v3178_v37 }
 0x4fa   : > { %5135 = vmatmul.msk.f32.vlgmr.msrb.gmra.mxu0 %vm456_vm1, %v7333_v56  ;;  %5143 = vmatmul.msk.f32.vlgmr.msrb.gmra.mxu1 %vm456_vm1, %v7338_v57 }
 0x4fb   : > { %3216 = vmatpush.msrb.mxu2 %v3175_v25  ;;  %3254 = vmatpush.msrb.mxu3 %v3176_v58 }
 0x4fd   : > { %3217 = vmatpush.msrb.mxu2 %v3173_v46  ;;  %3255 = vmatpush.msrb.mxu3 %v3174_v35 }
 0x4ff   : > { %3218 = vmatpush.msrb.mxu2 %v3171_v6  ;;  %3256 = vmatpush.msrb.mxu3 %v3172_v59 }
 0x502   : > { %5136 = vmatmul.msk.f32.gmra.mxu0 %vm456_vm1, %v7353_v20  ;;  %5144 = vmatmul.msk.f32.gmra.mxu1 %vm456_vm1, %v7358_v22 }
 0x50a   : > { %5137 = vmatmul.msk.f32.gmra.mxu0 %vm456_vm1, %v7363_v23  ;;  %5145 = vmatmul.msk.f32.gmra.mxu1 %vm456_vm1, %v7368_v26 }
 0x512   : > { %5138 = vmatmul.msk.f32.gmra.mxu0 %vm456_vm1, %v7373_v27  ;;  %5146 = vmatmul.msk.f32.gmra.mxu1 %vm456_vm1, %v7378_v28 }
 0x51a   : > { %5139 = vmatmul.msk.f32.gmra.mxu0 %vm456_vm1, %v7383_v19  ;;  %5147 = vmatmul.msk.f32.gmra.mxu1 %vm456_vm1, %v7388_v53 }
 0x522   : > { %5140 = vmatmul.msk.f32.gmra.mxu0 %vm456_vm1, %v7393_v47  ;;  %5148 = vmatmul.msk.f32.gmra.mxu1 %vm456_vm1, %v7398_v44 }
 0x52a   : > { %5141 = vmatmul.msk.f32.gmra.mxu0 %vm456_vm1, %v7403_v43  ;;  %5149 = vmatmul.msk.f32.gmra.mxu1 %vm456_vm1, %v7408_v30 }
 0x52f   : > { %v2973_v33 = vpop.f32.mrf.mxu2  ;;  %v3025_v39 = vpop.f32.mrf.mxu3 }
 0x530   : > { %v2974_v37 = vadd.f32 %v7746_v31, %v2973_v33  ;;  %v3026_v25 = vadd.f32 %v7746_v31, %v3025_v39 }
 0x532   : > { %v2994_v58 = vmax.f32 %v2974_v37, 0.0  ;;  %v3046_v46 = vmax.f32 %v3026_v25, 0.0 }
 0x537   : > { %v2976_v1 = vpop.f32.mrf.mxu2  ;;  %v3028_v34 = vpop.f32.mrf.mxu3 }
 0x53f   : > { %v7626_v45 = vpop.f32.mrf.mxu0  ;;  %v7628_v18 = vpop.f32.mrf.mxu1 }
 0x540   : > { %9007 = vst [vmem:[#allocation91_spill] sm:$0xff] %v7626_v45  ;;  %v2979_v35 = vpop.f32.mrf.mxu2  ;;  %v3031_v6 = vpop.f32.mrf.mxu3 }
 0x541   : > { %9008 = vst [vmem:[#allocation92_spill] sm:$0xff] %v7628_v18 }
 0x547   : > { %v7648_v52 = vpop.f32.mrf.mxu0  ;;  %v7650_v0 = vpop.f32.mrf.mxu1 }
 0x548   : > { %9009 = vst [vmem:[#allocation93_spill] sm:$0xff] %v7648_v52  ;;  %v2982_v25 = vpop.f32.mrf.mxu2  ;;  %v3034_v45 = vpop.f32.mrf.mxu3 }
 0x549   : > { %9010 = vst [vmem:[#allocation94_spill] sm:$0xff] %v7650_v0 }
 0x54f   : > { %v7676_v61 = vpop.f32.mrf.mxu0  ;;  %v7678_v21 = vpop.f32.mrf.mxu1 }
 0x550   : > { %9011 = vst [vmem:[#allocation95_spill] sm:$0xff] %v7676_v61 }
 0x551   : > { %9012 = vst [vmem:[#allocation96_spill] sm:$0xff] %v7678_v21 }
 0x557   : > { %v7704_v55 = vpop.f32.mrf.mxu0  ;;  %v7706_v42 = vpop.f32.mrf.mxu1 }
 0x558   : > { %9013 = vst [vmem:[#allocation97_spill] sm:$0xff] %v7704_v55  ;;  %v3053_v55 = vadd.f32 %v3046_v46, %v2994_v58  ;;  %v2983_v46 = vadd.f32 %v7746_v31, %v2982_v25 }
 0x559   : > { %9014 = vst [vmem:[#allocation98_spill] sm:$0xff] %v7706_v42  ;;  %v3029_v42 = vadd.f32 %v7746_v31, %v3028_v34 }
 0x55b   : > { %v3047_v18 = vmax.f32 %v3029_v42, 0.0 }
 0x55f   : > { %v7732_v13 = vpop.f32.mrf.mxu0  ;;  %v7734_v3 = vpop.f32.mrf.mxu1 }
 0x560   : > { %9015 = vst [vmem:[#allocation99_spill] sm:$0xff] %v7732_v13  ;;  %v2977_v13 = vadd.f32 %v7746_v31, %v2976_v1  ;;  %v2980_v1 = vadd.f32 %v7746_v31, %v2979_v35  ;;  %v3035_v35 = vadd.f32 %v7746_v31, %v3034_v45 }
 0x561   : > { %9016 = vst [vmem:[#allocation100_spill] sm:$0xff] %v7734_v3 }
 0x562   : > { %v2995_v33 = vmax.f32 %v2977_v13, 0.0 }
 0x567   : > { %v7742_v63 = vpop.f32.mrf.mxu0  ;;  %v7744_v29 = vpop.f32.mrf.mxu1 }
 0x568   : > { %9017 = vst [vmem:[#allocation101_spill] sm:$0xff] %v7742_v63 }
 0x569   : > { %9018 = vst [vmem:[#allocation102_spill] sm:$0xff] %v7744_v29 }
 0x56f   : > { %v7748_v10 = vpop.f32.mrf.mxu0  ;;  %v7750_v38 = vpop.f32.mrf.mxu1 }
 0x570   : > { %9019 = vst [vmem:[#allocation103_spill] sm:$0xff] %v7748_v10 }
 0x571   : > { %9020 = vst [vmem:[#allocation104_spill] sm:$0xff] %v7750_v38  ;;  %v3054_v38 = vadd.f32 %v3047_v18, %v2995_v33  ;;  %v2985_v33 = vpop.f32.mrf.mxu2 }
 0x577   : > { %v3077_v59 = vpop.f32.mrf.mxu0  ;;  %v3129_v3 = vpop.f32.mrf.mxu1 }
 0x578   : > { %v3078_v21 = vadd.f32 %v7746_v31, %v3077_v59  ;;  %v3130_v61 = vadd.f32 %v7746_v31, %v3129_v3  ;;  %v3032_v3 = vadd.f32 %v7746_v31, %v3031_v6 }
 0x57a   : > { %v3098_v0 = vmax.f32 %v3078_v21, 0.0  ;;  %v3150_v52 = vmax.f32 %v3130_v61, 0.0 }
 0x57c   : > { %v3105_v39 = vadd.f32 %v3098_v0, %v3053_v55  ;;  %v3048_v55 = vmax.f32 %v3032_v3, 0.0  ;;  %v3293_v3 = vld [vmem:[#allocation6 + $0x20] sm:$0x7] }
 0x57d   : > { %5166 = vmatpush.msk.msra.mxu2 %vm478_vm0, %v3293_v3  ;;  %5174 = vmatpush.msk.msra.mxu3 %vm478_vm0, %v3293_v3 }
 0x57e   : > { %v3157_v37 = vadd.f32 %v3150_v52, %v3105_v39  ;;  %v2996_v52 = vmax.f32 %v2980_v1, 0.0  ;;  %v3037_v39 = vpop.f32.mrf.mxu3  ;;  %v3049_v1 = vmax.f32 %v3035_v35, 0.0  ;;  %5150 = vmatpush.msk.msra.mxu0 %vm478_vm0, %v3293_v3  ;;  %5158 = vmatpush.msk.msra.mxu1 %vm478_vm0, %v3293_v3 }
 0x57f   : > { %v3080_v10 = vpop.f32.mrf.mxu0  ;;  %v3132_v29 = vpop.f32.mrf.mxu1  ;;  %5151 = vmatmul.msk.f32.vlgmr.msra.gmra.mxu0 %vm456_vm1, %v7263_v4  ;;  %5159 = vmatmul.msk.f32.vlgmr.msra.gmra.mxu1 %vm456_vm1, %v7268_v36 }
 0x580   : > { %v3164_v63 = vmul.f32 0.25, %v3157_v37  ;;  %v3081_v34 = vadd.f32 %v7746_v31, %v3080_v10  ;;  %v3133_v58 = vadd.f32 %v7746_v31, %v3132_v29  ;;  %v3055_v59 = vadd.f32 %v3048_v55, %v2996_v52 }
 0x582   : > { %v3099_v21 = vmax.f32 %v3081_v34, 0.0  ;;  %v3151_v61 = vmax.f32 %v3133_v58, 0.0  ;;  %3219 = vmatmul.f32.vlgmr.msrb.gmra.mxu2 %v3164_v63  ;;  %3257 = vmatmul.f32.vlgmr.msrb.gmra.mxu3 %v3164_v63 }
 0x584   : > { %v3106_v0 = vadd.f32 %v3099_v21, %v3054_v38  ;;  %v2997_v38 = vmax.f32 %v2983_v46, 0.0  ;;  %v2988_v46 = vpop.f32.mrf.mxu2 }
 0x586   : > { %v3158_v42 = vadd.f32 %v3151_v61, %v3106_v0  ;;  %v3056_v25 = vadd.f32 %v3049_v1, %v2997_v38  ;;  %v2986_v61 = vadd.f32 %v7746_v31, %v2985_v33  ;;  %v3040_v35 = vpop.f32.mrf.mxu3 }
 0x587   : > { %v3083_v18 = vpop.f32.mrf.mxu0  ;;  %v3135_v13 = vpop.f32.mrf.mxu1  ;;  %5152 = vmatmul.msk.f32.gmra.mxu0 %vm456_vm1, %v7277_v9  ;;  %5160 = vmatmul.msk.f32.gmra.mxu1 %vm456_vm1, %v7282_v11 }
 0x588   : > { %v3084_v10 = vadd.f32 %v7746_v31, %v3083_v18  ;;  %v3136_v29 = vadd.f32 %v7746_v31, %v3135_v13  ;;  %v3165_v6 = vmul.f32 0.25, %v3158_v42  ;;  %v3038_v42 = vadd.f32 %v7746_v31, %v3037_v39 }
 0x58a   : > { %v3100_v37 = vmax.f32 %v3084_v10, 0.0  ;;  %v3152_v63 = vmax.f32 %v3136_v29, 0.0  ;;  %3222 = vmatmul.f32.gmra.mxu2 %v3165_v6  ;;  %3260 = vmatmul.f32.gmra.mxu3 %v3165_v6  ;;  %v2998_v10 = vmax.f32 %v2986_v61, 0.0  ;;  %v3050_v29 = vmax.f32 %v3038_v42, 0.0 }
 0x58c   : > { %v3107_v34 = vadd.f32 %v3100_v37, %v3055_v59  ;;  %v2989_v37 = vadd.f32 %v7746_v31, %v2988_v46  ;;  %v3057_v4 = vadd.f32 %v3050_v29, %v2998_v10 }
 0x58e   : > { %v3159_v58 = vadd.f32 %v3152_v63, %v3107_v34  ;;  %v3041_v63 = vadd.f32 %v7746_v31, %v3040_v35  ;;  %v2999_v3 = vmax.f32 %v2989_v37, 0.0  ;;  %v3043_v61 = vpop.f32.mrf.mxu3 }
 0x58f   : > { %v3086_v21 = vpop.f32.mrf.mxu0  ;;  %v3138_v45 = vpop.f32.mrf.mxu1  ;;  %v3044_v46 = vadd.f32 %v7746_v31, %v3043_v61  ;;  %5153 = vmatmul.msk.f32.gmra.mxu0 %vm456_vm1, %v7291_v17  ;;  %5161 = vmatmul.msk.f32.gmra.mxu1 %vm456_vm1, %v7296_v5  ;;  %v3527_v61 = vld [vmem:[%s8926_s5 + $0x858] sm:$0xff] }
 0x590   : > { %v3087_v0 = vadd.f32 %v7746_v31, %v3086_v21  ;;  %v3139_v52 = vadd.f32 %v7746_v31, %v3138_v45  ;;  %v3166_v55 = vmul.f32 0.25, %v3159_v58  ;;  %v2991_v45 = vpop.f32.mrf.mxu2 }
 0x592   : > { %v3101_v18 = vmax.f32 %v3087_v0, 0.0  ;;  %v3153_v13 = vmax.f32 %v3139_v52, 0.0  ;;  %3225 = vmatmul.f32.gmra.mxu2 %v3166_v55  ;;  %3263 = vmatmul.f32.gmra.mxu3 %v3166_v55 }
 0x594   : > { %v3108_v59 = vadd.f32 %v3101_v18, %v3056_v25  ;;  %v3051_v25 = vmax.f32 %v3041_v63, 0.0  ;;  %v2992_v18 = vadd.f32 %v7746_v31, %v2991_v45  ;;  %v3526_v45 = vld [vmem:[%s8926_s5 + $0x850] sm:$0xff] }
 0x596   : > { %v3160_v6 = vadd.f32 %v3153_v13, %v3108_v59  ;;  %v3058_v52 = vadd.f32 %v3051_v25, %v2999_v3  ;;  %v3000_v29 = vmax.f32 %v2992_v18, 0.0  ;;  %v3531_v3 = vld [vmem:[%s8926_s5 + $0x878] sm:$0xff]  ;;  %v3528_v25 = vld [vmem:[%s8926_s5 + $0x860] sm:$0xff]  ;;  %v3522_v18 = vld [vmem:[%s8926_s5 + $0x830] sm:$0xff] }
 0x597   : > { %v3089_v33 = vpop.f32.mrf.mxu0  ;;  %v3141_v39 = vpop.f32.mrf.mxu1  ;;  %5154 = vmatmul.msk.f32.gmra.mxu0 %vm456_vm1, %v7303_v62  ;;  %5162 = vmatmul.msk.f32.gmra.mxu1 %vm456_vm1, %v7308_v7 }
 0x598   : > { %v3090_v38 = vadd.f32 %v7746_v31, %v3089_v33  ;;  %v3142_v36 = vadd.f32 %v7746_v31, %v3141_v39  ;;  %v3167_v1 = vmul.f32 0.25, %v3160_v6  ;;  %v3052_v6 = vmax.f32 %v3044_v46, 0.0  ;;  %v3518_v46 = vld [vmem:[%s8926_s5 + $0x810] sm:$0xff] }
 0x59a   : > { %v3102_v34 = vmax.f32 %v3090_v38, 0.0  ;;  %v3154_v58 = vmax.f32 %v3142_v36, 0.0  ;;  %3228 = vmatmul.f32.gmra.mxu2 %v3167_v1  ;;  %3266 = vmatmul.f32.gmra.mxu3 %v3167_v1  ;;  %v3059_v63 = vadd.f32 %v3052_v6, %v3000_v29 }
 0x59c   : > { %v3109_v21 = vadd.f32 %v3102_v34, %v3057_v4 }
 0x59e   : > { %v3161_v0 = vadd.f32 %v3154_v58, %v3109_v21  ;;  %v3529_v21 = vld [vmem:[%s8926_s5 + $0x868] sm:$0xff] }
 0x59f   : > { %v3092_v55 = vpop.f32.mrf.mxu0  ;;  %v3144_v42 = vpop.f32.mrf.mxu1  ;;  %5155 = vmatmul.msk.f32.gmra.mxu0 %vm456_vm1, %v7313_v48  ;;  %5163 = vmatmul.msk.f32.gmra.mxu1 %vm456_vm1, %v7318_v49  ;;  %v3546_v48 = vld [vmem:[%s8926_s5 + $0x8f0] sm:$0xff]  ;;  %v3547_v49 = vld [vmem:[%s8926_s5 + $0x8f8] sm:$0xff] }
 0x5a0   : > { %v3093_v9 = vadd.f32 %v7746_v31, %v3092_v55  ;;  %v3145_v13 = vadd.f32 %v7746_v31, %v3144_v42  ;;  %v3168_v11 = vmul.f32 0.25, %v3161_v0  ;;  %3548 = vmatpush.msrb.mxu0 %v3546_v48  ;;  %3586 = vmatpush.msrb.mxu1 %v3547_v49  ;;  %v3524_v55 = vld [vmem:[%s8926_s5 + $0x840] sm:$0xff]  ;;  %v3525_v42 = vld [vmem:[%s8926_s5 + $0x848] sm:$0xff] }
 0x5a2   : > { %v3103_v35 = vmax.f32 %v3093_v9, 0.0  ;;  %v3155_v59 = vmax.f32 %v3145_v13, 0.0  ;;  %3231 = vmatmul.f32.gmra.mxu2 %v3168_v11  ;;  %3269 = vmatmul.f32.gmra.mxu3 %v3168_v11  ;;  %v3523_v9 = vld [vmem:[%s8926_s5 + $0x838] sm:$0xff]  ;;  %v3520_v13 = vld [vmem:[%s8926_s5 + $0x820] sm:$0xff]  ;;  %v3521_v11 = vld [vmem:[%s8926_s5 + $0x828] sm:$0xff] }
 0x5a4   : > { %v3110_v10 = vadd.f32 %v3103_v35, %v3058_v52  ;;  %v3519_v35 = vld [vmem:[%s8926_s5 + $0x818] sm:$0xff] }
 0x5a6   : > { %v3162_v33 = vadd.f32 %v3155_v59, %v3110_v10 }
 0x5a7   : > { %v3095_v39 = vpop.f32.mrf.mxu0  ;;  %v3147_v37 = vpop.f32.mrf.mxu1  ;;  %5156 = vmatmul.msk.f32.gmra.mxu0 %vm456_vm1, %v7323_v50  ;;  %5164 = vmatmul.msk.f32.gmra.mxu1 %vm456_vm1, %v7328_v51  ;;  %v3544_v50 = vld [vmem:[%s8926_s5 + $0x8e0] sm:$0xff]  ;;  %v3545_v51 = vld [vmem:[%s8926_s5 + $0x8e8] sm:$0xff] }
 0x5a8   : > { %v3096_v4 = vadd.f32 %v7746_v31, %v3095_v39  ;;  %v3148_v38 = vadd.f32 %v7746_v31, %v3147_v37  ;;  %v3169_v36 = vmul.f32 0.25, %v3162_v33  ;;  %3549 = vmatpush.msrb.mxu0 %v3544_v50  ;;  %3587 = vmatpush.msrb.mxu1 %v3545_v51  ;;  %v3530_v31 = vld [vmem:[%s8926_s5 + $0x870] sm:$0xff]  ;;  %v3516_v33 = vld [vmem:[%s8926_s5 + $0x800] sm:$0xff]  ;;  %v3517_v39 = vld [vmem:[%s8926_s5 + $0x808] sm:$0xff] }
 0x5aa   : > { %v3104_v17 = vmax.f32 %v3096_v4, 0.0  ;;  %v3156_v5 = vmax.f32 %v3148_v38, 0.0  ;;  %3234 = vmatmul.f32.gmra.mxu2 %v3169_v36  ;;  %3272 = vmatmul.f32.gmra.mxu3 %v3169_v36  ;;  %v7960_v36 = vld [vmem:[#allocation7 + $0x8] ss:$0 sm:$0xff] }
 0x5ac   : > { %v3111_v1 = vadd.f32 %v3104_v17, %v3059_v63 }
 0x5ae   : > { %v3163_v34 = vadd.f32 %v3156_v5, %v3111_v1 }
 0x5af   : > { %5157 = vmatmul.msk.f32.gmra.mxu0 %vm456_vm1, %v7343_v14  ;;  %5165 = vmatmul.msk.f32.gmra.mxu1 %vm456_vm1, %v7348_v15 }
 0x5b0   : > { %v3170_v58 = vmul.f32 0.25, %v3163_v34 }
 0x5b2   : > { %3237 = vmatmul.f32.gmra.mxu2 %v3170_v58  ;;  %3275 = vmatmul.f32.gmra.mxu3 %v3170_v58 }
 0x5ba   : > { %5167 = vmatmul.msk.f32.vlgmr.msra.gmra.mxu2 %vm456_vm1, %v7333_v56  ;;  %5175 = vmatmul.msk.f32.vlgmr.msra.gmra.mxu3 %vm456_vm1, %v7338_v57  ;;  %v3542_v56 = vld [vmem:[%s8926_s5 + $0x8d0] sm:$0xff]  ;;  %v3543_v57 = vld [vmem:[%s8926_s5 + $0x8d8] sm:$0xff] }
 0x5bb   : > { %3550 = vmatpush.msrb.mxu0 %v3542_v56  ;;  %3588 = vmatpush.msrb.mxu1 %v3543_v57 }
 0x5c2   : > { %5168 = vmatmul.msk.f32.gmra.mxu2 %vm456_vm1, %v7353_v20  ;;  %5176 = vmatmul.msk.f32.gmra.mxu3 %vm456_vm1, %v7358_v22  ;;  %v3540_v20 = vld [vmem:[%s8926_s5 + $0x8c0] sm:$0xff]  ;;  %v3541_v22 = vld [vmem:[%s8926_s5 + $0x8c8] sm:$0xff] }
 0x5c3   : > { %3551 = vmatpush.msrb.mxu0 %v3540_v20  ;;  %3589 = vmatpush.msrb.mxu1 %v3541_v22 }
 0x5ca   : > { %5169 = vmatmul.msk.f32.gmra.mxu2 %vm456_vm1, %v7363_v23  ;;  %5177 = vmatmul.msk.f32.gmra.mxu3 %vm456_vm1, %v7368_v26  ;;  %v3538_v23 = vld [vmem:[%s8926_s5 + $0x8b0] sm:$0xff]  ;;  %v3539_v26 = vld [vmem:[%s8926_s5 + $0x8b8] sm:$0xff] }
 0x5cb   : > { %3552 = vmatpush.msrb.mxu0 %v3538_v23  ;;  %3590 = vmatpush.msrb.mxu1 %v3539_v26 }
 0x5d2   : > { %5170 = vmatmul.msk.f32.gmra.mxu2 %vm456_vm1, %v7373_v27  ;;  %5178 = vmatmul.msk.f32.gmra.mxu3 %vm456_vm1, %v7378_v28  ;;  %v3536_v27 = vld [vmem:[%s8926_s5 + $0x8a0] sm:$0xff]  ;;  %v3537_v28 = vld [vmem:[%s8926_s5 + $0x8a8] sm:$0xff] }
 0x5d3   : > { %3553 = vmatpush.msrb.mxu0 %v3536_v27  ;;  %3591 = vmatpush.msrb.mxu1 %v3537_v28 }
 0x5da   : > { %5171 = vmatmul.msk.f32.gmra.mxu2 %vm456_vm1, %v7383_v19  ;;  %5179 = vmatmul.msk.f32.gmra.mxu3 %vm456_vm1, %v7388_v53  ;;  %v3534_v19 = vld [vmem:[%s8926_s5 + $0x890] sm:$0xff]  ;;  %v3535_v53 = vld [vmem:[%s8926_s5 + $0x898] sm:$0xff] }
 0x5db   : > { %3554 = vmatpush.msrb.mxu0 %v3534_v19  ;;  %3592 = vmatpush.msrb.mxu1 %v3535_v53 }
 0x5e2   : > { %5172 = vmatmul.msk.f32.gmra.mxu2 %vm456_vm1, %v7393_v47  ;;  %5180 = vmatmul.msk.f32.gmra.mxu3 %vm456_vm1, %v7398_v44 }
 0x5ea   : > { %5173 = vmatmul.msk.f32.gmra.mxu2 %vm456_vm1, %v7403_v43  ;;  %5181 = vmatmul.msk.f32.gmra.mxu3 %vm456_vm1, %v7408_v30  ;;  %v3532_v43 = vld [vmem:[%s8926_s5 + $0x880] sm:$0xff]  ;;  %v3533_v30 = vld [vmem:[%s8926_s5 + $0x888] sm:$0xff] }
 0x5eb   : > { %3555 = vmatpush.msrb.mxu0 %v3532_v43  ;;  %3593 = vmatpush.msrb.mxu1 %v3533_v30 }
 0x5ed   : > { %3556 = vmatpush.msrb.mxu0 %v3530_v31  ;;  %3594 = vmatpush.msrb.mxu1 %v3531_v3 }
 0x5ef   : > { %3557 = vmatpush.msrb.mxu0 %v3528_v25  ;;  %3595 = vmatpush.msrb.mxu1 %v3529_v21 }
 0x5f1   : > { %3558 = vmatpush.msrb.mxu0 %v3526_v45  ;;  %3596 = vmatpush.msrb.mxu1 %v3527_v61 }
 0x5f3   : > { %3559 = vmatpush.msrb.mxu0 %v3524_v55  ;;  %3597 = vmatpush.msrb.mxu1 %v3525_v42 }
 0x5f5   : > { %3560 = vmatpush.msrb.mxu0 %v3522_v18  ;;  %3598 = vmatpush.msrb.mxu1 %v3523_v9 }
 0x5f7   : > { %3561 = vmatpush.msrb.mxu0 %v3520_v13  ;;  %3599 = vmatpush.msrb.mxu1 %v3521_v11 }
 0x5f9   : > { %3562 = vmatpush.msrb.mxu0 %v3518_v46  ;;  %3600 = vmatpush.msrb.mxu1 %v3519_v35 }
 0x5fb   : > { %3563 = vmatpush.msrb.mxu0 %v3516_v33  ;;  %3601 = vmatpush.msrb.mxu1 %v3517_v39  ;;  %v3638_v33 = vld [vmem:[#allocation6 + $0x24] sm:$0x7] }
 0x5fc   : > { %v3318_v29 = vpop.f32.mrf.mxu0  ;;  %v3370_v6 = vpop.f32.mrf.mxu1  ;;  %5182 = vmatpush.msk.msrb.mxu2 %vm478_vm0, %v3638_v33  ;;  %5190 = vmatpush.msk.msrb.mxu3 %vm478_vm0, %v3638_v33 }
 0x5fd   : > { %v3319_v1 = vadd.f32 %v7960_v36, %v3318_v29  ;;  %v3371_v34 = vadd.f32 %v7960_v36, %v3370_v6  ;;  %5198 = vmatpush.msk.msra.mxu0 %vm478_vm0, %v3638_v33  ;;  %5206 = vmatpush.msk.msra.mxu1 %vm478_vm0, %v3638_v33 }
 0x5ff   : > { %v3339_v58 = vmax.f32 %v3319_v1, 0.0  ;;  %v3391_v48 = vmax.f32 %v3371_v34, 0.0 }
 0x601   : > { %v3398_v22 = vadd.f32 %v3391_v48, %v3339_v58 }
 0x604   : > { %v3321_v4 = vpop.f32.mrf.mxu0  ;;  %v3373_v38 = vpop.f32.mrf.mxu1 }
 0x605   : > { %v7840_v62 = vpop.f32.mrf.mxu2  ;;  %v7842_v7 = vpop.f32.mrf.mxu3  ;;  %v3322_v57 = vadd.f32 %v7960_v36, %v3321_v4  ;;  %v3374_v20 = vadd.f32 %v7960_v36, %v3373_v38 }
 0x606   : > { %9021 = vst [vmem:[#allocation105_spill] sm:$0xff] %v7840_v62 }
 0x607   : > { %9022 = vst [vmem:[#allocation106_spill] sm:$0xff] %v7842_v7  ;;  %v3340_v19 = vmax.f32 %v3322_v57, 0.0  ;;  %v3392_v53 = vmax.f32 %v3374_v20, 0.0  ;;  %v7990_v57 = vld [vmem:[%s5842_s12 + $0x38] sm:$0xff] }
 0x608   : > { %5191 = vmatmul.msk.f32.vlgmr.msrb.gmra.mxu3 %vm456_vm1, %v7990_v57 }
 0x609   : > { %v3399_v25 = vadd.f32 %v3392_v53, %v3340_v19 }
 0x60c   : > { %v3324_v49 = vpop.f32.mrf.mxu0  ;;  %v3376_v50 = vpop.f32.mrf.mxu1 }
 0x60d   : > { %v7862_v14 = vpop.f32.mrf.mxu2  ;;  %v7864_v15 = vpop.f32.mrf.mxu3  ;;  %v3325_v61 = vadd.f32 %v7960_v36, %v3324_v49  ;;  %v3377_v9 = vadd.f32 %v7960_v36, %v3376_v50 }
 0x60e   : > { %9023 = vst [vmem:[#allocation107_spill] sm:$0xff] %v7862_v14 }
 0x60f   : > { %9024 = vst [vmem:[#allocation108_spill] sm:$0xff] %v7864_v15  ;;  %v3341_v35 = vmax.f32 %v3325_v61, 0.0  ;;  %v3393_v29 = vmax.f32 %v3377_v9, 0.0  ;;  %v8004_v61 = vld [vmem:[%s5842_s12 + $0x40] sm:$0xff] }
 0x610   : > { %5192 = vmatmul.msk.f32.gmra.mxu3 %vm456_vm1, %v8004_v61 }
 0x611   : > { %v3400_v34 = vadd.f32 %v3393_v29, %v3341_v35 }
 0x614   : > { %v3327_v31 = vpop.f32.mrf.mxu0  ;;  %v3379_v3 = vpop.f32.mrf.mxu1 }
 0x615   : > { %v7890_v47 = vpop.f32.mrf.mxu2  ;;  %v7892_v44 = vpop.f32.mrf.mxu3  ;;  %v3328_v38 = vadd.f32 %v7960_v36, %v3327_v31  ;;  %v3380_v1 = vadd.f32 %v7960_v36, %v3379_v3 }
 0x616   : > { %9025 = vst [vmem:[#allocation109_spill] sm:$0xff] %v7890_v47 }
 0x617   : > { %9026 = vst [vmem:[#allocation110_spill] sm:$0xff] %v7892_v44 }
 0x61c   : > { %v3330_v50 = vpop.f32.mrf.mxu0 }
 0x61d   : > { %v7918_v0 = vpop.f32.mrf.mxu2  ;;  %v7920_v52 = vpop.f32.mrf.mxu3 }
 0x61e   : > { %9027 = vst [vmem:[#allocation111_spill] sm:$0xff] %v7918_v0 }
 0x61f   : > { %9028 = vst [vmem:[#allocation112_spill] sm:$0xff] %v7920_v52 }
 0x625   : > { %v7946_v59 = vpop.f32.mrf.mxu2  ;;  %v7948_v10 = vpop.f32.mrf.mxu3 }
 0x626   : > { %9029 = vst [vmem:[#allocation113_spill] sm:$0xff] %v7946_v59 }
 0x627   : > { %9030 = vst [vmem:[#allocation114_spill] sm:$0xff] %v7948_v10 }
 0x62d   : > { %v7956_v37 = vpop.f32.mrf.mxu2  ;;  %v7958_v63 = vpop.f32.mrf.mxu3 }
 0x635   : > { %v7962_v17 = vpop.f32.mrf.mxu2  ;;  %v7964_v5 = vpop.f32.mrf.mxu3 }
 0x636   : > { %9031 = vst [vmem:[#allocation115_spill] sm:$0xff] %v7964_v5 }
 0x63d   : > { %v3422_v51 = vpop.f32.mrf.mxu2  ;;  %v3474_v56 = vpop.f32.mrf.mxu3 }
 0x63e   : > { %v3423_v23 = vadd.f32 %v7960_v36, %v3422_v51  ;;  %v3475_v26 = vadd.f32 %v7960_v36, %v3474_v56  ;;  %v3382_v51 = vpop.f32.mrf.mxu1  ;;  %v7985_v56 = vld [vmem:[%s5842_s12] sm:$0xff] }
 0x63f   : > { %5183 = vmatmul.msk.f32.vlgmr.msrb.gmra.mxu2 %vm456_vm1, %v7985_v56 }
 0x640   : > { %v3443_v27 = vmax.f32 %v3423_v23, 0.0  ;;  %v3495_v28 = vmax.f32 %v3475_v26, 0.0  ;;  %v3342_v23 = vmax.f32 %v3328_v38, 0.0  ;;  %v3394_v26 = vmax.f32 %v3380_v1, 0.0 }
 0x642   : > { %v3450_v43 = vadd.f32 %v3443_v27, %v3398_v22  ;;  %v3401_v19 = vadd.f32 %v3394_v26, %v3342_v23 }
 0x644   : > { %v3502_v30 = vadd.f32 %v3495_v28, %v3450_v43 }
 0x645   : > { %v3425_v21 = vpop.f32.mrf.mxu2  ;;  %v3477_v45 = vpop.f32.mrf.mxu3 }
 0x646   : > { %v3509_v55 = vmul.f32 0.25, %v3502_v30  ;;  %v3426_v42 = vadd.f32 %v7960_v36, %v3425_v21  ;;  %v3478_v18 = vadd.f32 %v7960_v36, %v3477_v45  ;;  %v3331_v30 = vadd.f32 %v7960_v36, %v3330_v50  ;;  %v7999_v45 = vld [vmem:[%s5842_s12 + $0x8] sm:$0xff]  ;;  %v3385_v9 = vpop.f32.mrf.mxu1 }
 0x647   : > { %v3383_v21 = vadd.f32 %v7960_v36, %v3382_v51  ;;  %5184 = vmatmul.msk.f32.gmra.mxu2 %vm456_vm1, %v7999_v45 }
 0x648   : > { %v3444_v13 = vmax.f32 %v3426_v42, 0.0  ;;  %v3496_v11 = vmax.f32 %v3478_v18, 0.0  ;;  %3564 = vmatmul.f32.vlgmr.msrb.gmra.mxu0 %v3509_v55  ;;  %3602 = vmatmul.f32.vlgmr.msrb.gmra.mxu1 %v3509_v55  ;;  %v3333_v18 = vpop.f32.mrf.mxu0 }
 0x649   : > { %v3334_v33 = vadd.f32 %v7960_v36, %v3333_v18 }
 0x64a   : > { %v3451_v46 = vadd.f32 %v3444_v13, %v3399_v25 }
 0x64b   : > { %v3344_v51 = vmax.f32 %v3334_v33, 0.0 }
 0x64c   : > { %v3503_v6 = vadd.f32 %v3496_v11, %v3451_v46  ;;  %v3343_v11 = vmax.f32 %v3331_v30, 0.0  ;;  %v3395_v46 = vmax.f32 %v3383_v21, 0.0  ;;  %v8027_v21 = vld [vmem:[%s5842_s12 + $0x18] sm:$0xff] }
 0x64d   : > { %v3428_v39 = vpop.f32.mrf.mxu2  ;;  %v3480_v4 = vpop.f32.mrf.mxu3 }
 0x64e   : > { %v3429_v58 = vadd.f32 %v7960_v36, %v3428_v39  ;;  %v3481_v48 = vadd.f32 %v7960_v36, %v3480_v4  ;;  %v3510_v49 = vmul.f32 0.25, %v3503_v6  ;;  %v3386_v39 = vadd.f32 %v7960_v36, %v3385_v9  ;;  %v3388_v26 = vpop.f32.mrf.mxu1 }
 0x64f   : > { %v3402_v4 = vadd.f32 %v3395_v46, %v3343_v11 }
 0x650   : > { %v3445_v20 = vmax.f32 %v3429_v58, 0.0  ;;  %v3497_v22 = vmax.f32 %v3481_v48, 0.0  ;;  %3567 = vmatmul.f32.gmra.mxu0 %v3510_v49  ;;  %3605 = vmatmul.f32.gmra.mxu1 %v3510_v49  ;;  %v8013_v58 = vld [vmem:[%s5842_s12 + $0x10] sm:$0xff]  ;;  %v8018_v48 = vld [vmem:[%s5842_s12 + $0x48] sm:$0xff]  ;;  %v3336_v23 = vpop.f32.mrf.mxu0 }
 0x651   : > { %5185 = vmatmul.msk.f32.gmra.mxu2 %vm456_vm1, %v8013_v58  ;;  %5193 = vmatmul.msk.f32.gmra.mxu3 %vm456_vm1, %v8018_v48 }
 0x652   : > { %v3452_v27 = vadd.f32 %v3445_v20, %v3400_v34  ;;  %v3396_v20 = vmax.f32 %v3386_v39, 0.0 }
 0x654   : > { %v3504_v28 = vadd.f32 %v3497_v22, %v3452_v27 }
 0x655   : > { %v3431_v53 = vpop.f32.mrf.mxu2  ;;  %v3483_v43 = vpop.f32.mrf.mxu3 }
 0x656   : > { %v3432_v31 = vadd.f32 %v7960_v36, %v3431_v53  ;;  %v3484_v3 = vadd.f32 %v7960_v36, %v3483_v43  ;;  %v3511_v25 = vmul.f32 0.25, %v3504_v28  ;;  %v3403_v28 = vadd.f32 %v3396_v20, %v3344_v51  ;;  %v8049_v20 = vld [vmem:[%s5842_s12 + $0x28] sm:$0xff] }
 0x657   : > { %v3337_v43 = vadd.f32 %v7960_v36, %v3336_v23  ;;  %v8059_v23 = vld [vmem:[%s5842_s12 + $0x30] sm:$0x1] }
 0x658   : > { %v3446_v55 = vmax.f32 %v3432_v31, 0.0  ;;  %v3498_v42 = vmax.f32 %v3484_v3, 0.0  ;;  %3570 = vmatmul.f32.gmra.mxu0 %v3511_v25  ;;  %3608 = vmatmul.f32.gmra.mxu1 %v3511_v25  ;;  %v3389_v25 = vadd.f32 %v7960_v36, %v3388_v26  ;;  %v8064_v26 = vld [vmem:[%s5842_s12 + $0x68] sm:$0x1] }
 0x659   : > { %5186 = vmatmul.msk.f32.gmra.mxu2 %vm456_vm1, %v8027_v21 }
 0x65a   : > { %v3453_v13 = vadd.f32 %v3446_v55, %v3401_v19  ;;  %v8032_v55 = vld [vmem:[%s5842_s12 + $0x50] sm:$0xff]  ;;  %v3397_v11 = vmax.f32 %v3389_v25, 0.0 }
 0x65b   : > { %5194 = vmatmul.msk.f32.gmra.mxu3 %vm456_vm1, %v8032_v55  ;;  %v8109_v25 = vld [vmem:[%s5842_s12 + $0x90] sm:$0xff] }
 0x65c   : > { %v3505_v35 = vadd.f32 %v3498_v42, %v3453_v13  ;;  %v3345_v13 = vmax.f32 %v3337_v43, 0.0  ;;  %v8089_v43 = vld [vmem:[%s5842_s12 + $0x80] sm:$0xff] }
 0x65d   : > { %v3434_v29 = vpop.f32.mrf.mxu2  ;;  %v3486_v6 = vpop.f32.mrf.mxu3 }
 0x65e   : > { %v3435_v38 = vadd.f32 %v7960_v36, %v3434_v29  ;;  %v3487_v1 = vadd.f32 %v7960_v36, %v3486_v6  ;;  %v3512_v34 = vmul.f32 0.25, %v3505_v35  ;;  %v3404_v6 = vadd.f32 %v3397_v11, %v3345_v13  ;;  %v8129_v13 = vld [vmem:[%s5842_s12 + $0xa0] sm:$0x1]  ;;  %v8134_v11 = vld [vmem:[%s5842_s12 + $0xd8] sm:$0x1] }
 0x660   : > { %v3447_v49 = vmax.f32 %v3435_v38, 0.0  ;;  %v3499_v50 = vmax.f32 %v3487_v1, 0.0  ;;  %3573 = vmatmul.f32.gmra.mxu0 %v3512_v34  ;;  %3611 = vmatmul.f32.gmra.mxu1 %v3512_v34  ;;  %v8039_v38 = vld [vmem:[%s5842_s12 + $0x20] sm:$0xff]  ;;  %v8044_v1 = vld [vmem:[%s5842_s12 + $0x58] sm:$0xff] }
 0x661   : > { %5187 = vmatmul.msk.f32.gmra.mxu2 %vm456_vm1, %v8039_v38 }
 0x662   : > { %v3454_v22 = vadd.f32 %v3447_v49, %v3402_v4 }
 0x663   : > { %5195 = vmatmul.msk.f32.gmra.mxu3 %vm456_vm1, %v8044_v1 }
 0x664   : > { %v3506_v27 = vadd.f32 %v3499_v50, %v3454_v22  ;;  %v8054_v22 = vld [vmem:[%s5842_s12 + $0x60] sm:$0xff] }
 0x665   : > { %v3437_v19 = vpop.f32.mrf.mxu2  ;;  %v3489_v53 = vpop.f32.mrf.mxu3 }
 0x666   : > { %v3438_v30 = vadd.f32 %v7960_v36, %v3437_v19  ;;  %v3490_v31 = vadd.f32 %v7960_v36, %v3489_v53  ;;  %v3513_v3 = vmul.f32 0.25, %v3506_v27  ;;  %v8069_v27 = vld [vmem:[%s5842_s12 + $0x70] sm:$0xff]  ;;  %v8079_v19 = vld [vmem:[%s5842_s12 + $0x78] sm:$0xff] }
 0x667   : > { %v8084_v53 = vld [vmem:[%s5842_s12 + $0xb0] sm:$0xff] }
 0x668   : > { %v3448_v42 = vmax.f32 %v3438_v30, 0.0  ;;  %v3500_v18 = vmax.f32 %v3490_v31, 0.0  ;;  %3576 = vmatmul.f32.gmra.mxu0 %v3513_v3  ;;  %3614 = vmatmul.f32.gmra.mxu1 %v3513_v3  ;;  %v8094_v30 = vld [vmem:[%s5842_s12 + $0xb8] sm:$0xff]  ;;  %v8099_v31 = vld [vmem:[%s5842_s12 + $0x88] sm:$0xff]  ;;  %v8104_v3 = vld [vmem:[%s5842_s12 + $0xc0] sm:$0xff] }
 0x669   : > { %5188 = vmatmul.msk.f32.gmra.mxu2 %vm456_vm1, %v8049_v20 }
 0x66a   : > { %v3455_v9 = vadd.f32 %v3448_v42, %v3403_v28  ;;  %v8074_v28 = vld [vmem:[%s5842_s12 + $0xa8] sm:$0xff] }
 0x66b   : > { %5196 = vmatmul.msk.f32.gmra.mxu3 %vm456_vm1, %v8054_v22  ;;  %v8114_v42 = vld [vmem:[%s5842_s12 + $0xc8] sm:$0xff] }
 0x66c   : > { %v3507_v46 = vadd.f32 %v3500_v18, %v3455_v9  ;;  %v8119_v18 = vld [vmem:[%s5842_s12 + $0x98] sm:$0xff]  ;;  %v8124_v9 = vld [vmem:[%s5842_s12 + $0xd0] sm:$0xff] }
 0x66d   : > { %v3440_v35 = vpop.f32.mrf.mxu2  ;;  %v3492_v29 = vpop.f32.mrf.mxu3 }
 0x66e   : > { %v3441_v33 = vadd.f32 %v7960_v36, %v3440_v35  ;;  %v3493_v39 = vadd.f32 %v7960_v36, %v3492_v29  ;;  %v3514_v4 = vmul.f32 0.25, %v3507_v46  ;;  %v3891_v29 = vld [vmem:[%s8926_s5 + $0x9f0] sm:$0xff] }
 0x66f   : > { %3893 = vmatpush.msra.mxu2 %v3891_v29  ;;  %v3883_v29 = vld [vmem:[%s8926_s5 + $0x9b0] sm:$0xff] }
 0x670   : > { %v3449_v34 = vmax.f32 %v3441_v33, 0.0  ;;  %v3501_v49 = vmax.f32 %v3493_v39, 0.0  ;;  %3579 = vmatmul.f32.gmra.mxu0 %v3514_v4  ;;  %3617 = vmatmul.f32.gmra.mxu1 %v3514_v4  ;;  %v3889_v33 = vld [vmem:[%s8926_s5 + $0x9e0] sm:$0xff]  ;;  %v3890_v39 = vld [vmem:[%s8926_s5 + $0x9e8] sm:$0xff]  ;;  %v3887_v4 = vld [vmem:[%s8926_s5 + $0x9d0] sm:$0xff] }
 0x671   : > { %5189 = vmatmul.msk.f32.gmra.mxu2 %vm456_vm1, %v8059_v23 }
 0x672   : > { %v3456_v36 = vadd.f32 %v3449_v34, %v3404_v6  ;;  %v3892_v6 = vld [vmem:[%s8926_s5 + $0x9f8] sm:$0xff]  ;;  %3894 = vmatpush.msra.mxu2 %v3889_v33  ;;  %v3881_v33 = vld [vmem:[%s8926_s5 + $0x9a0] sm:$0xff] }
 0x673   : > { %5197 = vmatmul.msk.f32.gmra.mxu3 %vm456_vm1, %v8064_v26  ;;  %v3888_v34 = vld [vmem:[%s8926_s5 + $0x9d8] sm:$0xff] }
 0x674   : > { %v3508_v50 = vadd.f32 %v3501_v49, %v3456_v36  ;;  %3931 = vmatpush.msra.mxu3 %v3892_v6  ;;  %3895 = vmatpush.msra.mxu2 %v3887_v4  ;;  %v3884_v6 = vld [vmem:[%s8926_s5 + $0x9b8] sm:$0xff]  ;;  %v3879_v4 = vld [vmem:[%s8926_s5 + $0x990] sm:$0xff] }
 0x676   : > { %v3515_v51 = vmul.f32 0.25, %v3508_v50  ;;  %3932 = vmatpush.msra.mxu3 %v3890_v39  ;;  %v3885_v50 = vld [vmem:[%s8926_s5 + $0x9c0] sm:$0xff]  ;;  %v3882_v39 = vld [vmem:[%s8926_s5 + $0x9a8] sm:$0xff] }
 0x677   : > { %3896 = vmatpush.msra.mxu2 %v3885_v50 }
 0x678   : > { %3582 = vmatmul.f32.gmra.mxu0 %v3515_v51  ;;  %3620 = vmatmul.f32.gmra.mxu1 %v3515_v51  ;;  %v3886_v51 = vld [vmem:[%s8926_s5 + $0x9c8] sm:$0xff] }
 0x679   : > { %3933 = vmatpush.msra.mxu3 %v3888_v34  ;;  %3897 = vmatpush.msra.mxu2 %v3883_v29  ;;  %v3880_v34 = vld [vmem:[%s8926_s5 + $0x998] sm:$0xff]  ;;  %v3877_v29 = vld [vmem:[%s8926_s5 + $0x980] sm:$0xff] }
 0x67b   : > { %3934 = vmatpush.msra.mxu3 %v3886_v51  ;;  %3898 = vmatpush.msra.mxu2 %v3881_v33  ;;  %v3875_v33 = vld [vmem:[%s8926_s5 + $0x970] sm:$0xff] }
 0x67d   : > { %3935 = vmatpush.msra.mxu3 %v3884_v6  ;;  %3899 = vmatpush.msra.mxu2 %v3879_v4  ;;  %v3878_v6 = vld [vmem:[%s8926_s5 + $0x988] sm:$0xff]  ;;  %v3873_v4 = vld [vmem:[%s8926_s5 + $0x960] sm:$0xff] }
 0x67f   : > { %3936 = vmatpush.msra.mxu3 %v3882_v39  ;;  %3900 = vmatpush.msra.mxu2 %v3877_v29  ;;  %v3876_v39 = vld [vmem:[%s8926_s5 + $0x978] sm:$0xff]  ;;  %v3871_v29 = vld [vmem:[%s8926_s5 + $0x950] sm:$0xff] }
 0x680   : > { %5199 = vmatmul.msk.f32.vlgmr.msra.gmra.mxu0 %vm456_vm1, %v8069_v27  ;;  %5207 = vmatmul.msk.f32.vlgmr.msra.gmra.mxu1 %vm456_vm1, %v8074_v28 }
 0x681   : > { %3937 = vmatpush.msra.mxu3 %v3880_v34  ;;  %v3874_v34 = vld [vmem:[%s8926_s5 + $0x968] sm:$0xff]  ;;  %3901 = vmatpush.msra.mxu2 %v3875_v33  ;;  %v3869_v33 = vld [vmem:[%s8926_s5 + $0x940] sm:$0xff] }
 0x683   : > { %3938 = vmatpush.msra.mxu3 %v3878_v6  ;;  %3902 = vmatpush.msra.mxu2 %v3873_v4  ;;  %v3872_v6 = vld [vmem:[%s8926_s5 + $0x958] sm:$0xff]  ;;  %v3867_v4 = vld [vmem:[%s8926_s5 + $0x930] sm:$0xff] }
 0x685   : > { %3939 = vmatpush.msra.mxu3 %v3876_v39  ;;  %3903 = vmatpush.msra.mxu2 %v3871_v29  ;;  %v3870_v39 = vld [vmem:[%s8926_s5 + $0x948] sm:$0xff]  ;;  %v3865_v29 = vld [vmem:[%s8926_s5 + $0x920] sm:$0xff] }
 0x687   : > { %3940 = vmatpush.msra.mxu3 %v3874_v34  ;;  %3904 = vmatpush.msra.mxu2 %v3869_v33  ;;  %v3868_v34 = vld [vmem:[%s8926_s5 + $0x938] sm:$0xff]  ;;  %v3863_v33 = vld [vmem:[%s8926_s5 + $0x910] sm:$0xff] }
 0x688   : > { %5200 = vmatmul.msk.f32.gmra.mxu0 %vm456_vm1, %v8079_v19  ;;  %5208 = vmatmul.msk.f32.gmra.mxu1 %vm456_vm1, %v8084_v53 }
 0x689   : > { %3941 = vmatpush.msra.mxu3 %v3872_v6  ;;  %3905 = vmatpush.msra.mxu2 %v3867_v4  ;;  %v3866_v6 = vld [vmem:[%s8926_s5 + $0x928] sm:$0xff] }
 0x68b   : > { %3942 = vmatpush.msra.mxu3 %v3870_v39  ;;  %3906 = vmatpush.msra.mxu2 %v3865_v29  ;;  %v3864_v39 = vld [vmem:[%s8926_s5 + $0x918] sm:$0xff]  ;;  %v3861_v29 = vld [vmem:[%s8926_s5 + $0x900] sm:$0xff] }
 0x68d   : > { %3943 = vmatpush.msra.mxu3 %v3868_v34  ;;  %3907 = vmatpush.msra.mxu2 %v3863_v33 }
 0x68f   : > { %3944 = vmatpush.msra.mxu3 %v3866_v6  ;;  %v3862_v6 = vld [vmem:[%s8926_s5 + $0x908] sm:$0xff]  ;;  %3908 = vmatpush.msra.mxu2 %v3861_v29  ;;  %v8268_v29 = vld [vmem:[#allocation7 + $0x9] ss:$0 sm:$0xff] }
 0x690   : > { %5201 = vmatmul.msk.f32.gmra.mxu0 %vm456_vm1, %v8089_v43  ;;  %5209 = vmatmul.msk.f32.gmra.mxu1 %vm456_vm1, %v8094_v30 }
 0x691   : > { %3945 = vmatpush.msra.mxu3 %v3864_v39 }
 0x693   : > { %3946 = vmatpush.msra.mxu3 %v3862_v6 }
 0x698   : > { %5202 = vmatmul.msk.f32.gmra.mxu0 %vm456_vm1, %v8099_v31  ;;  %5210 = vmatmul.msk.f32.gmra.mxu1 %vm456_vm1, %v8104_v3 }
 0x6a0   : > { %5203 = vmatmul.msk.f32.gmra.mxu0 %vm456_vm1, %v8109_v25  ;;  %5211 = vmatmul.msk.f32.gmra.mxu1 %vm456_vm1, %v8114_v42 }
 0x6a8   : > { %5204 = vmatmul.msk.f32.gmra.mxu0 %vm456_vm1, %v8119_v18  ;;  %5212 = vmatmul.msk.f32.gmra.mxu1 %vm456_vm1, %v8124_v9 }
 0x6b0   : > { %5205 = vmatmul.msk.f32.gmra.mxu0 %vm456_vm1, %v8129_v13  ;;  %5213 = vmatmul.msk.f32.gmra.mxu1 %vm456_vm1, %v8134_v11 }
 0x6c5   : > { %v8138_v46 = vpop.f32.mrf.mxu0  ;;  %v8140_v35 = vpop.f32.mrf.mxu1 }
 0x6c6   : > { %9032 = vst [vmem:[#allocation116_spill] sm:$0xff] %v8138_v46 }
 0x6c7   : > { %9033 = vst [vmem:[#allocation117_spill] sm:$0xff] %v8140_v35 }
 0x6cd   : > { %v8160_v49 = vpop.f32.mrf.mxu0  ;;  %v8162_v36 = vpop.f32.mrf.mxu1 }
 0x6ce   : > { %9034 = vst [vmem:[#allocation118_spill] sm:$0xff] %v8160_v49 }
 0x6cf   : > { %9035 = vst [vmem:[#allocation119_spill] sm:$0xff] %v8162_v36 }
 0x6d5   : > { %v8188_v50 = vpop.f32.mrf.mxu0  ;;  %v8190_v51 = vpop.f32.mrf.mxu1 }
 0x6d6   : > { %9036 = vst [vmem:[#allocation120_spill] sm:$0xff] %v8188_v50 }
 0x6d7   : > { %9037 = vst [vmem:[#allocation121_spill] sm:$0xff] %v8190_v51  ;;  %v8254_v51 = vld [vmem:[#allocation2] sm:$0x77] }
 0x6d8   : > { %3991 = vst [vmem:[#allocation1] ss:$2 sm:$0xff] %v8254_v51 }
 0x6dd   : > { %v8216_v10 = vpop.f32.mrf.mxu0  ;;  %v8218_v59 = vpop.f32.mrf.mxu1 }
 0x6de   : > { %9038 = vst [vmem:[#allocation122_spill] sm:$0xff] %v8216_v10  ;;  %v3715_v10 = vpop.f32.mrf.mxu3 }
 0x6df   : > { %9039 = vst [vmem:[#allocation123_spill] sm:$0xff] %v8218_v59  ;;  %v3663_v59 = vpop.f32.mrf.mxu2  ;;  %v3992_v39 = vld.sshfl [vmem:[#allocation1] sm:$0xff pattern:$0x75316420]  ;;  %v3716_v44 = vadd.f32 %v8268_v29, %v3715_v10 }
 0x6e0   : > { %5214 = vmatpush.msk.msrb.mxu0 %vm478_vm0, %v3992_v39  ;;  %v3664_v39 = vadd.f32 %v8268_v29, %v3663_v59 }
 0x6e1   : > { %5215 = vmatmul.msk.f32.vlgmr.msrb.gmra.mxu0 %vm456_vm1, %v7985_v56  ;;  %v3736_v47 = vmax.f32 %v3716_v44, 0.0 }
 0x6e5   : > { %v8244_v4 = vpop.f32.mrf.mxu0  ;;  %v8246_v34 = vpop.f32.mrf.mxu1 }
 0x6e6   : > { %9040 = vst [vmem:[#allocation124_spill] sm:$0xff] %v8244_v4  ;;  %v3718_v52 = vpop.f32.mrf.mxu3 }
 0x6e7   : > { %9041 = vst [vmem:[#allocation125_spill] sm:$0xff] %v8246_v34  ;;  %v3993_v34 = vld.sshfl [vmem:[#allocation1 + $0x8] sm:$0xff pattern:$0x75316420]  ;;  %v3666_v50 = vpop.f32.mrf.mxu2  ;;  %v3719_v35 = vadd.f32 %v8268_v29, %v3718_v52 }
 0x6e8   : > { %5222 = vmatpush.msk.msrb.mxu1 %vm478_vm0, %v3993_v34  ;;  %4102 = vst [vmem:[#allocation1] ss:$2 sm:$0xff] %v8254_v51  ;;  %v3684_v34 = vmax.f32 %v3664_v39, 0.0  ;;  %v3667_v14 = vadd.f32 %v8268_v29, %v3666_v50 }
 0x6e9   : > { %5223 = vmatmul.msk.f32.vlgmr.msrb.gmra.mxu1 %vm456_vm1, %v7985_v56  ;;  %5216 = vmatmul.msk.f32.gmra.mxu0 %vm456_vm1, %v7999_v45  ;;  %v3737_v44 = vmax.f32 %v3719_v35, 0.0 }
 0x6ea   : > { %v3743_v46 = vadd.f32 %v3736_v47, %v3684_v34 }
 0x6ed   : > { %v8257_v4 = vpop.f32.mrf.mxu0  ;;  %v8259_v33 = vpop.f32.mrf.mxu1 }
 0x6ee   : > { %v3721_v56 = vpop.f32.mrf.mxu3 }
 0x6ef   : > { %v3669_v36 = vpop.f32.mrf.mxu2 }
 0x6f1   : > { %5224 = vmatmul.msk.f32.gmra.mxu1 %vm456_vm1, %v7999_v45  ;;  %5217 = vmatmul.msk.f32.gmra.mxu0 %vm456_vm1, %v8013_v58  ;;  %v3685_v45 = vmax.f32 %v3667_v14, 0.0  ;;  %v3722_v14 = vadd.f32 %v8268_v29, %v3721_v56 }
 0x6f3   : > { %v3744_v52 = vadd.f32 %v3737_v44, %v3685_v45 }
 0x6f5   : > { %v8270_v6 = vpop.f32.mrf.mxu0  ;;  %v8272_v0 = vpop.f32.mrf.mxu1 }
 0x6f6   : > { %9042 = vst [vmem:[#allocation126_spill] sm:$0xff] %v8270_v6  ;;  %v3724_v6 = vpop.f32.mrf.mxu3 }
 0x6f7   : > { %9043 = vst [vmem:[#allocation127_spill] sm:$0xff] %v8272_v0  ;;  %v3672_v50 = vpop.f32.mrf.mxu2  ;;  %v3725_v56 = vadd.f32 %v8268_v29, %v3724_v6 }
 0x6f8   : > { %v3673_v45 = vadd.f32 %v8268_v29, %v3672_v50 }
 0x6f9   : > { %5225 = vmatmul.msk.f32.gmra.mxu1 %vm456_vm1, %v8013_v58  ;;  %5218 = vmatmul.msk.f32.gmra.mxu0 %vm456_vm1, %v8027_v21  ;;  %v3738_v58 = vmax.f32 %v3722_v14, 0.0 }
 0x6fd   : > { %v3767_v49 = vpop.f32.mrf.mxu0  ;;  %v3819_v15 = vpop.f32.mrf.mxu1 }
 0x6fe   : > { %v3768_v59 = vadd.f32 %v8268_v29, %v3767_v49  ;;  %v3820_v10 = vadd.f32 %v8268_v29, %v3819_v15  ;;  %v3670_v49 = vadd.f32 %v8268_v29, %v3669_v36 }
 0x700   : > { %v3788_v7 = vmax.f32 %v3768_v59, 0.0  ;;  %v3840_v62 = vmax.f32 %v3820_v10, 0.0 }
 0x701   : > { %5226 = vmatmul.msk.f32.gmra.mxu1 %vm456_vm1, %v8027_v21  ;;  %5219 = vmatmul.msk.f32.gmra.mxu0 %vm456_vm1, %v8039_v38 }
 0x702   : > { %v3795_v39 = vadd.f32 %v3788_v7, %v3743_v46  ;;  %v3686_v7 = vmax.f32 %v3670_v49, 0.0 }
 0x704   : > { %v3847_v0 = vadd.f32 %v3840_v62, %v3795_v39  ;;  %v3745_v39 = vadd.f32 %v3738_v58, %v3686_v7 }
 0x705   : > { %v3770_v47 = vpop.f32.mrf.mxu0  ;;  %v3822_v34 = vpop.f32.mrf.mxu1 }
 0x706   : > { %v3854_v15 = vmul.f32 0.25, %v3847_v0  ;;  %v3771_v59 = vadd.f32 %v8268_v29, %v3770_v47  ;;  %v3823_v10 = vadd.f32 %v8268_v29, %v3822_v34 }
 0x708   : > { %v3789_v35 = vmax.f32 %v3771_v59, 0.0  ;;  %v3841_v5 = vmax.f32 %v3823_v10, 0.0  ;;  %3909 = vmatmul.f32.vlgmr.msra.gmra.mxu2 %v3854_v15  ;;  %3947 = vmatmul.f32.vlgmr.msra.gmra.mxu3 %v3854_v15  ;;  %v3675_v15 = vpop.f32.mrf.mxu2  ;;  %v3727_v59 = vpop.f32.mrf.mxu3 }
 0x709   : > { %5227 = vmatmul.msk.f32.gmra.mxu1 %vm456_vm1, %v8039_v38  ;;  %5220 = vmatmul.msk.f32.gmra.mxu0 %vm456_vm1, %v8049_v20 }
 0x70a   : > { %v3796_v62 = vadd.f32 %v3789_v35, %v3744_v52  ;;  %v3687_v52 = vmax.f32 %v3673_v45, 0.0  ;;  %v4104_v45 = vld.sshfl [vmem:[#allocation1 + $0x8] sm:$0xff pattern:$0x75316420] }
 0x70b   : > { %5238 = vmatpush.msk.msrb.mxu3 %vm478_vm0, %v4104_v45 }
 0x70c   : > { %v3848_v0 = vadd.f32 %v3841_v5, %v3796_v62  ;;  %v3739_v5 = vmax.f32 %v3725_v56, 0.0  ;;  %v3676_v62 = vadd.f32 %v8268_v29, %v3675_v15 }
 0x70d   : > { %v3773_v46 = vpop.f32.mrf.mxu0  ;;  %v3825_v36 = vpop.f32.mrf.mxu1 }
 0x70e   : > { %v3855_v44 = vmul.f32 0.25, %v3848_v0  ;;  %v3774_v47 = vadd.f32 %v8268_v29, %v3773_v46  ;;  %v3826_v34 = vadd.f32 %v8268_v29, %v3825_v36  ;;  %v3746_v49 = vadd.f32 %v3739_v5, %v3687_v52  ;;  %v4103_v36 = vld.sshfl [vmem:[#allocation1] sm:$0xff pattern:$0x75316420] }
 0x70f   : > { %v3728_v46 = vadd.f32 %v8268_v29, %v3727_v59  ;;  %5230 = vmatpush.msk.msrb.mxu2 %vm478_vm0, %v4103_v36  ;;  %4213 = vst [vmem:[#allocation1] ss:$2 sm:$0xff] %v8254_v51 }
 0x710   : > { %v3790_v10 = vmax.f32 %v3774_v47, 0.0  ;;  %v3842_v21 = vmax.f32 %v3826_v34, 0.0  ;;  %3912 = vmatmul.f32.gmra.mxu2 %v3855_v44  ;;  %3950 = vmatmul.f32.gmra.mxu3 %v3855_v44  ;;  %v3678_v44 = vpop.f32.mrf.mxu2  ;;  %v3688_v34 = vmax.f32 %v3676_v62, 0.0 }
 0x711   : > { %v3740_v15 = vmax.f32 %v3728_v46, 0.0  ;;  %5228 = vmatmul.msk.f32.gmra.mxu1 %vm456_vm1, %v8049_v20  ;;  %v3679_v52 = vadd.f32 %v8268_v29, %v3678_v44  ;;  %5221 = vmatmul.msk.f32.gmra.mxu0 %vm456_vm1, %v8059_v23 }
 0x712   : > { %v3797_v6 = vadd.f32 %v3790_v10, %v3745_v39  ;;  %v3730_v39 = vpop.f32.mrf.mxu3 }
 0x713   : > { %v3731_v5 = vadd.f32 %v8268_v29, %v3730_v39 }
 0x714   : > { %v3849_v50 = vadd.f32 %v3842_v21, %v3797_v6 }
 0x715   : > { %v3776_v14 = vpop.f32.mrf.mxu0  ;;  %v3828_v35 = vpop.f32.mrf.mxu1  ;;  %v3741_v20 = vmax.f32 %v3731_v5, 0.0 }
 0x716   : > { %v3856_v7 = vmul.f32 0.25, %v3849_v50  ;;  %v3777_v58 = vadd.f32 %v8268_v29, %v3776_v14  ;;  %v3829_v0 = vadd.f32 %v8268_v29, %v3828_v35  ;;  %v3747_v50 = vadd.f32 %v3740_v15, %v3688_v34  ;;  %v4214_v62 = vld.sshfl [vmem:[#allocation1] sm:$0xff pattern:$0x75316420] }
 0x717   : > { %5246 = vmatpush.msk.msra.mxu0 %vm478_vm0, %v4214_v62 }
 0x718   : > { %v3791_v56 = vmax.f32 %v3777_v58, 0.0  ;;  %v3843_v38 = vmax.f32 %v3829_v0, 0.0  ;;  %3915 = vmatmul.f32.gmra.mxu2 %v3856_v7  ;;  %3953 = vmatmul.f32.gmra.mxu3 %v3856_v7  ;;  %v3689_v58 = vmax.f32 %v3679_v52, 0.0  ;;  %v4215_v0 = vld.sshfl [vmem:[#allocation1 + $0x8] sm:$0xff pattern:$0x75316420]  ;;  %v3681_v36 = vpop.f32.mrf.mxu2 }
 0x719   : > { %5229 = vmatmul.msk.f32.gmra.mxu1 %vm456_vm1, %v8059_v23  ;;  %4324 = vst [vmem:[#allocation1] ss:$2 sm:$0xff] %v8254_v51  ;;  %5247 = vmatmul.msk.f32.vlgmr.msra.gmra.mxu0 %vm456_vm1, %v8069_v27 }
 0x71a   : > { %v3798_v47 = vadd.f32 %v3791_v56, %v3746_v49  ;;  %v3733_v45 = vpop.f32.mrf.mxu3  ;;  %5254 = vmatpush.msk.msra.mxu1 %vm478_vm0, %v4215_v0 }
 0x71b   : > { %v3734_v23 = vadd.f32 %v8268_v29, %v3733_v45 }
 0x71c   : > { %v3850_v59 = vadd.f32 %v3843_v38, %v3798_v47  ;;  %v3748_v38 = vadd.f32 %v3741_v20, %v3689_v58  ;;  %v3682_v47 = vadd.f32 %v8268_v29, %v3681_v36 }
 0x71d   : > { %v3779_v10 = vpop.f32.mrf.mxu0  ;;  %v3831_v21 = vpop.f32.mrf.mxu1  ;;  %v3742_v5 = vmax.f32 %v3734_v23, 0.0  ;;  %v9048_v23 = vld [vmem:[#allocation87_spill] sm:$0xff] }
 0x71e   : > { %v3857_v6 = vmul.f32 0.25, %v3850_v59  ;;  %v3780_v14 = vadd.f32 %v8268_v29, %v3779_v10  ;;  %v3832_v35 = vadd.f32 %v8268_v29, %v3831_v21  ;;  %v3690_v52 = vmax.f32 %v3682_v47, 0.0 }
 0x720   : > { %v3792_v7 = vmax.f32 %v3780_v14, 0.0  ;;  %v3844_v49 = vmax.f32 %v3832_v35, 0.0  ;;  %3918 = vmatmul.f32.gmra.mxu2 %v3857_v6  ;;  %3956 = vmatmul.f32.gmra.mxu3 %v3857_v6  ;;  %v4326_v36 = vld.sshfl [vmem:[#allocation1 + $0x8] sm:$0xff pattern:$0x75316420] }
 0x721   : > { %5255 = vmatmul.msk.f32.vlgmr.msra.gmra.mxu1 %vm456_vm1, %v8069_v27  ;;  %5248 = vmatmul.msk.f32.gmra.mxu0 %vm456_vm1, %v8079_v19 }
 0x722   : > { %v3799_v46 = vadd.f32 %v3792_v7, %v3747_v50  ;;  %v3749_v7 = vadd.f32 %v3742_v5, %v3690_v52  ;;  %5270 = vmatpush.msk.msra.mxu3 %vm478_vm0, %v4326_v36  ;;  %v9052_v5 = vld [vmem:[#allocation101_spill] sm:$0xff] }
 0x724   : > { %v3851_v56 = vadd.f32 %v3844_v49, %v3799_v46 }
 0x725   : > { %v3782_v44 = vpop.f32.mrf.mxu0  ;;  %v3834_v39 = vpop.f32.mrf.mxu1 }
 0x726   : > { %v3858_v34 = vmul.f32 0.25, %v3851_v56  ;;  %v3783_v15 = vadd.f32 %v8268_v29, %v3782_v44  ;;  %v3835_v59 = vadd.f32 %v8268_v29, %v3834_v39  ;;  %v1218_v56 = vadd.f32 %v6448_v41, %v6506_v60  ;;  %v9044_v60 = vld [vmem:[#allocation39_spill] sm:$0xff] }
 0x728   : > { %v3793_v10 = vmax.f32 %v3783_v15, 0.0  ;;  %v3845_v21 = vmax.f32 %v3835_v59, 0.0  ;;  %3921 = vmatmul.f32.gmra.mxu2 %v3858_v34  ;;  %3959 = vmatmul.f32.gmra.mxu3 %v3858_v34  ;;  %v1565_v44 = vadd.f32 %v6804_v54, %v1218_v56  ;;  %v9046_v34 = vld [vmem:[#allocation40_spill] sm:$0xff]  ;;  %v9047_v15 = vld [vmem:[#allocation38_spill] sm:$0xff] }
 0x729   : > { %5256 = vmatmul.msk.f32.gmra.mxu1 %vm456_vm1, %v8079_v19  ;;  %5249 = vmatmul.msk.f32.gmra.mxu0 %vm456_vm1, %v8089_v43  ;;  %v1221_v59 = vadd.f32 %v9047_v15, %v9046_v34  ;;  %v9064_v34 = vld [vmem:[#allocation104_spill] sm:$0xff]  ;;  %v9065_v15 = vld [vmem:[#allocation115_spill] sm:$0xff] }
 0x72a   : > { %v3800_v51 = vadd.f32 %v3793_v10, %v3748_v38  ;;  %v1910_v39 = vadd.f32 %v7018_v24, %v1565_v44  ;;  %v9049_v10 = vld [vmem:[#allocation88_spill] sm:$0xff]  ;;  %v9058_v44 = vld [vmem:[#allocation89_spill] sm:$0xff] }
 0x72c   : > { %v3852_v6 = vadd.f32 %v3845_v21, %v3800_v51  ;;  %v9050_v21 = vld [vmem:[#allocation51_spill] sm:$0xff]  ;;  %v9051_v51 = vld [vmem:[#allocation52_spill] sm:$0xff] }
 0x72d   : > { %v3785_v50 = vpop.f32.mrf.mxu0  ;;  %v3837_v14 = vpop.f32.mrf.mxu1  ;;  %v1567_v52 = vadd.f32 %v9051_v51, %v1221_v59 }
 0x72e   : > { %v3859_v35 = vmul.f32 0.25, %v3852_v6  ;;  %v3786_v49 = vadd.f32 %v8268_v29, %v3785_v50  ;;  %v3838_v62 = vadd.f32 %v8268_v29, %v3837_v14  ;;  %v4325_v29 = vld.sshfl [vmem:[#allocation1] sm:$0xff pattern:$0x75316420]  ;;  %v9053_v50 = vld [vmem:[#allocation102_spill] sm:$0xff] }
 0x72f   : > { %5262 = vmatpush.msk.msra.mxu2 %vm478_vm0, %v4325_v29 }
 0x730   : > { %v3794_v58 = vmax.f32 %v3786_v49, 0.0  ;;  %v3846_v20 = vmax.f32 %v3838_v62, 0.0  ;;  %3924 = vmatmul.f32.gmra.mxu2 %v3859_v35  ;;  %3962 = vmatmul.f32.gmra.mxu3 %v3859_v35  ;;  %v9054_v35 = vld [vmem:[#allocation63_spill] sm:$0xff]  ;;  %v9055_v49 = vld [vmem:[#allocation64_spill] sm:$0xff] }
 0x731   : > { %5257 = vmatmul.msk.f32.gmra.mxu1 %vm456_vm1, %v8089_v43  ;;  %5250 = vmatmul.msk.f32.gmra.mxu0 %vm456_vm1, %v8099_v31  ;;  %v1912_v62 = vadd.f32 %v9055_v49, %v1567_v52 }
 0x732   : > { %v3801_v0 = vadd.f32 %v3794_v58, %v3749_v7 }
 0x734   : > { %v3853_v27 = vadd.f32 %v3846_v20, %v3801_v0  ;;  %v9056_v0 = vld [vmem:[#allocation75_spill] sm:$0xff] }
 0x736   : > { %v3860_v46 = vmul.f32 0.25, %v3853_v27 }
 0x738   : > { %3927 = vmatmul.f32.gmra.mxu2 %v3860_v46  ;;  %3965 = vmatmul.f32.gmra.mxu3 %v3860_v46  ;;  %v9057_v46 = vld [vmem:[#allocation76_spill] sm:$0xff] }
 0x739   : > { %5258 = vmatmul.msk.f32.gmra.mxu1 %vm456_vm1, %v8099_v31  ;;  %5251 = vmatmul.msk.f32.gmra.mxu0 %vm456_vm1, %v8109_v25  ;;  %v2257_v29 = vadd.f32 %v9057_v46, %v1912_v62 }
 0x740   : > { %5231 = vmatmul.msk.f32.vlgmr.msrb.gmra.mxu2 %vm456_vm1, %v7990_v57  ;;  %5239 = vmatmul.msk.f32.vlgmr.msrb.gmra.mxu3 %vm456_vm1, %v7990_v57 }
 0x741   : > { %5259 = vmatmul.msk.f32.gmra.mxu1 %vm456_vm1, %v8109_v25  ;;  %5252 = vmatmul.msk.f32.gmra.mxu0 %vm456_vm1, %v8119_v18 }
 0x748   : > { %5232 = vmatmul.msk.f32.gmra.mxu2 %vm456_vm1, %v8004_v61  ;;  %5240 = vmatmul.msk.f32.gmra.mxu3 %vm456_vm1, %v8004_v61 }
 0x749   : > { %5260 = vmatmul.msk.f32.gmra.mxu1 %vm456_vm1, %v8119_v18  ;;  %5253 = vmatmul.msk.f32.gmra.mxu0 %vm456_vm1, %v8129_v13 }
 0x750   : > { %5233 = vmatmul.msk.f32.gmra.mxu2 %vm456_vm1, %v8018_v48  ;;  %5241 = vmatmul.msk.f32.gmra.mxu3 %vm456_vm1, %v8018_v48 }
 0x751   : > { %5261 = vmatmul.msk.f32.gmra.mxu1 %vm456_vm1, %v8129_v13 }
 0x758   : > { %5234 = vmatmul.msk.f32.gmra.mxu2 %vm456_vm1, %v8032_v55  ;;  %5242 = vmatmul.msk.f32.gmra.mxu3 %vm456_vm1, %v8032_v55 }
 0x75e   : > { %v8394_v57 = vpop.f32.mrf.mxu0 }
 0x760   : > { %5235 = vmatmul.msk.f32.gmra.mxu2 %vm456_vm1, %v8044_v1  ;;  %5243 = vmatmul.msk.f32.gmra.mxu3 %vm456_vm1, %v8044_v1 }
 0x766   : > { %v8396_v61 = vpop.f32.mrf.mxu1  ;;  %v8402_v48 = vpop.f32.mrf.mxu0 }
 0x768   : > { %5236 = vmatmul.msk.f32.gmra.mxu2 %vm456_vm1, %v8054_v22  ;;  %5244 = vmatmul.msk.f32.gmra.mxu3 %vm456_vm1, %v8054_v22 }
 0x76e   : > { %v8404_v55 = vpop.f32.mrf.mxu1 }
 0x770   : > { %5237 = vmatmul.msk.f32.gmra.mxu2 %vm456_vm1, %v8064_v26  ;;  %5245 = vmatmul.msk.f32.gmra.mxu3 %vm456_vm1, %v8064_v26  ;;  %v8414_v26 = vpop.f32.mrf.mxu0 }
 0x778   : > { %5263 = vmatmul.msk.f32.vlgmr.msra.gmra.mxu2 %vm456_vm1, %v8074_v28  ;;  %5271 = vmatmul.msk.f32.vlgmr.msra.gmra.mxu3 %vm456_vm1, %v8074_v28  ;;  %v8416_v28 = vpop.f32.mrf.mxu1  ;;  %v8426_v43 = vpop.f32.mrf.mxu0 }
 0x780   : > { %5264 = vmatmul.msk.f32.gmra.mxu2 %vm456_vm1, %v8084_v53  ;;  %5272 = vmatmul.msk.f32.gmra.mxu3 %vm456_vm1, %v8084_v53 }
 0x788   : > { %5265 = vmatmul.msk.f32.gmra.mxu2 %vm456_vm1, %v8094_v30  ;;  %5273 = vmatmul.msk.f32.gmra.mxu3 %vm456_vm1, %v8094_v30  ;;  %v8428_v30 = vpop.f32.mrf.mxu1 }
 0x78b   : > { %v8410_v1 = vpop.f32.mrf.mxu2  ;;  %v8412_v22 = vpop.f32.mrf.mxu3 }
 0x790   : > { %5266 = vmatmul.msk.f32.gmra.mxu2 %vm456_vm1, %v8104_v3  ;;  %5274 = vmatmul.msk.f32.gmra.mxu3 %vm456_vm1, %v8104_v3  ;;  %v8442_v3 = vpop.f32.mrf.mxu0  ;;  %v8444_v18 = vpop.f32.mrf.mxu1 }
 0x793   : > { %v8422_v19 = vpop.f32.mrf.mxu2  ;;  %v8424_v53 = vpop.f32.mrf.mxu3 }
 0x798   : > { %5267 = vmatmul.msk.f32.gmra.mxu2 %vm456_vm1, %v8114_v42  ;;  %5275 = vmatmul.msk.f32.gmra.mxu3 %vm456_vm1, %v8114_v42  ;;  %v1180_v42 = vadd.f32 %v6446_v40, %v6504_v2  ;;  %v2255_v40 = vadd.f32 %v7232_v8, %v1910_v39  ;;  %v8464_v2 = vpop.f32.mrf.mxu0  ;;  %v8466_v41 = vpop.f32.mrf.mxu1  ;;  %v9059_v39 = vld [vmem:[#allocation90_spill] sm:$0xff] }
 0x79a   : > { %v1564_v38 = vadd.f32 %v6802_v32, %v1180_v42 }
 0x79b   : > { %v8434_v31 = vpop.f32.mrf.mxu2  ;;  %v8436_v25 = vpop.f32.mrf.mxu3 }
 0x7a0   : > { %5268 = vmatmul.msk.f32.gmra.mxu2 %vm456_vm1, %v8124_v9  ;;  %5276 = vmatmul.msk.f32.gmra.mxu3 %vm456_vm1, %v8124_v9  ;;  %v1909_v9 = vadd.f32 %v7016_v12, %v1564_v38  ;;  %v9045_v12 = vld [vmem:[#allocation35_spill] sm:$0xff] }
 0x7a1   : > { %v1183_v24 = vadd.f32 %v9045_v12, %v9044_v60  ;;  %v9063_v12 = vld [vmem:[#allocation103_spill] sm:$0xff] }
 0x7a2   : > { %v2254_v47 = vadd.f32 %v7230_v16, %v1909_v9  ;;  %v2600_v16 = vadd.f32 %v9049_v10, %v2255_v40  ;;  %v9067_v10 = vld [vmem:[#allocation127_spill] sm:$0xff] }
 0x7a3   : > { %v8446_v13 = vpop.f32.mrf.mxu2  ;;  %v8448_v45 = vpop.f32.mrf.mxu3  ;;  %v1566_v8 = vadd.f32 %v9050_v21, %v1183_v24  ;;  %v3983_v21 = vld [vmem:[#allocation4] sm:$0x3] }
 0x7a4   : > { %v2945_v14 = vadd.f32 %v9053_v50, %v2600_v16  ;;  %v8512_v50 = vperm.slane %v3983_v21, 1 }
 0x7a5   : > { %v1911_v7 = vadd.f32 %v9054_v35, %v1566_v8 }
 0x7a6   : > { %v3290_v20 = vadd.f32 %v7958_v63, %v2945_v14  ;;  %v8498_v63 = vpop.f32.mrf.mxu1 }
 0x7a7   : > { %v2256_v27 = vadd.f32 %v9056_v0, %v1911_v7  ;;  %9062 = vst [vmem:[#allocation40_spill] sm:$0xff] %v8498_v63  ;;  %v4054_v7 = vadd.f32 %v8396_v61, %v8512_v50  ;;  %v9127_v63 = vld [vmem:[#allocation91_spill] sm:$0xff] }
 0x7a8   : > { %5269 = vmatmul.msk.f32.gmra.mxu2 %vm456_vm1, %v8134_v11  ;;  %5277 = vmatmul.msk.f32.gmra.mxu3 %vm456_vm1, %v8134_v11  ;;  %v2599_v11 = vadd.f32 %v9048_v23, %v2254_v47  ;;  %v3635_v42 = vadd.f32 %v8259_v33, %v3290_v20  ;;  %v2602_v47 = vadd.f32 %v9059_v39, %v2257_v29  ;;  %v9066_v23 = vld [vmem:[#allocation126_spill] sm:$0xff] }
 0x7a9   : > { %v2601_v9 = vadd.f32 %v9058_v44, %v2256_v27  ;;  %v4075_v29 = vmax.f32 %v4054_v7, 0.0 }
 0x7aa   : > { %v2944_v6 = vadd.f32 %v9052_v5, %v2599_v11 }
 0x7ab   : > { %v8468_v32 = vpop.f32.mrf.mxu2  ;;  %v8470_v54 = vpop.f32.mrf.mxu3  ;;  %v2946_v24 = vadd.f32 %v9063_v12, %v2601_v9  ;;  %v4057_v9 = vadd.f32 %v8404_v55, %v8512_v50 }
 0x7ac   : > { %v3289_v58 = vadd.f32 %v7956_v37, %v2944_v6  ;;  %v8496_v37 = vpop.f32.mrf.mxu0  ;;  %v8510_v6 = vperm.slane %v3983_v21, 0  ;;  %v4063_v21 = vadd.f32 %v8428_v30, %v8512_v50 }
 0x7ad   : > { %v3291_v33 = vadd.f32 %v7962_v17, %v2946_v24 }
 0x7ae   : > { %v3634_v36 = vadd.f32 %v8257_v4, %v3289_v58  ;;  %v2947_v4 = vadd.f32 %v9064_v34, %v2602_v47  ;;  %v4275_v35 = vpop.f32.mrf.mxu1  ;;  %v4016_v17 = vadd.f32 %v8394_v57, %v8510_v6  ;;  %v4019_v61 = vadd.f32 %v8402_v48, %v8510_v6 }
 0x7af   : > { %v3636_v11 = vadd.f32 %v9066_v23, %v3291_v33  ;;  %v4276_v62 = vadd.f32 %v4275_v35, %v8512_v50  ;;  %v4081_v7 = vmax.f32 %v4063_v21, 0.0  ;;  %v4031_v30 = vadd.f32 %v8464_v2, %v8510_v6  ;;  %v9078_v21 = vld [vmem:[#allocation28_spill] sm:$0xff] }
 0x7b0   : > { %v3292_v59 = vadd.f32 %v9065_v15, %v2947_v4  ;;  %v4074_v46 = vmax.f32 %v4016_v17, 0.0  ;;  %v4076_v33 = vmax.f32 %v4019_v61, 0.0  ;;  %v4077_v15 = vmax.f32 %v4057_v9, 0.0 }
 0x7b2   : > { %v3637_v16 = vadd.f32 %v9067_v10, %v3292_v59 }
 0x7b3   : > { %v3925_v56 = vpop.f32.mrf.mxu2  ;;  %v3963_v38 = vpop.f32.mrf.mxu3 }
 0x7b4   : > { %v8492_v40 = vadd.f32 %v3925_v56, %v3634_v36  ;;  %v8494_v60 = vadd.f32 %v3963_v38, %v3635_v42  ;;  %v4237_v14 = vpop.f32.mrf.mxu0  ;;  %v4297_v38 = vmax.f32 %v4276_v62, 0.0 }
 0x7b5   : > { %v4238_v49 = vadd.f32 %v4237_v14, %v8510_v6 }
 0x7b6   : > { %9060 = vst [vmem:[#allocation39_spill] sm:$0xff] %v8492_v40  ;;  %v9106_v40 = vld [vmem:[#allocation57_spill] sm:$0xff] }
 0x7b7   : > { %9061 = vst [vmem:[#allocation35_spill] sm:$0xff] %v8494_v60  ;;  %v4296_v56 = vmax.f32 %v4238_v49, 0.0 }
 0x7bb   : > { %v3928_v8 = vpop.f32.mrf.mxu2  ;;  %v3966_v51 = vpop.f32.mrf.mxu3 }
 0x7bc   : > { %v8506_v52 = vadd.f32 %v3928_v8, %v3636_v11  ;;  %v8508_v5 = vadd.f32 %v3966_v51, %v3637_v16  ;;  %v4025_v16 = vadd.f32 %v8426_v43, %v8510_v6 }
 0x7be   : > { %9068 = vst [vmem:[#allocation38_spill] sm:$0xff] %v8506_v52  ;;  %v4080_v17 = vmax.f32 %v4025_v16, 0.0 }
 0x7bf   : > { %9069 = vst [vmem:[#allocation87_spill] sm:$0xff] %v8508_v5  ;;  %v9099_v5 = vld [vmem:[#allocation48_spill] sm:$0xff] }
 0x7c3   : > { %v4126_v58 = vpop.f32.mrf.mxu2  ;;  %v4164_v20 = vpop.f32.mrf.mxu3 }
 0x7c4   : > { %v4127_v0 = vadd.f32 %v4126_v58, %v8510_v6  ;;  %v4165_v27 = vadd.f32 %v4164_v20, %v8512_v50 }
 0x7c6   : > { %v4185_v36 = vmax.f32 %v4127_v0, 0.0  ;;  %v4186_v42 = vmax.f32 %v4165_v27, 0.0  ;;  %v4069_v27 = vadd.f32 %v8466_v41, %v8512_v50 }
 0x7c8   : > { %v4199_v57 = vadd.f32 %v4185_v36, %v4074_v46  ;;  %v4200_v44 = vadd.f32 %v4186_v42, %v4075_v29 }
 0x7ca   : > { %v8526_v39 = vadd.f32 %v4296_v56, %v4199_v57  ;;  %v8528_v47 = vadd.f32 %v4297_v38, %v4200_v44  ;;  %v4084_v56 = vmax.f32 %v4031_v30, 0.0  ;;  %v4085_v38 = vmax.f32 %v4069_v27, 0.0  ;;  %v8560_v57 = vpop.f32.mrf.mxu0  ;;  %v8562_v44 = vpop.f32.mrf.mxu1  ;;  %v9084_v30 = vld [vmem:[#allocation33_spill] sm:$0xff] }
 0x7cb   : > { %v4129_v12 = vpop.f32.mrf.mxu2  ;;  %v4167_v24 = vpop.f32.mrf.mxu3  ;;  %v9085_v27 = vld [vmem:[#allocation25_spill] sm:$0xff] }
 0x7cc   : > { %v4130_v34 = vadd.f32 %v4129_v12, %v8510_v6  ;;  %v4168_v4 = vadd.f32 %v4167_v24, %v8512_v50  ;;  %v9070_v12 = vld [vmem:[#allocation23_spill] sm:$0xff]  ;;  %v9071_v24 = vld [vmem:[#allocation17_spill] sm:$0xff] }
 0x7cd   : > { %v1165_v2 = vadd.f32 %v9071_v24, %v9070_v12  ;;  %v9088_v12 = vld [vmem:[#allocation36_spill] sm:$0xff] }
 0x7ce   : > { %v4187_v59 = vmax.f32 %v4130_v34, 0.0  ;;  %v4188_v23 = vmax.f32 %v4168_v4, 0.0  ;;  %v9072_v34 = vld [vmem:[#allocation24_spill] sm:$0xff]  ;;  %v9073_v4 = vld [vmem:[#allocation18_spill] sm:$0xff] }
 0x7cf   : > { %v1203_v41 = vadd.f32 %v9073_v4, %v9072_v34  ;;  %v9092_v34 = vld [vmem:[#allocation41_spill] sm:$0xff] }
 0x7d0   : > { %v8532_v11 = vadd.f32 %v4187_v59, %v4076_v33  ;;  %v8534_v48 = vadd.f32 %v4188_v23, %v4077_v15  ;;  %v9074_v33 = vld [vmem:[#allocation27_spill] sm:$0xff]  ;;  %v1554_v4 = vadd.f32 %v9092_v34, %v1165_v2  ;;  %v9101_v34 = vld [vmem:[#allocation50_spill] sm:$0xff] }
 0x7d1   : > { %v9075_v15 = vld [vmem:[#allocation19_spill] sm:$0xff] }
 0x7d2   : > { %v1168_v59 = vadd.f32 %v9075_v15, %v9074_v33  ;;  %v9093_v33 = vld [vmem:[#allocation42_spill] sm:$0xff] }
 0x7d3   : > { %v8536_v10 = vpop.f32.mrf.mxu2  ;;  %v8538_v55 = vpop.f32.mrf.mxu3  ;;  %v1555_v15 = vadd.f32 %v9093_v33, %v1203_v41  ;;  %v9102_v33 = vld [vmem:[#allocation53_spill] sm:$0xff] }
 0x7db   : > { %v4135_v8 = vpop.f32.mrf.mxu2  ;;  %v4173_v51 = vpop.f32.mrf.mxu3 }
 0x7dc   : > { %v4136_v14 = vadd.f32 %v4135_v8, %v8510_v6  ;;  %v4174_v35 = vadd.f32 %v4173_v51, %v8512_v50  ;;  %v9079_v8 = vld [vmem:[#allocation20_spill] sm:$0xff] }
 0x7dd   : > { %v1206_v51 = vadd.f32 %v9079_v8, %v9078_v21  ;;  %v9094_v21 = vld [vmem:[#allocation43_spill] sm:$0xff] }
 0x7de   : > { %v4191_v49 = vmax.f32 %v4136_v14, 0.0  ;;  %v4192_v62 = vmax.f32 %v4174_v35, 0.0  ;;  %v9080_v14 = vld [vmem:[#allocation31_spill] sm:$0xff]  ;;  %v9081_v35 = vld [vmem:[#allocation21_spill] sm:$0xff]  ;;  %v1556_v8 = vadd.f32 %v9094_v21, %v1168_v59  ;;  %v1899_v59 = vadd.f32 %v9102_v33, %v1554_v4  ;;  %v9103_v21 = vld [vmem:[#allocation54_spill] sm:$0xff] }
 0x7df   : > { %v9113_v33 = vld [vmem:[#allocation62_spill] sm:$0xff] }
 0x7e0   : > { %v8546_v58 = vadd.f32 %v4191_v49, %v4080_v17  ;;  %v8548_v20 = vadd.f32 %v4192_v62, %v4081_v7  ;;  %v1171_v17 = vadd.f32 %v9081_v35, %v9080_v14  ;;  %v9082_v7 = vld [vmem:[#allocation32_spill] sm:$0xff]  ;;  %v9083_v49 = vld [vmem:[#allocation22_spill] sm:$0xff] }
 0x7e1   : > { %v1209_v62 = vadd.f32 %v9083_v49, %v9082_v7  ;;  %v9095_v14 = vld [vmem:[#allocation44_spill] sm:$0xff]  ;;  %v9096_v7 = vld [vmem:[#allocation45_spill] sm:$0xff] }
 0x7e2   : > { %v1557_v35 = vadd.f32 %v9095_v14, %v1206_v51  ;;  %v1558_v49 = vadd.f32 %v9096_v7, %v1171_v17  ;;  %v1900_v51 = vadd.f32 %v9103_v21, %v1555_v15  ;;  %v9104_v14 = vld [vmem:[#allocation55_spill] sm:$0xff]  ;;  %v9105_v7 = vld [vmem:[#allocation56_spill] sm:$0xff] }
 0x7e3   : > { %v8550_v0 = vpop.f32.mrf.mxu2  ;;  %v8552_v43 = vpop.f32.mrf.mxu3  ;;  %v1901_v17 = vadd.f32 %v9104_v14, %v1556_v8  ;;  %v9114_v21 = vld [vmem:[#allocation67_spill] sm:$0xff]  ;;  %v9115_v14 = vld [vmem:[#allocation68_spill] sm:$0xff] }
 0x7e4   : > { %v1902_v52 = vadd.f32 %v9105_v7, %v1557_v35  ;;  %v1903_v60 = vadd.f32 %v9106_v40, %v1558_v49  ;;  %v9116_v7 = vld [vmem:[#allocation69_spill] sm:$0xff]  ;;  %v4243_v49 = vpop.f32.mrf.mxu0 }
 0x7e5   : > { %v2246_v8 = vadd.f32 %v9114_v21, %v1901_v17  ;;  %v9124_v21 = vld [vmem:[#allocation79_spill] sm:$0xff] }
 0x7e6   : > { %v2247_v35 = vadd.f32 %v9115_v14, %v1902_v52  ;;  %v2248_v40 = vadd.f32 %v9116_v7, %v1903_v60  ;;  %v9125_v14 = vld [vmem:[#allocation80_spill] sm:$0xff]  ;;  %v9126_v7 = vld [vmem:[#allocation81_spill] sm:$0xff] }
 0x7e7   : > { %v2591_v52 = vadd.f32 %v9124_v21, %v2246_v8 }
 0x7e8   : > { %v2592_v60 = vadd.f32 %v9125_v14, %v2247_v35  ;;  %v9135_v14 = vld [vmem:[#allocation86_spill] sm:$0xff] }
 0x7eb   : > { %v4141_v46 = vpop.f32.mrf.mxu2  ;;  %v4179_v29 = vpop.f32.mrf.mxu3 }
 0x7ec   : > { %v4142_v36 = vadd.f32 %v4141_v46, %v8510_v6  ;;  %v4180_v42 = vadd.f32 %v4179_v29, %v8512_v50  ;;  %v1174_v46 = vadd.f32 %v9085_v27, %v9084_v30  ;;  %v9086_v29 = vld [vmem:[#allocation34_spill] sm:$0xff] }
 0x7ee   : > { %v4195_v61 = vmax.f32 %v4142_v36, 0.0  ;;  %v4196_v9 = vmax.f32 %v4180_v42, 0.0  ;;  %v9087_v36 = vld [vmem:[#allocation26_spill] sm:$0xff] }
 0x7ef   : > { %v1212_v42 = vadd.f32 %v9087_v36, %v9086_v29  ;;  %v9097_v29 = vld [vmem:[#allocation46_spill] sm:$0xff] }
 0x7f0   : > { %v8570_v23 = vadd.f32 %v4195_v61, %v4084_v56  ;;  %v8572_v16 = vadd.f32 %v4196_v9, %v4085_v38  ;;  %v9089_v56 = vld [vmem:[#allocation29_spill] sm:$0xff]  ;;  %v9091_v9 = vld [vmem:[#allocation30_spill] sm:$0xff]  ;;  %v1559_v36 = vadd.f32 %v9097_v29, %v1209_v62  ;;  %v9108_v29 = vld [vmem:[#allocation59_spill] sm:$0xff] }
 0x7f1   : > { %v1177_v61 = vadd.f32 %v9089_v56, %v9088_v12  ;;  %v9090_v38 = vld [vmem:[#allocation37_spill] sm:$0xff]  ;;  %v9098_v12 = vld [vmem:[#allocation47_spill] sm:$0xff] }
 0x7f2   : > { %9076 = vst [vmem:[#allocation88_spill] sm:$0xff] %v8570_v23  ;;  %v1215_v24 = vadd.f32 %v9091_v9, %v9090_v38  ;;  %v1560_v56 = vadd.f32 %v9098_v12, %v1174_v46  ;;  %v1561_v38 = vadd.f32 %v9099_v5, %v1212_v42  ;;  %v9100_v9 = vld [vmem:[#allocation49_spill] sm:$0xff]  ;;  %v9109_v12 = vld [vmem:[#allocation60_spill] sm:$0xff]  ;;  %v2593_v23 = vadd.f32 %v9126_v7, %v2248_v40 }
 0x7f3   : > { %9077 = vst [vmem:[#allocation51_spill] sm:$0xff] %v8572_v16  ;;  %v8593_v30 = vpop.f32.mrf.mxu2  ;;  %v8595_v27 = vpop.f32.mrf.mxu3  ;;  %v1562_v2 = vadd.f32 %v9100_v9, %v1177_v61  ;;  %v9107_v16 = vld [vmem:[#allocation58_spill] sm:$0xff]  ;;  %v9110_v42 = vld [vmem:[#allocation61_spill] sm:$0xff]  ;;  %v4241_v40 = vadd.f32 %v8560_v57, %v8510_v6 }
 0x7f4   : > { %v1563_v41 = vadd.f32 %v9101_v34, %v1215_v24  ;;  %v1904_v62 = vadd.f32 %v9107_v16, %v1559_v36  ;;  %v1905_v46 = vadd.f32 %v9108_v29, %v1560_v56  ;;  %v1906_v5 = vadd.f32 %v9109_v12, %v1561_v38  ;;  %v9111_v9 = vld [vmem:[#allocation65_spill] sm:$0xff]  ;;  %v9112_v34 = vld [vmem:[#allocation66_spill] sm:$0xff]  ;;  %v4281_v16 = vpop.f32.mrf.mxu1  ;;  %v9118_v29 = vld [vmem:[#allocation71_spill] sm:$0xff] }
 0x7f5   : > { %v1907_v61 = vadd.f32 %v9110_v42, %v1562_v2  ;;  %v2244_v24 = vadd.f32 %v9111_v9, %v1899_v59  ;;  %v2245_v4 = vadd.f32 %v9112_v34, %v1900_v51  ;;  %v9117_v36 = vld [vmem:[#allocation70_spill] sm:$0xff]  ;;  %v9119_v12 = vld [vmem:[#allocation77_spill] sm:$0xff]  ;;  %v9121_v9 = vld [vmem:[#allocation72_spill] sm:$0xff] }
 0x7f6   : > { %v1908_v15 = vadd.f32 %v9113_v33, %v1563_v41  ;;  %v2249_v56 = vadd.f32 %v9117_v36, %v1904_v62  ;;  %v2250_v38 = vadd.f32 %v9118_v29, %v1905_v46  ;;  %v9120_v42 = vld [vmem:[#allocation78_spill] sm:$0xff]  ;;  %v2251_v51 = vadd.f32 %v9121_v9, %v1906_v5  ;;  %v9122_v34 = vld [vmem:[#allocation73_spill] sm:$0xff]  ;;  %v9128_v36 = vld [vmem:[#allocation92_spill] sm:$0xff] }
 0x7f7   : > { %v2589_v2 = vadd.f32 %v9119_v12, %v2244_v24  ;;  %v2590_v59 = vadd.f32 %v9120_v42, %v2245_v4  ;;  %v2252_v41 = vadd.f32 %v9122_v34, %v1907_v61  ;;  %v9123_v33 = vld [vmem:[#allocation74_spill] sm:$0xff]  ;;  %v9130_v42 = vld [vmem:[#allocation83_spill] sm:$0xff]  ;;  %v9131_v9 = vld [vmem:[#allocation105_spill] sm:$0xff] }
 0x7f8   : > { %v2253_v17 = vadd.f32 %v9123_v33, %v1908_v15  ;;  %v9129_v12 = vld [vmem:[#allocation82_spill] sm:$0xff]  ;;  %v2595_v5 = vadd.f32 %v9130_v42, %v2250_v38  ;;  %v9134_v33 = vld [vmem:[#allocation85_spill] sm:$0xff] }
 0x7f9   : > { %v2934_v62 = vadd.f32 %v9127_v63, %v2589_v2  ;;  %v2935_v46 = vadd.f32 %v9128_v36, %v2590_v59  ;;  %v2594_v4 = vadd.f32 %v9129_v12, %v2249_v56  ;;  %v9132_v34 = vld [vmem:[#allocation106_spill] sm:$0xff]  ;;  %v4279_v63 = vadd.f32 %v8562_v44, %v8512_v50  ;;  %v9133_v2 = vld [vmem:[#allocation84_spill] sm:$0xff]  ;;  %v9136_v36 = vld [vmem:[#allocation93_spill] sm:$0xff] }
 0x7fa   : > { %v2596_v59 = vadd.f32 %v9133_v2, %v2251_v51  ;;  %v2597_v56 = vadd.f32 %v9134_v33, %v2252_v41  ;;  %v8642_v7 = vadd.f32 %v9135_v14, %v2253_v17  ;;  %v9139_v42 = vld [vmem:[#allocation94_spill] sm:$0xff]  ;;  %v4298_v17 = vmax.f32 %v4241_v40, 0.0  ;;  %v9141_v33 = vld [vmem:[#allocation107_spill] sm:$0xff] }
 0x7fb   : > { %v4348_v29 = vpop.f32.mrf.mxu2  ;;  %v4386_v24 = vpop.f32.mrf.mxu3  ;;  %v3279_v8 = vadd.f32 %v9131_v9, %v2934_v62  ;;  %v3280_v35 = vadd.f32 %v9132_v34, %v2935_v46  ;;  %v9137_v62 = vld [vmem:[#allocation116_spill] sm:$0xff]  ;;  %v9138_v46 = vld [vmem:[#allocation117_spill] sm:$0xff]  ;;  %v2937_v57 = vadd.f32 %v9139_v42, %v2592_v60  ;;  %v9140_v9 = vld [vmem:[#allocation95_spill] sm:$0xff] }
 0x7fc   : > { %v4349_v61 = vadd.f32 %v4348_v29, %v8510_v6  ;;  %v4387_v15 = vadd.f32 %v4386_v24, %v8512_v50  ;;  %v2936_v29 = vadd.f32 %v9136_v36, %v2591_v52  ;;  %v2938_v34 = vadd.f32 %v9140_v9, %v2593_v23  ;;  %v4284_v60 = vpop.f32.mrf.mxu1  ;;  %v9143_v42 = vld [vmem:[#allocation96_spill] sm:$0xff]  ;;  %v9144_v9 = vld [vmem:[#allocation97_spill] sm:$0xff] }
 0x7fd   : > { %v3624_v24 = vadd.f32 %v9137_v62, %v3279_v8  ;;  %v3625_v12 = vadd.f32 %v9138_v46, %v3280_v35  ;;  %v4133_v52 = vadd.f32 %v8536_v10, %v8510_v6  ;;  %v4171_v8 = vadd.f32 %v8538_v55, %v8512_v50  ;;  %v4246_v35 = vpop.f32.mrf.mxu0 }
 0x7fe   : > { %v4407_v21 = vmax.f32 %v4349_v61, 0.0  ;;  %v4408_v38 = vmax.f32 %v4387_v15, 0.0  ;;  %v4299_v15 = vmax.f32 %v4279_v63, 0.0  ;;  %v4312_v36 = vadd.f32 %v4298_v17, %v8532_v11 }
 0x7ff   : > { %v3969_v41 = vadd.f32 %v8410_v1, %v3624_v24  ;;  %v3970_v61 = vadd.f32 %v8412_v22, %v3625_v12  ;;  %v4022_v1 = vadd.f32 %v8414_v26, %v8510_v6  ;;  %v4060_v22 = vadd.f32 %v8416_v28, %v8512_v50 }
 0x800   : > { %v4421_v44 = vadd.f32 %v4407_v21, %v8526_v39  ;;  %v4422_v51 = vadd.f32 %v4408_v38, %v8528_v47  ;;  %v3281_v39 = vadd.f32 %v9141_v33, %v2936_v29  ;;  %v9142_v21 = vld [vmem:[#allocation108_spill] sm:$0xff]  ;;  %v4313_v29 = vadd.f32 %v4299_v15, %v8534_v48 }
 0x801   : > { %v3282_v47 = vadd.f32 %v9142_v21, %v2937_v57  ;;  %v4244_v62 = vadd.f32 %v4243_v49, %v8510_v6  ;;  %v4282_v26 = vadd.f32 %v4281_v16, %v8512_v50  ;;  %v4189_v24 = vmax.f32 %v4133_v52, 0.0 }
 0x802   : > { %v4435_v2 = vmul.f32 0.25, %v4421_v44  ;;  %v4436_v23 = vmul.f32 0.25, %v4422_v51  ;;  %v4190_v28 = vmax.f32 %v4171_v8, 0.0  ;;  %v2939_v57 = vadd.f32 %v9143_v42, %v2594_v4  ;;  %v9145_v51 = vld [vmem:[#allocation118_spill] sm:$0xff] }
 0x803   : > { %v4351_v40 = vpop.f32.mrf.mxu2  ;;  %v4389_v63 = vpop.f32.mrf.mxu3  ;;  %v2940_v44 = vadd.f32 %v9144_v9, %v2595_v5  ;;  %v4079_v11 = vmax.f32 %v4060_v22, 0.0  ;;  %v4300_v15 = vmax.f32 %v4244_v62, 0.0  ;;  %v4301_v52 = vmax.f32 %v4282_v26, 0.0  ;;  %v9150_v22 = vld [vmem:[#allocation110_spill] sm:$0xff] }
 0x804   : > { %v8663_v10 = vadd.f32 %v4436_v23, %v3970_v61  ;;  %v4352_v55 = vadd.f32 %v4351_v40, %v8510_v6  ;;  %v4390_v38 = vadd.f32 %v4389_v63, %v8512_v50  ;;  %v8667_v14 = vadd.f32 %v4435_v2, %v3969_v41  ;;  %v9146_v41 = vld [vmem:[#allocation119_spill] sm:$0xff]  ;;  %v9147_v40 = vld [vmem:[#allocation98_spill] sm:$0xff] }
 0x805   : > { %v3626_v61 = vadd.f32 %v9145_v51, %v3281_v39  ;;  %v3627_v2 = vadd.f32 %v9146_v41, %v3282_v47  ;;  %v4078_v23 = vmax.f32 %v4022_v1, 0.0  ;;  %v4204_v33 = vadd.f32 %v4190_v28, %v4079_v11  ;;  %v9148_v63 = vld [vmem:[#allocation99_spill] sm:$0xff]  ;;  %v9149_v47 = vld [vmem:[#allocation109_spill] sm:$0xff]  ;;  %v9155_v11 = vld [vmem:[#allocation122_spill] sm:$0xff] }
 0x806   : > { %v4409_v46 = vmax.f32 %v4352_v55, 0.0  ;;  %v4410_v12 = vmax.f32 %v4390_v38, 0.0  ;;  %v2941_v5 = vadd.f32 %v9147_v40, %v2596_v59  ;;  %v8681_v39 = vadd.f32 %v9148_v63, %v2597_v56  ;;  %v9151_v59 = vld [vmem:[#allocation111_spill] sm:$0xff]  ;;  %v9152_v56 = vld [vmem:[#allocation112_spill] sm:$0xff] }
 0x807   : > { %v3971_v49 = vadd.f32 %v8422_v19, %v3626_v61  ;;  %v3972_v16 = vadd.f32 %v8424_v53, %v3627_v2  ;;  %v4203_v8 = vadd.f32 %v4189_v24, %v4078_v23  ;;  %v3283_v1 = vadd.f32 %v9149_v47, %v2938_v34  ;;  %v4249_v19 = vpop.f32.mrf.mxu0  ;;  %v9153_v61 = vld [vmem:[#allocation120_spill] sm:$0xff]  ;;  %v9154_v2 = vld [vmem:[#allocation121_spill] sm:$0xff] }
 0x808   : > { %v4423_v17 = vadd.f32 %v4409_v46, %v4312_v36  ;;  %v4424_v48 = vadd.f32 %v4410_v12, %v4313_v29  ;;  %v3284_v55 = vadd.f32 %v9150_v22, %v2939_v57  ;;  %v4287_v29 = vpop.f32.mrf.mxu1  ;;  %v3285_v28 = vadd.f32 %v9151_v59, %v2940_v44 }
 0x809   : > { %v3286_v46 = vadd.f32 %v9152_v56, %v2941_v5  ;;  %v4247_v34 = vadd.f32 %v4246_v35, %v8510_v6  ;;  %v4285_v12 = vadd.f32 %v4284_v60, %v8512_v50  ;;  %v4314_v42 = vadd.f32 %v4300_v15, %v4203_v8  ;;  %v4463_v15 = vld [vmem:[#allocation9] sm:$0x3] }
 0x80a   : > { %v4437_v21 = vmul.f32 0.25, %v4423_v17  ;;  %v4438_v4 = vmul.f32 0.25, %v4424_v48  ;;  %v4315_v57 = vadd.f32 %v4301_v52, %v4204_v33  ;;  %v3628_v41 = vadd.f32 %v9153_v61, %v3283_v1  ;;  %v9156_v48 = vld [vmem:[#allocation123_spill] sm:$0xff] }
 0x80b   : > { %v4354_v38 = vpop.f32.mrf.mxu2  ;;  %v4392_v36 = vpop.f32.mrf.mxu3  ;;  %v3629_v23 = vadd.f32 %v9154_v2, %v3284_v55  ;;  %v3630_v17 = vadd.f32 %v9155_v11, %v3285_v28  ;;  %v4028_v44 = vadd.f32 %v8442_v3, %v8510_v6  ;;  %v4066_v35 = vadd.f32 %v8444_v18, %v8512_v50 }
 0x80c   : > { %v8685_v53 = vadd.f32 %v4438_v4, %v3972_v16  ;;  %v4355_v62 = vadd.f32 %v4354_v38, %v8510_v6  ;;  %v4393_v26 = vadd.f32 %v4392_v36, %v8512_v50  ;;  %v8689_v24 = vadd.f32 %v4437_v21, %v3971_v49 }
 0x80d   : > { %v3631_v49 = vadd.f32 %v9156_v48, %v3286_v46  ;;  %v4302_v52 = vmax.f32 %v4247_v34, 0.0  ;;  %v4303_v8 = vmax.f32 %v4285_v12, 0.0  ;;  %v4139_v33 = vadd.f32 %v8550_v0, %v8510_v6 }
 0x80e   : > { %v4411_v9 = vmax.f32 %v4355_v62, 0.0  ;;  %v4412_v51 = vmax.f32 %v4393_v26, 0.0  ;;  %v4177_v21 = vadd.f32 %v8552_v43, %v8512_v50  ;;  %v3973_v4 = vadd.f32 %v8434_v31, %v3628_v41 }
 0x80f   : > { %v3974_v40 = vadd.f32 %v8436_v25, %v3629_v23  ;;  %v4250_v63 = vadd.f32 %v4249_v19, %v8510_v6  ;;  %v4288_v18 = vadd.f32 %v4287_v29, %v8512_v50  ;;  %v8711_v22 = vperm.slane %v4463_v15, 0  ;;  %v4252_v26 = vpop.f32.mrf.mxu0 }
 0x810   : > { %v4425_v16 = vadd.f32 %v4411_v9, %v4314_v42  ;;  %v4426_v60 = vadd.f32 %v4412_v51, %v4315_v57  ;;  %v8713_v55 = vperm.slane %v4463_v15, 1  ;;  %v4316_v25 = vadd.f32 %v4302_v52, %v8546_v58  ;;  %v4290_v29 = vpop.f32.mrf.mxu1 }
 0x811   : > { %v4317_v36 = vadd.f32 %v4303_v8, %v8548_v20  ;;  %v4193_v62 = vmax.f32 %v4139_v33, 0.0  ;;  %v4194_v19 = vmax.f32 %v4177_v21, 0.0  ;;  %v3975_v34 = vadd.f32 %v8446_v13, %v3630_v17  ;;  %v9157_v17 = vld [vmem:[#allocation100_spill] sm:$0xff] }
 0x812   : > { %v4439_v5 = vmul.f32 0.25, %v4425_v16  ;;  %v4440_v3 = vmul.f32 0.25, %v4426_v60  ;;  %v4082_v12 = vmax.f32 %v4028_v44, 0.0  ;;  %v4083_v42 = vmax.f32 %v4066_v35, 0.0 }
 0x813   : > { %v4357_v47 = vpop.f32.mrf.mxu2  ;;  %v4395_v1 = vpop.f32.mrf.mxu3  ;;  %v3976_v58 = vadd.f32 %v8448_v45, %v3631_v49  ;;  %v4304_v61 = vmax.f32 %v4250_v63, 0.0  ;;  %v4305_v41 = vmax.f32 %v4288_v18, 0.0  ;;  %v8732_v13 = vadd.f32 %v8713_v55, %v8685_v53  ;;  %v9158_v49 = vld [vmem:[#allocation113_spill] sm:$0xff]  ;;  %v9159_v53 = vld [vmem:[#allocation114_spill] sm:$0xff]  ;;  %v9160_v18 = vld [vmem:[#allocation124_spill] sm:$0xff] }
 0x814   : > { %v4358_v0 = vadd.f32 %v4357_v47, %v8510_v6  ;;  %v4396_v43 = vadd.f32 %v4395_v1, %v8512_v50  ;;  %v4453_v38 = vadd.f32 %v4439_v5, %v3973_v4  ;;  %v4454_v31 = vadd.f32 %v4440_v3, %v3974_v40  ;;  %v9161_v1 = vld [vmem:[#allocation125_spill] sm:$0xff] }
 0x815   : > { %v4207_v51 = vadd.f32 %v4193_v62, %v4082_v12  ;;  %v4208_v23 = vadd.f32 %v4194_v19, %v4083_v42  ;;  %v2943_v45 = vadd.f32 %v9157_v17, %v8642_v7  ;;  %v3287_v44 = vadd.f32 %v9158_v49, %v8681_v39  ;;  %v9162_v42 = vld [vmem:[#allocation40_spill] sm:$0xff] }
 0x816   : > { %v4413_v59 = vmax.f32 %v4358_v0, 0.0  ;;  %v4414_v28 = vmax.f32 %v4396_v43, 0.0  ;;  %v8720_v56 = vadd.f32 %v8711_v22, %v4453_v38  ;;  %v8723_v46 = vadd.f32 %v8713_v55, %v4454_v31 }
 0x817   : > { %v4253_v35 = vadd.f32 %v4252_v26, %v8510_v6  ;;  %v3288_v21 = vadd.f32 %v9159_v53, %v2943_v45  ;;  %v4318_v4 = vadd.f32 %v4304_v61, %v4207_v51  ;;  %v4291_v7 = vadd.f32 %v4290_v29, %v8512_v50  ;;  %v4255_v38 = vpop.f32.mrf.mxu0  ;;  %v9163_v61 = vld [vmem:[#allocation88_spill] sm:$0xff] }
 0x818   : > { %v4427_v20 = vadd.f32 %v4413_v59, %v4316_v25  ;;  %v4428_v57 = vadd.f32 %v4414_v28, %v4317_v36  ;;  %v4492_v9 = vsel %vm4483_vm2, %v8723_v46, 0.0  ;;  %v8747_v39 = vadd.f32 %v8711_v22, %v8689_v24  ;;  %v4293_v31 = vpop.f32.mrf.mxu1 }
 0x819   : > { %v4493_v2 = vadd.f32 %v4492_v9, %v8720_v56  ;;  %v4319_v40 = vadd.f32 %v4305_v41, %v4208_v23  ;;  %v4488_v63 = vsel %vm4483_vm2, %v8732_v13, 0.0  ;;  %v3632_v47 = vadd.f32 %v9160_v18, %v3287_v44 }
 0x81a   : > { %v4441_v11 = vmul.f32 0.25, %v4427_v20  ;;  %v4442_v48 = vmul.f32 0.25, %v4428_v57  ;;  %v3633_v0 = vadd.f32 %v9161_v1, %v3288_v21  ;;  %v4306_v43 = vmax.f32 %v4253_v35, 0.0 }
 0x81b   : > { %v4360_v16 = vpop.f32.mrf.mxu2  ;;  %v4398_v60 = vpop.f32.mrf.mxu3  ;;  %4494 = vadd.xlane.f32.xlu2 %v4493_v2  ;;  %v4307_v62 = vmax.f32 %v4291_v7, 0.0  ;;  %v4145_v24 = vadd.f32 %v8593_v30, %v8510_v6  ;;  %v4183_v19 = vadd.f32 %v8595_v27, %v8512_v50  ;;  %v4489_v26 = vadd.f32 %v4488_v63, %v8747_v39  ;;  %v9164_v2 = vld [vmem:[#allocation51_spill] sm:$0xff] }
 0x81c   : > { %v4456_v15 = vadd.f32 %v4442_v48, %v3976_v58  ;;  %v4361_v52 = vadd.f32 %v4360_v16, %v8510_v6  ;;  %v4399_v8 = vadd.f32 %v4398_v60, %v8512_v50  ;;  %v8741_v33 = vadd.f32 %v4441_v11, %v3975_v34 }
 0x81d   : > { %v3977_v29 = vadd.f32 %v8468_v32, %v3632_v47  ;;  %v3978_v59 = vadd.f32 %v8470_v54, %v3633_v0  ;;  %v4034_v12 = vadd.f32 %v8496_v37, %v8510_v6  ;;  %v4072_v58 = vadd.f32 %v9162_v42, %v8512_v50  ;;  %v9165_v47 = vld [vmem:[#allocation35_spill] sm:$0xff] }
 0x81e   : > { %v4415_v5 = vmax.f32 %v4361_v52, 0.0  ;;  %v4416_v3 = vmax.f32 %v4399_v8, 0.0  ;;  %v4256_v20 = vadd.f32 %v4255_v38, %v8510_v6  ;;  %v4294_v30 = vadd.f32 %v4293_v31, %v8512_v50  ;;  %v9166_v38 = vld [vmem:[#allocation39_spill] sm:$0xff] }
 0x81f   : > { %v4320_v41 = vadd.f32 %v4306_v43, %v9163_v61  ;;  %v4321_v37 = vadd.f32 %v4307_v62, %v9164_v2  ;;  %v4197_v23 = vmax.f32 %v4145_v24, 0.0  ;;  %v4198_v11 = vmax.f32 %v4183_v19, 0.0 }
 0x820   : > { %v4429_v25 = vadd.f32 %v4415_v5, %v4318_v4  ;;  %v4430_v36 = vadd.f32 %v4416_v3, %v4319_v40  ;;  %v4086_v44 = vmax.f32 %v4034_v12, 0.0  ;;  %v4087_v35 = vmax.f32 %v4072_v58, 0.0  ;;  %v9168_v12 = vld [vmem:[#allocation87_spill] sm:$0xff] }
 0x821   : > { %v4308_v53 = vmax.f32 %v4256_v20, 0.0  ;;  %v4309_v21 = vmax.f32 %v4294_v30, 0.0  ;;  %v8780_v3 = vadd.f32 %v8713_v55, %v4456_v15  ;;  %v8808_v61 = vadd.f32 %v8711_v22, %v8667_v14 }
 0x822   : > { %v4443_v28 = vmul.f32 0.25, %v4429_v25  ;;  %v4444_v34 = vmul.f32 0.25, %v4430_v36  ;;  %v4211_v8 = vadd.f32 %v4197_v23, %v4086_v44  ;;  %v4212_v7 = vadd.f32 %v4198_v11, %v4087_v35 }
 0x823   : > { %v4363_v57 = vpop.f32.mrf.mxu2  ;;  %v4401_v27 = vpop.f32.mrf.mxu3  ;;  %4490 = vadd.xlane.f32.xlu2 %v4489_v26  ;;  %v8788_v36 = vadd.f32 %v8711_v22, %v8741_v33  ;;  %v4496_v19 = vsel %vm4483_vm2, %v8780_v3, 0.0 }
 0x824   : > { %v4364_v9 = vadd.f32 %v4363_v57, %v8510_v6  ;;  %v4402_v32 = vadd.f32 %v4401_v27, %v8512_v50  ;;  %v4457_v54 = vadd.f32 %v4443_v28, %v3977_v29  ;;  %v4458_v51 = vadd.f32 %v4444_v34, %v3978_v59 }
 0x825   : > { %v4322_v25 = vadd.f32 %v4308_v53, %v4211_v8  ;;  %v4323_v62 = vadd.f32 %v4309_v21, %v4212_v7  ;;  %v4497_v59 = vadd.f32 %v4496_v19, %v8788_v36 }
 0x826   : > { %v4417_v48 = vmax.f32 %v4364_v9, 0.0  ;;  %v4418_v17 = vmax.f32 %v4402_v32, 0.0  ;;  %v8771_v45 = vadd.f32 %v8711_v22, %v4457_v54  ;;  %v8774_v49 = vadd.f32 %v8713_v55, %v4458_v51 }
 0x827   : > { %v8804_v51 = vadd.f32 %v8713_v55, %v8663_v10 }
 0x828   : > { %v4431_v16 = vadd.f32 %v4417_v48, %v4320_v41  ;;  %v4432_v60 = vadd.f32 %v4418_v17, %v4321_v37  ;;  %v4500_v52 = vsel %vm4483_vm2, %v8774_v49, 0.0 }
 0x829   : > { %v4501_v4 = vadd.f32 %v4500_v52, %v8771_v45  ;;  %v4484_v41 = vsel %vm4483_vm2, %v8804_v51, 0.0 }
 0x82a   : > { %v4445_v40 = vmul.f32 0.25, %v4431_v16  ;;  %v4446_v5 = vmul.f32 0.25, %v4432_v60  ;;  %v4485_v2 = vadd.f32 %v4484_v41, %v8808_v61 }
 0x82b   : > { %v4366_v63 = vpop.f32.mrf.mxu2  ;;  %v4404_v18 = vpop.f32.mrf.mxu3  ;;  %4502 = vadd.xlane.f32.xlu1 %v4501_v4 }
 0x82c   : > { %v4460_v1 = vadd.f32 %v4446_v5, %v9165_v47  ;;  %v4367_v0 = vadd.f32 %v4366_v63, %v8510_v6  ;;  %v4405_v43 = vadd.f32 %v4404_v18, %v8512_v50  ;;  %v4459_v31 = vadd.f32 %v4445_v40, %v9166_v38  ;;  %v9167_v50 = vld [vmem:[#allocation38_spill] sm:$0xff] }
 0x82e   : > { %v4419_v24 = vmax.f32 %v4367_v0, 0.0  ;;  %v4420_v15 = vmax.f32 %v4405_v43, 0.0  ;;  %v4480_v27 = vadd.f32 %v8713_v55, %v4460_v1  ;;  %v4479_v9 = vadd.f32 %v8711_v22, %v4459_v31 }
 0x830   : > { %v4433_v26 = vadd.f32 %v4419_v24, %v4322_v25  ;;  %v4434_v29 = vadd.f32 %v4420_v15, %v4323_v62  ;;  %v4504_v32 = vsel %vm4483_vm2, %v4480_v27, 0.0 }
 0x831   : > { %v4505_v54 = vadd.f32 %v4504_v32, %v4479_v9 }
 0x832   : > { %v4447_v6 = vmul.f32 0.25, %v4433_v26  ;;  %v4448_v28 = vmul.f32 0.25, %v4434_v29 }
 0x833   : > { %4498 = vadd.xlane.f32.xlu1 %v4497_v59 }
 0x834   : > { %v4461_v34 = vadd.f32 %v4447_v6, %v9167_v50  ;;  %v4462_v42 = vadd.f32 %v4448_v28, %v9168_v12 }
 0x836   : > { %v4481_v33 = vadd.f32 %v8711_v22, %v4461_v34  ;;  %v4482_v58 = vadd.f32 %v8713_v55, %v4462_v42  ;;  %v5711_v22 = vmov 1.0  }
 0x838   : > { %v4509_v20 = vsel %vm4508_vm3, %v4481_v33, 0.0  ;;  %v4511_v30 = vsel %vm4510_vm4, %v4482_v58, 0.0 }
 0x839   : > { %v4512_v57 = vadd.f32 %v4511_v30, %v4509_v20 }
 0x83b   : > { %4513 = vadd.xlane.f32.xlu0 %v4512_v57 }
 0x843   : > { %4506 = vadd.xlane.f32.xlu0 %v4505_v54 }
 0x84b   : > { %4486 = vadd.xlane.f32.xlu0 %v4485_v2 }
 0x88e   : > { %v4495_v11 = vpop.xlane.xlu2 %4494 }
 0x896   : > { %v4491_v55 = vpop.xlane.xlu2 %4490 }
 0x89e   : > { %v4503_v23 = vpop.xlane.xlu1 %4502 }
 0x8a6   : > { %v4499_v10 = vpop.xlane.xlu1 %4498 }
 0x8ae   : > { %v4514_v37 = vpop.xlane.xlu0 %4513 }
 0x8af   : > { %5278 = vmatpush.msk.msrb.mxu0 %vm4508_vm3, %v4514_v37 }
 0x8b6   : > { %v4507_v48 = vpop.xlane.xlu0 %4506 }
 0x8b7   : > { %4532 = vmatpush.msrb.mxu0 %v4507_v48 }
 0x8b9   : > { %4533 = vmatpush.msrb.mxu0 %v4503_v23 }
 0x8bb   : > { %4534 = vmatpush.msrb.mxu0 %v4499_v10 }
 0x8bd   : > { %4535 = vmatpush.msrb.mxu0 %v4495_v11 }
 0x8be   : > { %v4487_v14 = vpop.xlane.xlu0 %4486 }
 0x8bf   : > { %4536 = vmatpush.msrb.mxu0 %v4491_v55 }
 0x8c1   : > { %4537 = vmatpush.msrb.mxu0 %v4487_v14 }
 0x8c2   : > { %5279 = vmatmul.msk.f32.vlgmr.msrb.gmra.mxu0 %vm4515_vm5, %v5711_v22 }
 0x93f   : > { %v4539_v17 = vpop.f32.mrf.mxu0 }
 0x940   : > { %v4542_v44 = vmul.f32 0.000106292515, %v4539_v17 }
 0x942   : > { %5286 = vpush %v4542_v44 }
 0x973   : > { %s5287_s25 = spop %5286 }
 0x974   : > { %v4545_v35 = vstv %s5287_s25 }
 0x975   : > { %v8816_v16 = vsub.f32 %v4481_v33, %v4545_v35  ;;  %v8818_v60 = vsub.f32 %v4482_v58, %v4545_v35  ;;  %v8820_v52 = vsub.f32 %v4479_v9, %v4545_v35  ;;  %v8822_v8 = vsub.f32 %v4480_v27, %v4545_v35 }
 0x976   : > { %v8825_v53 = vsub.f32 %v8771_v45, %v4545_v35  ;;  %v8828_v21 = vsub.f32 %v8774_v49, %v4545_v35  ;;  %v8831_v4 = vsub.f32 %v8780_v3, %v4545_v35  ;;  %v8849_v1 = vsub.f32 %v8788_v36, %v4545_v35 }
 0x977   : > { %v4573_v7 = vmul.f32 %v8816_v16, %v8816_v16  ;;  %v4574_v40 = vmul.f32 %v8818_v60, %v8818_v60  ;;  %v4571_v5 = vmul.f32 %v8820_v52, %v8820_v52  ;;  %v4572_v63 = vmul.f32 %v8822_v8, %v8822_v8 }
 0x978   : > { %v4569_v45 = vmul.f32 %v8825_v53, %v8825_v53  ;;  %v4570_v49 = vmul.f32 %v8828_v21, %v8828_v21  ;;  %v8853_v31 = vsub.f32 %v8720_v56, %v4545_v35  ;;  %v4568_v62 = vmul.f32 %v8831_v4, %v8831_v4 }
 0x979   : > { %v4599_v3 = vsel %vm4508_vm3, %v4573_v7, 0.0  ;;  %v4600_v18 = vsel %vm4510_vm4, %v4574_v40, 0.0  ;;  %v4595_v47 = vsel %vm4483_vm2, %v4572_v63, 0.0  ;;  %v8858_v24 = vsub.f32 %v8723_v46, %v4545_v35  ;;  %v4657_v40 = vld [vmem:[#allocation10] sm:$0xff] }
 0x97a   : > { %v4601_v0 = vadd.f32 %v4600_v18, %v4599_v3  ;;  %v4596_v43 = vadd.f32 %v4595_v47, %v4571_v5  ;;  %v4591_v38 = vsel %vm4483_vm2, %v4570_v49, 0.0  ;;  %v4549_v15 = vsub.f32 %v8747_v39, %v4545_v35  ;;  %v4658_v5 = vld [vmem:[#allocation10 + $0x8] sm:$0xff]  ;;  %v4660_v49 = vld [vmem:[#allocation10 + $0x18] sm:$0xff]  ;;  %v4661_v18 = vld [vmem:[#allocation10 + $0x20] sm:$0xff] }
 0x97b   : > { %v4592_v25 = vadd.f32 %v4591_v38, %v4569_v45  ;;  %v4550_v36 = vsub.f32 %v8732_v13, %v4545_v35  ;;  %v4566_v19 = vmul.f32 %v8858_v24, %v8858_v24  ;;  %v4567_v56 = vmul.f32 %v8849_v1, %v8849_v1  ;;  %v4659_v45 = vld [vmem:[#allocation10 + $0x10] sm:$0xff] }
 0x97c   : > { %4602 = vadd.xlane.f32.xlu1 %v4601_v0  ;;  %4597 = vadd.xlane.f32.xlu2 %v4596_v43  ;;  %v4565_v26 = vmul.f32 %v8853_v31, %v8853_v31  ;;  %v4587_v46 = vsel %vm4483_vm2, %v4568_v62, 0.0  ;;  %v4563_v6 = vmul.f32 %v4549_v15, %v4549_v15  ;;  %v4548_v39 = vsub.f32 %v8804_v51, %v4545_v35  ;;  %v4662_v0 = vld [vmem:[#allocation10 + $0x28] sm:$0xff]  ;;  %v4663_v43 = vld [vmem:[#allocation10 + $0x30] sm:$0xff] }
 0x97d   : > { %4593 = vadd.xlane.f32.xlu0 %v4592_v25  ;;  %v4564_v29 = vmul.f32 %v4550_v36, %v4550_v36  ;;  %v4583_v59 = vsel %vm4483_vm2, %v4566_v19, 0.0  ;;  %v4588_v28 = vadd.f32 %v4587_v46, %v4567_v56  ;;  %v4547_v34 = vsub.f32 %v8808_v61, %v4545_v35  ;;  %v4685_v19 = vld [vmem:[#allocation12] sm:$0xff]  ;;  %v4686_v56 = vld [vmem:[#allocation12 + $0x8] sm:$0xff] }
 0x97e   : > { %v4584_v50 = vadd.f32 %v4583_v59, %v4565_v26  ;;  %v4562_v42 = vmul.f32 %v4548_v39, %v4548_v39  ;;  %v4687_v26 = vld [vmem:[#allocation12 + $0x10] sm:$0xff]  ;;  %v4688_v59 = vld [vmem:[#allocation12 + $0x18] sm:$0xff] }
 0x97f   : > { %v4579_v13 = vsel %vm4483_vm2, %v4564_v29, 0.0  ;;  %v4561_v33 = vmul.f32 %v4547_v34, %v4547_v34  ;;  %v4664_v29 = vld [vmem:[#allocation10 + $0x38] sm:$0xff] }
 0x980   : > { %v4580_v12 = vadd.f32 %v4579_v13, %v4563_v6  ;;  %v4575_v58 = vsel %vm4483_vm2, %v4562_v42, 0.0  ;;  %v4666_v13 = vld [vmem:[#allocation10 + $0x48] sm:$0xff] }
 0x981   : > { %v4576_v20 = vadd.f32 %v4575_v58, %v4561_v33  ;;  %v4667_v33 = vld [vmem:[#allocation10 + $0x50] sm:$0xff] }
 0x984   : > { %4589 = vadd.xlane.f32.xlu1 %v4588_v28  ;;  %4585 = vadd.xlane.f32.xlu2 %v4584_v50  ;;  %v4690_v50 = vld [vmem:[#allocation12 + $0x28] sm:$0xff] }
 0x985   : > { %4581 = vadd.xlane.f32.xlu0 %v4580_v12 }
 0x98c   : > { %4577 = vadd.xlane.f32.xlu1 %v4576_v20  ;;  %v4691_v20 = vld [vmem:[#allocation12 + $0x30] sm:$0xff] }
 0x9ef   : > { %v4603_v30 = vpop.xlane.xlu1 %4602  ;;  %v4598_v57 = vpop.xlane.xlu2 %4597 }
 0x9f0   : > { %5280 = vmatpush.msk.msrb.mxu1 %vm4508_vm3, %v4603_v30  ;;  %v4594_v27 = vpop.xlane.xlu0 %4593 }
 0x9f2   : > { %4617 = vmatpush.msrb.mxu1 %v4598_v57 }
 0x9f4   : > { %4618 = vmatpush.msrb.mxu1 %v4594_v27  ;;  %v4692_v27 = vld [vmem:[#allocation12 + $0x38] sm:$0xff] }
 0x9f7   : > { %v4590_v9 = vpop.xlane.xlu1 %4589  ;;  %v4586_v32 = vpop.xlane.xlu2 %4585 }
 0x9f8   : > { %4619 = vmatpush.msrb.mxu1 %v4590_v9  ;;  %v4582_v54 = vpop.xlane.xlu0 %4581 }
 0x9fa   : > { %4620 = vmatpush.msrb.mxu1 %v4586_v32 }
 0x9fc   : > { %4621 = vmatpush.msrb.mxu1 %v4582_v54  ;;  %v4669_v54 = vld [vmem:[#allocation10 + $0x60] sm:$0x1] }
 0x9ff   : > { %v4578_v51 = vpop.xlane.xlu1 %4577 }
 0xa00   : > { %4622 = vmatpush.msrb.mxu1 %v4578_v51 }
 0xa01   : > { %5281 = vmatmul.msk.f32.vlgmr.msrb.gmra.mxu1 %vm4515_vm5, %v5711_v22 }
 0xa7e   : > { %v4624_v61 = vpop.f32.mrf.mxu1 }
 0xa7f   : > { %v4627_v41 = vmul.f32 0.000106292515, %v4624_v61 }
 0xa81   : > { %v4628_v2 = vadd.f32 1e-05, %v4627_v41  ;;  %v4670_v41 = vld [vmem:[#allocation10 + $0x68] sm:$0x1] }
 0xa83   : > { %5382 = vrsqrt.f32 %v4628_v2  ;;  %vm4635_vm7 = vweird.f32 %v4628_v2 }
 0xa89   : > { %v5383_v37 = vpop.eup %5382 }
 0xa8a   : > { %v4630_v23 = vmul.f32 %v5383_v37, %v4628_v2  ;;  %vm4636_vm6 = vweird.f32 %v5383_v37 }
 0xa8b   : > { %vm4637_vm8 = vmor %vm4635_vm7, %vm4636_vm6 }
 0xa8c   : > { %v4631_v11 = vmul.f32 %v5383_v37, %v4630_v23 }
 0xa8e   : > { %v4632_v48 = vmul.f32 0.5, %v4631_v11  ;;  %v4695_v11 = vld [vmem:[#allocation12 + $0x50] sm:$0xff] }
 0xa90   : > { %v4633_v10 = vsub.f32 1.5, %v4632_v48 }
 0xa92   : > { %v4634_v55 = vmul.f32 %v5383_v37, %v4633_v10  ;;  %v4696_v10 = vld [vmem:[#allocation12 + $0x58] sm:$0xff] }
 0xa94   : > { %v4638_v14 = vsel %vm4637_vm8, %v5383_v37, %v4634_v55 }
 0xa95   : > { %5288 = vpush %v4638_v14 }
 0xac6   : > { %s5289_s26 = spop %5288 }
 0xac7   : > { %v4641_v22 = vstv %s5289_s26 }
 0xac8   : > { %v4643_v17 = vmul.f32 %v4641_v22, %v4547_v34  ;;  %v4644_v44 = vmul.f32 %v4641_v22, %v4548_v39  ;;  %v4645_v35 = vmul.f32 %v4641_v22, %v4549_v15  ;;  %v4646_v7 = vmul.f32 %v4641_v22, %v4550_v36  ;;  %v4689_v39 = vld [vmem:[#allocation12 + $0x20] sm:$0xff] }
 0xac9   : > { %v4647_v63 = vmul.f32 %v4641_v22, %v8853_v31  ;;  %v4648_v3 = vmul.f32 %v4641_v22, %v8858_v24  ;;  %v4649_v47 = vmul.f32 %v4641_v22, %v8849_v1  ;;  %v4650_v62 = vmul.f32 %v4641_v22, %v8831_v4  ;;  %v4665_v4 = vld [vmem:[#allocation10 + $0x40] sm:$0xff] }
 0xaca   : > { %v4671_v38 = vmul.f32 %v4657_v40, %v4643_v17  ;;  %v4672_v25 = vmul.f32 %v4658_v5, %v4644_v44  ;;  %v4673_v15 = vmul.f32 %v4659_v45, %v4645_v35  ;;  %v4674_v36 = vmul.f32 %v4660_v49, %v4646_v7  ;;  %v4698_v44 = vld [vmem:[#allocation12 + $0x68] sm:$0x1] }
 0xacb   : > { %v4651_v31 = vmul.f32 %v4641_v22, %v8825_v53  ;;  %v4675_v46 = vmul.f32 %v4661_v18, %v4647_v63  ;;  %v4652_v1 = vmul.f32 %v4641_v22, %v8828_v21  ;;  %v4653_v24 = vmul.f32 %v4641_v22, %v8820_v52  ;;  %v4668_v52 = vld [vmem:[#allocation10 + $0x58] sm:$0xff] }
 0xacc   : > { %v4676_v6 = vmul.f32 %v4662_v0, %v4648_v3  ;;  %v4677_v28 = vmul.f32 %v4663_v43, %v4649_v47  ;;  %v4699_v53 = vadd.f32 %v4685_v19, %v4671_v38  ;;  %v4700_v34 = vadd.f32 %v4686_v56, %v4672_v25 }
 0xacd   : > { %v4701_v12 = vadd.f32 %v4687_v26, %v4673_v15  ;;  %v4654_v42 = vmul.f32 %v4641_v22, %v8822_v8  ;;  %v4678_v58 = vmul.f32 %v4664_v29, %v4650_v62  ;;  %v4702_v30 = vadd.f32 %v4688_v59, %v4674_v36  ;;  %v4693_v8 = vld [vmem:[#allocation12 + $0x40] sm:$0xff] }
 0xace   : > { %v4655_v21 = vmul.f32 %v4641_v22, %v8816_v16  ;;  %v4679_v57 = vmul.f32 %v4665_v4, %v4651_v31  ;;  %v4703_v9 = vadd.f32 %v4689_v39, %v4675_v46  ;;  %4713 = vst [vmem:[%s8890_s11] sm:$0xff] %v4699_v53  ;;  %v4656_v32 = vmul.f32 %v4641_v22, %v8818_v60  ;;  %v4694_v16 = vld [vmem:[#allocation12 + $0x48] sm:$0xff]  ;;  %v4697_v22 = vld [vmem:[#allocation12 + $0x60] sm:$0x1] }
 0xacf   : > { %v4680_v51 = vmul.f32 %v4666_v13, %v4652_v1  ;;  %v4704_v61 = vadd.f32 %v4690_v50, %v4676_v6  ;;  %4714 = vst.msk [vmem:[%s8890_s11 + $0x8] sm:$0xff] %vm4483_vm2, %v4700_v34  ;;  %v4681_v2 = vmul.f32 %v4667_v33, %v4653_v24  ;;  %v4705_v37 = vadd.f32 %v4691_v20, %v4677_v28 }
 0xad0   : > { %4715 = vst [vmem:[%s8890_s11 + $0x10] sm:$0xff] %v4701_v12  ;;  %v4682_v23 = vmul.f32 %v4668_v52, %v4654_v42  ;;  %v4706_v48 = vadd.f32 %v4692_v27, %v4678_v58  ;;  %v4683_v60 = vmul.f32 %v4669_v54, %v4655_v21  ;;  %v4707_v55 = vadd.f32 %v4693_v8, %v4679_v57 }
 0xad1   : > { %4716 = vst.msk [vmem:[%s8890_s11 + $0x18] sm:$0xff] %vm4483_vm2, %v4702_v30  ;;  %v4684_v14 = vmul.f32 %v4670_v41, %v4656_v32  ;;  %v4708_v17 = vadd.f32 %v4694_v16, %v4680_v51  ;;  %v4709_v35 = vadd.f32 %v4695_v11, %v4681_v2 }
 0xad2   : > { %4717 = vst [vmem:[%s8890_s11 + $0x20] sm:$0xff] %v4703_v9  ;;  %v4710_v7 = vadd.f32 %v4696_v10, %v4682_v23  ;;  %v4711_v40 = vadd.f32 %v4697_v22, %v4683_v60 }
 0xad3   : > { %4718 = vst.msk [vmem:[%s8890_s11 + $0x28] sm:$0xff] %vm4483_vm2, %v4704_v61  ;;  %v4712_v5 = vadd.f32 %v4698_v44, %v4684_v14 }
 0xad4   : > { %4719 = vst [vmem:[%s8890_s11 + $0x30] sm:$0xff] %v4705_v37 }
 0xad5   : > { %4720 = vst.msk [vmem:[%s8890_s11 + $0x38] sm:$0xff] %vm4483_vm2, %v4706_v48 }
 0xad6   : > { %4721 = vst [vmem:[%s8890_s11 + $0x40] sm:$0xff] %v4707_v55 }
 0xad7   : > { %4722 = vst.msk [vmem:[%s8890_s11 + $0x48] sm:$0xff] %vm4483_vm2, %v4708_v17 }
 0xad8   : > { %4723 = vst [vmem:[%s8890_s11 + $0x50] sm:$0xff] %v4709_v35 }
 0xad9   : > { %4724 = vst.msk [vmem:[%s8890_s11 + $0x58] sm:$0xff] %vm4483_vm2, %v4710_v7 }
 0xada   : > { %4725 = vst [vmem:[%s8890_s11 + $0x60] sm:$0x1] %v4711_v40 }
 0xadb   : > { %4726 = vst.msk [vmem:[%s8890_s11 + $0x68] sm:$0x1] %vm4510_vm4, %v4712_v5 }
 0xadc PF: > { %s23_s30 = sadd.s32 1, %s5700_s30  }
 0xadd   : > { %p20_p8 = scmp.ge.s32.totalorder %s23_s30, 4  }
 0xadf   :  { %22 = sbr.rel (!%p20_p8) target bundleno = 4 (0x4), region = 118 }
 0xae4   :  { %4748 = vsyncpa [#allocation3], 1 }
 0xae5   :  { %4750 = vsyncpa [#allocation3 + $0x1], 1 }
 0xae6   :  { %4751 = vsyncpa [#allocation5], 1 }
 0xae7   :  { %4752 = vsyncpa [#allocation8], 1 }
 0xae8   :  { %4753 = vsyncpa [#allocation11], 1 }

</bundles_post_ra>
